<compile_context>
chip_gen: v5e
topology: v5e:2x2
jax: 0.10.0
libtpu: 0.0.40
codegen_flags: <defaults>
</compile_context>

<pallas_src>
import functools
import numpy as np
import jax
import jax.numpy as jnp
from jax.experimental import pallas as pl
from jax.experimental.pallas import tpu as pltpu

# ---------------- config (scaled-down SwinV2) ----------------
IMG = 32
IN_CH = 3
PATCH = 4
EMBED_DIM = 32
DEPTHS = (2, 2)
HEADS = (2, 4)
WINDOW = 4
MLP_RATIO = 4
CPB_HIDDEN = 32
NUM_CLASSES = 5          # stands in for len(le.classes_)
LN_EPS = 1e-5


# ---------------- small helpers ----------------
def _row_tile(M, cap=512):
    """Largest multiple-of-8 divisor of M that is <= cap and < M (so the row grid has
    >=2 'parallel' steps and both v7x TensorCores get work); falls back to M."""
    best = None
    t = 8
    while t <= min(cap, M - 1):
        if M % t == 0:
            best = t
        t += 8
    return best if best is not None else M


def _ln(x, g, b):
    mu = jnp.mean(x, axis=-1, keepdims=True)
    var = jnp.mean((x - mu) * (x - mu), axis=-1, keepdims=True)
    return (x - mu) * jax.lax.rsqrt(var + LN_EPS) * g + b


def _bf16_dot(a, b):
    # MXU native dtype is bf16 on v5e/v6e/v7x; accumulate in f32.
    return jnp.dot(a.astype(jnp.bfloat16), b.astype(jnp.bfloat16),
                   preferred_element_type=jnp.float32)


# ---------------- fused Pallas kernels ----------------
def _mm_ln_kernel(x_ref, w_ref, b_ref, g_ref, beta_ref, o_ref):
    # LayerNorm fused into the matmul epilogue (patch embed / patch merging).
    y = _bf16_dot(x_ref[...], w_ref[...]) + b_ref[...]
    o_ref[...] = _ln(y, g_ref[...], beta_ref[...])


def matmul_ln(x, w, b, g, beta):
    M, K = x.shape
    N = w.shape[1]
    tm = _row_tile(M)
    return pl.pallas_call(
        _mm_ln_kernel,
        out_shape=jax.ShapeDtypeStruct((M, N), jnp.float32),
        grid=(M // tm,),
        in_specs=[pl.BlockSpec((tm, K), lambda i: (i, 0)),
                  pl.BlockSpec((K, N), lambda i: (0, 0)),
                  pl.BlockSpec((1, N), lambda i: (0, 0)),
                  pl.BlockSpec((1, N), lambda i: (0, 0)),
                  pl.BlockSpec((1, N), lambda i: (0, 0))],
        out_specs=pl.BlockSpec((tm, N), lambda i: (i, 0)),
        compiler_params=pltpu.CompilerParams(dimension_semantics=("parallel",)),
    )(x, w, b.reshape(1, N), g.reshape(1, N), beta.reshape(1, N))


def _mlp_kernel(x_ref, w1_ref, b1_ref, w2_ref, b2_ref, g_ref, beta_ref, o_ref):
    # x + LN2(fc2(GELU(fc1(x))))  -- SwinV2 post-norm residual, fully fused.
    x = x_ref[...]
    h = _bf16_dot(x, w1_ref[...]) + b1_ref[...]
    # TODO(synk): HF Swinv2 uses exact (erf) GELU; tanh-approx kept for robust TPU EUP lowering.
    h = jax.nn.gelu(h, approximate=True)
    h = _bf16_dot(h, w2_ref[...]) + b2_ref[...]
    o_ref[...] = x + _ln(h, g_ref[...], beta_ref[...])


def mlp_block(x, p):
    M, C = x.shape
    Hd = p["fc1_w"].shape[1]
    tm = _row_tile(M)
    return pl.pallas_call(
        _mlp_kernel,
        out_shape=jax.ShapeDtypeStruct((M, C), jnp.float32),
        grid=(M // tm,),
        in_specs=[pl.BlockSpec((tm, C), lambda i: (i, 0)),
                  pl.BlockSpec((C, Hd), lambda i: (0, 0)),
                  pl.BlockSpec((1, Hd), lambda i: (0, 0)),
                  pl.BlockSpec((Hd, C), lambda i: (0, 0)),
                  pl.BlockSpec((1, C), lambda i: (0, 0)),
                  pl.BlockSpec((1, C), lambda i: (0, 0)),
                  pl.BlockSpec((1, C), lambda i: (0, 0))],
        out_specs=pl.BlockSpec((tm, C), lambda i: (i, 0)),
        compiler_params=pltpu.CompilerParams(dimension_semantics=("parallel",)),
    )(x, p["fc1_w"], p["fc1_b"].reshape(1, Hd), p["fc2_w"], p["fc2_b"].reshape(1, C),
      p["norm2_g"].reshape(1, C), p["norm2_b"].reshape(1, C))


def _attn_block_kernel(x_ref, qkv_w_ref, qkv_b_ref, proj_w_ref, proj_b_ref,
                       g_ref, beta_ref, bias_ref, scale_ref, o_ref,
                       *, nW, N, C, heads):
    """Fused shifted-window attention block for one batch element:
       fused-QKV matmul -> per-head cosine attention (+CPB bias, +shift mask) ->
       softmax -> @V -> output projection -> post-LayerNorm -> residual add.
       All intermediates live in vregs/VMEM; no HBM round-trips inside the block."""
    D = C // heads
    x = x_ref[...].reshape(nW * N, C)                                   # [nW*N, C]
    qkv = _bf16_dot(x, qkv_w_ref[...]) + qkv_b_ref[...]                 # [nW*N, 3C]
    qkv = qkv.reshape(nW, N, 3 * C)

    head_out = []
    for h in range(heads):                                              # static unroll
        q = qkv[:, :, h * D:(h + 1) * D]                                # [nW, N, D]
        k = qkv[:, :, C + h * D:C + (h + 1) * D]
        v = qkv[:, :, 2 * C + h * D:2 * C + (h + 1) * D]
        # cosine attention (SwinV2) -- keep normalization/softmax math in f32
        qn = q * jax.lax.rsqrt(jnp.sum(q * q, axis=-1, keepdims=True) + 1e-6)
        kn = k * jax.lax.rsqrt(jnp.sum(k * k, axis=-1, keepdims=True) + 1e-6)
        attn = jax.lax.dot_general(qn.astype(jnp.bfloat16), kn.astype(jnp.bfloat16),
                                   (((2,), (2,)), ((0,), (0,))),
                                   preferred_element_type=jnp.float32)  # [nW, N, N]
        attn = attn * scale_ref[h] + bias_ref[h]                        # per-head scale + bias/mask
        attn = attn - jnp.max(attn, axis=-1, keepdims=True)
        pexp = jnp.exp(attn)
        probs = pexp * pl.reciprocal(jnp.sum(pexp, axis=-1, keepdims=True), approx=True)
        head_out.append(
            jax.lax.dot_general(probs.astype(jnp.bfloat16), v.astype(jnp.bfloat16),
                                (((2,), (1,)), ((0,), (0,))),
                                preferred_element_type=jnp.float32))    # [nW, N, D]

    out = jnp.concatenate(head_out, axis=-1).reshape(nW * N, C)         # merge heads
    out = _bf16_dot(out, proj_w_ref[...]) + proj_b_ref[...]
    out = _ln(out, g_ref[...], beta_ref[...])                           # SwinV2 post-norm
    o_ref[...] = (x + out).reshape(1, nW, N, C)                         # residual (window coords)


def attention_block(windows, p, c, heads):
    B, nW, N, C = windows.shape
    kernel = functools.partial(_attn_block_kernel, nW=nW, N=N, C=C, heads=heads)

    def w_spec(shape):
        return pl.BlockSpec(shape, lambda b: (0,) * len(shape))

    return pl.pallas_call(
        kernel,
        out_shape=jax.ShapeDtypeStruct((B, nW, N, C), jnp.float32),
        grid=(B,),
        in_specs=[pl.BlockSpec((1, nW, N, C), lambda b: (b, 0, 0, 0)),   # x (windows)
                  w_spec((C, 3 * C)),                                    # fused qkv weight
                  w_spec((1, 3 * C)),                                    # fused qkv bias
                  w_spec((C, C)),                                        # proj weight
                  w_spec((1, C)),                                        # proj bias
                  w_spec((1, C)),                                        # norm1 gamma
                  w_spec((1, C)),                                        # norm1 beta
                  w_spec((heads, nW, N, N)),                             # CPB bias + shift mask (B-independent)
                  w_spec((heads, 1, 1))],                                # clamped logit scale per head
        out_specs=pl.BlockSpec((1, nW, N, C), lambda b: (b, 0, 0, 0)),
        compiler_params=pltpu.CompilerParams(dimension_semantics=("parallel",)),
    )(windows, c["qkv_w"], c["qkv_b"], p["proj_w"], p["proj_b"].reshape(1, C),
      p["norm1_g"].reshape(1, C), p["norm1_b"].reshape(1, C),
      c["bias_mask"], c["scale"])


def _tail_kernel(x_ref, g_ref, beta_ref, w_ref, cb_ref, o_ref):
    # final LayerNorm -> mean pool over tokens (HF pooler) -> Tanh -> Linear classifier
    xn = _ln(x_ref[...], g_ref[...], beta_ref[...])          # [B, L, C]
    pooled = jnp.mean(xn, axis=1)                            # [B, C]
    o_ref[...] = _bf16_dot(jnp.tanh(pooled), w_ref[...]) + cb_ref[...]


def tail(h, params):
    B, L, C = h.shape
    NC = params["cls_w"].shape[1]

    def fs(shape):
        return pl.BlockSpec(shape, lambda i: (0,) * len(shape))

    return pl.pallas_call(
        _tail_kernel,
        out_shape=jax.ShapeDtypeStruct((B, NC), jnp.float32),
        grid=(1,),
        in_specs=[fs((B, L, C)), fs((1, C)), fs((1, C)), fs((C, NC)), fs((1, NC))],
        out_specs=fs((B, NC)),
        compiler_params=pltpu.CompilerParams(dimension_semantics=("arbitrary",)),
    )(h, params["norm_g"].reshape(1, C), params["norm_b"].reshape(1, C),
      params["cls_w"], params["cls_b"].reshape(1, NC))


# ---------------- JAX glue (permutations, bias tables) ----------------
def window_partition(x, ws):
    B, H, W, C = x.shape
    x = x.reshape(B, H // ws, ws, W // ws, ws, C)
    x = jnp.transpose(x, (0, 1, 3, 2, 4, 5))
    return x.reshape(B, (H // ws) * (W // ws), ws * ws, C)


def window_reverse(w, ws, H, W):
    B, nW, N, C = w.shape
    x = w.reshape(B, H // ws, W // ws, ws, ws, C)
    return jnp.transpose(x, (0, 1, 3, 2, 4, 5)).reshape(B, H, W, C)


def relative_coords_table(ws):
    r = np.arange(-(ws - 1), ws, dtype=np.float32)
    tbl = np.stack(np.meshgrid(r, r, indexing="ij"), axis=-1)   # [2ws-1, 2ws-1, 2]
    tbl = tbl / max(ws - 1, 1)
    tbl = tbl * 8.0
    tbl = np.sign(tbl) * np.log2(np.abs(tbl) + 1.0) / np.log2(8.0)
    return jnp.asarray(tbl.reshape(-1, 2))


def relative_position_index(ws):
    coords = np.stack(np.meshgrid(np.arange(ws), np.arange(ws), indexing="ij"))
    flat = coords.reshape(2, -1)
    rel = flat[:, :, None] - flat[:, None, :]
    rel = rel.transpose(1, 2, 0) + (ws - 1)
    idx = rel[..., 0] * (2 * ws - 1) + rel[..., 1]
    return jnp.asarray(idx.reshape(-1))


def compute_cpb_bias(p, ws, num_heads):
    table = relative_coords_table(ws)                                  # [(2ws-1)^2, 2]
    h = jnp.maximum(table @ p["cpb_w1"] + p["cpb_b1"], 0.0)
    bias_table = h @ p["cpb_w2"]                                       # [(2ws-1)^2, H]
    idx = relative_position_index(ws)
    bias = bias_table[idx].reshape(ws * ws, ws * ws, num_heads)
    bias = jnp.transpose(bias, (2, 0, 1))
    return 16.0 * jax.nn.sigmoid(bias)                                 # [H, N, N]


def build_attn_mask(H, W, ws, shift):
    img = np.zeros((1, H, W, 1), np.float32)
    cnt = 0
    for hs in (slice(0, -ws), slice(-ws, -shift), slice(-shift, None)):
        for wsl in (slice(0, -ws), slice(-ws, -shift), slice(-shift, None)):
            img[:, hs, wsl, :] = cnt
            cnt += 1
    mw = window_partition(jnp.asarray(img), ws).reshape(-1, ws * ws)   # [nW, N]
    m = mw[:, None, :] - mw[:, :, None]
    return jnp.where(m != 0, -100.0, 0.0)                              # [nW, N, N]


def precompute_block_constants(params):
    """Hoists parameter-only work out of the per-forward trace: the CPB-bias MLP,
    the shifted-window mask, the fused (C,3C) QKV weight/bias, and the clamped
    exp(logit_scale). All results are small and batch-independent."""
    consts = []
    dims = (IMG // PATCH, IMG // PATCH)
    for si in range(len(DEPTHS)):
        heads = HEADS[si]
        ws = min(WINDOW, min(dims))
        nW = (dims[0] // ws) * (dims[1] // ws)
        N = ws * ws
        blocks = []
        for bi in range(DEPTHS[si]):
            p = params["stages"][si]["blocks"][bi]
            shift = 0 if (bi % 2 == 0 or min(dims) <= WINDOW) else WINDOW // 2
            bias = compute_cpb_bias(p, ws, heads)                              # [H, N, N]
            if shift > 0:
                mask = build_attn_mask(dims[0], dims[1], ws, shift)            # [nW, N, N]
            else:
                mask = jnp.zeros((nW, N, N), jnp.float32)
            bias_mask = bias[:, None, :, :] + mask[None, :, :, :]              # [H, nW, N, N]
            scale = jnp.exp(jnp.minimum(p["logit_scale"], np.log(1.0 / 0.01)))
            scale = scale.astype(jnp.float32).reshape(heads, 1, 1)
            C = p["q_w"].shape[0]
            qkv_w = jnp.concatenate([p["q_w"], p["k_w"], p["v_w"]], axis=1)    # [C, 3C]
            qkv_b = jnp.concatenate([p["q_b"], p["k_b"], p["v_b"]],
                                    axis=0).reshape(1, 3 * C)
            blocks.append(dict(bias_mask=bias_mask, scale=scale, qkv_w=qkv_w, qkv_b=qkv_b))
        consts.append(blocks)
        if si < len(DEPTHS) - 1:
            dims = (dims[0] // 2, dims[1] // 2)
    return consts


# ---------------- model forward ----------------
def swin_block(x, dims, p, c, ws, shift, heads):
    B, L, C = x.shape
    H, W = dims
    h = x.reshape(B, H, W, C)
    if shift > 0:
        h = jnp.roll(h, (-shift, -shift), axis=(1, 2))
    windows = window_partition(h, ws)                    # [B, nW, N, C]
    # fused attention block (includes post-LN + residual, done in window coordinates;
    # roll/partition are permutations so LN + residual commute with them)
    win_out = attention_block(windows, p, c, heads)
    h = window_reverse(win_out, ws, H, W)
    if shift > 0:
        h = jnp.roll(h, (shift, shift), axis=(1, 2))
    x = h.reshape(B * L, C)
    x = mlp_block(x, p)                                  # fused MLP + post-LN + residual
    return x.reshape(B, L, C)


def patch_embed(x, p):
    # x: NCHW [B, 3, IMG, IMG]
    B, Cin, H, W = x.shape
    ps = PATCH
    x = jnp.transpose(x, (0, 2, 3, 1))                   # NHWC
    x = x.reshape(B, H // ps, ps, W // ps, ps, Cin)
    x = jnp.transpose(x, (0, 1, 3, 2, 4, 5)).reshape(B * (H // ps) * (W // ps), ps * ps * Cin)
    y = matmul_ln(x, p["proj_w"], p["proj_b"], p["norm_g"], p["norm_b"])
    return y.reshape(B, (H // ps) * (W // ps), EMBED_DIM), (H // ps, W // ps)


def patch_merging(x, dims, p):
    B, L, C = x.shape
    H, W = dims
    x = x.reshape(B, H, W, C)
    x0 = x[:, 0::2, 0::2, :]
    x1 = x[:, 1::2, 0::2, :]
    x2 = x[:, 0::2, 1::2, :]
    x3 = x[:, 1::2, 1::2, :]
    x = jnp.concatenate([x0, x1, x2, x3], axis=-1).reshape(B * (H // 2) * (W // 2), 4 * C)
    x = matmul_ln(x, p["red_w"], p["red_b"], p["norm_g"], p["norm_b"])   # 4C -> 2C, then LN
    return x.reshape(B, (H // 2) * (W // 2), 2 * C), (H // 2, W // 2)


def forward(x, params, consts):
    h, dims = patch_embed(x, params["patch_embed"])
    for si in range(len(DEPTHS)):
        stage = params["stages"][si]
        heads = HEADS[si]
        ws = min(WINDOW, min(dims))
        for bi in range(DEPTHS[si]):
            shift = 0 if (bi % 2 == 0 or min(dims) <= WINDOW) else WINDOW // 2
            h = swin_block(h, dims, stage["blocks"][bi], consts[si][bi], ws, shift, heads)
        if si < len(DEPTHS) - 1:
            h, dims = patch_merging(h, dims, stage["downsample"])
    return tail(h, params)   # fused final LN + mean pool + tanh + classifier


# ---------------- deterministic parameter init ----------------
class KeyGen:
    def __init__(self, key):
        self.key = key
        self.i = 0

    def __call__(self):
        self.i += 1
        return jax.random.fold_in(self.key, self.i)


def init_params(key):
    kg = KeyGen(key)

    def lin(fi, fo, zero_b=False):
        w = jax.random.normal(kg(), (fi, fo), jnp.float32) * 0.02
        b = (jnp.zeros((fo,), jnp.float32) if zero_b
             else jax.random.normal(kg(), (fo,), jnp.float32) * 0.02)
        return w, b

    params = {}
    pw, pb = lin(PATCH * PATCH * IN_CH, EMBED_DIM)
    params["patch_embed"] = dict(proj_w=pw, proj_b=pb,
                                 norm_g=jnp.ones((EMBED_DIM,), jnp.float32),
                                 norm_b=jnp.zeros((EMBED_DIM,), jnp.float32))
    stages = []
    C = EMBED_DIM
    for si in range(len(DEPTHS)):
        heads = HEADS[si]
        blocks = []
        for _ in range(DEPTHS[si]):
            qw, qb = lin(C, C)
            kw, _ = lin(C, C)
            vw, vb = lin(C, C)
            prw, prb = lin(C, C)
            f1w, f1b = lin(C, MLP_RATIO * C)
            f2w, f2b = lin(MLP_RATIO * C, C)
            c1w, c1b = lin(2, CPB_HIDDEN)
            c2w, _ = lin(CPB_HIDDEN, heads)
            blocks.append(dict(
                q_w=qw, q_b=qb, k_w=kw, k_b=jnp.zeros((C,), jnp.float32),
                v_w=vw, v_b=vb, proj_w=prw, proj_b=prb,
                logit_scale=jnp.full((heads,), np.log(10.0), jnp.float32),
                cpb_w1=c1w, cpb_b1=c1b, cpb_w2=c2w,
                norm1_g=jnp.ones((C,), jnp.float32), norm1_b=jnp.zeros((C,), jnp.float32),
                fc1_w=f1w, fc1_b=f1b, fc2_w=f2w, fc2_b=f2b,
                norm2_g=jnp.ones((C,), jnp.float32), norm2_b=jnp.zeros((C,), jnp.float32)))
        st = dict(blocks=blocks)
        if si < len(DEPTHS) - 1:
            rw, _ = lin(4 * C, 2 * C)
            st["downsample"] = dict(red_w=rw, red_b=jnp.zeros((2 * C,), jnp.float32),
                                    norm_g=jnp.ones((2 * C,), jnp.float32),
                                    norm_b=jnp.zeros((2 * C,), jnp.float32))
            C = 2 * C
        stages.append(st)
    params["stages"] = stages
    params["norm_g"] = jnp.ones((C,), jnp.float32)
    params["norm_b"] = jnp.zeros((C,), jnp.float32)
    cw, cb = lin(C, NUM_CLASSES)
    params["cls_w"] = cw
    params["cls_b"] = cb
    return params


if __name__ == "__main__":
    key = jax.random.PRNGKey(0)
    params = init_params(key)
    consts = precompute_block_constants(params)   # hoisted param-derived constants
    x = jax.random.normal(jax.random.fold_in(key, 999), (2, IN_CH, IMG, IMG), jnp.float32)

    fwd = jax.jit(forward)
    out = jax.block_until_ready(fwd(x, params, consts))
    assert out.shape == (2, NUM_CLASSES), out.shape
    assert bool(jnp.all(jnp.isfinite(out)))
    print("KERNEL_OK")
</pallas_src>

<mosaic_0001>
module attributes {stable_mosaic.version = 11 : i64} {
  func.func @_mm_ln_kernel(%arg0: i32, %arg1: memref<64x48xf32, #tpu.memory_space<vmem>>, %arg2: memref<48x32xf32, #tpu.memory_space<vmem>>, %arg3: memref<1x32xf32, #tpu.memory_space<vmem>>, %arg4: memref<1x32xf32, #tpu.memory_space<vmem>>, %arg5: memref<1x32xf32, #tpu.memory_space<vmem>>, %arg6: memref<64x32xf32, #tpu.memory_space<vmem>>) attributes {dimension_semantics = [#tpu.dimension_semantics<parallel>], iteration_bounds = array<i64: 2>, scalar_prefetch = 0 : i64, scratch_operands = 0 : i64, tpu.core_type = #tpu.core_type<tc>, window_params = [{transform_indices = @transform_0, window_bounds = array<i64: 64, 48>}, {pipeline_mode = #tpu.pipeline_mode<synchronous>, transform_indices = @transform_1, window_bounds = array<i64: 48, 32>}, {pipeline_mode = #tpu.pipeline_mode<synchronous>, transform_indices = @transform_2, window_bounds = array<i64: 1, 32>}, {pipeline_mode = #tpu.pipeline_mode<synchronous>, transform_indices = @transform_3, window_bounds = array<i64: 1, 32>}, {pipeline_mode = #tpu.pipeline_mode<synchronous>, transform_indices = @transform_4, window_bounds = array<i64: 1, 32>}, {transform_indices = @transform_5, window_bounds = array<i64: 64, 32>}]} {
    %c0 = arith.constant 0 : index
    %c0_0 = arith.constant 0 : index
    %0 = vector.load %arg1[%c0, %c0_0] : memref<64x48xf32, #tpu.memory_space<vmem>>, vector<64x48xf32>
    %c0_1 = arith.constant 0 : index
    %c0_2 = arith.constant 0 : index
    %1 = vector.load %arg2[%c0_1, %c0_2] : memref<48x32xf32, #tpu.memory_space<vmem>>, vector<48x32xf32>
    %2 = arith.truncf %0 : vector<64x48xf32> to vector<64x48xbf16>
    %3 = arith.truncf %1 : vector<48x32xf32> to vector<48x32xbf16>
    %cst = arith.constant dense<0.000000e+00> : vector<64x32xf32>
    %4 = tpu.matmul %2, %3, %cst {dimension_numbers = #tpu.dot_dimension_numbers<[1], [0], [0], [1], [0, 0, 1, 1], [], []>} : vector<64x48xbf16>, vector<48x32xbf16>, vector<64x32xf32> -> vector<64x32xf32>
    %c0_3 = arith.constant 0 : index
    %c0_4 = arith.constant 0 : index
    %5 = vector.load %arg3[%c0_3, %c0_4] : memref<1x32xf32, #tpu.memory_space<vmem>>, vector<1x32xf32>
    %6 = vector.broadcast %5 : vector<1x32xf32> to vector<64x32xf32>
    %7 = arith.addf %4, %6 : vector<64x32xf32>
    %c0_5 = arith.constant 0 : index
    %c0_6 = arith.constant 0 : index
    %8 = vector.load %arg4[%c0_5, %c0_6] : memref<1x32xf32, #tpu.memory_space<vmem>>, vector<1x32xf32>
    %c0_7 = arith.constant 0 : index
    %c0_8 = arith.constant 0 : index
    %9 = vector.load %arg5[%c0_7, %c0_8] : memref<1x32xf32, #tpu.memory_space<vmem>>, vector<1x32xf32>
    %cst_9 = arith.constant dense<0.000000e+00> : vector<64xf32>
    %10 = vector.multi_reduction <add>, %7, %cst_9 [1] : vector<64x32xf32> to vector<64xf32>
    %11 = vector.shape_cast %10 : vector<64xf32> to vector<64x1xf32>
    %cst_10 = arith.constant 3.200000e+01 : f32
    %12 = vector.broadcast %cst_10 : f32 to vector<64x1xf32>
    %13 = arith.divf %11, %12 : vector<64x1xf32>
    %14 = vector.broadcast %13 : vector<64x1xf32> to vector<64x32xf32>
    %15 = arith.subf %7, %14 : vector<64x32xf32>
    %16 = vector.broadcast %13 : vector<64x1xf32> to vector<64x32xf32>
    %17 = arith.subf %7, %16 : vector<64x32xf32>
    %18 = arith.mulf %15, %17 : vector<64x32xf32>
    %cst_11 = arith.constant dense<0.000000e+00> : vector<64xf32>
    %19 = vector.multi_reduction <add>, %18, %cst_11 [1] : vector<64x32xf32> to vector<64xf32>
    %20 = vector.shape_cast %19 : vector<64xf32> to vector<64x1xf32>
    %cst_12 = arith.constant 3.200000e+01 : f32
    %21 = vector.broadcast %cst_12 : f32 to vector<64x1xf32>
    %22 = arith.divf %20, %21 : vector<64x1xf32>
    %23 = vector.broadcast %13 : vector<64x1xf32> to vector<64x32xf32>
    %24 = arith.subf %7, %23 : vector<64x32xf32>
    %cst_13 = arith.constant 9.99999974E-6 : f32
    %25 = vector.broadcast %cst_13 : f32 to vector<64x1xf32>
    %26 = arith.addf %22, %25 : vector<64x1xf32>
    %27 = math.rsqrt %26 : vector<64x1xf32>
    %28 = vector.broadcast %27 : vector<64x1xf32> to vector<64x32xf32>
    %29 = arith.mulf %24, %28 : vector<64x32xf32>
    %30 = vector.broadcast %8 : vector<1x32xf32> to vector<64x32xf32>
    %31 = arith.mulf %29, %30 : vector<64x32xf32>
    %32 = vector.broadcast %9 : vector<1x32xf32> to vector<64x32xf32>
    %33 = arith.addf %31, %32 : vector<64x32xf32>
    %c0_14 = arith.constant 0 : index
    %c0_15 = arith.constant 0 : index
    %34 = vector.load %arg6[%c0_14, %c0_15] : memref<64x32xf32, #tpu.memory_space<vmem>>, vector<64x32xf32>
    tpu.vector_store %arg6[%c0_14, %c0_15], %33 {strides = array<i32>} : memref<64x32xf32, #tpu.memory_space<vmem>>, vector<64x32xf32>,
    return
  }
  func.func @transform_0(%arg0: i32) -> (i32, i32) {
    %c0_i32 = arith.constant 0 : i32
    %c0_i32_0 = arith.constant 0 : i32
    return %arg0, %c0_i32 : i32, i32
  }
  func.func @transform_1(%arg0: i32) -> (i32, i32) {
    %c0_i32 = arith.constant 0 : i32
    %c0_i32_0 = arith.constant 0 : i32
    %c0_i32_1 = arith.constant 0 : i32
    return %c0_i32, %c0_i32_0 : i32, i32
  }
  func.func @transform_2(%arg0: i32) -> (i32, i32) {
    %c0_i32 = arith.constant 0 : i32
    %c0_i32_0 = arith.constant 0 : i32
    %c0_i32_1 = arith.constant 0 : i32
    return %c0_i32, %c0_i32_0 : i32, i32
  }
  func.func @transform_3(%arg0: i32) -> (i32, i32) {
    %c0_i32 = arith.constant 0 : i32
    %c0_i32_0 = arith.constant 0 : i32
    %c0_i32_1 = arith.constant 0 : i32
    return %c0_i32, %c0_i32_0 : i32, i32
  }
  func.func @transform_4(%arg0: i32) -> (i32, i32) {
    %c0_i32 = arith.constant 0 : i32
    %c0_i32_0 = arith.constant 0 : i32
    %c0_i32_1 = arith.constant 0 : i32
    return %c0_i32, %c0_i32_0 : i32, i32
  }
  func.func @transform_5(%arg0: i32) -> (i32, i32) {
    %c0_i32 = arith.constant 0 : i32
    %c0_i32_0 = arith.constant 0 : i32
    return %arg0, %c0_i32 : i32, i32
  }
}

module attributes {stable_mosaic.version = 11 : i64} {
  func.func @_attn_block_kernel(%arg0: i32, %arg1: memref<1x4x16x32xf32, #tpu.memory_space<vmem>>, %arg2: memref<32x96xf32, #tpu.memory_space<vmem>>, %arg3: memref<1x96xf32, #tpu.memory_space<vmem>>, %arg4: memref<32x32xf32, #tpu.memory_space<vmem>>, %arg5: memref<1x32xf32, #tpu.memory_space<vmem>>, %arg6: memref<1x32xf32, #tpu.memory_space<vmem>>, %arg7: memref<1x32xf32, #tpu.memory_space<vmem>>, %arg8: memref<2x4x16x16xf32, #tpu.memory_space<vmem>>, %arg9: memref<2x1x1xf32, #tpu.memory_space<vmem>>, %arg10: memref<1x4x16x32xf32, #tpu.memory_space<vmem>>) attributes {dimension_semantics = [#tpu.dimension_semantics<parallel>], iteration_bounds = array<i64: 2>, scalar_prefetch = 0 : i64, scratch_operands = 0 : i64, tpu.core_type = #tpu.core_type<tc>, window_params = [{transform_indices = @transform_0, window_bounds = array<i64: 1, 4, 16, 32>}, {pipeline_mode = #tpu.pipeline_mode<synchronous>, transform_indices = @transform_1, window_bounds = array<i64: 32, 96>}, {pipeline_mode = #tpu.pipeline_mode<synchronous>, transform_indices = @transform_2, window_bounds = array<i64: 1, 96>}, {pipeline_mode = #tpu.pipeline_mode<synchronous>, transform_indices = @transform_3, window_bounds = array<i64: 32, 32>}, {pipeline_mode = #tpu.pipeline_mode<synchronous>, transform_indices = @transform_4, window_bounds = array<i64: 1, 32>}, {pipeline_mode = #tpu.pipeline_mode<synchronous>, transform_indices = @transform_5, window_bounds = array<i64: 1, 32>}, {pipeline_mode = #tpu.pipeline_mode<synchronous>, transform_indices = @transform_6, window_bounds = array<i64: 1, 32>}, {pipeline_mode = #tpu.pipeline_mode<synchronous>, transform_indices = @transform_7, window_bounds = array<i64: 2, 4, 16, 16>}, {pipeline_mode = #tpu.pipeline_mode<synchronous>, transform_indices = @transform_8, window_bounds = array<i64: 2, 1, 1>}, {transform_indices = @transform_9, window_bounds = array<i64: 1, 4, 16, 32>}]} {
    %c0 = arith.constant 0 : index
    %c0_0 = arith.constant 0 : index
    %c0_1 = arith.constant 0 : index
    %c0_2 = arith.constant 0 : index
    %0 = vector.load %arg1[%c0, %c0_0, %c0_1, %c0_2] : memref<1x4x16x32xf32, #tpu.memory_space<vmem>>, vector<1x4x16x32xf32>
    %1 = vector.shape_cast %0 : vector<1x4x16x32xf32> to vector<64x32xf32>
    %c0_3 = arith.constant 0 : index
    %c0_4 = arith.constant 0 : index
    %2 = vector.load %arg2[%c0_3, %c0_4] : memref<32x96xf32, #tpu.memory_space<vmem>>, vector<32x96xf32>
    %3 = arith.truncf %1 : vector<64x32xf32> to vector<64x32xbf16>
    %4 = arith.truncf %2 : vector<32x96xf32> to vector<32x96xbf16>
    %cst = arith.constant dense<0.000000e+00> : vector<64x96xf32>
    %5 = tpu.matmul %3, %4, %cst {dimension_numbers = #tpu.dot_dimension_numbers<[1], [0], [0], [1], [0, 0, 1, 1], [], []>} : vector<64x32xbf16>, vector<32x96xbf16>, vector<64x96xf32> -> vector<64x96xf32>
    %c0_5 = arith.constant 0 : index
    %c0_6 = arith.constant 0 : index
    %6 = vector.load %arg3[%c0_5, %c0_6] : memref<1x96xf32, #tpu.memory_space<vmem>>, vector<1x96xf32>
    %7 = vector.broadcast %6 : vector<1x96xf32> to vector<64x96xf32>
    %8 = arith.addf %5, %7 : vector<64x96xf32>
    %9 = vector.shape_cast %8 : vector<64x96xf32> to vector<4x16x96xf32>
    %10 = vector.extract_strided_slice %9 {offsets = [0, 0, 0], sizes = [4, 16, 16], strides = [1, 1, 1]} : vector<4x16x96xf32> to vector<4x16x16xf32>
    %11 = vector.extract_strided_slice %9 {offsets = [0, 0, 32], sizes = [4, 16, 16], strides = [1, 1, 1]} : vector<4x16x96xf32> to vector<4x16x16xf32>
    %12 = vector.extract_strided_slice %9 {offsets = [0, 0, 64], sizes = [4, 16, 16], strides = [1, 1, 1]} : vector<4x16x96xf32> to vector<4x16x16xf32>
    %13 = arith.mulf %10, %10 : vector<4x16x16xf32>
    %cst_7 = arith.constant dense<0.000000e+00> : vector<4x16xf32>
    %14 = vector.multi_reduction <add>, %13, %cst_7 [2] : vector<4x16x16xf32> to vector<4x16xf32>
    %15 = vector.shape_cast %14 : vector<4x16xf32> to vector<4x16x1xf32>
    %cst_8 = arith.constant 9.99999997E-7 : f32
    %16 = vector.broadcast %cst_8 : f32 to vector<4x16x1xf32>
    %17 = arith.addf %15, %16 : vector<4x16x1xf32>
    %18 = math.rsqrt %17 : vector<4x16x1xf32>
    %19 = vector.broadcast %18 : vector<4x16x1xf32> to vector<4x16x16xf32>
    %20 = arith.mulf %10, %19 : vector<4x16x16xf32>
    %21 = arith.mulf %11, %11 : vector<4x16x16xf32>
    %cst_9 = arith.constant dense<0.000000e+00> : vector<4x16xf32>
    %22 = vector.multi_reduction <add>, %21, %cst_9 [2] : vector<4x16x16xf32> to vector<4x16xf32>
    %23 = vector.shape_cast %22 : vector<4x16xf32> to vector<4x16x1xf32>
    %cst_10 = arith.constant 9.99999997E-7 : f32
    %24 = vector.broadcast %cst_10 : f32 to vector<4x16x1xf32>
    %25 = arith.addf %23, %24 : vector<4x16x1xf32>
    %26 = math.rsqrt %25 : vector<4x16x1xf32>
    %27 = vector.broadcast %26 : vector<4x16x1xf32> to vector<4x16x16xf32>
    %28 = arith.mulf %11, %27 : vector<4x16x16xf32>
    %29 = arith.truncf %20 : vector<4x16x16xf32> to vector<4x16x16xbf16>
    %30 = arith.truncf %28 : vector<4x16x16xf32> to vector<4x16x16xbf16>
    %cst_11 = arith.constant dense<0.000000e+00> : vector<4x16x16xf32>
    %31 = tpu.matmul %29, %30, %cst_11 {dimension_numbers = #tpu.dot_dimension_numbers<[2], [2], [1], [1], [0, 0, 0, 1, 1, 1], [0], [0]>} : vector<4x16x16xbf16>, vector<4x16x16xbf16>, vector<4x16x16xf32> -> vector<4x16x16xf32>
    %c0_12 = arith.constant 0 : index
    %c0_13 = arith.constant 0 : index
    %c0_14 = arith.constant 0 : index
    %32 = vector.load %arg9[%c0_12, %c0_13, %c0_14] : memref<2x1x1xf32, #tpu.memory_space<vmem>>, vector<1x1x1xf32>
    %33 = vector.shape_cast %32 : vector<1x1x1xf32> to vector<1x1xf32>
    %34 = vector.shape_cast %33 : vector<1x1xf32> to vector<1x1x1xf32>
    %35 = vector.broadcast %34 : vector<1x1x1xf32> to vector<4x16x16xf32>
    %36 = arith.mulf %31, %35 : vector<4x16x16xf32>
    %c0_15 = arith.constant 0 : index
    %c0_16 = arith.constant 0 : index
    %c0_17 = arith.constant 0 : index
    %c0_18 = arith.constant 0 : index
    %37 = vector.load %arg8[%c0_15, %c0_16, %c0_17, %c0_18] : memref<2x4x16x16xf32, #tpu.memory_space<vmem>>, vector<1x4x16x16xf32>
    %38 = vector.shape_cast %37 : vector<1x4x16x16xf32> to vector<4x16x16xf32>
    %39 = arith.addf %36, %38 : vector<4x16x16xf32>
    %cst_19 = arith.constant dense<0xFF800000> : vector<4x16xf32>
    %40 = vector.multi_reduction <maximumf>, %39, %cst_19 [2] : vector<4x16x16xf32> to vector<4x16xf32>
    %41 = vector.shape_cast %40 : vector<4x16xf32> to vector<4x16x1xf32>
    %42 = vector.broadcast %41 : vector<4x16x1xf32> to vector<4x16x16xf32>
    %43 = arith.subf %39, %42 : vector<4x16x16xf32>
    %44 = math.exp %43 : vector<4x16x16xf32>
    %cst_20 = arith.constant dense<0.000000e+00> : vector<4x16xf32>
    %45 = vector.multi_reduction <add>, %44, %cst_20 [2] : vector<4x16x16xf32> to vector<4x16xf32>
    %46 = vector.shape_cast %45 : vector<4x16xf32> to vector<4x16x1xf32>
    %47 = tpu.reciprocal %46 {approx = true} : vector<4x16x1xf32> -> vector<4x16x1xf32>
    %48 = vector.broadcast %47 : vector<4x16x1xf32> to vector<4x16x16xf32>
    %49 = arith.mulf %44, %48 : vector<4x16x16xf32>
    %50 = arith.truncf %49 : vector<4x16x16xf32> to vector<4x16x16xbf16>
    %51 = arith.truncf %12 : vector<4x16x16xf32> to vector<4x16x16xbf16>
    %cst_21 = arith.constant dense<0.000000e+00> : vector<4x16x16xf32>
    %52 = tpu.matmul %50, %51, %cst_21 {dimension_numbers = #tpu.dot_dimension_numbers<[2], [1], [1], [2], [0, 0, 0, 1, 1, 2], [0], [0]>} : vector<4x16x16xbf16>, vector<4x16x16xbf16>, vector<4x16x16xf32> -> vector<4x16x16xf32>
    %53 = vector.extract_strided_slice %9 {offsets = [0, 0, 16], sizes = [4, 16, 16], strides = [1, 1, 1]} : vector<4x16x96xf32> to vector<4x16x16xf32>
    %54 = vector.extract_strided_slice %9 {offsets = [0, 0, 48], sizes = [4, 16, 16], strides = [1, 1, 1]} : vector<4x16x96xf32> to vector<4x16x16xf32>
    %55 = vector.extract_strided_slice %9 {offsets = [0, 0, 80], sizes = [4, 16, 16], strides = [1, 1, 1]} : vector<4x16x96xf32> to vector<4x16x16xf32>
    %56 = arith.mulf %53, %53 : vector<4x16x16xf32>
    %cst_22 = arith.constant dense<0.000000e+00> : vector<4x16xf32>
    %57 = vector.multi_reduction <add>, %56, %cst_22 [2] : vector<4x16x16xf32> to vector<4x16xf32>
    %58 = vector.shape_cast %57 : vector<4x16xf32> to vector<4x16x1xf32>
    %cst_23 = arith.constant 9.99999997E-7 : f32
    %59 = vector.broadcast %cst_23 : f32 to vector<4x16x1xf32>
    %60 = arith.addf %58, %59 : vector<4x16x1xf32>
    %61 = math.rsqrt %60 : vector<4x16x1xf32>
    %62 = vector.broadcast %61 : vector<4x16x1xf32> to vector<4x16x16xf32>
    %63 = arith.mulf %53, %62 : vector<4x16x16xf32>
    %64 = arith.mulf %54, %54 : vector<4x16x16xf32>
    %cst_24 = arith.constant dense<0.000000e+00> : vector<4x16xf32>
    %65 = vector.multi_reduction <add>, %64, %cst_24 [2] : vector<4x16x16xf32> to vector<4x16xf32>
    %66 = vector.shape_cast %65 : vector<4x16xf32> to vector<4x16x1xf32>
    %cst_25 = arith.constant 9.99999997E-7 : f32
    %67 = vector.broadcast %cst_25 : f32 to vector<4x16x1xf32>
    %68 = arith.addf %66, %67 : vector<4x16x1xf32>
    %69 = math.rsqrt %68 : vector<4x16x1xf32>
    %70 = vector.broadcast %69 : vector<4x16x1xf32> to vector<4x16x16xf32>
    %71 = arith.mulf %54, %70 : vector<4x16x16xf32>
    %72 = arith.truncf %63 : vector<4x16x16xf32> to vector<4x16x16xbf16>
    %73 = arith.truncf %71 : vector<4x16x16xf32> to vector<4x16x16xbf16>
    %cst_26 = arith.constant dense<0.000000e+00> : vector<4x16x16xf32>
    %74 = tpu.matmul %72, %73, %cst_26 {dimension_numbers = #tpu.dot_dimension_numbers<[2], [2], [1], [1], [0, 0, 0, 1, 1, 1], [0], [0]>} : vector<4x16x16xbf16>, vector<4x16x16xbf16>, vector<4x16x16xf32> -> vector<4x16x16xf32>
    %c1 = arith.constant 1 : index
    %c0_27 = arith.constant 0 : index
    %c0_28 = arith.constant 0 : index
    %75 = vector.load %arg9[%c1, %c0_27, %c0_28] : memref<2x1x1xf32, #tpu.memory_space<vmem>>, vector<1x1x1xf32>
    %76 = vector.shape_cast %75 : vector<1x1x1xf32> to vector<1x1xf32>
    %77 = vector.shape_cast %76 : vector<1x1xf32> to vector<1x1x1xf32>
    %78 = vector.broadcast %77 : vector<1x1x1xf32> to vector<4x16x16xf32>
    %79 = arith.mulf %74, %78 : vector<4x16x16xf32>
    %c1_29 = arith.constant 1 : index
    %c0_30 = arith.constant 0 : index
    %c0_31 = arith.constant 0 : index
    %c0_32 = arith.constant 0 : index
    %80 = vector.load %arg8[%c1_29, %c0_30, %c0_31, %c0_32] : memref<2x4x16x16xf32, #tpu.memory_space<vmem>>, vector<1x4x16x16xf32>
    %81 = vector.shape_cast %80 : vector<1x4x16x16xf32> to vector<4x16x16xf32>
    %82 = arith.addf %79, %81 : vector<4x16x16xf32>
    %cst_33 = arith.constant dense<0xFF800000> : vector<4x16xf32>
    %83 = vector.multi_reduction <maximumf>, %82, %cst_33 [2] : vector<4x16x16xf32> to vector<4x16xf32>
    %84 = vector.shape_cast %83 : vector<4x16xf32> to vector<4x16x1xf32>
    %85 = vector.broadcast %84 : vector<4x16x1xf32> to vector<4x16x16xf32>
    %86 = arith.subf %82, %85 : vector<4x16x16xf32>
    %87 = math.exp %86 : vector<4x16x16xf32>
    %cst_34 = arith.constant dense<0.000000e+00> : vector<4x16xf32>
    %88 = vector.multi_reduction <add>, %87, %cst_34 [2] : vector<4x16x16xf32> to vector<4x16xf32>
    %89 = vector.shape_cast %88 : vector<4x16xf32> to vector<4x16x1xf32>
    %90 = tpu.reciprocal %89 {approx = true} : vector<4x16x1xf32> -> vector<4x16x1xf32>
    %91 = vector.broadcast %90 : vector<4x16x1xf32> to vector<4x16x16xf32>
    %92 = arith.mulf %87, %91 : vector<4x16x16xf32>
    %93 = arith.truncf %92 : vector<4x16x16xf32> to vector<4x16x16xbf16>
    %94 = arith.truncf %55 : vector<4x16x16xf32> to vector<4x16x16xbf16>
    %cst_35 = arith.constant dense<0.000000e+00> : vector<4x16x16xf32>
    %95 = tpu.matmul %93, %94, %cst_35 {dimension_numbers = #tpu.dot_dimension_numbers<[2], [1], [1], [2], [0, 0, 0, 1, 1, 2], [0], [0]>} : vector<4x16x16xbf16>, vector<4x16x16xbf16>, vector<4x16x16xf32> -> vector<4x16x16xf32>
    %96 = tpu.concatenate %52, %95 in 2 : vector<4x16x16xf32>, vector<4x16x16xf32> -> vector<4x16x32xf32>
    %97 = vector.shape_cast %96 : vector<4x16x32xf32> to vector<64x32xf32>
    %c0_36 = arith.constant 0 : index
    %c0_37 = arith.constant 0 : index
    %98 = vector.load %arg4[%c0_36, %c0_37] : memref<32x32xf32, #tpu.memory_space<vmem>>, vector<32x32xf32>
    %99 = arith.truncf %97 : vector<64x32xf32> to vector<64x32xbf16>
    %100 = arith.truncf %98 : vector<32x32xf32> to vector<32x32xbf16>
    %cst_38 = arith.constant dense<0.000000e+00> : vector<64x32xf32>
    %101 = tpu.matmul %99, %100, %cst_38 {dimension_numbers = #tpu.dot_dimension_numbers<[1], [0], [0], [1], [0, 0, 1, 1], [], []>} : vector<64x32xbf16>, vector<32x32xbf16>, vector<64x32xf32> -> vector<64x32xf32>
    %c0_39 = arith.constant 0 : index
    %c0_40 = arith.constant 0 : index
    %102 = vector.load %arg5[%c0_39, %c0_40] : memref<1x32xf32, #tpu.memory_space<vmem>>, vector<1x32xf32>
    %103 = vector.broadcast %102 : vector<1x32xf32> to vector<64x32xf32>
    %104 = arith.addf %101, %103 : vector<64x32xf32>
    %c0_41 = arith.constant 0 : index
    %c0_42 = arith.constant 0 : index
    %105 = vector.load %arg6[%c0_41, %c0_42] : memref<1x32xf32, #tpu.memory_space<vmem>>, vector<1x32xf32>
    %c0_43 = arith.constant 0 : index
    %c0_44 = arith.constant 0 : index
    %106 = vector.load %arg7[%c0_43, %c0_44] : memref<1x32xf32, #tpu.memory_space<vmem>>, vector<1x32xf32>
    %cst_45 = arith.constant dense<0.000000e+00> : vector<64xf32>
    %107 = vector.multi_reduction <add>, %104, %cst_45 [1] : vector<64x32xf32> to vector<64xf32>
    %108 = vector.shape_cast %107 : vector<64xf32> to vector<64x1xf32>
    %cst_46 = arith.constant 3.200000e+01 : f32
    %109 = vector.broadcast %cst_46 : f32 to vector<64x1xf32>
    %110 = arith.divf %108, %109 : vector<64x1xf32>
    %111 = vector.broadcast %110 : vector<64x1xf32> to vector<64x32xf32>
    %112 = arith.subf %104, %111 : vector<64x32xf32>
    %113 = vector.broadcast %110 : vector<64x1xf32> to vector<64x32xf32>
    %114 = arith.subf %104, %113 : vector<64x32xf32>
    %115 = arith.mulf %112, %114 : vector<64x32xf32>
    %cst_47 = arith.constant dense<0.000000e+00> : vector<64xf32>
    %116 = vector.multi_reduction <add>, %115, %cst_47 [1] : vector<64x32xf32> to vector<64xf32>
    %117 = vector.shape_cast %116 : vector<64xf32> to vector<64x1xf32>
    %cst_48 = arith.constant 3.200000e+01 : f32
    %118 = vector.broadcast %cst_48 : f32 to vector<64x1xf32>
    %119 = arith.divf %117, %118 : vector<64x1xf32>
    %120 = vector.broadcast %110 : vector<64x1xf32> to vector<64x32xf32>
    %121 = arith.subf %104, %120 : vector<64x32xf32>
    %cst_49 = arith.constant 9.99999974E-6 : f32
    %122 = vector.broadcast %cst_49 : f32 to vector<64x1xf32>
    %123 = arith.addf %119, %122 : vector<64x1xf32>
    %124 = math.rsqrt %123 : vector<64x1xf32>
    %125 = vector.broadcast %124 : vector<64x1xf32> to vector<64x32xf32>
    %126 = arith.mulf %121, %125 : vector<64x32xf32>
    %127 = vector.broadcast %105 : vector<1x32xf32> to vector<64x32xf32>
    %128 = arith.mulf %126, %127 : vector<64x32xf32>
    %129 = vector.broadcast %106 : vector<1x32xf32> to vector<64x32xf32>
    %130 = arith.addf %128, %129 : vector<64x32xf32>
    %131 = arith.addf %1, %130 : vector<64x32xf32>
    %132 = vector.shape_cast %131 : vector<64x32xf32> to vector<1x4x16x32xf32>
    %c0_50 = arith.constant 0 : index
    %c0_51 = arith.constant 0 : index
    %c0_52 = arith.constant 0 : index
    %c0_53 = arith.constant 0 : index
    %133 = vector.load %arg10[%c0_50, %c0_51, %c0_52, %c0_53] : memref<1x4x16x32xf32, #tpu.memory_space<vmem>>, vector<1x4x16x32xf32>
    tpu.vector_store %arg10[%c0_50, %c0_51, %c0_52, %c0_53], %132 {strides = array<i32>} : memref<1x4x16x32xf32, #tpu.memory_space<vmem>>, vector<1x4x16x32xf32>,
    return
  }
  func.func @transform_0(%arg0: i32) -> (i32, i32, i32, i32) {
    %c0_i32 = arith.constant 0 : i32
    %c0_i32_0 = arith.constant 0 : i32
    %c0_i32_1 = arith.constant 0 : i32
    %c0_i32_2 = arith.constant 0 : i32
    return %arg0, %c0_i32, %c0_i32_0, %c0_i32_1 : i32, i32, i32, i32
  }
  func.func @transform_1(%arg0: i32) -> (i32, i32) {
    %c0_i32 = arith.constant 0 : i32
    %c0_i32_0 = arith.constant 0 : i32
    %c0_i32_1 = arith.constant 0 : i32
    return %c0_i32, %c0_i32_0 : i32, i32
  }
  func.func @transform_2(%arg0: i32) -> (i32, i32) {
    %c0_i32 = arith.constant 0 : i32
    %c0_i32_0 = arith.constant 0 : i32
    %c0_i32_1 = arith.constant 0 : i32
    return %c0_i32, %c0_i32_0 : i32, i32
  }
  func.func @transform_3(%arg0: i32) -> (i32, i32) {
    %c0_i32 = arith.constant 0 : i32
    %c0_i32_0 = arith.constant 0 : i32
    %c0_i32_1 = arith.constant 0 : i32
    return %c0_i32, %c0_i32_0 : i32, i32
  }
  func.func @transform_4(%arg0: i32) -> (i32, i32) {
    %c0_i32 = arith.constant 0 : i32
    %c0_i32_0 = arith.constant 0 : i32
    %c0_i32_1 = arith.constant 0 : i32
    return %c0_i32, %c0_i32_0 : i32, i32
  }
  func.func @transform_5(%arg0: i32) -> (i32, i32) {
    %c0_i32 = arith.constant 0 : i32
    %c0_i32_0 = arith.constant 0 : i32
    %c0_i32_1 = arith.constant 0 : i32
    return %c0_i32, %c0_i32_0 : i32, i32
  }
  func.func @transform_6(%arg0: i32) -> (i32, i32) {
    %c0_i32 = arith.constant 0 : i32
    %c0_i32_0 = arith.constant 0 : i32
    %c0_i32_1 = arith.constant 0 : i32
    return %c0_i32, %c0_i32_0 : i32, i32
  }
  func.func @transform_7(%arg0: i32) -> (i32, i32, i32, i32) {
    %c0_i32 = arith.constant 0 : i32
    %c0_i32_0 = arith.constant 0 : i32
    %c0_i32_1 = arith.constant 0 : i32
    %c0_i32_2 = arith.constant 0 : i32
    %c0_i32_3 = arith.constant 0 : i32
    return %c0_i32, %c0_i32_0, %c0_i32_1, %c0_i32_2 : i32, i32, i32, i32
  }
  func.func @transform_8(%arg0: i32) -> (i32, i32, i32) {
    %c0_i32 = arith.constant 0 : i32
    %c0_i32_0 = arith.constant 0 : i32
    %c0_i32_1 = arith.constant 0 : i32
    %c0_i32_2 = arith.constant 0 : i32
    return %c0_i32, %c0_i32_0, %c0_i32_1 : i32, i32, i32
  }
  func.func @transform_9(%arg0: i32) -> (i32, i32, i32, i32) {
    %c0_i32 = arith.constant 0 : i32
    %c0_i32_0 = arith.constant 0 : i32
    %c0_i32_1 = arith.constant 0 : i32
    %c0_i32_2 = arith.constant 0 : i32
    return %arg0, %c0_i32, %c0_i32_0, %c0_i32_1 : i32, i32, i32, i32
  }
}

module attributes {stable_mosaic.version = 11 : i64} {
  func.func @_mlp_kernel(%arg0: i32, %arg1: memref<64x32xf32, #tpu.memory_space<vmem>>, %arg2: memref<32x128xf32, #tpu.memory_space<vmem>>, %arg3: memref<1x128xf32, #tpu.memory_space<vmem>>, %arg4: memref<128x32xf32, #tpu.memory_space<vmem>>, %arg5: memref<1x32xf32, #tpu.memory_space<vmem>>, %arg6: memref<1x32xf32, #tpu.memory_space<vmem>>, %arg7: memref<1x32xf32, #tpu.memory_space<vmem>>, %arg8: memref<64x32xf32, #tpu.memory_space<vmem>>) attributes {dimension_semantics = [#tpu.dimension_semantics<parallel>], iteration_bounds = array<i64: 2>, scalar_prefetch = 0 : i64, scratch_operands = 0 : i64, tpu.core_type = #tpu.core_type<tc>, window_params = [{transform_indices = @transform_0, window_bounds = array<i64: 64, 32>}, {pipeline_mode = #tpu.pipeline_mode<synchronous>, transform_indices = @transform_1, window_bounds = array<i64: 32, 128>}, {pipeline_mode = #tpu.pipeline_mode<synchronous>, transform_indices = @transform_2, window_bounds = array<i64: 1, 128>}, {pipeline_mode = #tpu.pipeline_mode<synchronous>, transform_indices = @transform_3, window_bounds = array<i64: 128, 32>}, {pipeline_mode = #tpu.pipeline_mode<synchronous>, transform_indices = @transform_4, window_bounds = array<i64: 1, 32>}, {pipeline_mode = #tpu.pipeline_mode<synchronous>, transform_indices = @transform_5, window_bounds = array<i64: 1, 32>}, {pipeline_mode = #tpu.pipeline_mode<synchronous>, transform_indices = @transform_6, window_bounds = array<i64: 1, 32>}, {transform_indices = @transform_7, window_bounds = array<i64: 64, 32>}]} {
    %c0 = arith.constant 0 : index
    %c0_0 = arith.constant 0 : index
    %0 = vector.load %arg1[%c0, %c0_0] : memref<64x32xf32, #tpu.memory_space<vmem>>, vector<64x32xf32>
    %c0_1 = arith.constant 0 : index
    %c0_2 = arith.constant 0 : index
    %1 = vector.load %arg2[%c0_1, %c0_2] : memref<32x128xf32, #tpu.memory_space<vmem>>, vector<32x128xf32>
    %2 = arith.truncf %0 : vector<64x32xf32> to vector<64x32xbf16>
    %3 = arith.truncf %1 : vector<32x128xf32> to vector<32x128xbf16>
    %cst = arith.constant dense<0.000000e+00> : vector<64x128xf32>
    %4 = tpu.matmul %2, %3, %cst {dimension_numbers = #tpu.dot_dimension_numbers<[1], [0], [0], [1], [0, 0, 1, 1], [], []>} : vector<64x32xbf16>, vector<32x128xbf16>, vector<64x128xf32> -> vector<64x128xf32>
    %c0_3 = arith.constant 0 : index
    %c0_4 = arith.constant 0 : index
    %5 = vector.load %arg3[%c0_3, %c0_4] : memref<1x128xf32, #tpu.memory_space<vmem>>, vector<1x128xf32>
    %6 = vector.broadcast %5 : vector<1x128xf32> to vector<64x128xf32>
    %7 = arith.addf %4, %6 : vector<64x128xf32>
    %8 = arith.mulf %7, %7 : vector<64x128xf32>
    %9 = arith.mulf %7, %8 : vector<64x128xf32>
    %cst_5 = arith.constant 4.471500e-02 : f32
    %10 = vector.broadcast %cst_5 : f32 to vector<64x128xf32>
    %11 = arith.mulf %10, %9 : vector<64x128xf32>
    %12 = arith.addf %7, %11 : vector<64x128xf32>
    %cst_6 = arith.constant 0.797884583 : f32
    %13 = vector.broadcast %cst_6 : f32 to vector<64x128xf32>
    %14 = arith.mulf %13, %12 : vector<64x128xf32>
    %15 = math.tanh %14 : vector<64x128xf32>
    %cst_7 = arith.constant 1.000000e+00 : f32
    %16 = vector.broadcast %cst_7 : f32 to vector<64x128xf32>
    %17 = arith.addf %16, %15 : vector<64x128xf32>
    %cst_8 = arith.constant 5.000000e-01 : f32
    %18 = vector.broadcast %cst_8 : f32 to vector<64x128xf32>
    %19 = arith.mulf %18, %17 : vector<64x128xf32>
    %20 = arith.mulf %7, %19 : vector<64x128xf32>
    %c0_9 = arith.constant 0 : index
    %c0_10 = arith.constant 0 : index
    %21 = vector.load %arg4[%c0_9, %c0_10] : memref<128x32xf32, #tpu.memory_space<vmem>>, vector<128x32xf32>
    %22 = arith.truncf %20 : vector<64x128xf32> to vector<64x128xbf16>
    %23 = arith.truncf %21 : vector<128x32xf32> to vector<128x32xbf16>
    %cst_11 = arith.constant dense<0.000000e+00> : vector<64x32xf32>
    %24 = tpu.matmul %22, %23, %cst_11 {dimension_numbers = #tpu.dot_dimension_numbers<[1], [0], [0], [1], [0, 0, 1, 1], [], []>} : vector<64x128xbf16>, vector<128x32xbf16>, vector<64x32xf32> -> vector<64x32xf32>
    %c0_12 = arith.constant 0 : index
    %c0_13 = arith.constant 0 : index
    %25 = vector.load %arg5[%c0_12, %c0_13] : memref<1x32xf32, #tpu.memory_space<vmem>>, vector<1x32xf32>
    %26 = vector.broadcast %25 : vector<1x32xf32> to vector<64x32xf32>
    %27 = arith.addf %24, %26 : vector<64x32xf32>
    %c0_14 = arith.constant 0 : index
    %c0_15 = arith.constant 0 : index
    %28 = vector.load %arg6[%c0_14, %c0_15] : memref<1x32xf32, #tpu.memory_space<vmem>>, vector<1x32xf32>
    %c0_16 = arith.constant 0 : index
    %c0_17 = arith.constant 0 : index
    %29 = vector.load %arg7[%c0_16, %c0_17] : memref<1x32xf32, #tpu.memory_space<vmem>>, vector<1x32xf32>
    %cst_18 = arith.constant dense<0.000000e+00> : vector<64xf32>
    %30 = vector.multi_reduction <add>, %27, %cst_18 [1] : vector<64x32xf32> to vector<64xf32>
    %31 = vector.shape_cast %30 : vector<64xf32> to vector<64x1xf32>
    %cst_19 = arith.constant 3.200000e+01 : f32
    %32 = vector.broadcast %cst_19 : f32 to vector<64x1xf32>
    %33 = arith.divf %31, %32 : vector<64x1xf32>
    %34 = vector.broadcast %33 : vector<64x1xf32> to vector<64x32xf32>
    %35 = arith.subf %27, %34 : vector<64x32xf32>
    %36 = vector.broadcast %33 : vector<64x1xf32> to vector<64x32xf32>
    %37 = arith.subf %27, %36 : vector<64x32xf32>
    %38 = arith.mulf %35, %37 : vector<64x32xf32>
    %cst_20 = arith.constant dense<0.000000e+00> : vector<64xf32>
    %39 = vector.multi_reduction <add>, %38, %cst_20 [1] : vector<64x32xf32> to vector<64xf32>
    %40 = vector.shape_cast %39 : vector<64xf32> to vector<64x1xf32>
    %cst_21 = arith.constant 3.200000e+01 : f32
    %41 = vector.broadcast %cst_21 : f32 to vector<64x1xf32>
    %42 = arith.divf %40, %41 : vector<64x1xf32>
    %43 = vector.broadcast %33 : vector<64x1xf32> to vector<64x32xf32>
    %44 = arith.subf %27, %43 : vector<64x32xf32>
    %cst_22 = arith.constant 9.99999974E-6 : f32
    %45 = vector.broadcast %cst_22 : f32 to vector<64x1xf32>
    %46 = arith.addf %42, %45 : vector<64x1xf32>
    %47 = math.rsqrt %46 : vector<64x1xf32>
    %48 = vector.broadcast %47 : vector<64x1xf32> to vector<64x32xf32>
    %49 = arith.mulf %44, %48 : vector<64x32xf32>
    %50 = vector.broadcast %28 : vector<1x32xf32> to vector<64x32xf32>
    %51 = arith.mulf %49, %50 : vector<64x32xf32>
    %52 = vector.broadcast %29 : vector<1x32xf32> to vector<64x32xf32>
    %53 = arith.addf %51, %52 : vector<64x32xf32>
    %54 = arith.addf %0, %53 : vector<64x32xf32>
    %c0_23 = arith.constant 0 : index
    %c0_24 = arith.constant 0 : index
    %55 = vector.load %arg8[%c0_23, %c0_24] : memref<64x32xf32, #tpu.memory_space<vmem>>, vector<64x32xf32>
    tpu.vector_store %arg8[%c0_23, %c0_24], %54 {strides = array<i32>} : memref<64x32xf32, #tpu.memory_space<vmem>>, vector<64x32xf32>,
    return
  }
  func.func @transform_0(%arg0: i32) -> (i32, i32) {
    %c0_i32 = arith.constant 0 : i32
    %c0_i32_0 = arith.constant 0 : i32
    return %arg0, %c0_i32 : i32, i32
  }
  func.func @transform_1(%arg0: i32) -> (i32, i32) {
    %c0_i32 = arith.constant 0 : i32
    %c0_i32_0 = arith.constant 0 : i32
    %c0_i32_1 = arith.constant 0 : i32
    return %c0_i32, %c0_i32_0 : i32, i32
  }
  func.func @transform_2(%arg0: i32) -> (i32, i32) {
    %c0_i32 = arith.constant 0 : i32
    %c0_i32_0 = arith.constant 0 : i32
    %c0_i32_1 = arith.constant 0 : i32
    return %c0_i32, %c0_i32_0 : i32, i32
  }
  func.func @transform_3(%arg0: i32) -> (i32, i32) {
    %c0_i32 = arith.constant 0 : i32
    %c0_i32_0 = arith.constant 0 : i32
    %c0_i32_1 = arith.constant 0 : i32
    return %c0_i32, %c0_i32_0 : i32, i32
  }
  func.func @transform_4(%arg0: i32) -> (i32, i32) {
    %c0_i32 = arith.constant 0 : i32
    %c0_i32_0 = arith.constant 0 : i32
    %c0_i32_1 = arith.constant 0 : i32
    return %c0_i32, %c0_i32_0 : i32, i32
  }
  func.func @transform_5(%arg0: i32) -> (i32, i32) {
    %c0_i32 = arith.constant 0 : i32
    %c0_i32_0 = arith.constant 0 : i32
    %c0_i32_1 = arith.constant 0 : i32
    return %c0_i32, %c0_i32_0 : i32, i32
  }
  func.func @transform_6(%arg0: i32) -> (i32, i32) {
    %c0_i32 = arith.constant 0 : i32
    %c0_i32_0 = arith.constant 0 : i32
    %c0_i32_1 = arith.constant 0 : i32
    return %c0_i32, %c0_i32_0 : i32, i32
  }
  func.func @transform_7(%arg0: i32) -> (i32, i32) {
    %c0_i32 = arith.constant 0 : i32
    %c0_i32_0 = arith.constant 0 : i32
    return %arg0, %c0_i32 : i32, i32
  }
}

module attributes {stable_mosaic.version = 11 : i64} {
  func.func @_mm_ln_kernel(%arg0: i32, %arg1: memref<16x128xf32, #tpu.memory_space<vmem>>, %arg2: memref<128x64xf32, #tpu.memory_space<vmem>>, %arg3: memref<1x64xf32, #tpu.memory_space<vmem>>, %arg4: memref<1x64xf32, #tpu.memory_space<vmem>>, %arg5: memref<1x64xf32, #tpu.memory_space<vmem>>, %arg6: memref<16x64xf32, #tpu.memory_space<vmem>>) attributes {dimension_semantics = [#tpu.dimension_semantics<parallel>], iteration_bounds = array<i64: 2>, scalar_prefetch = 0 : i64, scratch_operands = 0 : i64, tpu.core_type = #tpu.core_type<tc>, window_params = [{transform_indices = @transform_0, window_bounds = array<i64: 16, 128>}, {pipeline_mode = #tpu.pipeline_mode<synchronous>, transform_indices = @transform_1, window_bounds = array<i64: 128, 64>}, {pipeline_mode = #tpu.pipeline_mode<synchronous>, transform_indices = @transform_2, window_bounds = array<i64: 1, 64>}, {pipeline_mode = #tpu.pipeline_mode<synchronous>, transform_indices = @transform_3, window_bounds = array<i64: 1, 64>}, {pipeline_mode = #tpu.pipeline_mode<synchronous>, transform_indices = @transform_4, window_bounds = array<i64: 1, 64>}, {transform_indices = @transform_5, window_bounds = array<i64: 16, 64>}]} {
    %c0 = arith.constant 0 : index
    %c0_0 = arith.constant 0 : index
    %0 = vector.load %arg1[%c0, %c0_0] : memref<16x128xf32, #tpu.memory_space<vmem>>, vector<16x128xf32>
    %c0_1 = arith.constant 0 : index
    %c0_2 = arith.constant 0 : index
    %1 = vector.load %arg2[%c0_1, %c0_2] : memref<128x64xf32, #tpu.memory_space<vmem>>, vector<128x64xf32>
    %2 = arith.truncf %0 : vector<16x128xf32> to vector<16x128xbf16>
    %3 = arith.truncf %1 : vector<128x64xf32> to vector<128x64xbf16>
    %cst = arith.constant dense<0.000000e+00> : vector<16x64xf32>
    %4 = tpu.matmul %2, %3, %cst {dimension_numbers = #tpu.dot_dimension_numbers<[1], [0], [0], [1], [0, 0, 1, 1], [], []>} : vector<16x128xbf16>, vector<128x64xbf16>, vector<16x64xf32> -> vector<16x64xf32>
    %c0_3 = arith.constant 0 : index
    %c0_4 = arith.constant 0 : index
    %5 = vector.load %arg3[%c0_3, %c0_4] : memref<1x64xf32, #tpu.memory_space<vmem>>, vector<1x64xf32>
    %6 = vector.broadcast %5 : vector<1x64xf32> to vector<16x64xf32>
    %7 = arith.addf %4, %6 : vector<16x64xf32>
    %c0_5 = arith.constant 0 : index
    %c0_6 = arith.constant 0 : index
    %8 = vector.load %arg4[%c0_5, %c0_6] : memref<1x64xf32, #tpu.memory_space<vmem>>, vector<1x64xf32>
    %c0_7 = arith.constant 0 : index
    %c0_8 = arith.constant 0 : index
    %9 = vector.load %arg5[%c0_7, %c0_8] : memref<1x64xf32, #tpu.memory_space<vmem>>, vector<1x64xf32>
    %cst_9 = arith.constant dense<0.000000e+00> : vector<16xf32>
    %10 = vector.multi_reduction <add>, %7, %cst_9 [1] : vector<16x64xf32> to vector<16xf32>
    %11 = vector.shape_cast %10 : vector<16xf32> to vector<16x1xf32>
    %cst_10 = arith.constant 6.400000e+01 : f32
    %12 = vector.broadcast %cst_10 : f32 to vector<16x1xf32>
    %13 = arith.divf %11, %12 : vector<16x1xf32>
    %14 = vector.broadcast %13 : vector<16x1xf32> to vector<16x64xf32>
    %15 = arith.subf %7, %14 : vector<16x64xf32>
    %16 = vector.broadcast %13 : vector<16x1xf32> to vector<16x64xf32>
    %17 = arith.subf %7, %16 : vector<16x64xf32>
    %18 = arith.mulf %15, %17 : vector<16x64xf32>
    %cst_11 = arith.constant dense<0.000000e+00> : vector<16xf32>
    %19 = vector.multi_reduction <add>, %18, %cst_11 [1] : vector<16x64xf32> to vector<16xf32>
    %20 = vector.shape_cast %19 : vector<16xf32> to vector<16x1xf32>
    %cst_12 = arith.constant 6.400000e+01 : f32
    %21 = vector.broadcast %cst_12 : f32 to vector<16x1xf32>
    %22 = arith.divf %20, %21 : vector<16x1xf32>
    %23 = vector.broadcast %13 : vector<16x1xf32> to vector<16x64xf32>
    %24 = arith.subf %7, %23 : vector<16x64xf32>
    %cst_13 = arith.constant 9.99999974E-6 : f32
    %25 = vector.broadcast %cst_13 : f32 to vector<16x1xf32>
    %26 = arith.addf %22, %25 : vector<16x1xf32>
    %27 = math.rsqrt %26 : vector<16x1xf32>
    %28 = vector.broadcast %27 : vector<16x1xf32> to vector<16x64xf32>
    %29 = arith.mulf %24, %28 : vector<16x64xf32>
    %30 = vector.broadcast %8 : vector<1x64xf32> to vector<16x64xf32>
    %31 = arith.mulf %29, %30 : vector<16x64xf32>
    %32 = vector.broadcast %9 : vector<1x64xf32> to vector<16x64xf32>
    %33 = arith.addf %31, %32 : vector<16x64xf32>
    %c0_14 = arith.constant 0 : index
    %c0_15 = arith.constant 0 : index
    %34 = vector.load %arg6[%c0_14, %c0_15] : memref<16x64xf32, #tpu.memory_space<vmem>>, vector<16x64xf32>
    tpu.vector_store %arg6[%c0_14, %c0_15], %33 {strides = array<i32>} : memref<16x64xf32, #tpu.memory_space<vmem>>, vector<16x64xf32>,
    return
  }
  func.func @transform_0(%arg0: i32) -> (i32, i32) {
    %c0_i32 = arith.constant 0 : i32
    %c0_i32_0 = arith.constant 0 : i32
    return %arg0, %c0_i32 : i32, i32
  }
  func.func @transform_1(%arg0: i32) -> (i32, i32) {
    %c0_i32 = arith.constant 0 : i32
    %c0_i32_0 = arith.constant 0 : i32
    %c0_i32_1 = arith.constant 0 : i32
    return %c0_i32, %c0_i32_0 : i32, i32
  }
  func.func @transform_2(%arg0: i32) -> (i32, i32) {
    %c0_i32 = arith.constant 0 : i32
    %c0_i32_0 = arith.constant 0 : i32
    %c0_i32_1 = arith.constant 0 : i32
    return %c0_i32, %c0_i32_0 : i32, i32
  }
  func.func @transform_3(%arg0: i32) -> (i32, i32) {
    %c0_i32 = arith.constant 0 : i32
    %c0_i32_0 = arith.constant 0 : i32
    %c0_i32_1 = arith.constant 0 : i32
    return %c0_i32, %c0_i32_0 : i32, i32
  }
  func.func @transform_4(%arg0: i32) -> (i32, i32) {
    %c0_i32 = arith.constant 0 : i32
    %c0_i32_0 = arith.constant 0 : i32
    %c0_i32_1 = arith.constant 0 : i32
    return %c0_i32, %c0_i32_0 : i32, i32
  }
  func.func @transform_5(%arg0: i32) -> (i32, i32) {
    %c0_i32 = arith.constant 0 : i32
    %c0_i32_0 = arith.constant 0 : i32
    return %arg0, %c0_i32 : i32, i32
  }
}

module attributes {stable_mosaic.version = 11 : i64} {
  func.func @_attn_block_kernel(%arg0: i32, %arg1: memref<1x1x16x64xf32, #tpu.memory_space<vmem>>, %arg2: memref<64x192xf32, #tpu.memory_space<vmem>>, %arg3: memref<1x192xf32, #tpu.memory_space<vmem>>, %arg4: memref<64x64xf32, #tpu.memory_space<vmem>>, %arg5: memref<1x64xf32, #tpu.memory_space<vmem>>, %arg6: memref<1x64xf32, #tpu.memory_space<vmem>>, %arg7: memref<1x64xf32, #tpu.memory_space<vmem>>, %arg8: memref<4x1x16x16xf32, #tpu.memory_space<vmem>>, %arg9: memref<4x1x1xf32, #tpu.memory_space<vmem>>, %arg10: memref<1x1x16x64xf32, #tpu.memory_space<vmem>>) attributes {dimension_semantics = [#tpu.dimension_semantics<parallel>], iteration_bounds = array<i64: 2>, scalar_prefetch = 0 : i64, scratch_operands = 0 : i64, tpu.core_type = #tpu.core_type<tc>, window_params = [{transform_indices = @transform_0, window_bounds = array<i64: 1, 1, 16, 64>}, {pipeline_mode = #tpu.pipeline_mode<synchronous>, transform_indices = @transform_1, window_bounds = array<i64: 64, 192>}, {pipeline_mode = #tpu.pipeline_mode<synchronous>, transform_indices = @transform_2, window_bounds = array<i64: 1, 192>}, {pipeline_mode = #tpu.pipeline_mode<synchronous>, transform_indices = @transform_3, window_bounds = array<i64: 64, 64>}, {pipeline_mode = #tpu.pipeline_mode<synchronous>, transform_indices = @transform_4, window_bounds = array<i64: 1, 64>}, {pipeline_mode = #tpu.pipeline_mode<synchronous>, transform_indices = @transform_5, window_bounds = array<i64: 1, 64>}, {pipeline_mode = #tpu.pipeline_mode<synchronous>, transform_indices = @transform_6, window_bounds = array<i64: 1, 64>}, {pipeline_mode = #tpu.pipeline_mode<synchronous>, transform_indices = @transform_7, window_bounds = array<i64: 4, 1, 16, 16>}, {pipeline_mode = #tpu.pipeline_mode<synchronous>, transform_indices = @transform_8, window_bounds = array<i64: 4, 1, 1>}, {transform_indices = @transform_9, window_bounds = array<i64: 1, 1, 16, 64>}]} {
    %c0 = arith.constant 0 : index
    %c0_0 = arith.constant 0 : index
    %c0_1 = arith.constant 0 : index
    %c0_2 = arith.constant 0 : index
    %0 = vector.load %arg1[%c0, %c0_0, %c0_1, %c0_2] : memref<1x1x16x64xf32, #tpu.memory_space<vmem>>, vector<1x1x16x64xf32>
    %1 = vector.shape_cast %0 : vector<1x1x16x64xf32> to vector<16x64xf32>
    %c0_3 = arith.constant 0 : index
    %c0_4 = arith.constant 0 : index
    %2 = vector.load %arg2[%c0_3, %c0_4] : memref<64x192xf32, #tpu.memory_space<vmem>>, vector<64x192xf32>
    %3 = arith.truncf %1 : vector<16x64xf32> to vector<16x64xbf16>
    %4 = arith.truncf %2 : vector<64x192xf32> to vector<64x192xbf16>
    %cst = arith.constant dense<0.000000e+00> : vector<16x192xf32>
    %5 = tpu.matmul %3, %4, %cst {dimension_numbers = #tpu.dot_dimension_numbers<[1], [0], [0], [1], [0, 0, 1, 1], [], []>} : vector<16x64xbf16>, vector<64x192xbf16>, vector<16x192xf32> -> vector<16x192xf32>
    %c0_5 = arith.constant 0 : index
    %c0_6 = arith.constant 0 : index
    %6 = vector.load %arg3[%c0_5, %c0_6] : memref<1x192xf32, #tpu.memory_space<vmem>>, vector<1x192xf32>
    %7 = vector.broadcast %6 : vector<1x192xf32> to vector<16x192xf32>
    %8 = arith.addf %5, %7 : vector<16x192xf32>
    %9 = vector.shape_cast %8 : vector<16x192xf32> to vector<1x16x192xf32>
    %10 = vector.extract_strided_slice %9 {offsets = [0, 0, 0], sizes = [1, 16, 16], strides = [1, 1, 1]} : vector<1x16x192xf32> to vector<1x16x16xf32>
    %11 = vector.extract_strided_slice %9 {offsets = [0, 0, 64], sizes = [1, 16, 16], strides = [1, 1, 1]} : vector<1x16x192xf32> to vector<1x16x16xf32>
    %12 = vector.extract_strided_slice %9 {offsets = [0, 0, 128], sizes = [1, 16, 16], strides = [1, 1, 1]} : vector<1x16x192xf32> to vector<1x16x16xf32>
    %13 = arith.mulf %10, %10 : vector<1x16x16xf32>
    %cst_7 = arith.constant dense<0.000000e+00> : vector<1x16xf32>
    %14 = vector.multi_reduction <add>, %13, %cst_7 [2] : vector<1x16x16xf32> to vector<1x16xf32>
    %15 = vector.shape_cast %14 : vector<1x16xf32> to vector<1x16x1xf32>
    %cst_8 = arith.constant 9.99999997E-7 : f32
    %16 = vector.broadcast %cst_8 : f32 to vector<1x16x1xf32>
    %17 = arith.addf %15, %16 : vector<1x16x1xf32>
    %18 = math.rsqrt %17 : vector<1x16x1xf32>
    %19 = vector.broadcast %18 : vector<1x16x1xf32> to vector<1x16x16xf32>
    %20 = arith.mulf %10, %19 : vector<1x16x16xf32>
    %21 = arith.mulf %11, %11 : vector<1x16x16xf32>
    %cst_9 = arith.constant dense<0.000000e+00> : vector<1x16xf32>
    %22 = vector.multi_reduction <add>, %21, %cst_9 [2] : vector<1x16x16xf32> to vector<1x16xf32>
    %23 = vector.shape_cast %22 : vector<1x16xf32> to vector<1x16x1xf32>
    %cst_10 = arith.constant 9.99999997E-7 : f32
    %24 = vector.broadcast %cst_10 : f32 to vector<1x16x1xf32>
    %25 = arith.addf %23, %24 : vector<1x16x1xf32>
    %26 = math.rsqrt %25 : vector<1x16x1xf32>
    %27 = vector.broadcast %26 : vector<1x16x1xf32> to vector<1x16x16xf32>
    %28 = arith.mulf %11, %27 : vector<1x16x16xf32>
    %29 = arith.truncf %20 : vector<1x16x16xf32> to vector<1x16x16xbf16>
    %30 = arith.truncf %28 : vector<1x16x16xf32> to vector<1x16x16xbf16>
    %cst_11 = arith.constant dense<0.000000e+00> : vector<1x16x16xf32>
    %31 = tpu.matmul %29, %30, %cst_11 {dimension_numbers = #tpu.dot_dimension_numbers<[2], [2], [1], [1], [0, 0, 0, 1, 1, 1], [0], [0]>} : vector<1x16x16xbf16>, vector<1x16x16xbf16>, vector<1x16x16xf32> -> vector<1x16x16xf32>
    %c0_12 = arith.constant 0 : index
    %c0_13 = arith.constant 0 : index
    %c0_14 = arith.constant 0 : index
    %32 = vector.load %arg9[%c0_12, %c0_13, %c0_14] : memref<4x1x1xf32, #tpu.memory_space<vmem>>, vector<1x1x1xf32>
    %33 = vector.shape_cast %32 : vector<1x1x1xf32> to vector<1x1xf32>
    %34 = vector.shape_cast %33 : vector<1x1xf32> to vector<1x1x1xf32>
    %35 = vector.broadcast %34 : vector<1x1x1xf32> to vector<1x16x16xf32>
    %36 = arith.mulf %31, %35 : vector<1x16x16xf32>
    %c0_15 = arith.constant 0 : index
    %c0_16 = arith.constant 0 : index
    %c0_17 = arith.constant 0 : index
    %c0_18 = arith.constant 0 : index
    %37 = vector.load %arg8[%c0_15, %c0_16, %c0_17, %c0_18] : memref<4x1x16x16xf32, #tpu.memory_space<vmem>>, vector<1x1x16x16xf32>
    %38 = vector.shape_cast %37 : vector<1x1x16x16xf32> to vector<1x16x16xf32>
    %39 = arith.addf %36, %38 : vector<1x16x16xf32>
    %cst_19 = arith.constant dense<0xFF800000> : vector<1x16xf32>
    %40 = vector.multi_reduction <maximumf>, %39, %cst_19 [2] : vector<1x16x16xf32> to vector<1x16xf32>
    %41 = vector.shape_cast %40 : vector<1x16xf32> to vector<1x16x1xf32>
    %42 = vector.broadcast %41 : vector<1x16x1xf32> to vector<1x16x16xf32>
    %43 = arith.subf %39, %42 : vector<1x16x16xf32>
    %44 = math.exp %43 : vector<1x16x16xf32>
    %cst_20 = arith.constant dense<0.000000e+00> : vector<1x16xf32>
    %45 = vector.multi_reduction <add>, %44, %cst_20 [2] : vector<1x16x16xf32> to vector<1x16xf32>
    %46 = vector.shape_cast %45 : vector<1x16xf32> to vector<1x16x1xf32>
    %47 = tpu.reciprocal %46 {approx = true} : vector<1x16x1xf32> -> vector<1x16x1xf32>
    %48 = vector.broadcast %47 : vector<1x16x1xf32> to vector<1x16x16xf32>
    %49 = arith.mulf %44, %48 : vector<1x16x16xf32>
    %50 = arith.truncf %49 : vector<1x16x16xf32> to vector<1x16x16xbf16>
    %51 = arith.truncf %12 : vector<1x16x16xf32> to vector<1x16x16xbf16>
    %cst_21 = arith.constant dense<0.000000e+00> : vector<1x16x16xf32>
    %52 = tpu.matmul %50, %51, %cst_21 {dimension_numbers = #tpu.dot_dimension_numbers<[2], [1], [1], [2], [0, 0, 0, 1, 1, 2], [0], [0]>} : vector<1x16x16xbf16>, vector<1x16x16xbf16>, vector<1x16x16xf32> -> vector<1x16x16xf32>
    %53 = vector.extract_strided_slice %9 {offsets = [0, 0, 16], sizes = [1, 16, 16], strides = [1, 1, 1]} : vector<1x16x192xf32> to vector<1x16x16xf32>
    %54 = vector.extract_strided_slice %9 {offsets = [0, 0, 80], sizes = [1, 16, 16], strides = [1, 1, 1]} : vector<1x16x192xf32> to vector<1x16x16xf32>
    %55 = vector.extract_strided_slice %9 {offsets = [0, 0, 144], sizes = [1, 16, 16], strides = [1, 1, 1]} : vector<1x16x192xf32> to vector<1x16x16xf32>
    %56 = arith.mulf %53, %53 : vector<1x16x16xf32>
    %cst_22 = arith.constant dense<0.000000e+00> : vector<1x16xf32>
    %57 = vector.multi_reduction <add>, %56, %cst_22 [2] : vector<1x16x16xf32> to vector<1x16xf32>
    %58 = vector.shape_cast %57 : vector<1x16xf32> to vector<1x16x1xf32>
    %cst_23 = arith.constant 9.99999997E-7 : f32
    %59 = vector.broadcast %cst_23 : f32 to vector<1x16x1xf32>
    %60 = arith.addf %58, %59 : vector<1x16x1xf32>
    %61 = math.rsqrt %60 : vector<1x16x1xf32>
    %62 = vector.broadcast %61 : vector<1x16x1xf32> to vector<1x16x16xf32>
    %63 = arith.mulf %53, %62 : vector<1x16x16xf32>
    %64 = arith.mulf %54, %54 : vector<1x16x16xf32>
    %cst_24 = arith.constant dense<0.000000e+00> : vector<1x16xf32>
    %65 = vector.multi_reduction <add>, %64, %cst_24 [2] : vector<1x16x16xf32> to vector<1x16xf32>
    %66 = vector.shape_cast %65 : vector<1x16xf32> to vector<1x16x1xf32>
    %cst_25 = arith.constant 9.99999997E-7 : f32
    %67 = vector.broadcast %cst_25 : f32 to vector<1x16x1xf32>
    %68 = arith.addf %66, %67 : vector<1x16x1xf32>
    %69 = math.rsqrt %68 : vector<1x16x1xf32>
    %70 = vector.broadcast %69 : vector<1x16x1xf32> to vector<1x16x16xf32>
    %71 = arith.mulf %54, %70 : vector<1x16x16xf32>
    %72 = arith.truncf %63 : vector<1x16x16xf32> to vector<1x16x16xbf16>
    %73 = arith.truncf %71 : vector<1x16x16xf32> to vector<1x16x16xbf16>
    %cst_26 = arith.constant dense<0.000000e+00> : vector<1x16x16xf32>
    %74 = tpu.matmul %72, %73, %cst_26 {dimension_numbers = #tpu.dot_dimension_numbers<[2], [2], [1], [1], [0, 0, 0, 1, 1, 1], [0], [0]>} : vector<1x16x16xbf16>, vector<1x16x16xbf16>, vector<1x16x16xf32> -> vector<1x16x16xf32>
    %c1 = arith.constant 1 : index
    %c0_27 = arith.constant 0 : index
    %c0_28 = arith.constant 0 : index
    %75 = vector.load %arg9[%c1, %c0_27, %c0_28] : memref<4x1x1xf32, #tpu.memory_space<vmem>>, vector<1x1x1xf32>
    %76 = vector.shape_cast %75 : vector<1x1x1xf32> to vector<1x1xf32>
    %77 = vector.shape_cast %76 : vector<1x1xf32> to vector<1x1x1xf32>
    %78 = vector.broadcast %77 : vector<1x1x1xf32> to vector<1x16x16xf32>
    %79 = arith.mulf %74, %78 : vector<1x16x16xf32>
    %c1_29 = arith.constant 1 : index
    %c0_30 = arith.constant 0 : index
    %c0_31 = arith.constant 0 : index
    %c0_32 = arith.constant 0 : index
    %80 = vector.load %arg8[%c1_29, %c0_30, %c0_31, %c0_32] : memref<4x1x16x16xf32, #tpu.memory_space<vmem>>, vector<1x1x16x16xf32>
    %81 = vector.shape_cast %80 : vector<1x1x16x16xf32> to vector<1x16x16xf32>
    %82 = arith.addf %79, %81 : vector<1x16x16xf32>
    %cst_33 = arith.constant dense<0xFF800000> : vector<1x16xf32>
    %83 = vector.multi_reduction <maximumf>, %82, %cst_33 [2] : vector<1x16x16xf32> to vector<1x16xf32>
    %84 = vector.shape_cast %83 : vector<1x16xf32> to vector<1x16x1xf32>
    %85 = vector.broadcast %84 : vector<1x16x1xf32> to vector<1x16x16xf32>
    %86 = arith.subf %82, %85 : vector<1x16x16xf32>
    %87 = math.exp %86 : vector<1x16x16xf32>
    %cst_34 = arith.constant dense<0.000000e+00> : vector<1x16xf32>
    %88 = vector.multi_reduction <add>, %87, %cst_34 [2] : vector<1x16x16xf32> to vector<1x16xf32>
    %89 = vector.shape_cast %88 : vector<1x16xf32> to vector<1x16x1xf32>
    %90 = tpu.reciprocal %89 {approx = true} : vector<1x16x1xf32> -> vector<1x16x1xf32>
    %91 = vector.broadcast %90 : vector<1x16x1xf32> to vector<1x16x16xf32>
    %92 = arith.mulf %87, %91 : vector<1x16x16xf32>
    %93 = arith.truncf %92 : vector<1x16x16xf32> to vector<1x16x16xbf16>
    %94 = arith.truncf %55 : vector<1x16x16xf32> to vector<1x16x16xbf16>
    %cst_35 = arith.constant dense<0.000000e+00> : vector<1x16x16xf32>
    %95 = tpu.matmul %93, %94, %cst_35 {dimension_numbers = #tpu.dot_dimension_numbers<[2], [1], [1], [2], [0, 0, 0, 1, 1, 2], [0], [0]>} : vector<1x16x16xbf16>, vector<1x16x16xbf16>, vector<1x16x16xf32> -> vector<1x16x16xf32>
    %96 = vector.extract_strided_slice %9 {offsets = [0, 0, 32], sizes = [1, 16, 16], strides = [1, 1, 1]} : vector<1x16x192xf32> to vector<1x16x16xf32>
    %97 = vector.extract_strided_slice %9 {offsets = [0, 0, 96], sizes = [1, 16, 16], strides = [1, 1, 1]} : vector<1x16x192xf32> to vector<1x16x16xf32>
    %98 = vector.extract_strided_slice %9 {offsets = [0, 0, 160], sizes = [1, 16, 16], strides = [1, 1, 1]} : vector<1x16x192xf32> to vector<1x16x16xf32>
    %99 = arith.mulf %96, %96 : vector<1x16x16xf32>
    %cst_36 = arith.constant dense<0.000000e+00> : vector<1x16xf32>
    %100 = vector.multi_reduction <add>, %99, %cst_36 [2] : vector<1x16x16xf32> to vector<1x16xf32>
    %101 = vector.shape_cast %100 : vector<1x16xf32> to vector<1x16x1xf32>
    %cst_37 = arith.constant 9.99999997E-7 : f32
    %102 = vector.broadcast %cst_37 : f32 to vector<1x16x1xf32>
    %103 = arith.addf %101, %102 : vector<1x16x1xf32>
    %104 = math.rsqrt %103 : vector<1x16x1xf32>
    %105 = vector.broadcast %104 : vector<1x16x1xf32> to vector<1x16x16xf32>
    %106 = arith.mulf %96, %105 : vector<1x16x16xf32>
    %107 = arith.mulf %97, %97 : vector<1x16x16xf32>
    %cst_38 = arith.constant dense<0.000000e+00> : vector<1x16xf32>
    %108 = vector.multi_reduction <add>, %107, %cst_38 [2] : vector<1x16x16xf32> to vector<1x16xf32>
    %109 = vector.shape_cast %108 : vector<1x16xf32> to vector<1x16x1xf32>
    %cst_39 = arith.constant 9.99999997E-7 : f32
    %110 = vector.broadcast %cst_39 : f32 to vector<1x16x1xf32>
    %111 = arith.addf %109, %110 : vector<1x16x1xf32>
    %112 = math.rsqrt %111 : vector<1x16x1xf32>
    %113 = vector.broadcast %112 : vector<1x16x1xf32> to vector<1x16x16xf32>
    %114 = arith.mulf %97, %113 : vector<1x16x16xf32>
    %115 = arith.truncf %106 : vector<1x16x16xf32> to vector<1x16x16xbf16>
    %116 = arith.truncf %114 : vector<1x16x16xf32> to vector<1x16x16xbf16>
    %cst_40 = arith.constant dense<0.000000e+00> : vector<1x16x16xf32>
    %117 = tpu.matmul %115, %116, %cst_40 {dimension_numbers = #tpu.dot_dimension_numbers<[2], [2], [1], [1], [0, 0, 0, 1, 1, 1], [0], [0]>} : vector<1x16x16xbf16>, vector<1x16x16xbf16>, vector<1x16x16xf32> -> vector<1x16x16xf32>
    %c2 = arith.constant 2 : index
    %c0_41 = arith.constant 0 : index
    %c0_42 = arith.constant 0 : index
    %118 = vector.load %arg9[%c2, %c0_41, %c0_42] : memref<4x1x1xf32, #tpu.memory_space<vmem>>, vector<1x1x1xf32>
    %119 = vector.shape_cast %118 : vector<1x1x1xf32> to vector<1x1xf32>
    %120 = vector.shape_cast %119 : vector<1x1xf32> to vector<1x1x1xf32>
    %121 = vector.broadcast %120 : vector<1x1x1xf32> to vector<1x16x16xf32>
    %122 = arith.mulf %117, %121 : vector<1x16x16xf32>
    %c2_43 = arith.constant 2 : index
    %c0_44 = arith.constant 0 : index
    %c0_45 = arith.constant 0 : index
    %c0_46 = arith.constant 0 : index
    %123 = vector.load %arg8[%c2_43, %c0_44, %c0_45, %c0_46] : memref<4x1x16x16xf32, #tpu.memory_space<vmem>>, vector<1x1x16x16xf32>
    %124 = vector.shape_cast %123 : vector<1x1x16x16xf32> to vector<1x16x16xf32>
    %125 = arith.addf %122, %124 : vector<1x16x16xf32>
    %cst_47 = arith.constant dense<0xFF800000> : vector<1x16xf32>
    %126 = vector.multi_reduction <maximumf>, %125, %cst_47 [2] : vector<1x16x16xf32> to vector<1x16xf32>
    %127 = vector.shape_cast %126 : vector<1x16xf32> to vector<1x16x1xf32>
    %128 = vector.broadcast %127 : vector<1x16x1xf32> to vector<1x16x16xf32>
    %129 = arith.subf %125, %128 : vector<1x16x16xf32>
    %130 = math.exp %129 : vector<1x16x16xf32>
    %cst_48 = arith.constant dense<0.000000e+00> : vector<1x16xf32>
    %131 = vector.multi_reduction <add>, %130, %cst_48 [2] : vector<1x16x16xf32> to vector<1x16xf32>
    %132 = vector.shape_cast %131 : vector<1x16xf32> to vector<1x16x1xf32>
    %133 = tpu.reciprocal %132 {approx = true} : vector<1x16x1xf32> -> vector<1x16x1xf32>
    %134 = vector.broadcast %133 : vector<1x16x1xf32> to vector<1x16x16xf32>
    %135 = arith.mulf %130, %134 : vector<1x16x16xf32>
    %136 = arith.truncf %135 : vector<1x16x16xf32> to vector<1x16x16xbf16>
    %137 = arith.truncf %98 : vector<1x16x16xf32> to vector<1x16x16xbf16>
    %cst_49 = arith.constant dense<0.000000e+00> : vector<1x16x16xf32>
    %138 = tpu.matmul %136, %137, %cst_49 {dimension_numbers = #tpu.dot_dimension_numbers<[2], [1], [1], [2], [0, 0, 0, 1, 1, 2], [0], [0]>} : vector<1x16x16xbf16>, vector<1x16x16xbf16>, vector<1x16x16xf32> -> vector<1x16x16xf32>
    %139 = vector.extract_strided_slice %9 {offsets = [0, 0, 48], sizes = [1, 16, 16], strides = [1, 1, 1]} : vector<1x16x192xf32> to vector<1x16x16xf32>
    %140 = vector.extract_strided_slice %9 {offsets = [0, 0, 112], sizes = [1, 16, 16], strides = [1, 1, 1]} : vector<1x16x192xf32> to vector<1x16x16xf32>
    %141 = vector.extract_strided_slice %9 {offsets = [0, 0, 176], sizes = [1, 16, 16], strides = [1, 1, 1]} : vector<1x16x192xf32> to vector<1x16x16xf32>
    %142 = arith.mulf %139, %139 : vector<1x16x16xf32>
    %cst_50 = arith.constant dense<0.000000e+00> : vector<1x16xf32>
    %143 = vector.multi_reduction <add>, %142, %cst_50 [2] : vector<1x16x16xf32> to vector<1x16xf32>
    %144 = vector.shape_cast %143 : vector<1x16xf32> to vector<1x16x1xf32>
    %cst_51 = arith.constant 9.99999997E-7 : f32
    %145 = vector.broadcast %cst_51 : f32 to vector<1x16x1xf32>
    %146 = arith.addf %144, %145 : vector<1x16x1xf32>
    %147 = math.rsqrt %146 : vector<1x16x1xf32>
    %148 = vector.broadcast %147 : vector<1x16x1xf32> to vector<1x16x16xf32>
    %149 = arith.mulf %139, %148 : vector<1x16x16xf32>
    %150 = arith.mulf %140, %140 : vector<1x16x16xf32>
    %cst_52 = arith.constant dense<0.000000e+00> : vector<1x16xf32>
    %151 = vector.multi_reduction <add>, %150, %cst_52 [2] : vector<1x16x16xf32> to vector<1x16xf32>
    %152 = vector.shape_cast %151 : vector<1x16xf32> to vector<1x16x1xf32>
    %cst_53 = arith.constant 9.99999997E-7 : f32
    %153 = vector.broadcast %cst_53 : f32 to vector<1x16x1xf32>
    %154 = arith.addf %152, %153 : vector<1x16x1xf32>
    %155 = math.rsqrt %154 : vector<1x16x1xf32>
    %156 = vector.broadcast %155 : vector<1x16x1xf32> to vector<1x16x16xf32>
    %157 = arith.mulf %140, %156 : vector<1x16x16xf32>
    %158 = arith.truncf %149 : vector<1x16x16xf32> to vector<1x16x16xbf16>
    %159 = arith.truncf %157 : vector<1x16x16xf32> to vector<1x16x16xbf16>
    %cst_54 = arith.constant dense<0.000000e+00> : vector<1x16x16xf32>
    %160 = tpu.matmul %158, %159, %cst_54 {dimension_numbers = #tpu.dot_dimension_numbers<[2], [2], [1], [1], [0, 0, 0, 1, 1, 1], [0], [0]>} : vector<1x16x16xbf16>, vector<1x16x16xbf16>, vector<1x16x16xf32> -> vector<1x16x16xf32>
    %c3 = arith.constant 3 : index
    %c0_55 = arith.constant 0 : index
    %c0_56 = arith.constant 0 : index
    %161 = vector.load %arg9[%c3, %c0_55, %c0_56] : memref<4x1x1xf32, #tpu.memory_space<vmem>>, vector<1x1x1xf32>
    %162 = vector.shape_cast %161 : vector<1x1x1xf32> to vector<1x1xf32>
    %163 = vector.shape_cast %162 : vector<1x1xf32> to vector<1x1x1xf32>
    %164 = vector.broadcast %163 : vector<1x1x1xf32> to vector<1x16x16xf32>
    %165 = arith.mulf %160, %164 : vector<1x16x16xf32>
    %c3_57 = arith.constant 3 : index
    %c0_58 = arith.constant 0 : index
    %c0_59 = arith.constant 0 : index
    %c0_60 = arith.constant 0 : index
    %166 = vector.load %arg8[%c3_57, %c0_58, %c0_59, %c0_60] : memref<4x1x16x16xf32, #tpu.memory_space<vmem>>, vector<1x1x16x16xf32>
    %167 = vector.shape_cast %166 : vector<1x1x16x16xf32> to vector<1x16x16xf32>
    %168 = arith.addf %165, %167 : vector<1x16x16xf32>
    %cst_61 = arith.constant dense<0xFF800000> : vector<1x16xf32>
    %169 = vector.multi_reduction <maximumf>, %168, %cst_61 [2] : vector<1x16x16xf32> to vector<1x16xf32>
    %170 = vector.shape_cast %169 : vector<1x16xf32> to vector<1x16x1xf32>
    %171 = vector.broadcast %170 : vector<1x16x1xf32> to vector<1x16x16xf32>
    %172 = arith.subf %168, %171 : vector<1x16x16xf32>
    %173 = math.exp %172 : vector<1x16x16xf32>
    %cst_62 = arith.constant dense<0.000000e+00> : vector<1x16xf32>
    %174 = vector.multi_reduction <add>, %173, %cst_62 [2] : vector<1x16x16xf32> to vector<1x16xf32>
    %175 = vector.shape_cast %174 : vector<1x16xf32> to vector<1x16x1xf32>
    %176 = tpu.reciprocal %175 {approx = true} : vector<1x16x1xf32> -> vector<1x16x1xf32>
    %177 = vector.broadcast %176 : vector<1x16x1xf32> to vector<1x16x16xf32>
    %178 = arith.mulf %173, %177 : vector<1x16x16xf32>
    %179 = arith.truncf %178 : vector<1x16x16xf32> to vector<1x16x16xbf16>
    %180 = arith.truncf %141 : vector<1x16x16xf32> to vector<1x16x16xbf16>
    %cst_63 = arith.constant dense<0.000000e+00> : vector<1x16x16xf32>
    %181 = tpu.matmul %179, %180, %cst_63 {dimension_numbers = #tpu.dot_dimension_numbers<[2], [1], [1], [2], [0, 0, 0, 1, 1, 2], [0], [0]>} : vector<1x16x16xbf16>, vector<1x16x16xbf16>, vector<1x16x16xf32> -> vector<1x16x16xf32>
    %182 = tpu.concatenate %52, %95, %138, %181 in 2 : vector<1x16x16xf32>, vector<1x16x16xf32>, vector<1x16x16xf32>, vector<1x16x16xf32> -> vector<1x16x64xf32>
    %183 = vector.shape_cast %182 : vector<1x16x64xf32> to vector<16x64xf32>
    %c0_64 = arith.constant 0 : index
    %c0_65 = arith.constant 0 : index
    %184 = vector.load %arg4[%c0_64, %c0_65] : memref<64x64xf32, #tpu.memory_space<vmem>>, vector<64x64xf32>
    %185 = arith.truncf %183 : vector<16x64xf32> to vector<16x64xbf16>
    %186 = arith.truncf %184 : vector<64x64xf32> to vector<64x64xbf16>
    %cst_66 = arith.constant dense<0.000000e+00> : vector<16x64xf32>
    %187 = tpu.matmul %185, %186, %cst_66 {dimension_numbers = #tpu.dot_dimension_numbers<[1], [0], [0], [1], [0, 0, 1, 1], [], []>} : vector<16x64xbf16>, vector<64x64xbf16>, vector<16x64xf32> -> vector<16x64xf32>
    %c0_67 = arith.constant 0 : index
    %c0_68 = arith.constant 0 : index
    %188 = vector.load %arg5[%c0_67, %c0_68] : memref<1x64xf32, #tpu.memory_space<vmem>>, vector<1x64xf32>
    %189 = vector.broadcast %188 : vector<1x64xf32> to vector<16x64xf32>
    %190 = arith.addf %187, %189 : vector<16x64xf32>
    %c0_69 = arith.constant 0 : index
    %c0_70 = arith.constant 0 : index
    %191 = vector.load %arg6[%c0_69, %c0_70] : memref<1x64xf32, #tpu.memory_space<vmem>>, vector<1x64xf32>
    %c0_71 = arith.constant 0 : index
    %c0_72 = arith.constant 0 : index
    %192 = vector.load %arg7[%c0_71, %c0_72] : memref<1x64xf32, #tpu.memory_space<vmem>>, vector<1x64xf32>
    %cst_73 = arith.constant dense<0.000000e+00> : vector<16xf32>
    %193 = vector.multi_reduction <add>, %190, %cst_73 [1] : vector<16x64xf32> to vector<16xf32>
    %194 = vector.shape_cast %193 : vector<16xf32> to vector<16x1xf32>
    %cst_74 = arith.constant 6.400000e+01 : f32
    %195 = vector.broadcast %cst_74 : f32 to vector<16x1xf32>
    %196 = arith.divf %194, %195 : vector<16x1xf32>
    %197 = vector.broadcast %196 : vector<16x1xf32> to vector<16x64xf32>
    %198 = arith.subf %190, %197 : vector<16x64xf32>
    %199 = vector.broadcast %196 : vector<16x1xf32> to vector<16x64xf32>
    %200 = arith.subf %190, %199 : vector<16x64xf32>
    %201 = arith.mulf %198, %200 : vector<16x64xf32>
    %cst_75 = arith.constant dense<0.000000e+00> : vector<16xf32>
    %202 = vector.multi_reduction <add>, %201, %cst_75 [1] : vector<16x64xf32> to vector<16xf32>
    %203 = vector.shape_cast %202 : vector<16xf32> to vector<16x1xf32>
    %cst_76 = arith.constant 6.400000e+01 : f32
    %204 = vector.broadcast %cst_76 : f32 to vector<16x1xf32>
    %205 = arith.divf %203, %204 : vector<16x1xf32>
    %206 = vector.broadcast %196 : vector<16x1xf32> to vector<16x64xf32>
    %207 = arith.subf %190, %206 : vector<16x64xf32>
    %cst_77 = arith.constant 9.99999974E-6 : f32
    %208 = vector.broadcast %cst_77 : f32 to vector<16x1xf32>
    %209 = arith.addf %205, %208 : vector<16x1xf32>
    %210 = math.rsqrt %209 : vector<16x1xf32>
    %211 = vector.broadcast %210 : vector<16x1xf32> to vector<16x64xf32>
    %212 = arith.mulf %207, %211 : vector<16x64xf32>
    %213 = vector.broadcast %191 : vector<1x64xf32> to vector<16x64xf32>
    %214 = arith.mulf %212, %213 : vector<16x64xf32>
    %215 = vector.broadcast %192 : vector<1x64xf32> to vector<16x64xf32>
    %216 = arith.addf %214, %215 : vector<16x64xf32>
    %217 = arith.addf %1, %216 : vector<16x64xf32>
    %218 = vector.shape_cast %217 : vector<16x64xf32> to vector<1x1x16x64xf32>
    %c0_78 = arith.constant 0 : index
    %c0_79 = arith.constant 0 : index
    %c0_80 = arith.constant 0 : index
    %c0_81 = arith.constant 0 : index
    %219 = vector.load %arg10[%c0_78, %c0_79, %c0_80, %c0_81] : memref<1x1x16x64xf32, #tpu.memory_space<vmem>>, vector<1x1x16x64xf32>
    tpu.vector_store %arg10[%c0_78, %c0_79, %c0_80, %c0_81], %218 {strides = array<i32>} : memref<1x1x16x64xf32, #tpu.memory_space<vmem>>, vector<1x1x16x64xf32>,
    return
  }
  func.func @transform_0(%arg0: i32) -> (i32, i32, i32, i32) {
    %c0_i32 = arith.constant 0 : i32
    %c0_i32_0 = arith.constant 0 : i32
    %c0_i32_1 = arith.constant 0 : i32
    %c0_i32_2 = arith.constant 0 : i32
    return %arg0, %c0_i32, %c0_i32_0, %c0_i32_1 : i32, i32, i32, i32
  }
  func.func @transform_1(%arg0: i32) -> (i32, i32) {
    %c0_i32 = arith.constant 0 : i32
    %c0_i32_0 = arith.constant 0 : i32
    %c0_i32_1 = arith.constant 0 : i32
    return %c0_i32, %c0_i32_0 : i32, i32
  }
  func.func @transform_2(%arg0: i32) -> (i32, i32) {
    %c0_i32 = arith.constant 0 : i32
    %c0_i32_0 = arith.constant 0 : i32
    %c0_i32_1 = arith.constant 0 : i32
    return %c0_i32, %c0_i32_0 : i32, i32
  }
  func.func @transform_3(%arg0: i32) -> (i32, i32) {
    %c0_i32 = arith.constant 0 : i32
    %c0_i32_0 = arith.constant 0 : i32
    %c0_i32_1 = arith.constant 0 : i32
    return %c0_i32, %c0_i32_0 : i32, i32
  }
  func.func @transform_4(%arg0: i32) -> (i32, i32) {
    %c0_i32 = arith.constant 0 : i32
    %c0_i32_0 = arith.constant 0 : i32
    %c0_i32_1 = arith.constant 0 : i32
    return %c0_i32, %c0_i32_0 : i32, i32
  }
  func.func @transform_5(%arg0: i32) -> (i32, i32) {
    %c0_i32 = arith.constant 0 : i32
    %c0_i32_0 = arith.constant 0 : i32
    %c0_i32_1 = arith.constant 0 : i32
    return %c0_i32, %c0_i32_0 : i32, i32
  }
  func.func @transform_6(%arg0: i32) -> (i32, i32) {
    %c0_i32 = arith.constant 0 : i32
    %c0_i32_0 = arith.constant 0 : i32
    %c0_i32_1 = arith.constant 0 : i32
    return %c0_i32, %c0_i32_0 : i32, i32
  }
  func.func @transform_7(%arg0: i32) -> (i32, i32, i32, i32) {
    %c0_i32 = arith.constant 0 : i32
    %c0_i32_0 = arith.constant 0 : i32
    %c0_i32_1 = arith.constant 0 : i32
    %c0_i32_2 = arith.constant 0 : i32
    %c0_i32_3 = arith.constant 0 : i32
    return %c0_i32, %c0_i32_0, %c0_i32_1, %c0_i32_2 : i32, i32, i32, i32
  }
  func.func @transform_8(%arg0: i32) -> (i32, i32, i32) {
    %c0_i32 = arith.constant 0 : i32
    %c0_i32_0 = arith.constant 0 : i32
    %c0_i32_1 = arith.constant 0 : i32
    %c0_i32_2 = arith.constant 0 : i32
    return %c0_i32, %c0_i32_0, %c0_i32_1 : i32, i32, i32
  }
  func.func @transform_9(%arg0: i32) -> (i32, i32, i32, i32) {
    %c0_i32 = arith.constant 0 : i32
    %c0_i32_0 = arith.constant 0 : i32
    %c0_i32_1 = arith.constant 0 : i32
    %c0_i32_2 = arith.constant 0 : i32
    return %arg0, %c0_i32, %c0_i32_0, %c0_i32_1 : i32, i32, i32, i32
  }
}

module attributes {stable_mosaic.version = 11 : i64} {
  func.func @_mlp_kernel(%arg0: i32, %arg1: memref<16x64xf32, #tpu.memory_space<vmem>>, %arg2: memref<64x256xf32, #tpu.memory_space<vmem>>, %arg3: memref<1x256xf32, #tpu.memory_space<vmem>>, %arg4: memref<256x64xf32, #tpu.memory_space<vmem>>, %arg5: memref<1x64xf32, #tpu.memory_space<vmem>>, %arg6: memref<1x64xf32, #tpu.memory_space<vmem>>, %arg7: memref<1x64xf32, #tpu.memory_space<vmem>>, %arg8: memref<16x64xf32, #tpu.memory_space<vmem>>) attributes {dimension_semantics = [#tpu.dimension_semantics<parallel>], iteration_bounds = array<i64: 2>, scalar_prefetch = 0 : i64, scratch_operands = 0 : i64, tpu.core_type = #tpu.core_type<tc>, window_params = [{transform_indices = @transform_0, window_bounds = array<i64: 16, 64>}, {pipeline_mode = #tpu.pipeline_mode<synchronous>, transform_indices = @transform_1, window_bounds = array<i64: 64, 256>}, {pipeline_mode = #tpu.pipeline_mode<synchronous>, transform_indices = @transform_2, window_bounds = array<i64: 1, 256>}, {pipeline_mode = #tpu.pipeline_mode<synchronous>, transform_indices = @transform_3, window_bounds = array<i64: 256, 64>}, {pipeline_mode = #tpu.pipeline_mode<synchronous>, transform_indices = @transform_4, window_bounds = array<i64: 1, 64>}, {pipeline_mode = #tpu.pipeline_mode<synchronous>, transform_indices = @transform_5, window_bounds = array<i64: 1, 64>}, {pipeline_mode = #tpu.pipeline_mode<synchronous>, transform_indices = @transform_6, window_bounds = array<i64: 1, 64>}, {transform_indices = @transform_7, window_bounds = array<i64: 16, 64>}]} {
    %c0 = arith.constant 0 : index
    %c0_0 = arith.constant 0 : index
    %0 = vector.load %arg1[%c0, %c0_0] : memref<16x64xf32, #tpu.memory_space<vmem>>, vector<16x64xf32>
    %c0_1 = arith.constant 0 : index
    %c0_2 = arith.constant 0 : index
    %1 = vector.load %arg2[%c0_1, %c0_2] : memref<64x256xf32, #tpu.memory_space<vmem>>, vector<64x256xf32>
    %2 = arith.truncf %0 : vector<16x64xf32> to vector<16x64xbf16>
    %3 = arith.truncf %1 : vector<64x256xf32> to vector<64x256xbf16>
    %cst = arith.constant dense<0.000000e+00> : vector<16x256xf32>
    %4 = tpu.matmul %2, %3, %cst {dimension_numbers = #tpu.dot_dimension_numbers<[1], [0], [0], [1], [0, 0, 1, 1], [], []>} : vector<16x64xbf16>, vector<64x256xbf16>, vector<16x256xf32> -> vector<16x256xf32>
    %c0_3 = arith.constant 0 : index
    %c0_4 = arith.constant 0 : index
    %5 = vector.load %arg3[%c0_3, %c0_4] : memref<1x256xf32, #tpu.memory_space<vmem>>, vector<1x256xf32>
    %6 = vector.broadcast %5 : vector<1x256xf32> to vector<16x256xf32>
    %7 = arith.addf %4, %6 : vector<16x256xf32>
    %8 = arith.mulf %7, %7 : vector<16x256xf32>
    %9 = arith.mulf %7, %8 : vector<16x256xf32>
    %cst_5 = arith.constant 4.471500e-02 : f32
    %10 = vector.broadcast %cst_5 : f32 to vector<16x256xf32>
    %11 = arith.mulf %10, %9 : vector<16x256xf32>
    %12 = arith.addf %7, %11 : vector<16x256xf32>
    %cst_6 = arith.constant 0.797884583 : f32
    %13 = vector.broadcast %cst_6 : f32 to vector<16x256xf32>
    %14 = arith.mulf %13, %12 : vector<16x256xf32>
    %15 = math.tanh %14 : vector<16x256xf32>
    %cst_7 = arith.constant 1.000000e+00 : f32
    %16 = vector.broadcast %cst_7 : f32 to vector<16x256xf32>
    %17 = arith.addf %16, %15 : vector<16x256xf32>
    %cst_8 = arith.constant 5.000000e-01 : f32
    %18 = vector.broadcast %cst_8 : f32 to vector<16x256xf32>
    %19 = arith.mulf %18, %17 : vector<16x256xf32>
    %20 = arith.mulf %7, %19 : vector<16x256xf32>
    %c0_9 = arith.constant 0 : index
    %c0_10 = arith.constant 0 : index
    %21 = vector.load %arg4[%c0_9, %c0_10] : memref<256x64xf32, #tpu.memory_space<vmem>>, vector<256x64xf32>
    %22 = arith.truncf %20 : vector<16x256xf32> to vector<16x256xbf16>
    %23 = arith.truncf %21 : vector<256x64xf32> to vector<256x64xbf16>
    %cst_11 = arith.constant dense<0.000000e+00> : vector<16x64xf32>
    %24 = tpu.matmul %22, %23, %cst_11 {dimension_numbers = #tpu.dot_dimension_numbers<[1], [0], [0], [1], [0, 0, 1, 1], [], []>} : vector<16x256xbf16>, vector<256x64xbf16>, vector<16x64xf32> -> vector<16x64xf32>
    %c0_12 = arith.constant 0 : index
    %c0_13 = arith.constant 0 : index
    %25 = vector.load %arg5[%c0_12, %c0_13] : memref<1x64xf32, #tpu.memory_space<vmem>>, vector<1x64xf32>
    %26 = vector.broadcast %25 : vector<1x64xf32> to vector<16x64xf32>
    %27 = arith.addf %24, %26 : vector<16x64xf32>
    %c0_14 = arith.constant 0 : index
    %c0_15 = arith.constant 0 : index
    %28 = vector.load %arg6[%c0_14, %c0_15] : memref<1x64xf32, #tpu.memory_space<vmem>>, vector<1x64xf32>
    %c0_16 = arith.constant 0 : index
    %c0_17 = arith.constant 0 : index
    %29 = vector.load %arg7[%c0_16, %c0_17] : memref<1x64xf32, #tpu.memory_space<vmem>>, vector<1x64xf32>
    %cst_18 = arith.constant dense<0.000000e+00> : vector<16xf32>
    %30 = vector.multi_reduction <add>, %27, %cst_18 [1] : vector<16x64xf32> to vector<16xf32>
    %31 = vector.shape_cast %30 : vector<16xf32> to vector<16x1xf32>
    %cst_19 = arith.constant 6.400000e+01 : f32
    %32 = vector.broadcast %cst_19 : f32 to vector<16x1xf32>
    %33 = arith.divf %31, %32 : vector<16x1xf32>
    %34 = vector.broadcast %33 : vector<16x1xf32> to vector<16x64xf32>
    %35 = arith.subf %27, %34 : vector<16x64xf32>
    %36 = vector.broadcast %33 : vector<16x1xf32> to vector<16x64xf32>
    %37 = arith.subf %27, %36 : vector<16x64xf32>
    %38 = arith.mulf %35, %37 : vector<16x64xf32>
    %cst_20 = arith.constant dense<0.000000e+00> : vector<16xf32>
    %39 = vector.multi_reduction <add>, %38, %cst_20 [1] : vector<16x64xf32> to vector<16xf32>
    %40 = vector.shape_cast %39 : vector<16xf32> to vector<16x1xf32>
    %cst_21 = arith.constant 6.400000e+01 : f32
    %41 = vector.broadcast %cst_21 : f32 to vector<16x1xf32>
    %42 = arith.divf %40, %41 : vector<16x1xf32>
    %43 = vector.broadcast %33 : vector<16x1xf32> to vector<16x64xf32>
    %44 = arith.subf %27, %43 : vector<16x64xf32>
    %cst_22 = arith.constant 9.99999974E-6 : f32
    %45 = vector.broadcast %cst_22 : f32 to vector<16x1xf32>
    %46 = arith.addf %42, %45 : vector<16x1xf32>
    %47 = math.rsqrt %46 : vector<16x1xf32>
    %48 = vector.broadcast %47 : vector<16x1xf32> to vector<16x64xf32>
    %49 = arith.mulf %44, %48 : vector<16x64xf32>
    %50 = vector.broadcast %28 : vector<1x64xf32> to vector<16x64xf32>
    %51 = arith.mulf %49, %50 : vector<16x64xf32>
    %52 = vector.broadcast %29 : vector<1x64xf32> to vector<16x64xf32>
    %53 = arith.addf %51, %52 : vector<16x64xf32>
    %54 = arith.addf %0, %53 : vector<16x64xf32>
    %c0_23 = arith.constant 0 : index
    %c0_24 = arith.constant 0 : index
    %55 = vector.load %arg8[%c0_23, %c0_24] : memref<16x64xf32, #tpu.memory_space<vmem>>, vector<16x64xf32>
    tpu.vector_store %arg8[%c0_23, %c0_24], %54 {strides = array<i32>} : memref<16x64xf32, #tpu.memory_space<vmem>>, vector<16x64xf32>,
    return
  }
  func.func @transform_0(%arg0: i32) -> (i32, i32) {
    %c0_i32 = arith.constant 0 : i32
    %c0_i32_0 = arith.constant 0 : i32
    return %arg0, %c0_i32 : i32, i32
  }
  func.func @transform_1(%arg0: i32) -> (i32, i32) {
    %c0_i32 = arith.constant 0 : i32
    %c0_i32_0 = arith.constant 0 : i32
    %c0_i32_1 = arith.constant 0 : i32
    return %c0_i32, %c0_i32_0 : i32, i32
  }
  func.func @transform_2(%arg0: i32) -> (i32, i32) {
    %c0_i32 = arith.constant 0 : i32
    %c0_i32_0 = arith.constant 0 : i32
    %c0_i32_1 = arith.constant 0 : i32
    return %c0_i32, %c0_i32_0 : i32, i32
  }
  func.func @transform_3(%arg0: i32) -> (i32, i32) {
    %c0_i32 = arith.constant 0 : i32
    %c0_i32_0 = arith.constant 0 : i32
    %c0_i32_1 = arith.constant 0 : i32
    return %c0_i32, %c0_i32_0 : i32, i32
  }
  func.func @transform_4(%arg0: i32) -> (i32, i32) {
    %c0_i32 = arith.constant 0 : i32
    %c0_i32_0 = arith.constant 0 : i32
    %c0_i32_1 = arith.constant 0 : i32
    return %c0_i32, %c0_i32_0 : i32, i32
  }
  func.func @transform_5(%arg0: i32) -> (i32, i32) {
    %c0_i32 = arith.constant 0 : i32
    %c0_i32_0 = arith.constant 0 : i32
    %c0_i32_1 = arith.constant 0 : i32
    return %c0_i32, %c0_i32_0 : i32, i32
  }
  func.func @transform_6(%arg0: i32) -> (i32, i32) {
    %c0_i32 = arith.constant 0 : i32
    %c0_i32_0 = arith.constant 0 : i32
    %c0_i32_1 = arith.constant 0 : i32
    return %c0_i32, %c0_i32_0 : i32, i32
  }
  func.func @transform_7(%arg0: i32) -> (i32, i32) {
    %c0_i32 = arith.constant 0 : i32
    %c0_i32_0 = arith.constant 0 : i32
    return %arg0, %c0_i32 : i32, i32
  }
}

module attributes {stable_mosaic.version = 11 : i64} {
  func.func @_tail_kernel(%arg0: i32, %arg1: memref<2x16x64xf32, #tpu.memory_space<vmem>>, %arg2: memref<1x64xf32, #tpu.memory_space<vmem>>, %arg3: memref<1x64xf32, #tpu.memory_space<vmem>>, %arg4: memref<64x5xf32, #tpu.memory_space<vmem>>, %arg5: memref<1x5xf32, #tpu.memory_space<vmem>>, %arg6: memref<2x5xf32, #tpu.memory_space<vmem>>) attributes {dimension_semantics = [#tpu.dimension_semantics<arbitrary>], iteration_bounds = array<i64: 1>, scalar_prefetch = 0 : i64, scratch_operands = 0 : i64, tpu.core_type = #tpu.core_type<tc>, window_params = [{pipeline_mode = #tpu.pipeline_mode<synchronous>, transform_indices = @transform_0, window_bounds = array<i64: 2, 16, 64>}, {pipeline_mode = #tpu.pipeline_mode<synchronous>, transform_indices = @transform_1, window_bounds = array<i64: 1, 64>}, {pipeline_mode = #tpu.pipeline_mode<synchronous>, transform_indices = @transform_2, window_bounds = array<i64: 1, 64>}, {pipeline_mode = #tpu.pipeline_mode<synchronous>, transform_indices = @transform_3, window_bounds = array<i64: 64, 5>}, {pipeline_mode = #tpu.pipeline_mode<synchronous>, transform_indices = @transform_4, window_bounds = array<i64: 1, 5>}, {pipeline_mode = #tpu.pipeline_mode<synchronous>, transform_indices = @transform_5, window_bounds = array<i64: 2, 5>}]} {
    %c0 = arith.constant 0 : index
    %c0_0 = arith.constant 0 : index
    %c0_1 = arith.constant 0 : index
    %0 = vector.load %arg1[%c0, %c0_0, %c0_1] : memref<2x16x64xf32, #tpu.memory_space<vmem>>, vector<2x16x64xf32>
    %c0_2 = arith.constant 0 : index
    %c0_3 = arith.constant 0 : index
    %1 = vector.load %arg2[%c0_2, %c0_3] : memref<1x64xf32, #tpu.memory_space<vmem>>, vector<1x64xf32>
    %c0_4 = arith.constant 0 : index
    %c0_5 = arith.constant 0 : index
    %2 = vector.load %arg3[%c0_4, %c0_5] : memref<1x64xf32, #tpu.memory_space<vmem>>, vector<1x64xf32>
    %cst = arith.constant dense<0.000000e+00> : vector<2x16xf32>
    %3 = vector.multi_reduction <add>, %0, %cst [2] : vector<2x16x64xf32> to vector<2x16xf32>
    %4 = vector.shape_cast %3 : vector<2x16xf32> to vector<2x16x1xf32>
    %cst_6 = arith.constant 6.400000e+01 : f32
    %5 = vector.broadcast %cst_6 : f32 to vector<2x16x1xf32>
    %6 = arith.divf %4, %5 : vector<2x16x1xf32>
    %7 = vector.broadcast %6 : vector<2x16x1xf32> to vector<2x16x64xf32>
    %8 = arith.subf %0, %7 : vector<2x16x64xf32>
    %9 = vector.broadcast %6 : vector<2x16x1xf32> to vector<2x16x64xf32>
    %10 = arith.subf %0, %9 : vector<2x16x64xf32>
    %11 = arith.mulf %8, %10 : vector<2x16x64xf32>
    %cst_7 = arith.constant dense<0.000000e+00> : vector<2x16xf32>
    %12 = vector.multi_reduction <add>, %11, %cst_7 [2] : vector<2x16x64xf32> to vector<2x16xf32>
    %13 = vector.shape_cast %12 : vector<2x16xf32> to vector<2x16x1xf32>
    %cst_8 = arith.constant 6.400000e+01 : f32
    %14 = vector.broadcast %cst_8 : f32 to vector<2x16x1xf32>
    %15 = arith.divf %13, %14 : vector<2x16x1xf32>
    %16 = vector.broadcast %6 : vector<2x16x1xf32> to vector<2x16x64xf32>
    %17 = arith.subf %0, %16 : vector<2x16x64xf32>
    %cst_9 = arith.constant 9.99999974E-6 : f32
    %18 = vector.broadcast %cst_9 : f32 to vector<2x16x1xf32>
    %19 = arith.addf %15, %18 : vector<2x16x1xf32>
    %20 = math.rsqrt %19 : vector<2x16x1xf32>
    %21 = vector.broadcast %20 : vector<2x16x1xf32> to vector<2x16x64xf32>
    %22 = arith.mulf %17, %21 : vector<2x16x64xf32>
    %23 = vector.shape_cast %1 : vector<1x64xf32> to vector<1x1x64xf32>
    %24 = vector.broadcast %23 : vector<1x1x64xf32> to vector<2x16x64xf32>
    %25 = arith.mulf %22, %24 : vector<2x16x64xf32>
    %26 = vector.shape_cast %2 : vector<1x64xf32> to vector<1x1x64xf32>
    %27 = vector.broadcast %26 : vector<1x1x64xf32> to vector<2x16x64xf32>
    %28 = arith.addf %25, %27 : vector<2x16x64xf32>
    %cst_10 = arith.constant dense<0.000000e+00> : vector<2x64xf32>
    %29 = vector.multi_reduction <add>, %28, %cst_10 [1] : vector<2x16x64xf32> to vector<2x64xf32>
    %cst_11 = arith.constant 1.600000e+01 : f32
    %30 = vector.broadcast %cst_11 : f32 to vector<2x64xf32>
    %31 = arith.divf %29, %30 : vector<2x64xf32>
    %32 = math.tanh %31 : vector<2x64xf32>
    %c0_12 = arith.constant 0 : index
    %c0_13 = arith.constant 0 : index
    %33 = vector.load %arg4[%c0_12, %c0_13] : memref<64x5xf32, #tpu.memory_space<vmem>>, vector<64x5xf32>
    %34 = arith.truncf %32 : vector<2x64xf32> to vector<2x64xbf16>
    %35 = arith.truncf %33 : vector<64x5xf32> to vector<64x5xbf16>
    %cst_14 = arith.constant dense<0.000000e+00> : vector<2x5xf32>
    %36 = tpu.matmul %34, %35, %cst_14 {dimension_numbers = #tpu.dot_dimension_numbers<[1], [0], [0], [1], [0, 0, 1, 1], [], []>} : vector<2x64xbf16>, vector<64x5xbf16>, vector<2x5xf32> -> vector<2x5xf32>
    %c0_15 = arith.constant 0 : index
    %c0_16 = arith.constant 0 : index
    %37 = vector.load %arg5[%c0_15, %c0_16] : memref<1x5xf32, #tpu.memory_space<vmem>>, vector<1x5xf32>
    %38 = vector.broadcast %37 : vector<1x5xf32> to vector<2x5xf32>
    %39 = arith.addf %36, %38 : vector<2x5xf32>
    %c0_17 = arith.constant 0 : index
    %c0_18 = arith.constant 0 : index
    %40 = vector.load %arg6[%c0_17, %c0_18] : memref<2x5xf32, #tpu.memory_space<vmem>>, vector<2x5xf32>
    tpu.vector_store %arg6[%c0_17, %c0_18], %39 {strides = array<i32>} : memref<2x5xf32, #tpu.memory_space<vmem>>, vector<2x5xf32>,
    return
  }
  func.func @transform_0(%arg0: i32) -> (i32, i32, i32) {
    %c0_i32 = arith.constant 0 : i32
    %c0_i32_0 = arith.constant 0 : i32
    %c0_i32_1 = arith.constant 0 : i32
    %c0_i32_2 = arith.constant 0 : i32
    return %c0_i32, %c0_i32_0, %c0_i32_1 : i32, i32, i32
  }
  func.func @transform_1(%arg0: i32) -> (i32, i32) {
    %c0_i32 = arith.constant 0 : i32
    %c0_i32_0 = arith.constant 0 : i32
    %c0_i32_1 = arith.constant 0 : i32
    return %c0_i32, %c0_i32_0 : i32, i32
  }
  func.func @transform_2(%arg0: i32) -> (i32, i32) {
    %c0_i32 = arith.constant 0 : i32
    %c0_i32_0 = arith.constant 0 : i32
    %c0_i32_1 = arith.constant 0 : i32
    return %c0_i32, %c0_i32_0 : i32, i32
  }
  func.func @transform_3(%arg0: i32) -> (i32, i32) {
    %c0_i32 = arith.constant 0 : i32
    %c0_i32_0 = arith.constant 0 : i32
    %c0_i32_1 = arith.constant 0 : i32
    return %c0_i32, %c0_i32_0 : i32, i32
  }
  func.func @transform_4(%arg0: i32) -> (i32, i32) {
    %c0_i32 = arith.constant 0 : i32
    %c0_i32_0 = arith.constant 0 : i32
    %c0_i32_1 = arith.constant 0 : i32
    return %c0_i32, %c0_i32_0 : i32, i32
  }
  func.func @transform_5(%arg0: i32) -> (i32, i32) {
    %c0_i32 = arith.constant 0 : i32
    %c0_i32_0 = arith.constant 0 : i32
    %c0_i32_1 = arith.constant 0 : i32
    return %c0_i32, %c0_i32_0 : i32, i32
  }
}

</mosaic_0001>

<bundles_post_ra>
// kernel: forward.11
= control target key start
LH: loop header
LB: loop body
LE: loop exit
PB: predicated region body
PF: predicated region fallthrough
CT: control target
= control target key end

     0   :  { %s661_s18 = smov 0   ;;  %s855_s0 = inlined_call_operand.vmem [shape: f32[128,48], index: 0, kind: input, shape index: {}]   ;;  %s856_s1 = inlined_call_operand.vmem [shape: f32[48,32], index: 1, kind: input, shape index: {}]   ;;  %s857_s2 = inlined_call_operand.vmem [shape: f32[1,32], index: 2, kind: input, shape index: {}]   ;;  %s858_s3 = inlined_call_operand.vmem [shape: f32[1,32], index: 3, kind: input, shape index: {}]   ;;  %s859_s4 = inlined_call_operand.vmem [shape: f32[1,32], index: 4, kind: input, shape index: {}]   ;;  %s860_s5 = inlined_call_operand.vmem [shape: f32[128,32], index: 5, kind: output, shape index: {}]  }
   0x1 LB: > { %s568_s19 = sadd.s32 4294967295, %s628_s18   ;;  %p572_p0 = scmp.ge.s32.totalorder %s628_s18, 1  ;;  %s628_s18 = sphi %s661_s18, %s15_s18  }
   0x2   : > { %p188_p1 = scmp.lt.s32.totalorder %s628_s18, 3 }
   0x4   : > { %p189_p2 = pnand %p572_p0, %p188_p1 }
   0x5   : > { %s573_s26 = sshll.u32 (!%p189_p2), %s568_s19, 3 }
   0x6   : > { %192 = sbr.rel (%p189_p2) target bundleno = 445 (0x1bd), region = 40  ;;  %p217_p3 = scmp.lt.s32.totalorder (!%p189_p2), %s573_s26, 15 }
   0xb   : > { %v241_v0 = vld [vmem:[%s856_s1 + $0x20] sm:$0xff]  ;;  %v242_v1 = vld [vmem:[%s856_s1 + $0x28] sm:$0xff]  ;;  %v239_v2 = vld [vmem:[%s856_s1 + $0x10] sm:$0xff]  ;;  %s862_s26 = smov (!%p217_p3, %s573_s26), 15  ;;  %vm254_vm0 = vcmask 392192   ;;  %vm298_vm1 = vcmask 261120  }
   0xc   : > { %v249_v3 = vpack.c.bf16 %v242_v1, %v241_v0  ;;  %v240_v4 = vld [vmem:[%s856_s1 + $0x18] sm:$0xff]  ;;  %v237_v6 = vld [vmem:[%s856_s1] sm:$0xff]  ;;  %v238_v7 = vld [vmem:[%s856_s1 + $0x8] sm:$0xff]  ;;  %s574_s8 = sshll.u32 %s862_s26, 3  ;;  %v630_v46 = vmov 32.0  }
   0xd   : > { %v248_v5 = vpack.c.bf16 %v240_v4, %v239_v2  ;;  %s220_s11 = scalar_lea.vmem %s855_s0, %s574_s8  ;;  %v247_v8 = vpack.c.bf16 %v238_v7, %v237_v6  ;;  %v601_v21 = vld [vmem:[%s857_s2] ss:$0 sm:$0xff]  ;;  %604 = vrcp.f32 %v630_v46  ;;  %s799_s21 = scalar_lea.vmem %s860_s5, %s574_s8 }
   0xe   : > { %272 = vmatpush.bf16.msra.mxu0 %v249_v3  ;;  %583 = vmatpush.bf16.msra.mxu1 %v249_v3  ;;  %v229_v9 = vld [vmem:[%s220_s11] sm:$0xff]  ;;  %v230_v10 = vld [vmem:[%s220_s11 + $0x8] sm:$0xff]  ;;  %v231_v11 = vld [vmem:[%s220_s11 + $0x10] sm:$0xff] }
   0xf   : > { %584 = vmatpush.bf16.msra.mxu2 %v249_v3  ;;  %585 = vmatpush.bf16.msra.mxu3 %v249_v3  ;;  %v232_v12 = vld [vmem:[%s220_s11 + $0x18] sm:$0xff]  ;;  %v233_v13 = vld [vmem:[%s220_s11 + $0x20] sm:$0xff]  ;;  %v234_v14 = vld [vmem:[%s220_s11 + $0x28] sm:$0xff]  ;;  %v243_v17 = vpack.c.bf16 %v230_v10, %v229_v9 }
  0x10   : > { %v235_v15 = vld [vmem:[%s220_s11 + $0x30] sm:$0xff]  ;;  %v236_v16 = vld [vmem:[%s220_s11 + $0x38] sm:$0xff]  ;;  %v244_v18 = vpack.c.bf16 %v232_v12, %v231_v11  ;;  %v245_v19 = vpack.c.bf16 %v234_v14, %v233_v13 }
  0x11   : > { %v246_v20 = vpack.c.bf16 %v236_v16, %v235_v15 }
  0x12   : > { %273 = vmatpush.bf16.msra.mxu0 %v248_v5  ;;  %586 = vmatpush.bf16.msra.mxu1 %v248_v5 }
  0x13   : > { %587 = vmatpush.bf16.msra.mxu2 %v248_v5  ;;  %588 = vmatpush.bf16.msra.mxu3 %v248_v5  ;;  %v605_v47 = vpop.eup %604 }
  0x14   : > { %v324_v48 = vmul.f32 32.0, %v605_v47  ;;  %vm328_vm2 = vweird.f32 %v605_v47 }
  0x16   : > { %274 = vmatpush.bf16.msra.mxu0 %v247_v8  ;;  %589 = vmatpush.bf16.msra.mxu1 %v247_v8  ;;  %v325_v49 = vsub.f32 1.0, %v324_v48 }
  0x17   : > { %590 = vmatpush.bf16.msra.mxu2 %v247_v8  ;;  %591 = vmatpush.bf16.msra.mxu3 %v247_v8 }
  0x18   : > { %v326_v50 = vmul.f32 %v605_v47, %v325_v49 }
  0x19   : > { %577 = vmatmul.msk.bf16.vlgmr.msra.gmra.mxu0 %vm254_vm0, %v243_v17  ;;  %578 = vmatmul.msk.bf16.vlgmr.msra.gmra.mxu1 %vm254_vm0, %v244_v18 }
  0x1a   : > { %579 = vmatmul.msk.bf16.vlgmr.msra.gmra.mxu2 %vm254_vm0, %v245_v19  ;;  %580 = vmatmul.msk.bf16.vlgmr.msra.gmra.mxu3 %vm254_vm0, %v246_v20  ;;  %v327_v51 = vadd.f32 %v605_v47, %v326_v50 }
  0x1c   : > { %v706_v52 = vsel %vm328_vm2, %v605_v47, %v327_v51 }
  0x96   : > { %v276_v22 = vpop.f32.mrf.mxu0  ;;  %v281_v23 = vpop.f32.mrf.mxu1 }
  0x97   : > { %v277_v24 = vadd.f32 %v601_v21, %v276_v22  ;;  %v282_v25 = vadd.f32 %v601_v21, %v281_v23 }
  0x99   : > { %v305_v26 = vsel %vm298_vm1, %v282_v25, 0.0  ;;  %v299_v27 = vsel %vm298_vm1, %v277_v24, 0.0 }
  0x9a   : > { %306 = vadd.xlane.f32.xlu1 %v305_v26  ;;  %300 = vadd.xlane.f32.xlu0 %v299_v27 }
  0x9d   : > { %v286_v28 = vpop.f32.mrf.mxu2  ;;  %v291_v29 = vpop.f32.mrf.mxu3 }
  0x9e   : > { %v287_v30 = vadd.f32 %v601_v21, %v286_v28  ;;  %v278_v31 = vpop.f32.mrf.mxu0  ;;  %v283_v32 = vpop.f32.mrf.mxu1  ;;  %v292_v38 = vadd.f32 %v601_v21, %v291_v29 }
  0x9f   : > { %v279_v33 = vadd.f32 %v601_v21, %v278_v31  ;;  %v284_v34 = vadd.f32 %v601_v21, %v283_v32 }
  0xa0   : > { %v311_v35 = vsel %vm298_vm1, %v287_v30, 0.0  ;;  %v317_v45 = vsel %vm298_vm1, %v292_v38, 0.0 }
  0xa1   : > { %312 = vadd.xlane.f32.xlu2 %v311_v35  ;;  %v308_v36 = vsel %vm298_vm1, %v284_v34, 0.0  ;;  %v302_v37 = vsel %vm298_vm1, %v279_v33, 0.0 }
  0xa2   : > { %309 = vadd.xlane.f32.xlu1 %v308_v36  ;;  %303 = vadd.xlane.f32.xlu0 %v302_v37 }
  0xa5   : > { %v288_v39 = vpop.f32.mrf.mxu2  ;;  %v293_v40 = vpop.f32.mrf.mxu3 }
  0xa6   : > { %v289_v41 = vadd.f32 %v601_v21, %v288_v39  ;;  %v294_v42 = vadd.f32 %v601_v21, %v293_v40 }
  0xa8   : > { %v314_v43 = vsel %vm298_vm1, %v289_v41, 0.0  ;;  %v320_v44 = vsel %vm298_vm1, %v294_v42, 0.0 }
  0xa9   : > { %315 = vadd.xlane.f32.xlu2 %v314_v43 }
  0xaa   : > { %321 = vadd.xlane.f32.xlu1 %v320_v44  ;;  %318 = vadd.xlane.f32.xlu0 %v317_v45 }
 0x10d   : > { %v307_v53 = vpop.xlane.xlu1 %306  ;;  %v301_v54 = vpop.xlane.xlu0 %300 }
 0x10e   : > { %v332_v55 = vmul.f32 %v706_v52, %v307_v53  ;;  %v330_v56 = vmul.f32 %v706_v52, %v301_v54 }
 0x110   : > { %v710_v57 = vsub.f32 %v282_v25, %v332_v55  ;;  %v712_v58 = vsub.f32 %v277_v24, %v330_v56 }
 0x112   : > { %v348_v59 = vmul.f32 %v710_v57, %v710_v57  ;;  %v346_v60 = vmul.f32 %v712_v58, %v712_v58 }
 0x114   : > { %v313_v61 = vpop.xlane.xlu2 %312  ;;  %v360_v62 = vsel %vm298_vm1, %v348_v59, 0.0  ;;  %v354_v63 = vsel %vm298_vm1, %v346_v60, 0.0 }
 0x115   : > { %v334_v0 = vmul.f32 %v706_v52, %v313_v61  ;;  %361 = vadd.xlane.f32.xlu1 %v360_v62  ;;  %v310_v1 = vpop.xlane.xlu1 %309  ;;  %355 = vadd.xlane.f32.xlu2 %v354_v63  ;;  %v304_v2 = vpop.xlane.xlu0 %303 }
 0x116   : > { %v333_v3 = vmul.f32 %v706_v52, %v310_v1  ;;  %v331_v5 = vmul.f32 %v706_v52, %v304_v2 }
 0x117   : > { %v722_v4 = vsub.f32 %v287_v30, %v334_v0 }
 0x118   : > { %v725_v6 = vsub.f32 %v284_v34, %v333_v3  ;;  %v731_v9 = vsub.f32 %v279_v33, %v331_v5  ;;  %v781_v5 = vld [vmem:[%s858_s3] ss:$0 sm:$0xff] }
 0x119   : > { %v350_v7 = vmul.f32 %v722_v4, %v722_v4 }
 0x11a   : > { %v349_v8 = vmul.f32 %v725_v6, %v725_v6  ;;  %v347_v19 = vmul.f32 %v731_v9, %v731_v9 }
 0x11b   : > { %v366_v10 = vsel %vm298_vm1, %v350_v7, 0.0 }
 0x11c   : > { %v316_v11 = vpop.xlane.xlu2 %315  ;;  %367 = vadd.xlane.f32.xlu0 %v366_v10  ;;  %v363_v12 = vsel %vm298_vm1, %v349_v8, 0.0  ;;  %v357_v25 = vsel %vm298_vm1, %v347_v19, 0.0 }
 0x11d   : > { %v335_v13 = vmul.f32 %v706_v52, %v316_v11  ;;  %v322_v14 = vpop.xlane.xlu1 %321  ;;  %364 = vadd.xlane.f32.xlu2 %v363_v12  ;;  %v319_v15 = vpop.xlane.xlu0 %318  ;;  %v788_v12 = vld [vmem:[%s859_s4] ss:$0 sm:$0xff] }
 0x11e   : > { %v336_v16 = vmul.f32 %v706_v52, %v319_v15  ;;  %v337_v18 = vmul.f32 %v706_v52, %v322_v14 }
 0x11f   : > { %v737_v17 = vsub.f32 %v289_v41, %v335_v13 }
 0x120   : > { %v742_v20 = vsub.f32 %v292_v38, %v336_v16  ;;  %v748_v23 = vsub.f32 %v294_v42, %v337_v18 }
 0x121   : > { %v351_v21 = vmul.f32 %v737_v17, %v737_v17 }
 0x122   : > { %v352_v22 = vmul.f32 %v742_v20, %v742_v20  ;;  %v353_v27 = vmul.f32 %v748_v23, %v748_v23 }
 0x123   : > { %v369_v24 = vsel %vm298_vm1, %v351_v21, 0.0 }
 0x124   : > { %370 = vadd.xlane.f32.xlu1 %v369_v24  ;;  %358 = vadd.xlane.f32.xlu0 %v357_v25  ;;  %v372_v26 = vsel %vm298_vm1, %v352_v22, 0.0  ;;  %v375_v28 = vsel %vm298_vm1, %v353_v27, 0.0 }
 0x125   : > { %373 = vadd.xlane.f32.xlu2 %v372_v26 }
 0x12c   : > { %376 = vadd.xlane.f32.xlu0 %v375_v28 }
 0x188   : > { %v362_v29 = vpop.xlane.xlu1 %361  ;;  %v356_v30 = vpop.xlane.xlu2 %355 }
 0x189   : > { %v380_v31 = vmul.f32 %v362_v29, %v706_v52  ;;  %v378_v32 = vmul.f32 %v356_v30, %v706_v52 }
 0x18b   : > { %v388_v33 = vadd.f32 1e-05, %v380_v31  ;;  %v386_v34 = vadd.f32 1e-05, %v378_v32 }
 0x18d   : > { %606 = vrsqrt.f32 %v388_v33  ;;  %vm420_vm5 = vweird.f32 %v388_v33  ;;  %vm400_vm7 = vweird.f32 %v386_v34 }
 0x18e   : > { %608 = vrsqrt.f32 %v386_v34 }
 0x18f   : > { %v368_v35 = vpop.xlane.xlu0 %367 }
 0x190   : > { %v382_v36 = vmul.f32 %v368_v35, %v706_v52  ;;  %v365_v37 = vpop.xlane.xlu2 %364 }
 0x191   : > { %v381_v38 = vmul.f32 %v365_v37, %v706_v52 }
 0x192   : > { %v760_v39 = vadd.f32 1e-05, %v382_v36 }
 0x193   : > { %v607_v40 = vpop.eup %606  ;;  %v762_v41 = vadd.f32 1e-05, %v381_v38 }
 0x194   : > { %v609_v42 = vpop.eup %608  ;;  %v415_v43 = vmul.f32 %v607_v40, %v388_v33  ;;  %610 = vrsqrt.f32 %v760_v39  ;;  %vm421_vm3 = vweird.f32 %v607_v40  ;;  %vm440_vm11 = vweird.f32 %v760_v39 }
 0x195   : > { %v395_v44 = vmul.f32 %v609_v42, %v386_v34  ;;  %612 = vrsqrt.f32 %v762_v41  ;;  %vm401_vm4 = vweird.f32 %v609_v42  ;;  %vm422_vm6 = vmor %vm420_vm5, %vm421_vm3  ;;  %vm430_vm13 = vweird.f32 %v762_v41 }
 0x196   : > { %v416_v45 = vmul.f32 %v607_v40, %v415_v43  ;;  %vm402_vm8 = vmor %vm400_vm7, %vm401_vm4 }
 0x197   : > { %v396_v46 = vmul.f32 %v609_v42, %v395_v44  ;;  %v371_v47 = vpop.xlane.xlu1 %370  ;;  %v359_v48 = vpop.xlane.xlu0 %358 }
 0x198   : > { %v417_v49 = vmul.f32 0.5, %v416_v45  ;;  %v383_v50 = vmul.f32 %v371_v47, %v706_v52  ;;  %v379_v51 = vmul.f32 %v359_v48, %v706_v52  ;;  %v374_v53 = vpop.xlane.xlu2 %373 }
 0x199   : > { %v397_v54 = vmul.f32 0.5, %v396_v46  ;;  %v384_v55 = vmul.f32 %v374_v53, %v706_v52 }
 0x19a   : > { %v611_v56 = vpop.eup %610  ;;  %v418_v59 = vsub.f32 1.5, %v417_v49  ;;  %v769_v60 = vadd.f32 1e-05, %v383_v50  ;;  %v771_v61 = vadd.f32 1e-05, %v379_v51 }
 0x19b   : > { %v613_v62 = vpop.eup %612  ;;  %v398_v63 = vsub.f32 1.5, %v397_v54  ;;  %v435_v0 = vmul.f32 %v611_v56, %v760_v39  ;;  %v774_v1 = vadd.f32 1e-05, %v384_v55  ;;  %vm441_vm9 = vweird.f32 %v611_v56 }
 0x19c   : > { %v419_v2 = vmul.f32 %v607_v40, %v418_v59  ;;  %v425_v3 = vmul.f32 %v613_v62, %v762_v41  ;;  %614 = vrsqrt.f32 %v769_v60  ;;  %vm431_vm10 = vweird.f32 %v613_v62  ;;  %vm442_vm12 = vmor %vm440_vm11, %vm441_vm9 }
 0x19d   : > { %v399_v7 = vmul.f32 %v609_v42, %v398_v63  ;;  %v436_v8 = vmul.f32 %v611_v56, %v435_v0  ;;  %616 = vrsqrt.f32 %v771_v61  ;;  %vm432_vm14 = vmor %vm430_vm13, %vm431_vm10  ;;  %vm450_vm0 = vweird.f32 %v769_v60 }
 0x19e   : > { %v423_v10 = vsel %vm422_vm6, %v607_v40, %v419_v2  ;;  %v426_v11 = vmul.f32 %v613_v62, %v425_v3  ;;  %618 = vrsqrt.f32 %v774_v1  ;;  %vm410_vm5 = vweird.f32 %v771_v61 }
 0x19f   : > { %v476_v13 = vmul.f32 %v423_v10, %v710_v57  ;;  %v403_v14 = vsel %vm402_vm8, %v609_v42, %v399_v7  ;;  %v437_v15 = vmul.f32 0.5, %v436_v8  ;;  %v377_v16 = vpop.xlane.xlu0 %376  ;;  %vm460_vm7 = vweird.f32 %v774_v1 }
 0x1a0   : > { %v474_v18 = vmul.f32 %v403_v14, %v712_v58  ;;  %v427_v19 = vmul.f32 0.5, %v426_v11  ;;  %v385_v21 = vmul.f32 %v377_v16, %v706_v52 }
 0x1a1   : > { %v487_v22 = vmul.f32 %v781_v5, %v476_v13  ;;  %v438_v24 = vsub.f32 1.5, %v437_v15 }
 0x1a2   : > { %v615_v25 = vpop.eup %614  ;;  %v485_v57 = vmul.f32 %v781_v5, %v474_v18  ;;  %v428_v26 = vsub.f32 1.5, %v427_v19  ;;  %v802_v58 = vadd.f32 1e-05, %v385_v21 }
 0x1a3   : > { %v617_v27 = vpop.eup %616  ;;  %v498_v52 = vadd.f32 %v788_v12, %v487_v22  ;;  %v439_v28 = vmul.f32 %v611_v56, %v438_v24  ;;  %v445_v29 = vmul.f32 %v615_v25, %v769_v60  ;;  %vm451_vm15 = vweird.f32 %v615_v25 }
 0x1a4   : > { %v619_v30 = vpop.eup %618  ;;  %v496_v31 = vadd.f32 %v788_v12, %v485_v57  ;;  %v429_v32 = vmul.f32 %v613_v62, %v428_v26  ;;  %v405_v33 = vmul.f32 %v617_v27, %v771_v61  ;;  %620 = vrsqrt.f32 %v802_v58  ;;  %vm452_vm4 = vmor %vm450_vm0, %vm451_vm15 }
 0x1a5   : > { %506 = vst.msk [vmem:[%s799_s21 + $0x10] sm:$0xff] %vm298_vm1, %v498_v52  ;;  %v443_v34 = vsel %vm442_vm12, %v611_v56, %v439_v28  ;;  %v446_v35 = vmul.f32 %v615_v25, %v445_v29  ;;  %v455_v36 = vmul.f32 %v619_v30, %v774_v1  ;;  %vm411_vm2 = vweird.f32 %v617_v27 }
 0x1a6   : > { %504 = vst.msk [vmem:[%s799_s21] sm:$0xff] %vm298_vm1, %v496_v31  ;;  %v478_v37 = vmul.f32 %v443_v34, %v722_v4  ;;  %v433_v38 = vsel %vm432_vm14, %v613_v62, %v429_v32  ;;  %v406_v39 = vmul.f32 %v617_v27, %v405_v33  ;;  %vm461_vm3 = vweird.f32 %v619_v30  ;;  %vm412_vm6 = vmor %vm410_vm5, %vm411_vm2 }
 0x1a7   : > { %v477_v40 = vmul.f32 %v433_v38, %v725_v6  ;;  %v447_v41 = vmul.f32 0.5, %v446_v35  ;;  %v456_v42 = vmul.f32 %v619_v30, %v455_v36  ;;  %vm462_vm8 = vmor %vm460_vm7, %vm461_vm3  ;;  %vm470_vm10 = vweird.f32 %v802_v58 }
 0x1a8   : > { %v489_v43 = vmul.f32 %v781_v5, %v478_v37  ;;  %v407_v44 = vmul.f32 0.5, %v406_v39 }
 0x1a9   : > { %v488_v45 = vmul.f32 %v781_v5, %v477_v40  ;;  %v448_v46 = vsub.f32 1.5, %v447_v41  ;;  %v457_v47 = vmul.f32 0.5, %v456_v42 }
 0x1aa   : > { %v500_v4 = vadd.f32 %v788_v12, %v489_v43  ;;  %v408_v48 = vsub.f32 1.5, %v407_v44  ;;  %v621_v51 = vpop.eup %620 }
 0x1ab   : > { %v499_v6 = vadd.f32 %v788_v12, %v488_v45  ;;  %v449_v49 = vmul.f32 %v615_v25, %v448_v46  ;;  %v458_v50 = vsub.f32 1.5, %v457_v47  ;;  %v465_v56 = vmul.f32 %v621_v51, %v802_v58 }
 0x1ac   : > { %508 = vst.msk [vmem:[%s799_s21 + $0x20] sm:$0xff] %vm298_vm1, %v500_v4  ;;  %v409_v53 = vmul.f32 %v617_v27, %v408_v48  ;;  %vm471_vm9 = vweird.f32 %v621_v51 }
 0x1ad   : > { %507 = vst.msk [vmem:[%s799_s21 + $0x18] sm:$0xff] %vm298_vm1, %v499_v6  ;;  %v453_v54 = vsel %vm452_vm4, %v615_v25, %v449_v49  ;;  %v459_v55 = vmul.f32 %v619_v30, %v458_v50  ;;  %v466_v61 = vmul.f32 %v621_v51, %v465_v56  ;;  %vm472_vm11 = vmor %vm470_vm10, %vm471_vm9 }
 0x1ae   : > { %v479_v59 = vmul.f32 %v453_v54, %v737_v17  ;;  %v413_v60 = vsel %vm412_vm6, %v617_v27, %v409_v53 }
 0x1af   : > { %v475_v62 = vmul.f32 %v413_v60, %v731_v9  ;;  %v463_v63 = vsel %vm462_vm8, %v619_v30, %v459_v55  ;;  %v467_v1 = vmul.f32 0.5, %v466_v61 }
 0x1b0   : > { %v490_v0 = vmul.f32 %v781_v5, %v479_v59  ;;  %v480_v2 = vmul.f32 %v463_v63, %v742_v20 }
 0x1b1   : > { %v486_v3 = vmul.f32 %v781_v5, %v475_v62  ;;  %v468_v10 = vsub.f32 1.5, %v467_v1 }
 0x1b2   : > { %v501_v7 = vadd.f32 %v788_v12, %v490_v0  ;;  %v491_v17 = vmul.f32 %v781_v5, %v480_v2 }
 0x1b3   : > { %v497_v8 = vadd.f32 %v788_v12, %v486_v3  ;;  %v469_v11 = vmul.f32 %v621_v51, %v468_v10 }
 0x1b4   : > { %509 = vst.msk [vmem:[%s799_s21 + $0x28] sm:$0xff] %vm298_vm1, %v501_v7  ;;  %v502_v9 = vadd.f32 %v788_v12, %v491_v17 }
 0x1b5   : > { %505 = vst.msk [vmem:[%s799_s21 + $0x8] sm:$0xff] %vm298_vm1, %v497_v8  ;;  %v473_v20 = vsel %vm472_vm11, %v621_v51, %v469_v11 }
 0x1b6   : > { %510 = vst.msk [vmem:[%s799_s21 + $0x30] sm:$0xff] %vm298_vm1, %v502_v9  ;;  %v481_v13 = vmul.f32 %v473_v20, %v748_v23 }
 0x1b8   : > { %v492_v14 = vmul.f32 %v781_v5, %v481_v13 }
 0x1ba   : > { %v503_v15 = vadd.f32 %v788_v12, %v492_v14 }
 0x1bc   : > { %511 = vst.msk [vmem:[%s799_s21 + $0x38] sm:$0xff] %vm298_vm1, %v503_v15 }
 0x1bd PF: > { %s15_s18 = sadd.s32 1, %s628_s18  }
 0x1be   : > { %p12_p4 = scmp.ge.s32.totalorder %s15_s18, 4  }
 0x1c0   :  { %14 = sbr.rel (!%p12_p4) target bundleno = 1 (0x1), region = 70 }

// kernel: forward.13
= control target key start
LH: loop header
LB: loop body
LE: loop exit
PB: predicated region body
PF: predicated region fallthrough
CT: control target
= control target key end

     0   :  { %s888_s24 = smov 0   ;;  %s1142_s0 = inlined_call_operand.vmem [shape: f32[128,32], index: 0, kind: input, shape index: {}]   ;;  %s1143_s1 = inlined_call_operand.vmem [shape: f32[32,128], index: 1, kind: input, shape index: {}]   ;;  %s1144_s2 = inlined_call_operand.vmem [shape: f32[1,128], index: 2, kind: input, shape index: {}]   ;;  %s1145_s3 = inlined_call_operand.vmem [shape: f32[128,32], index: 3, kind: input, shape index: {}]   ;;  %s1146_s4 = inlined_call_operand.vmem [shape: f32[1,32], index: 4, kind: input, shape index: {}]   ;;  %s1147_s5 = inlined_call_operand.vmem [shape: f32[1,32], index: 5, kind: input, shape index: {}]   ;;  %s1148_s6 = inlined_call_operand.vmem [shape: f32[1,32], index: 6, kind: input, shape index: {}]   ;;  %s1149_s7 = inlined_call_operand.vmem [shape: f32[128,32], index: 7, kind: output, shape index: {}]  }
   0x1 LB: > { %s759_s25 = sadd.s32 4294967295, %s845_s24   ;;  %p763_p0 = scmp.ge.s32.totalorder %s845_s24, 1  ;;  %s845_s24 = sphi %s888_s24, %s17_s24  }
   0x2   : > { %p238_p1 = scmp.lt.s32.totalorder %s845_s24, 3 }
   0x4   : > { %p239_p2 = pnand %p763_p0, %p238_p1 }
   0x5   : > { %s764_s9 = sshll.u32 (!%p239_p2), %s759_s25, 3 }
   0x6   : > { %242 = sbr.rel (%p239_p2) target bundleno = 633 (0x279), region = 48  ;;  %p271_p3 = scmp.lt.s32.totalorder (!%p239_p2), %s764_s9, 15 }
   0xb   : > { %v293_v0 = vld [vmem:[%s1143_s1 + $0x10] sm:$0xff]  ;;  %v294_v1 = vld [vmem:[%s1143_s1 + $0x18] sm:$0xff]  ;;  %v291_v2 = vld [vmem:[%s1143_s1] sm:$0xff]  ;;  %s1151_s9 = smov (!%p271_p3, %s764_s9), 15  ;;  %vm305_vm0 = vcmask 261120  }
   0xc   : > { %v300_v3 = vpack.c.bf16 %v294_v1, %v293_v0  ;;  %v292_v4 = vld [vmem:[%s1143_s1 + $0x8] sm:$0xff]  ;;  %s765_s12 = sshll.u32 %s1151_s9, 3  ;;  %v433_v18 = vld [vmem:[%s1145_s3 + $0x70] sm:$0xff]  ;;  %v434_v19 = vld [vmem:[%s1145_s3 + $0x78] sm:$0xff] }
   0xd   : > { %v299_v5 = vpack.c.bf16 %v292_v4, %v291_v2  ;;  %s274_s15 = scalar_lea.vmem %s1142_s0, %s765_s12  ;;  %v446_v20 = vpack.c.bf16 %v434_v19, %v433_v18  ;;  %v431_v21 = vld [vmem:[%s1145_s3 + $0x60] sm:$0xff]  ;;  %v432_v22 = vld [vmem:[%s1145_s3 + $0x68] sm:$0xff]  ;;  %v429_v24 = vld [vmem:[%s1145_s3 + $0x50] sm:$0xff]  ;;  %s1088_s18 = scalar_lea.vmem %s1149_s7, %s765_s12 }
   0xe   : > { %324 = vmatpush.bf16.msra.mxu0 %v300_v3  ;;  %774 = vmatpush.bf16.msra.mxu3 %v300_v3  ;;  %v916_v6 = vld [vmem:[%s274_s15] sm:$0xff]  ;;  %v918_v7 = vld [vmem:[%s274_s15 + $0x8] sm:$0xff]  ;;  %v920_v8 = vld [vmem:[%s274_s15 + $0x10] sm:$0xff]  ;;  %v445_v23 = vpack.c.bf16 %v432_v22, %v431_v21 }
   0xf   : > { %v295_v9 = vpack.c.bf16 %v918_v7, %v916_v6  ;;  %v924_v10 = vld [vmem:[%s274_s15 + $0x18] sm:$0xff]  ;;  %v930_v12 = vld [vmem:[%s274_s15 + $0x20] sm:$0xff]  ;;  %v932_v13 = vld [vmem:[%s274_s15 + $0x28] sm:$0xff]  ;;  %776 = vmatpush.bf16.msra.mxu1 %v446_v20  ;;  %777 = vmatpush.bf16.msra.mxu2 %v446_v20 }
  0x10   : > { %v296_v11 = vpack.c.bf16 %v924_v10, %v920_v8  ;;  %v297_v14 = vpack.c.bf16 %v932_v13, %v930_v12  ;;  %v937_v15 = vld [vmem:[%s274_s15 + $0x30] sm:$0xff]  ;;  %v939_v16 = vld [vmem:[%s274_s15 + $0x38] sm:$0xff]  ;;  %v427_v27 = vld [vmem:[%s1145_s3 + $0x40] sm:$0xff] }
  0x11   : > { %v298_v17 = vpack.c.bf16 %v939_v16, %v937_v15  ;;  %v430_v25 = vld [vmem:[%s1145_s3 + $0x58] sm:$0xff]  ;;  %v428_v28 = vld [vmem:[%s1145_s3 + $0x48] sm:$0xff]  ;;  %v425_v30 = vld [vmem:[%s1145_s3 + $0x30] sm:$0xff] }
  0x12   : > { %325 = vmatpush.bf16.msra.mxu0 %v299_v5  ;;  %775 = vmatpush.bf16.msra.mxu3 %v299_v5  ;;  %v444_v26 = vpack.c.bf16 %v430_v25, %v429_v24  ;;  %v443_v29 = vpack.c.bf16 %v428_v28, %v427_v27  ;;  %v426_v31 = vld [vmem:[%s1145_s3 + $0x38] sm:$0xff]  ;;  %v423_v33 = vld [vmem:[%s1145_s3 + $0x20] sm:$0xff]  ;;  %v424_v34 = vld [vmem:[%s1145_s3 + $0x28] sm:$0xff] }
  0x13   : > { %778 = vmatpush.bf16.msra.mxu1 %v445_v23  ;;  %779 = vmatpush.bf16.msra.mxu2 %v445_v23  ;;  %v442_v32 = vpack.c.bf16 %v426_v31, %v425_v30  ;;  %v441_v35 = vpack.c.bf16 %v424_v34, %v423_v33  ;;  %v421_v36 = vld [vmem:[%s1145_s3 + $0x10] sm:$0xff]  ;;  %v422_v37 = vld [vmem:[%s1145_s3 + $0x18] sm:$0xff]  ;;  %v989_v39 = vld [vmem:[%s1144_s2] ss:$0 sm:$0xff] }
  0x14   : > { %v440_v38 = vpack.c.bf16 %v422_v37, %v421_v36  ;;  %v419_v40 = vld [vmem:[%s1145_s3] sm:$0xff]  ;;  %v420_v41 = vld [vmem:[%s1145_s3 + $0x8] sm:$0xff] }
  0x15   : > { %768 = vmatmul.msk.bf16.vlgmr.msra.gmra.mxu0 %vm305_vm0, %v295_v9  ;;  %769 = vmatmul.msk.bf16.vlgmr.msra.gmra.mxu3 %vm305_vm0, %v296_v11  ;;  %v439_v43 = vpack.c.bf16 %v420_v41, %v419_v40 }
  0x16   : > { %451 = vmatpush.bf16.msrb.mxu0 %v446_v20 }
  0x17   : > { %780 = vmatpush.bf16.msra.mxu1 %v444_v26  ;;  %781 = vmatpush.bf16.msra.mxu2 %v444_v26 }
  0x1a   : > { %452 = vmatpush.bf16.msrb.mxu0 %v445_v23 }
  0x1b   : > { %782 = vmatpush.bf16.msra.mxu1 %v443_v29  ;;  %783 = vmatpush.bf16.msra.mxu2 %v443_v29 }
  0x1e   : > { %453 = vmatpush.bf16.msrb.mxu0 %v444_v26 }
  0x1f   : > { %784 = vmatpush.bf16.msra.mxu1 %v442_v32  ;;  %785 = vmatpush.bf16.msra.mxu2 %v442_v32 }
  0x22   : > { %454 = vmatpush.bf16.msrb.mxu0 %v443_v29 }
  0x23   : > { %786 = vmatpush.bf16.msra.mxu1 %v441_v35  ;;  %787 = vmatpush.bf16.msra.mxu2 %v441_v35 }
  0x25   : > { %770 = vmatmul.msk.bf16.gmra.mxu3 %vm305_vm0, %v297_v14 }
  0x26   : > { %455 = vmatpush.bf16.msrb.mxu0 %v442_v32 }
  0x27   : > { %788 = vmatpush.bf16.msra.mxu1 %v440_v38  ;;  %789 = vmatpush.bf16.msra.mxu2 %v440_v38 }
  0x2a   : > { %456 = vmatpush.bf16.msrb.mxu0 %v441_v35 }
  0x2b   : > { %790 = vmatpush.bf16.msra.mxu1 %v439_v43  ;;  %791 = vmatpush.bf16.msra.mxu2 %v439_v43 }
  0x2e   : > { %457 = vmatpush.bf16.msrb.mxu0 %v440_v38 }
  0x32   : > { %458 = vmatpush.bf16.msrb.mxu0 %v439_v43 }
  0x35   : > { %771 = vmatmul.msk.bf16.gmra.mxu3 %vm305_vm0, %v298_v17 }
  0x92   : > { %v327_v42 = vpop.f32.mrf.mxu0 }
  0x93   : > { %v328_v44 = vadd.f32 %v989_v39, %v327_v42 }
  0x95   : > { %v347_v45 = vmul.f32 %v328_v44, %v328_v44 }
  0x97   : > { %v355_v46 = vmul.f32 %v347_v45, %v328_v44 }
  0x98   : > { %v332_v48 = vpop.f32.mrf.mxu3 }
  0x99   : > { %v363_v47 = vmul.f32 0.044715, %v355_v46  ;;  %v333_v49 = vadd.f32 %v989_v39, %v332_v48 }
  0x9a   : > { %v329_v50 = vpop.f32.mrf.mxu0 }
  0x9b   : > { %v371_v51 = vadd.f32 %v363_v47, %v328_v44  ;;  %v330_v52 = vadd.f32 %v989_v39, %v329_v50  ;;  %v349_v53 = vmul.f32 %v333_v49, %v333_v49 }
  0x9d   : > { %v379_v54 = vmul.f32 0.7978846, %v371_v51  ;;  %v348_v55 = vmul.f32 %v330_v52, %v330_v52  ;;  %v357_v56 = vmul.f32 %v349_v53, %v333_v49 }
  0x9f   : > { %805 = vtanh.f32 %v379_v54  ;;  %v356_v57 = vmul.f32 %v348_v55, %v330_v52  ;;  %v365_v58 = vmul.f32 0.044715, %v357_v56 }
  0xa0   : > { %v334_v60 = vpop.f32.mrf.mxu3 }
  0xa1   : > { %v364_v59 = vmul.f32 0.044715, %v356_v57  ;;  %v373_v61 = vadd.f32 %v365_v58, %v333_v49  ;;  %v335_v62 = vadd.f32 %v989_v39, %v334_v60 }
  0xa3   : > { %v372_v63 = vadd.f32 %v364_v59, %v330_v52  ;;  %v350_v0 = vmul.f32 %v335_v62, %v335_v62  ;;  %v381_v1 = vmul.f32 0.7978846, %v373_v61 }
  0xa5   : > { %v806_v2 = vpop.eup %805  ;;  %v380_v3 = vmul.f32 0.7978846, %v372_v63  ;;  %v358_v4 = vmul.f32 %v350_v0, %v335_v62 }
  0xa6   : > { %v395_v9 = vadd.f32 1.0, %v806_v2 }
  0xa7   : > { %807 = vtanh.f32 %v380_v3  ;;  %v366_v5 = vmul.f32 0.044715, %v358_v4 }
  0xa8   : > { %809 = vtanh.f32 %v381_v1  ;;  %v337_v11 = vpop.f32.mrf.mxu3  ;;  %v403_v19 = vmul.f32 0.5, %v395_v9 }
  0xa9   : > { %v374_v14 = vadd.f32 %v366_v5, %v335_v62  ;;  %v338_v17 = vadd.f32 %v989_v39, %v337_v11 }
  0xaa   : > { %v411_v27 = vmul.f32 %v403_v19, %v328_v44 }
  0xab   : > { %v351_v18 = vmul.f32 %v338_v17, %v338_v17  ;;  %v382_v20 = vmul.f32 0.7978846, %v374_v14 }
  0xad   : > { %v808_v21 = vpop.eup %807  ;;  %v359_v23 = vmul.f32 %v351_v18, %v338_v17  ;;  %811 = vtanh.f32 %v382_v20 }
  0xae   : > { %v810_v22 = vpop.eup %809  ;;  %v396_v24 = vadd.f32 1.0, %v808_v21 }
  0xaf   : > { %v367_v25 = vmul.f32 0.044715, %v359_v23  ;;  %v397_v29 = vadd.f32 1.0, %v810_v22 }
  0xb0   : > { %v404_v26 = vmul.f32 0.5, %v396_v24  ;;  %v339_v28 = vpop.f32.mrf.mxu3 }
  0xb1   : > { %v375_v30 = vadd.f32 %v367_v25, %v338_v17  ;;  %v340_v31 = vadd.f32 %v989_v39, %v339_v28  ;;  %v405_v38 = vmul.f32 0.5, %v397_v29 }
  0xb2   : > { %v412_v32 = vmul.f32 %v404_v26, %v330_v52 }
  0xb3   : > { %v812_v33 = vpop.eup %811  ;;  %v352_v34 = vmul.f32 %v340_v31, %v340_v31  ;;  %v383_v36 = vmul.f32 0.7978846, %v375_v30  ;;  %v413_v45 = vmul.f32 %v405_v38, %v333_v49 }
  0xb4   : > { %v435_v35 = vpack.c.bf16 %v412_v32, %v411_v27  ;;  %v398_v37 = vadd.f32 1.0, %v812_v33 }
  0xb5   : > { %v360_v40 = vmul.f32 %v352_v34, %v340_v31  ;;  %813 = vtanh.f32 %v383_v36 }
  0xb6   : > { %459 = vmatmul.bf16.vlgmr.msrb.gmra.mxu0 %v435_v35  ;;  %v406_v41 = vmul.f32 0.5, %v398_v37 }
  0xb7   : > { %v368_v42 = vmul.f32 0.044715, %v360_v40 }
  0xb8   : > { %v342_v43 = vpop.f32.mrf.mxu3  ;;  %v414_v44 = vmul.f32 %v406_v41, %v335_v62 }
  0xb9   : > { %v376_v46 = vadd.f32 %v368_v42, %v340_v31  ;;  %v343_v47 = vadd.f32 %v989_v39, %v342_v43 }
  0xba   : > { %v436_v48 = vpack.c.bf16 %v414_v44, %v413_v45 }
  0xbb   : > { %v353_v50 = vmul.f32 %v343_v47, %v343_v47  ;;  %v384_v51 = vmul.f32 0.7978846, %v376_v46  ;;  %v814_v52 = vpop.eup %813 }
  0xbc   : > { %464 = vmatmul.bf16.vlgmr.msra.gmra.mxu1 %v436_v48  ;;  %v399_v56 = vadd.f32 1.0, %v814_v52 }
  0xbd   : > { %v361_v53 = vmul.f32 %v353_v50, %v343_v47  ;;  %815 = vtanh.f32 %v384_v51  ;;  %v847_v50 = vmov 32.0  }
  0xbe   : > { %v407_v62 = vmul.f32 0.5, %v399_v56 }
  0xbf   : > { %v369_v54 = vmul.f32 0.044715, %v361_v53 }
  0xc0   : > { %v344_v55 = vpop.f32.mrf.mxu3  ;;  %v415_v2 = vmul.f32 %v407_v62, %v338_v17  ;;  %v802_v17 = vld [vmem:[%s1146_s4] ss:$0 sm:$0xff] }
  0xc1   : > { %v377_v57 = vadd.f32 %v369_v54, %v343_v47  ;;  %v345_v58 = vadd.f32 %v989_v39, %v344_v55 }
  0xc3   : > { %v816_v59 = vpop.eup %815  ;;  %v354_v60 = vmul.f32 %v345_v58, %v345_v58  ;;  %v385_v49 = vmul.f32 0.7978846, %v377_v57 }
  0xc4   : > { %v400_v61 = vadd.f32 1.0, %v816_v59 }
  0xc5   : > { %v362_v63 = vmul.f32 %v354_v60, %v345_v58  ;;  %817 = vtanh.f32 %v385_v49 }
  0xc6   : > { %v408_v0 = vmul.f32 0.5, %v400_v61 }
  0xc7   : > { %v370_v1 = vmul.f32 0.044715, %v362_v63 }
  0xc8   : > { %v416_v3 = vmul.f32 %v408_v0, %v340_v31 }
  0xc9   : > { %v378_v4 = vadd.f32 %v370_v1, %v345_v58 }
  0xca   : > { %v437_v5 = vpack.c.bf16 %v416_v3, %v415_v2 }
  0xcb   : > { %v386_v9 = vmul.f32 0.7978846, %v378_v4  ;;  %v818_v11 = vpop.eup %817 }
  0xcc   : > { %469 = vmatmul.bf16.vlgmr.msra.gmra.mxu2 %v437_v5  ;;  %v401_v14 = vadd.f32 1.0, %v818_v11 }
  0xcd   : > { %819 = vtanh.f32 %v386_v9 }
  0xce   : > { %v409_v19 = vmul.f32 0.5, %v401_v14  ;;  %821 = vrcp.f32 %v847_v50 }
  0xd0   : > { %v417_v21 = vmul.f32 %v409_v19, %v343_v47 }
  0xd3   : > { %v820_v18 = vpop.eup %819 }
  0xd4   : > { %v402_v39 = vadd.f32 1.0, %v820_v18  ;;  %v822_v51 = vpop.eup %821 }
  0xd5   : > { %v507_v52 = vmul.f32 32.0, %v822_v51  ;;  %vm511_vm1 = vweird.f32 %v822_v51 }
  0xd6   : > { %v410_v20 = vmul.f32 0.5, %v402_v39 }
  0xd7   : > { %v508_v53 = vsub.f32 1.0, %v507_v52 }
  0xd8   : > { %v418_v22 = vmul.f32 %v410_v20, %v345_v58 }
  0xd9   : > { %v509_v54 = vmul.f32 %v822_v51, %v508_v53 }
  0xda   : > { %v438_v23 = vpack.c.bf16 %v418_v22, %v417_v21 }
  0xdb   : > { %v510_v55 = vadd.f32 %v822_v51, %v509_v54 }
  0xdc   : > { %474 = vmatmul.bf16.gmra.mxu2 %v438_v23 }
  0xdd   : > { %v1016_v56 = vsel %vm511_vm1, %v822_v51, %v510_v55 }
 0x133   : > { %v460_v24 = vpop.f32.mrf.mxu0 }
 0x134   : > { %v461_v25 = vadd.f32 %v802_v17, %v460_v24 }
 0x136   : > { %v482_v26 = vsel %vm305_vm0, %v461_v25, 0.0 }
 0x137   : > { %483 = vadd.xlane.f32.xlu0 %v482_v26 }
 0x139   : > { %v465_v27 = vpop.f32.mrf.mxu1 }
 0x13a   : > { %v466_v28 = vadd.f32 %v802_v17, %v465_v27 }
 0x13b   : > { %v462_v29 = vpop.f32.mrf.mxu0 }
 0x13c   : > { %v463_v30 = vadd.f32 %v802_v17, %v462_v29  ;;  %v488_v31 = vsel %vm305_vm0, %v466_v28, 0.0 }
 0x13d   : > { %489 = vadd.xlane.f32.xlu1 %v488_v31 }
 0x13e   : > { %v485_v32 = vsel %vm305_vm0, %v463_v30, 0.0 }
 0x13f   : > { %486 = vadd.xlane.f32.xlu0 %v485_v32 }
 0x141   : > { %v467_v33 = vpop.f32.mrf.mxu1 }
 0x142   : > { %v468_v34 = vadd.f32 %v802_v17, %v467_v33 }
 0x144   : > { %v491_v35 = vsel %vm305_vm0, %v468_v34, 0.0 }
 0x145   : > { %492 = vadd.xlane.f32.xlu1 %v491_v35 }
 0x14f   : > { %v470_v36 = vpop.f32.mrf.mxu2 }
 0x150   : > { %v471_v37 = vadd.f32 %v802_v17, %v470_v36 }
 0x152   : > { %v494_v38 = vsel %vm305_vm0, %v471_v37, 0.0 }
 0x153   : > { %495 = vadd.xlane.f32.xlu2 %v494_v38 }
 0x157   : > { %v472_v40 = vpop.f32.mrf.mxu2 }
 0x158   : > { %v473_v41 = vadd.f32 %v802_v17, %v472_v40 }
 0x15a   : > { %v497_v42 = vsel %vm305_vm0, %v473_v41, 0.0 }
 0x15b   : > { %498 = vadd.xlane.f32.xlu2 %v497_v42 }
 0x15f   : > { %v475_v43 = vpop.f32.mrf.mxu2 }
 0x160   : > { %v476_v45 = vadd.f32 %v802_v17, %v475_v43 }
 0x162   : > { %v500_v44 = vsel %vm305_vm0, %v476_v45, 0.0 }
 0x163   : > { %501 = vadd.xlane.f32.xlu0 %v500_v44 }
 0x167   : > { %v477_v46 = vpop.f32.mrf.mxu2 }
 0x168   : > { %v478_v47 = vadd.f32 %v802_v17, %v477_v46 }
 0x16a   : > { %v503_v48 = vsel %vm305_vm0, %v478_v47, 0.0 }
 0x16b   : > { %504 = vadd.xlane.f32.xlu1 %v503_v48 }
 0x1aa   : > { %v484_v57 = vpop.xlane.xlu0 %483 }
 0x1ab   : > { %v513_v58 = vmul.f32 %v1016_v56, %v484_v57 }
 0x1ad   : > { %v1019_v59 = vsub.f32 %v461_v25, %v513_v58 }
 0x1af   : > { %v529_v60 = vmul.f32 %v1019_v59, %v1019_v59 }
 0x1b0   : > { %v490_v49 = vpop.xlane.xlu1 %489 }
 0x1b1   : > { %v537_v61 = vsel %vm305_vm0, %v529_v60, 0.0  ;;  %v515_v62 = vmul.f32 %v1016_v56, %v490_v49 }
 0x1b2   : > { %538 = vadd.xlane.f32.xlu2 %v537_v61  ;;  %v487_v63 = vpop.xlane.xlu0 %486 }
 0x1b3   : > { %v514_v0 = vmul.f32 %v1016_v56, %v487_v63  ;;  %v1026_v1 = vsub.f32 %v466_v28, %v515_v62 }
 0x1b5   : > { %v1028_v2 = vsub.f32 %v463_v30, %v514_v0  ;;  %v531_v3 = vmul.f32 %v1026_v1, %v1026_v1  ;;  %v1073_v0 = vld [vmem:[%s1147_s5] ss:$0 sm:$0xff] }
 0x1b7   : > { %v530_v4 = vmul.f32 %v1028_v2, %v1028_v2  ;;  %v543_v5 = vsel %vm305_vm0, %v531_v3, 0.0 }
 0x1b8   : > { %544 = vadd.xlane.f32.xlu1 %v543_v5  ;;  %v493_v9 = vpop.xlane.xlu1 %492 }
 0x1b9   : > { %v540_v11 = vsel %vm305_vm0, %v530_v4, 0.0  ;;  %v516_v14 = vmul.f32 %v1016_v56, %v493_v9  ;;  %v1078_v9 = vld [vmem:[%s1148_s6] ss:$0 sm:$0xff] }
 0x1ba   : > { %541 = vadd.xlane.f32.xlu0 %v540_v11 }
 0x1bb   : > { %v1037_v18 = vsub.f32 %v468_v34, %v516_v14 }
 0x1bd   : > { %v532_v39 = vmul.f32 %v1037_v18, %v1037_v18 }
 0x1bf   : > { %v546_v19 = vsel %vm305_vm0, %v532_v39, 0.0 }
 0x1c0   : > { %547 = vadd.xlane.f32.xlu2 %v546_v19 }
 0x1c6   : > { %v496_v20 = vpop.xlane.xlu2 %495 }
 0x1c7   : > { %v517_v21 = vmul.f32 %v1016_v56, %v496_v20 }
 0x1c9   : > { %v1043_v22 = vsub.f32 %v471_v37, %v517_v21 }
 0x1cb   : > { %v533_v23 = vmul.f32 %v1043_v22, %v1043_v22 }
 0x1cd   : > { %v549_v17 = vsel %vm305_vm0, %v533_v23, 0.0 }
 0x1ce   : > { %v499_v24 = vpop.xlane.xlu2 %498  ;;  %550 = vadd.xlane.f32.xlu0 %v549_v17 }
 0x1cf   : > { %v518_v25 = vmul.f32 %v1016_v56, %v499_v24 }
 0x1d1   : > { %v1049_v26 = vsub.f32 %v473_v41, %v518_v25 }
 0x1d3   : > { %v534_v27 = vmul.f32 %v1049_v26, %v1049_v26 }
 0x1d5   : > { %v552_v28 = vsel %vm305_vm0, %v534_v27, 0.0 }
 0x1d6   : > { %553 = vadd.xlane.f32.xlu1 %v552_v28  ;;  %v502_v29 = vpop.xlane.xlu0 %501 }
 0x1d7   : > { %v519_v30 = vmul.f32 %v1016_v56, %v502_v29 }
 0x1d9   : > { %v1055_v31 = vsub.f32 %v476_v45, %v519_v30 }
 0x1db   : > { %v535_v32 = vmul.f32 %v1055_v31, %v1055_v31 }
 0x1dd   : > { %v555_v33 = vsel %vm305_vm0, %v535_v32, 0.0 }
 0x1de   : > { %v505_v34 = vpop.xlane.xlu1 %504  ;;  %556 = vadd.xlane.f32.xlu2 %v555_v33 }
 0x1df   : > { %v520_v35 = vmul.f32 %v1016_v56, %v505_v34 }
 0x1e1   : > { %v1061_v36 = vsub.f32 %v478_v47, %v520_v35 }
 0x1e3   : > { %v536_v37 = vmul.f32 %v1061_v36, %v1061_v36 }
 0x1e5   : > { %v558_v38 = vsel %vm305_vm0, %v536_v37, 0.0 }
 0x1e6   : > { %559 = vadd.xlane.f32.xlu0 %v558_v38 }
 0x225   : > { %v539_v40 = vpop.xlane.xlu2 %538 }
 0x226   : > { %v561_v41 = vmul.f32 %v539_v40, %v1016_v56 }
 0x228   : > { %v569_v42 = vadd.f32 1e-05, %v561_v41 }
 0x22a   : > { %823 = vrsqrt.f32 %v569_v42  ;;  %vm583_vm3 = vweird.f32 %v569_v42 }
 0x22b   : > { %v545_v43 = vpop.xlane.xlu1 %544 }
 0x22c   : > { %v563_v45 = vmul.f32 %v545_v43, %v1016_v56 }
 0x22d   : > { %v542_v44 = vpop.xlane.xlu0 %541 }
 0x22e   : > { %v562_v46 = vmul.f32 %v542_v44, %v1016_v56  ;;  %v571_v48 = vadd.f32 1e-05, %v563_v45 }
 0x230   : > { %v824_v47 = vpop.eup %823  ;;  %v570_v50 = vadd.f32 1e-05, %v562_v46  ;;  %825 = vrsqrt.f32 %v571_v48  ;;  %vm603_vm7 = vweird.f32 %v571_v48 }
 0x231   : > { %v578_v51 = vmul.f32 %v824_v47, %v569_v42  ;;  %vm584_vm2 = vweird.f32 %v824_v47 }
 0x232   : > { %827 = vrsqrt.f32 %v570_v50  ;;  %vm585_vm4 = vmor %vm583_vm3, %vm584_vm2  ;;  %vm593_vm9 = vweird.f32 %v570_v50 }
 0x233   : > { %v579_v52 = vmul.f32 %v824_v47, %v578_v51  ;;  %v548_v53 = vpop.xlane.xlu2 %547 }
 0x234   : > { %v564_v55 = vmul.f32 %v548_v53, %v1016_v56 }
 0x235   : > { %v580_v54 = vmul.f32 0.5, %v579_v52 }
 0x236   : > { %v826_v57 = vpop.eup %825  ;;  %v572_v60 = vadd.f32 1e-05, %v564_v55 }
 0x237   : > { %v581_v58 = vsub.f32 1.5, %v580_v54  ;;  %v598_v61 = vmul.f32 %v826_v57, %v571_v48  ;;  %vm604_vm5 = vweird.f32 %v826_v57 }
 0x238   : > { %v828_v49 = vpop.eup %827  ;;  %829 = vrsqrt.f32 %v572_v60  ;;  %vm605_vm8 = vmor %vm603_vm7, %vm604_vm5  ;;  %vm613_vm12 = vweird.f32 %v572_v60 }
 0x239   : > { %v582_v62 = vmul.f32 %v824_v47, %v581_v58  ;;  %v588_v63 = vmul.f32 %v828_v49, %v570_v50  ;;  %v599_v3 = vmul.f32 %v826_v57, %v598_v61  ;;  %vm594_vm6 = vweird.f32 %v828_v49 }
 0x23a   : > { %vm595_vm10 = vmor %vm593_vm9, %vm594_vm6 }
 0x23b   : > { %v586_v4 = vsel %vm585_vm4, %v824_v47, %v582_v62  ;;  %v589_v5 = vmul.f32 %v828_v49, %v588_v63  ;;  %v600_v14 = vmul.f32 0.5, %v599_v3 }
 0x23c   : > { %v657_v11 = vmul.f32 %v586_v4, %v1019_v59 }
 0x23d   : > { %v590_v39 = vmul.f32 0.5, %v589_v5  ;;  %v601_v20 = vsub.f32 1.5, %v600_v14 }
 0x23e   : > { %v668_v19 = vmul.f32 %v1073_v0, %v657_v11  ;;  %v830_v21 = vpop.eup %829 }
 0x23f   : > { %v591_v23 = vsub.f32 1.5, %v590_v39  ;;  %v602_v24 = vmul.f32 %v826_v57, %v601_v20  ;;  %v608_v25 = vmul.f32 %v830_v21, %v572_v60  ;;  %vm614_vm11 = vweird.f32 %v830_v21 }
 0x240   : > { %v679_v17 = vadd.f32 %v1078_v9, %v668_v19  ;;  %vm615_vm13 = vmor %vm613_vm12, %vm614_vm11 }
 0x241   : > { %v592_v59 = vmul.f32 %v828_v49, %v591_v23  ;;  %v606_v28 = vsel %vm605_vm8, %v826_v57, %v602_v24  ;;  %v609_v29 = vmul.f32 %v830_v21, %v608_v25  ;;  %v551_v30 = vpop.xlane.xlu0 %550 }
 0x242   : > { %v687_v27 = vadd.f32 %v679_v17, %v916_v6  ;;  %v659_v32 = vmul.f32 %v606_v28, %v1026_v1  ;;  %v565_v34 = vmul.f32 %v551_v30, %v1016_v56 }
 0x243   : > { %v596_v33 = vsel %vm595_vm10, %v828_v49, %v592_v59  ;;  %v610_v37 = vmul.f32 0.5, %v609_v29 }
 0x244   : > { %695 = vst.msk [vmem:[%s1088_s18] sm:$0xff] %vm305_vm0, %v687_v27  ;;  %v658_v35 = vmul.f32 %v596_v33, %v1028_v2  ;;  %v670_v38 = vmul.f32 %v1073_v0, %v659_v32  ;;  %v573_v40 = vadd.f32 1e-05, %v565_v34 }
 0x245   : > { %v611_v41 = vsub.f32 1.5, %v610_v37 }
 0x246   : > { %v669_v6 = vmul.f32 %v1073_v0, %v658_v35  ;;  %v681_v42 = vadd.f32 %v1078_v9, %v670_v38  ;;  %831 = vrsqrt.f32 %v573_v40  ;;  %vm623_vm15 = vweird.f32 %v573_v40 }
 0x247   : > { %v612_v43 = vmul.f32 %v830_v21, %v611_v41 }
 0x248   : > { %v680_v1 = vadd.f32 %v1078_v9, %v669_v6  ;;  %v689_v45 = vadd.f32 %v681_v42, %v920_v8 }
 0x249   : > { %v616_v44 = vsel %vm615_vm13, %v830_v21, %v612_v43  ;;  %v554_v46 = vpop.xlane.xlu1 %553 }
 0x24a   : > { %v688_v2 = vadd.f32 %v680_v1, %v918_v7  ;;  %697 = vst.msk [vmem:[%s1088_s18 + $0x10] sm:$0xff] %vm305_vm0, %v689_v45  ;;  %v660_v48 = vmul.f32 %v616_v44, %v1037_v18  ;;  %v566_v47 = vmul.f32 %v554_v46, %v1016_v56 }
 0x24c   : > { %696 = vst.msk [vmem:[%s1088_s18 + $0x8] sm:$0xff] %vm305_vm0, %v688_v2  ;;  %v832_v50 = vpop.eup %831  ;;  %v671_v51 = vmul.f32 %v1073_v0, %v660_v48  ;;  %v574_v52 = vadd.f32 1e-05, %v566_v47 }
 0x24d   : > { %v618_v53 = vmul.f32 %v832_v50, %v573_v40  ;;  %vm624_vm14 = vweird.f32 %v832_v50 }
 0x24e   : > { %v682_v8 = vadd.f32 %v1078_v9, %v671_v51  ;;  %833 = vrsqrt.f32 %v574_v52  ;;  %vm625_vm1 = vmor %vm623_vm15, %vm624_vm14  ;;  %vm633_vm3 = vweird.f32 %v574_v52 }
 0x24f   : > { %v619_v7 = vmul.f32 %v832_v50, %v618_v53 }
 0x250   : > { %v690_v54 = vadd.f32 %v682_v8, %v924_v10 }
 0x251   : > { %v620_v55 = vmul.f32 0.5, %v619_v7  ;;  %v557_v57 = vpop.xlane.xlu2 %556 }
 0x252   : > { %698 = vst.msk [vmem:[%s1088_s18 + $0x18] sm:$0xff] %vm305_vm0, %v690_v54  ;;  %v567_v18 = vmul.f32 %v557_v57, %v1016_v56 }
 0x253   : > { %v621_v58 = vsub.f32 1.5, %v620_v55 }
 0x254   : > { %v834_v60 = vpop.eup %833  ;;  %v575_v49 = vadd.f32 1e-05, %v567_v18 }
 0x255   : > { %v622_v61 = vmul.f32 %v832_v50, %v621_v58  ;;  %v628_v62 = vmul.f32 %v834_v60, %v574_v52  ;;  %vm634_vm2 = vweird.f32 %v834_v60 }
 0x256   : > { %835 = vrsqrt.f32 %v575_v49  ;;  %vm635_vm4 = vmor %vm633_vm3, %vm634_vm2  ;;  %vm643_vm6 = vweird.f32 %v575_v49 }
 0x257   : > { %v626_v63 = vsel %vm625_vm1, %v832_v50, %v622_v61  ;;  %v629_v3 = vmul.f32 %v834_v60, %v628_v62 }
 0x258   : > { %v661_v4 = vmul.f32 %v626_v63, %v1043_v22 }
 0x259   : > { %v630_v10 = vmul.f32 0.5, %v629_v3  ;;  %v560_v5 = vpop.xlane.xlu0 %559 }
 0x25a   : > { %v672_v11 = vmul.f32 %v1073_v0, %v661_v4  ;;  %v568_v14 = vmul.f32 %v560_v5, %v1016_v56 }
 0x25b   : > { %v631_v39 = vsub.f32 1.5, %v630_v10 }
 0x25c   : > { %v836_v19 = vpop.eup %835  ;;  %v683_v20 = vadd.f32 %v1078_v9, %v672_v11  ;;  %v576_v21 = vadd.f32 1e-05, %v568_v14 }
 0x25d   : > { %v632_v23 = vmul.f32 %v834_v60, %v631_v39  ;;  %v638_v17 = vmul.f32 %v836_v19, %v575_v49  ;;  %vm644_vm5 = vweird.f32 %v836_v19 }
 0x25e   : > { %v691_v24 = vadd.f32 %v683_v20, %v930_v12  ;;  %837 = vrsqrt.f32 %v576_v21  ;;  %vm645_vm7 = vmor %vm643_vm6, %vm644_vm5  ;;  %vm653_vm9 = vweird.f32 %v576_v21 }
 0x25f   : > { %v636_v22 = vsel %vm635_vm4, %v834_v60, %v632_v23  ;;  %v639_v25 = vmul.f32 %v836_v19, %v638_v17 }
 0x260   : > { %699 = vst.msk [vmem:[%s1088_s18 + $0x20] sm:$0xff] %vm305_vm0, %v691_v24  ;;  %v662_v56 = vmul.f32 %v636_v22, %v1049_v26 }
 0x261   : > { %v640_v59 = vmul.f32 0.5, %v639_v25 }
 0x262   : > { %v673_v27 = vmul.f32 %v1073_v0, %v662_v56 }
 0x263   : > { %v641_v28 = vsub.f32 1.5, %v640_v59 }
 0x264   : > { %v838_v29 = vpop.eup %837  ;;  %v684_v30 = vadd.f32 %v1078_v9, %v673_v27 }
 0x265   : > { %v642_v32 = vmul.f32 %v836_v19, %v641_v28  ;;  %v648_v12 = vmul.f32 %v838_v29, %v576_v21  ;;  %vm654_vm8 = vweird.f32 %v838_v29 }
 0x266   : > { %v692_v33 = vadd.f32 %v684_v30, %v932_v13  ;;  %vm655_vm10 = vmor %vm653_vm9, %vm654_vm8 }
 0x267   : > { %v646_v34 = vsel %vm645_vm7, %v836_v19, %v642_v32  ;;  %v649_v35 = vmul.f32 %v838_v29, %v648_v12 }
 0x268   : > { %700 = vst.msk [vmem:[%s1088_s18 + $0x28] sm:$0xff] %vm305_vm0, %v692_v33  ;;  %v663_v26 = vmul.f32 %v646_v34, %v1055_v31 }
 0x269   : > { %v650_v37 = vmul.f32 0.5, %v649_v35 }
 0x26a   : > { %v674_v38 = vmul.f32 %v1073_v0, %v663_v26 }
 0x26b   : > { %v651_v40 = vsub.f32 1.5, %v650_v37 }
 0x26c   : > { %v685_v6 = vadd.f32 %v1078_v9, %v674_v38 }
 0x26d   : > { %v652_v41 = vmul.f32 %v838_v29, %v651_v40 }
 0x26e   : > { %v693_v13 = vadd.f32 %v685_v6, %v937_v15 }
 0x26f   : > { %v656_v42 = vsel %vm655_vm10, %v838_v29, %v652_v41 }
 0x270   : > { %701 = vst.msk [vmem:[%s1088_s18 + $0x30] sm:$0xff] %vm305_vm0, %v693_v13  ;;  %v664_v1 = vmul.f32 %v656_v42, %v1061_v36 }
 0x272   : > { %v675_v31 = vmul.f32 %v1073_v0, %v664_v1 }
 0x274   : > { %v686_v43 = vadd.f32 %v1078_v9, %v675_v31 }
 0x276   : > { %v694_v45 = vadd.f32 %v686_v43, %v939_v16 }
 0x278   : > { %702 = vst.msk [vmem:[%s1088_s18 + $0x38] sm:$0xff] %vm305_vm0, %v694_v45 }
 0x279 PF: > { %s17_s24 = sadd.s32 1, %s845_s24  }
 0x27a   : > { %p14_p4 = scmp.ge.s32.totalorder %s17_s24, 4  }
 0x27c   :  { %16 = sbr.rel (!%p14_p4) target bundleno = 1 (0x1), region = 78 }

// kernel: forward.12
= control target key start
LH: loop header
LB: loop body
LE: loop exit
PB: predicated region body
PF: predicated region fallthrough
CT: control target
= control target key end

     0   :  { %s2437_s30 = smov 0   ;;  %s3340_s0 = inlined_call_operand.vmem [shape: f32[2,4,16,32], index: 0, kind: input, shape index: {}]   ;;  %s3341_s1 = inlined_call_operand.vmem [shape: f32[32,96], index: 1, kind: input, shape index: {}]   ;;  %s3342_s2 = inlined_call_operand.vmem [shape: f32[1,96], index: 2, kind: input, shape index: {}]   ;;  %s3343_s3 = inlined_call_operand.vmem [shape: f32[32,32], index: 3, kind: input, shape index: {}]   ;;  %s3344_s4 = inlined_call_operand.vmem [shape: f32[1,32], index: 4, kind: input, shape index: {}]   ;;  %s3345_s5 = inlined_call_operand.vmem [shape: f32[1,32], index: 5, kind: input, shape index: {}]   ;;  %s3346_s6 = inlined_call_operand.vmem [shape: f32[1,32], index: 6, kind: input, shape index: {}]   ;;  %s3347_s7 = inlined_call_operand.vmem [shape: f32[2,4,16,16], index: 7, kind: input, shape index: {}]   ;;  %s3348_s8 = inlined_call_operand.vmem [shape: f32[2,1,1], index: 8, kind: input, shape index: {}]   ;;  %s3349_s9 = inlined_call_operand.vmem [shape: f32[2,4,16,32], index: 9, kind: output, shape index: {}]  }
   0x1 LB: > { %s2120_s10 = sadd.s32 4294967295, %s2377_s30   ;;  %p2124_p0 = scmp.ge.s32.totalorder %s2377_s30, 1  ;;  %s2377_s30 = sphi %s2437_s30, %s19_s30  }
   0x2   : > { %p287_p1 = scmp.lt.s32.totalorder %s2377_s30, 3 }
   0x4   : > { %p288_p2 = pnand %p2124_p0, %p287_p1 }
   0x5   : > { %p323_p3 = scmp.lt.s32.totalorder (!%p288_p2), %s2120_s10, 1  ;;  %s2379_s25 = smov (!%p288_p2), 96  }
   0x6   : > { %291 = sbr.rel (%p288_p2) target bundleno = 2221 (0x8ad), region = 56  ;;  %s2381_s28 = smov (!%p288_p2), 80  }
   0x7   : > { %s2382_s29 = smov (!%p288_p2), 112   ;;  %s2383_s12 = smov (!%p288_p2), 64  }
   0x8   : > { %s2384_s27 = smov (!%p288_p2), 48   ;;  %s2385_s13 = smov (!%p288_p2), 16  }
   0xb   : > { %v344_v0 = vld [vmem:[%s3341_s1 + $0x10] sm:$0xff]  ;;  %v345_v1 = vld [vmem:[%s3341_s1 + $0x18] sm:$0xff]  ;;  %v342_v2 = vld [vmem:[%s3341_s1] sm:$0xff]  ;;  %s3365_s10 = smov (!%p323_p3, %s2120_s10), 1  ;;  %vm356_vm0 = vcmask 261120   ;;  %vm406_vm1 = vcmask 130048  }
   0xc   : > { %v351_v3 = vpack.c.bf16 %v345_v1, %v344_v0  ;;  %v343_v4 = vld [vmem:[%s3341_s1 + $0x8] sm:$0xff]  ;;  %s2164_s19 = sshll.u32 %s3365_s10, 6  ;;  %v2211_v18 = vld [vmem:[%s3342_s2] ss:$0 sm:$0xff] }
   0xd   : > { %v350_v5 = vpack.c.bf16 %v343_v4, %v342_v2  ;;  %s2465_s22 = scalar_lea.vmem %s3340_s0, %s2164_s19 }
   0xe   : > { %375 = vmatpush.bf16.msra.mxu0 %v351_v3  ;;  %2166 = vmatpush.bf16.msra.mxu1 %v351_v3  ;;  %v334_v6 = vld [vmem:[%s2465_s22] sm:$0xff]  ;;  %v335_v7 = vld [vmem:[%s2465_s22 + $0x8] sm:$0xff]  ;;  %v336_v8 = vld [vmem:[%s2465_s22 + $0x10] sm:$0xff] }
   0xf   : > { %2168 = vmatpush.bf16.msra.mxu3 %v351_v3  ;;  %2167 = vmatpush.bf16.msra.mxu2 %v351_v3  ;;  %v346_v9 = vpack.c.bf16 %v335_v7, %v334_v6  ;;  %v337_v10 = vld [vmem:[%s2465_s22 + $0x18] sm:$0xff]  ;;  %v340_v11 = vld [vmem:[%s2465_s22 + $0x30] sm:$0xff]  ;;  %v338_v15 = vld [vmem:[%s2465_s22 + $0x20] sm:$0xff] }
  0x10   : > { %v341_v12 = vld [vmem:[%s2465_s22 + $0x38] sm:$0xff]  ;;  %v347_v13 = vpack.c.bf16 %v337_v10, %v336_v8  ;;  %v339_v16 = vld [vmem:[%s2465_s22 + $0x28] sm:$0xff] }
  0x11   : > { %v349_v14 = vpack.c.bf16 %v341_v12, %v340_v11  ;;  %v348_v17 = vpack.c.bf16 %v339_v16, %v338_v15 }
  0x12   : > { %376 = vmatpush.bf16.msra.mxu0 %v350_v5  ;;  %2169 = vmatpush.bf16.msra.mxu1 %v350_v5 }
  0x13   : > { %2171 = vmatpush.bf16.msra.mxu3 %v350_v5  ;;  %2170 = vmatpush.bf16.msra.mxu2 %v350_v5 }
  0x15   : > { %2129 = vmatmul.msk.bf16.vlgmr.msra.gmra.mxu0 %vm356_vm0, %v346_v9  ;;  %2130 = vmatmul.msk.bf16.vlgmr.msra.gmra.mxu1 %vm356_vm0, %v347_v13 }
  0x16   : > { %2132 = vmatmul.msk.bf16.vlgmr.msra.gmra.mxu3 %vm356_vm0, %v349_v14  ;;  %2131 = vmatmul.msk.bf16.vlgmr.msra.gmra.mxu2 %vm356_vm0, %v348_v17 }
  0x92   : > { %v378_v19 = vpop.f32.mrf.mxu0  ;;  %v383_v20 = vpop.f32.mrf.mxu1 }
  0x93   : > { %v2482_v21 = vadd.f32 %v2211_v18, %v378_v19  ;;  %v2484_v22 = vadd.f32 %v2211_v18, %v383_v20 }
  0x95   : > { %v2488_v23 = vmul.f32 %v2484_v22, %v2484_v22  ;;  %v2492_v24 = vmul.f32 %v2482_v21, %v2482_v21 }
  0x97   : > { %539 = vrot.lane.b32.xlu0 %v2488_v23, %s2379_s25  ;;  %535 = vrot.lane.b32.xlu1 %v2492_v24, %s2379_s25  ;;  %v413_v57 = vsel %vm406_vm1, %v2488_v23, 0.0  ;;  %v407_v59 = vsel %vm406_vm1, %v2492_v24, 0.0 }
  0x99   : > { %v393_v25 = vpop.f32.mrf.mxu3  ;;  %v388_v26 = vpop.f32.mrf.mxu2 }
  0x9a   : > { %v385_v27 = vpop.f32.mrf.mxu1  ;;  %v380_v28 = vpop.f32.mrf.mxu0  ;;  %v2498_v29 = vadd.f32 %v2211_v18, %v388_v26  ;;  %v2520_v35 = vadd.f32 %v2211_v18, %v393_v25 }
  0x9b   : > { %v2500_v30 = vadd.f32 %v2211_v18, %v385_v27  ;;  %v2502_v31 = vadd.f32 %v2211_v18, %v380_v28  ;;  %v2380_v27 = vmov 0  }
  0x9c   : > { %v2506_v32 = vmul.f32 %v2498_v29, %v2498_v29  ;;  %v2530_v40 = vmul.f32 %v2520_v35, %v2520_v35  ;;  %2188 = vset.pattern.permute.xlu1 %v2380_v27  ;;  %2189 = vset.pattern.permute.xlu2 %v2380_v27 }
  0x9d   : > { %v2510_v33 = vmul.f32 %v2500_v30, %v2500_v30  ;;  %v2514_v34 = vmul.f32 %v2502_v31, %v2502_v31  ;;  %2210 = vset.pattern.permute.xlu0 %v2380_v27 }
  0x9e   : > { %543 = vrot.lane.b32.xlu2 %v2506_v32, %s2379_s25  ;;  %v419_v0 = vsel %vm406_vm1, %v2506_v32, 0.0  ;;  %v425_v2 = vsel %vm406_vm1, %v2530_v40, 0.0 }
  0x9f   : > { %541 = vrot.lane.b32.xlu0 %v2510_v33, %s2379_s25  ;;  %537 = vrot.lane.b32.xlu1 %v2514_v34, %s2379_s25  ;;  %v416_v58 = vsel %vm406_vm1, %v2510_v33, 0.0  ;;  %v410_v62 = vsel %vm406_vm1, %v2514_v34, 0.0 }
  0xa1   : > { %v390_v36 = vpop.f32.mrf.mxu2  ;;  %v395_v37 = vpop.f32.mrf.mxu3 }
  0xa2   : > { %v2524_v38 = vadd.f32 %v2211_v18, %v390_v36  ;;  %v2526_v39 = vadd.f32 %v2211_v18, %v395_v37 }
  0xa4   : > { %v2534_v41 = vmul.f32 %v2524_v38, %v2524_v38  ;;  %v2538_v42 = vmul.f32 %v2526_v39, %v2526_v39 }
  0xa6   : > { %545 = vrot.lane.b32.xlu2 %v2534_v41, %s2379_s25  ;;  %v422_v63 = vsel %vm406_vm1, %v2534_v41, 0.0  ;;  %v428_v1 = vsel %vm406_vm1, %v2538_v42, 0.0 }
  0xa7   : > { %547 = vrot.lane.b32.xlu0 %v2530_v40, %s2379_s25  ;;  %549 = vrot.lane.b32.xlu1 %v2538_v42, %s2379_s25 }
  0xf8   : > { %v544_v47 = vpop.permute.xlu2 %543 }
  0xf9   : > { %v571_v48 = vsel %vm406_vm1, %v544_v47, 0.0 }
 0x100   : > { %v546_v52 = vpop.permute.xlu2 %545 }
 0x101   : > { %v574_v55 = vsel %vm406_vm1, %v546_v52, 0.0 }
 0x109   : > { %v540_v43 = vpop.permute.xlu0 %539  ;;  %v536_v44 = vpop.permute.xlu1 %535 }
 0x10a   : > { %v565_v45 = vsel %vm406_vm1, %v540_v43, 0.0  ;;  %v559_v46 = vsel %vm406_vm1, %v536_v44, 0.0 }
 0x10b   : > { %566 = vadd.xlane.f32.xlu2 %v565_v45  ;;  %560 = vadd.xlane.f32.xlu1 %v559_v46 }
 0x111   : > { %v542_v49 = vpop.permute.xlu0 %541  ;;  %v538_v51 = vpop.permute.xlu1 %537 }
 0x112   : > { %v568_v50 = vsel %vm406_vm1, %v542_v49, 0.0  ;;  %v562_v54 = vsel %vm406_vm1, %v538_v51, 0.0 }
 0x113   : > { %572 = vadd.xlane.f32.xlu2 %v571_v48  ;;  %569 = vadd.xlane.f32.xlu0 %v568_v50 }
 0x119   : > { %v548_v53 = vpop.permute.xlu0 %547  ;;  %v550_v60 = vpop.permute.xlu1 %549 }
 0x11a   : > { %v577_v56 = vsel %vm406_vm1, %v548_v53, 0.0  ;;  %v580_v61 = vsel %vm406_vm1, %v550_v60, 0.0 }
 0x11b   : > { %575 = vadd.xlane.f32.xlu0 %v574_v55  ;;  %578 = vadd.xlane.f32.xlu1 %v577_v56 }
 0x11c   : > { %563 = vadd.xlane.f32.xlu2 %v562_v54 }
 0x123   : > { %414 = vadd.xlane.f32.xlu0 %v413_v57  ;;  %417 = vadd.xlane.f32.xlu1 %v416_v58 }
 0x124   : > { %408 = vadd.xlane.f32.xlu2 %v407_v59 }
 0x12b   : > { %411 = vadd.xlane.f32.xlu0 %v410_v62 }
 0x12c   : > { %581 = vadd.xlane.f32.xlu2 %v580_v61 }
 0x133   : > { %423 = vadd.xlane.f32.xlu0 %v422_v63 }
 0x134   : > { %420 = vadd.xlane.f32.xlu2 %v419_v0 }
 0x13b   : > { %429 = vadd.xlane.f32.xlu0 %v428_v1 }
 0x13c   : > { %426 = vadd.xlane.f32.xlu2 %v425_v2 }
 0x17e   : > { %v567_v3 = vpop.xlane.xlu2 %566  ;;  %v561_v5 = vpop.xlane.xlu1 %560 }
 0x17f   : > { %v585_v4 = vadd.f32 1e-06, %v567_v3  ;;  %v2570_v6 = vadd.f32 1e-06, %v561_v5 }
 0x181   : > { %2217 = vrsqrt.f32 %v585_v4  ;;  %vm617_vm3 = vweird.f32 %v585_v4  ;;  %vm597_vm9 = vweird.f32 %v2570_v6 }
 0x182   : > { %2219 = vrsqrt.f32 %v2570_v6 }
 0x186   : > { %v573_v7 = vpop.xlane.xlu2 %572  ;;  %v570_v8 = vpop.xlane.xlu0 %569 }
 0x187   : > { %v2218_v9 = vpop.eup %2217  ;;  %v2572_v10 = vadd.f32 1e-06, %v573_v7  ;;  %v586_v11 = vadd.f32 1e-06, %v570_v8 }
 0x188   : > { %v612_v12 = vmul.f32 %v2218_v9, %v585_v4  ;;  %v2576_v15 = vpop.eup %2219  ;;  %vm618_vm2 = vweird.f32 %v2218_v9 }
 0x189   : > { %2221 = vrsqrt.f32 %v2572_v10  ;;  %v592_v37 = vmul.f32 %v2576_v15, %v2570_v6  ;;  %vm619_vm4 = vmor %vm617_vm3, %vm618_vm2  ;;  %vm627_vm6 = vweird.f32 %v586_v11  ;;  %vm598_vm10 = vweird.f32 %v2576_v15 }
 0x18a   : > { %v613_v13 = vmul.f32 %v2218_v9, %v612_v12  ;;  %2223 = vrsqrt.f32 %v586_v11  ;;  %vm637_vm11 = vweird.f32 %v2572_v10  ;;  %vm2600_vm2 = vmor %vm597_vm9, %vm598_vm10 }
 0x18b   : > { %v593_v47 = vmul.f32 %v2576_v15, %v592_v37 }
 0x18c   : > { %v614_v14 = vmul.f32 0.5, %v613_v13 }
 0x18d   : > { %v594_v56 = vmul.f32 0.5, %v593_v47 }
 0x18e   : > { %v576_v16 = vpop.xlane.xlu0 %575  ;;  %v615_v28 = vsub.f32 1.5, %v614_v14 }
 0x18f   : > { %v2578_v17 = vpop.eup %2221  ;;  %v2580_v18 = vadd.f32 1e-06, %v576_v16  ;;  %v564_v19 = vpop.xlane.xlu2 %563  ;;  %v595_v1 = vsub.f32 1.5, %v594_v56 }
 0x190   : > { %v2224_v20 = vpop.eup %2223  ;;  %v632_v25 = vmul.f32 %v2578_v17, %v2572_v10  ;;  %v584_v26 = vadd.f32 1e-06, %v564_v19  ;;  %v616_v45 = vmul.f32 %v2218_v9, %v615_v28  ;;  %vm638_vm8 = vweird.f32 %v2578_v17 }
 0x191   : > { %v622_v36 = vmul.f32 %v2224_v20, %v586_v11  ;;  %2225 = vrsqrt.f32 %v2580_v18  ;;  %vm628_vm5 = vweird.f32 %v2224_v20  ;;  %vm639_vm13 = vmor %vm637_vm11, %vm638_vm8  ;;  %v596_v11 = vmul.f32 %v2576_v15, %v595_v1 }
 0x192   : > { %v633_v43 = vmul.f32 %v2578_v17, %v632_v25  ;;  %2227 = vrsqrt.f32 %v584_v26  ;;  %v620_v55 = vsel %vm619_vm4, %v2218_v9, %v616_v45  ;;  %vm629_vm7 = vmor %vm627_vm6, %vm628_vm5  ;;  %vm607_vm14 = vweird.f32 %v584_v26 }
 0x193   : > { %v623_v44 = vmul.f32 %v2224_v20, %v622_v36  ;;  %v673_v62 = vmul.f32 %v620_v55, %v2484_v22  ;;  %vm647_vm3 = vweird.f32 %v2580_v18 }
 0x194   : > { %v634_v48 = vmul.f32 0.5, %v633_v43  ;;  %v2212_v43 = vld [vmem:[%s3348_s8] ss:$0 sm:$0xff] }
 0x195   : > { %v624_v46 = vmul.f32 0.5, %v623_v44  ;;  %v689_v7 = vpack.c.bf16 %v673_v62, %v673_v62  ;;  %v579_v44 = vpop.xlane.xlu1 %578 }
 0x196   : > { %v635_v57 = vsub.f32 1.5, %v634_v48 }
 0x197   : > { %v2226_v49 = vpop.eup %2225  ;;  %v625_v50 = vsub.f32 1.5, %v624_v46  ;;  %v2597_v9 = vpop.xlane.xlu2 %408  ;;  %v734_v13 = vunpack.c.l.b16 %v689_v7 }
 0x198   : > { %v2228_v51 = vpop.eup %2227  ;;  %v642_v52 = vmul.f32 %v2226_v49, %v2580_v18  ;;  %v636_v2 = vmul.f32 %v2578_v17, %v635_v57  ;;  %vm648_vm12 = vweird.f32 %v2226_v49  ;;  %v415_v7 = vpop.xlane.xlu0 %414 }
 0x199   : > { %v626_v53 = vmul.f32 %v2224_v20, %v625_v50  ;;  %v602_v54 = vmul.f32 %v2228_v51, %v584_v26  ;;  %vm608_vm15 = vweird.f32 %v2228_v51  ;;  %vm649_vm4 = vmor %vm647_vm3, %vm648_vm12  ;;  %v600_v26 = vsel %vm2600_vm2, %v2576_v15, %v596_v11 }
 0x19a   : > { %v643_v58 = vmul.f32 %v2226_v49, %v642_v52  ;;  %v640_v6 = vsel %vm639_vm13, %v2578_v17, %v636_v2  ;;  %vm609_vm5 = vmor %vm607_vm14, %vm608_vm15  ;;  %v671_v28 = vmul.f32 %v600_v26, %v2482_v21  ;;  %v589_v50 = vadd.f32 1e-06, %v579_v44 }
 0x19b   : > { %v603_v59 = vmul.f32 %v2228_v51, %v602_v54  ;;  %v630_v61 = vsel %vm629_vm7, %v2224_v20, %v626_v53  ;;  %v675_v19 = vmul.f32 %v640_v6, %v2498_v29  ;;  %v431_v6 = vadd.f32 1e-06, %v2597_v9 }
 0x19c   : > { %v644_v60 = vmul.f32 0.5, %v643_v58  ;;  %v674_v0 = vmul.f32 %v630_v61, %v2500_v30  ;;  %v687_v47 = vpack.c.bf16 %v671_v28, %v671_v28  ;;  %vm657_vm8 = vweird.f32 %v589_v50 }
 0x19d   : > { %v604_v63 = vmul.f32 0.5, %v603_v59  ;;  %v691_v18 = vpack.c.bf16 %v675_v19, %v675_v19  ;;  %vm445_vm2 = vweird.f32 %v431_v6 }
 0x19e   : > { %v645_v3 = vsub.f32 1.5, %v644_v60  ;;  %v690_v8 = vpack.c.bf16 %v674_v0, %v674_v0 }
 0x19f   : > { %v605_v4 = vsub.f32 1.5, %v604_v63  ;;  %v582_v37 = vpop.xlane.xlu2 %581  ;;  %v766_v45 = vunpack.c.l.b16 %v691_v18 }
 0x1a0   : > { %v646_v5 = vmul.f32 %v2226_v49, %v645_v3  ;;  %v735_v14 = vunpack.c.l.b16 %v690_v8  ;;  %v590_v48 = vadd.f32 1e-06, %v582_v37  ;;  %v412_v11 = vpop.xlane.xlu0 %411 }
 0x1a1   : > { %v606_v10 = vmul.f32 %v2228_v51, %v605_v4  ;;  %v432_v12 = vadd.f32 1e-06, %v412_v11 }
 0x1a2   : > { %v650_v16 = vsel %vm649_vm4, %v2226_v49, %v646_v5  ;;  %v736_v25 = vpack.c.b16 %v735_v14, %v734_v13  ;;  %2229 = vrsqrt.f32 %v590_v48  ;;  %vm667_vm6 = vweird.f32 %v590_v48 }
 0x1a3   : > { %v676_v20 = vmul.f32 %v650_v16, %v2524_v38  ;;  %v610_v27 = vsel %vm609_vm5, %v2228_v51, %v606_v10  ;;  %v702_v51 = vunpack.c.l.b16 %v687_v47  ;;  %2231 = vrsqrt.f32 %v589_v50 }
 0x1a4   : > { %737 = vrot.lane.b32.xlu1 %v736_v25, %s2379_s25  ;;  %v672_v36 = vmul.f32 %v610_v27, %v2502_v31  ;;  %2233 = vrsqrt.f32 %v432_v12  ;;  %v433_v13 = vadd.f32 1e-06, %v415_v7  ;;  %vm455_vm14 = vweird.f32 %v432_v12 }
 0x1a5   : > { %v692_v17 = vpack.c.bf16 %v676_v20, %v676_v20  ;;  %2235 = vrsqrt.f32 %v431_v6 }
 0x1a6   : > { %v688_v15 = vpack.c.bf16 %v672_v36, %v672_v36  ;;  %2237 = vrsqrt.f32 %v433_v13 }
 0x1a7   : > { %v767_v46 = vunpack.c.l.b16 %v692_v17  ;;  %v421_v26 = vpop.xlane.xlu2 %420 }
 0x1a8   : > { %v703_v52 = vunpack.c.l.b16 %v688_v15  ;;  %v2230_v54 = vpop.eup %2229  ;;  %v424_v20 = vpop.xlane.xlu0 %423  ;;  %v2653_v17 = vadd.f32 1e-06, %v421_v26 }
 0x1a9   : > { %v768_v49 = vpack.c.b16 %v767_v46, %v766_v45  ;;  %v2232_v55 = vpop.eup %2231  ;;  %v662_v56 = vmul.f32 %v2230_v54, %v590_v48  ;;  %vm668_vm7 = vweird.f32 %v2230_v54  ;;  %v2651_v18 = vadd.f32 1e-06, %v424_v20 }
 0x1aa   : > { %v704_v53 = vpack.c.b16 %v703_v52, %v702_v51  ;;  %v652_v57 = vmul.f32 %v2232_v55, %v589_v50  ;;  %vm658_vm9 = vweird.f32 %v2232_v55  ;;  %vm669_vm10 = vmor %vm667_vm6, %vm668_vm7  ;;  %v2234_v10 = vpop.eup %2233  ;;  %vm465_vm6 = vweird.f32 %v433_v13 }
 0x1ab   : > { %769 = vrot.lane.b32.xlu0 %v768_v49, %s2379_s25  ;;  %v663_v58 = vmul.f32 %v2230_v54, %v662_v56  ;;  %vm659_vm11 = vmor %vm657_vm8, %vm658_vm9  ;;  %v2236_v16 = vpop.eup %2235  ;;  %v450_v19 = vmul.f32 %v2234_v10, %v432_v12  ;;  %vm456_vm12 = vweird.f32 %v2234_v10 }
 0x1ac   : > { %827 = vperm.xlu1 %2188, %v2212_v43   ;;  %705 = vrot.lane.b32.xlu2 %v704_v53, %s2379_s25  ;;  %v653_v59 = vmul.f32 %v2232_v55, %v652_v57  ;;  %v2238_v9 = vpop.eup %2237  ;;  %vm446_vm13 = vweird.f32 %v2236_v16  ;;  %vm457_vm15 = vmor %vm455_vm14, %vm456_vm12  ;;  %vm495_vm12 = vweird.f32 %v2651_v18  ;;  %vm485_vm14 = vweird.f32 %v2653_v17 }
 0x1ad   : > { %v664_v60 = vmul.f32 0.5, %v663_v58  ;;  %v451_v25 = vmul.f32 %v2234_v10, %v450_v19  ;;  %v460_v37 = vmul.f32 %v2238_v9, %v433_v13  ;;  %vm447_vm3 = vmor %vm445_vm2, %vm446_vm13  ;;  %vm466_vm4 = vweird.f32 %v2238_v9 }
 0x1ae   : > { %v654_v61 = vmul.f32 0.5, %v653_v59  ;;  %vm467_vm7 = vmor %vm465_vm6, %vm466_vm4 }
 0x1af   : > { %v665_v62 = vsub.f32 1.5, %v664_v60  ;;  %v452_v28 = vmul.f32 0.5, %v451_v25  ;;  %v461_v46 = vmul.f32 %v2238_v9, %v460_v37  ;;  %v2665_v56 = vpop.xlane.xlu2 %426 }
 0x1b0   : > { %v655_v63 = vsub.f32 1.5, %v654_v61 }
 0x1b1   : > { %v453_v44 = vsub.f32 1.5, %v452_v28  ;;  %v462_v51 = vmul.f32 0.5, %v461_v46 }
 0x1b3   : > { %1224 = vrot.lane.b32.xlu0 %v2514_v34, %s2381_s28  ;;  %v454_v15 = vmul.f32 %v2234_v10, %v453_v44  ;;  %v463_v58 = vsub.f32 1.5, %v462_v51 }
 0x1b4   : > { %1222 = vrot.lane.b32.xlu1 %v2492_v24, %s2381_s28  ;;  %1078 = vrot.lane.b32.xlu2 %v2492_v24, %s2382_s29  ;;  %v666_v24 = vmul.f32 %v2230_v54, %v665_v62 }
 0x1b5   : > { %v458_v53 = vsel %vm457_vm15, %v2234_v10, %v454_v15 }
 0x1b6   : > { %v670_v0 = vsel %vm669_vm10, %v2230_v54, %v666_v24  ;;  %v520_v60 = vmul.f32 %v458_v53, %v2502_v31  ;;  %v464_v24 = vmul.f32 %v2238_v9, %v463_v58 }
 0x1b7   : > { %v678_v2 = vmul.f32 %v670_v0, %v2526_v39 }
 0x1b8   : > { %v680_v0 = vpack.c.bf16 %v520_v60, %v520_v60  ;;  %v468_v7 = vsel %vm467_vm7, %v2238_v9, %v464_v24 }
 0x1b9   : > { %v694_v4 = vpack.c.bf16 %v678_v2, %v678_v2 }
 0x1bb   : > { %1226 = vrot.lane.b32.xlu0 %v2488_v23, %s2381_s28 }
 0x1bc   : > { %1080 = vrot.lane.b32.xlu1 %v2514_v34, %s2382_s29  ;;  %1228 = vrot.lane.b32.xlu2 %v2510_v33, %s2381_s28  ;;  %v656_v34 = vmul.f32 %v2232_v55, %v655_v63 }
 0x1be   : > { %v660_v1 = vsel %vm659_vm11, %v2232_v55, %v656_v34 }
 0x1bf   : > { %v677_v3 = vmul.f32 %v660_v1, %v2520_v35 }
 0x1c1   : > { %v693_v5 = vpack.c.bf16 %v677_v3, %v677_v3 }
 0x1c3   : > { %1232 = vrot.lane.b32.xlu0 %v2534_v41, %s2381_s28  ;;  %v798_v8 = vunpack.c.l.b16 %v693_v5 }
 0x1c4   : > { %1230 = vrot.lane.b32.xlu1 %v2506_v32, %s2381_s28  ;;  %1082 = vrot.lane.b32.xlu2 %v2488_v23, %s2382_s29  ;;  %v799_v23 = vunpack.c.l.b16 %v694_v4 }
 0x1cc   : > { %1084 = vrot.lane.b32.xlu1 %v2510_v33, %s2382_s29  ;;  %1234 = vrot.lane.b32.xlu2 %v2530_v40, %s2381_s28  ;;  %v800_v33 = vpack.c.b16 %v799_v23, %v798_v8  ;;  %v698_v8 = vunpack.c.l.b16 %v680_v0 }
 0x1d4   : > { %1086 = vrot.lane.b32.xlu1 %v2506_v32, %s2382_s29  ;;  %1090 = vrot.lane.b32.xlu2 %v2530_v40, %s2382_s29  ;;  %v418_v32 = vpop.xlane.xlu1 %417  ;;  %v440_v40 = vmul.f32 %v2236_v16, %v431_v6  ;;  %v521_v6 = vmul.f32 %v468_v7, %v2484_v22 }
 0x1d5   : > { %v434_v14 = vadd.f32 1e-06, %v418_v32 }
 0x1d6   : > { %v441_v27 = vmul.f32 %v2236_v16, %v440_v40  ;;  %v681_v19 = vpack.c.bf16 %v521_v6, %v521_v6 }
 0x1d7   : > { %2239 = vrsqrt.f32 %v434_v14  ;;  %vm475_vm8 = vweird.f32 %v434_v14 }
 0x1d8   : > { %v442_v36 = vmul.f32 0.5, %v441_v27  ;;  %2241 = vrsqrt.f32 %v2651_v18  ;;  %v430_v27 = vpop.xlane.xlu0 %429 }
 0x1d9   : > { %2243 = vrsqrt.f32 %v2653_v17 }
 0x1da   : > { %v443_v45 = vsub.f32 1.5, %v442_v36 }
 0x1dc   : > { %801 = vrot.lane.b32.xlu1 %v800_v33, %s2379_s25  ;;  %v444_v50 = vmul.f32 %v2236_v16, %v443_v45 }
 0x1de   : > { %v448_v57 = vsel %vm447_vm3, %v2236_v16, %v444_v50  ;;  %v438_v50 = vadd.f32 1e-06, %v430_v27 }
 0x1df   : > { %v519_v63 = vmul.f32 %v448_v57, %v2482_v21 }
 0x1e0   : > { %2245 = vrsqrt.f32 %v438_v50  ;;  %vm515_vm4 = vweird.f32 %v438_v50 }
 0x1e1   : > { %v679_v4 = vpack.c.bf16 %v519_v63, %v519_v63 }
 0x1e3   : > { %v697_v12 = vunpack.c.l.b16 %v679_v4 }
 0x1e4   : > { %1088 = vrot.lane.b32.xlu1 %v2534_v41, %s2382_s29  ;;  %v2240_v41 = vpop.eup %2239 }
 0x1e5   : > { %v470_v43 = vmul.f32 %v2240_v41, %v434_v14  ;;  %v2657_v48 = vpop.eup %2241  ;;  %vm476_vm5 = vweird.f32 %v2240_v41  ;;  %v699_v10 = vpack.c.b16 %v698_v8, %v697_v12 }
 0x1e6   : > { %v2659_v49 = vpop.eup %2243  ;;  %v490_v54 = vmul.f32 %v2657_v48, %v2651_v18  ;;  %vm477_vm9 = vmor %vm475_vm8, %vm476_vm5  ;;  %vm496_vm10 = vweird.f32 %v2657_v48 }
 0x1e7   : > { %v471_v47 = vmul.f32 %v2240_v41, %v470_v43  ;;  %v480_v55 = vmul.f32 %v2659_v49, %v2653_v17  ;;  %vm486_vm11 = vweird.f32 %v2659_v49  ;;  %vm497_vm13 = vmor %vm495_vm12, %vm496_vm10 }
 0x1e8   : > { %v491_v61 = vmul.f32 %v2657_v48, %v490_v54  ;;  %vm487_vm15 = vmor %vm485_vm14, %vm486_vm11 }
 0x1e9   : > { %v472_v52 = vmul.f32 0.5, %v471_v47  ;;  %v481_v62 = vmul.f32 %v2659_v49, %v480_v55 }
 0x1ea   : > { %v492_v1 = vmul.f32 0.5, %v491_v61 }
 0x1eb   : > { %v473_v59 = vsub.f32 1.5, %v472_v52  ;;  %v482_v2 = vmul.f32 0.5, %v481_v62  ;;  %v437_v52 = vadd.f32 1e-06, %v2665_v56 }
 0x1ec   : > { %v493_v33 = vsub.f32 1.5, %v492_v1 }
 0x1ed   : > { %v474_v34 = vmul.f32 %v2240_v41, %v473_v59  ;;  %v483_v11 = vsub.f32 1.5, %v482_v2  ;;  %2247 = vrsqrt.f32 %v437_v52  ;;  %v2246_v59 = vpop.eup %2245  ;;  %vm505_vm6 = vweird.f32 %v437_v52 }
 0x1ee   : > { %v494_v13 = vmul.f32 %v2657_v48, %v493_v33  ;;  %v510_v56 = vmul.f32 %v2246_v59, %v438_v50  ;;  %vm516_vm2 = vweird.f32 %v2246_v59 }
 0x1ef   : > { %v478_v23 = vsel %vm477_vm9, %v2240_v41, %v474_v34  ;;  %v484_v14 = vmul.f32 %v2659_v49, %v483_v11  ;;  %v729_v41 = vunpack.c.l.b16 %v681_v19  ;;  %vm517_vm5 = vmor %vm515_vm4, %vm516_vm2 }
 0x1f0   : > { %v522_v32 = vmul.f32 %v478_v23, %v2500_v30  ;;  %v498_v25 = vsel %vm497_vm13, %v2657_v48, %v494_v13  ;;  %v511_v24 = vmul.f32 %v2246_v59, %v510_v56 }
 0x1f1   : > { %v488_v26 = vsel %vm487_vm15, %v2659_v49, %v484_v14  ;;  %v524_v18 = vmul.f32 %v498_v25, %v2524_v38 }
 0x1f2   : > { %v682_v40 = vpack.c.bf16 %v522_v32, %v522_v32  ;;  %v523_v36 = vmul.f32 %v488_v26, %v2498_v29  ;;  %v512_v2 = vmul.f32 0.5, %v511_v24 }
 0x1f3   : > { %v684_v44 = vpack.c.bf16 %v524_v18, %v524_v18  ;;  %v2248_v61 = vpop.eup %2247 }
 0x1f4   : > { %v730_v28 = vunpack.c.l.b16 %v682_v40  ;;  %v683_v17 = vpack.c.bf16 %v523_v36, %v523_v36  ;;  %v500_v63 = vmul.f32 %v2248_v61, %v437_v52  ;;  %vm506_vm3 = vweird.f32 %v2248_v61 }
 0x1f5   : > { %v762_v15 = vunpack.c.l.b16 %v684_v44  ;;  %vm507_vm7 = vmor %vm505_vm6, %vm506_vm3 }
 0x1f6   : > { %v731_v43 = vpack.c.b16 %v730_v28, %v729_v41  ;;  %v761_v48 = vunpack.c.l.b16 %v683_v17  ;;  %v501_v34 = vmul.f32 %v2248_v61, %v500_v63 }
 0x1f8   : > { %v763_v54 = vpack.c.b16 %v762_v15, %v761_v48 }
 0x206   : > { %v706_v3 = vpop.permute.xlu2 %705 }
 0x207   : > { %v711_v5 = vsel %vm406_vm1, %v706_v3, 0  ;;  %v502_v3 = vmul.f32 0.5, %v501_v34 }
 0x208   : > { %720 = vmatpush.bf16.xpose.msrb.mxu1 %v711_v5  ;;  %v513_v5 = vsub.f32 1.5, %v512_v2 }
 0x209   : > { %v503_v7 = vsub.f32 1.5, %v502_v3 }
 0x20a   : > { %v514_v33 = vmul.f32 %v2246_v59, %v513_v5 }
 0x20b   : > { %v504_v11 = vmul.f32 %v2248_v61, %v503_v7 }
 0x20c   : > { %v518_v12 = vsel %vm517_vm5, %v2246_v59, %v514_v33 }
 0x20d   : > { %v508_v6 = vsel %vm507_vm7, %v2248_v61, %v504_v11  ;;  %v526_v13 = vmul.f32 %v518_v12, %v2526_v39 }
 0x20e   : > { %v1079_v16 = vpop.permute.xlu2 %1078  ;;  %v525_v14 = vmul.f32 %v508_v6, %v2520_v35 }
 0x20f   : > { %2133 = vmatmul.msk.bf16.vlgmr.msrb.gmra.mxu1 %vm406_vm1, %v699_v10  ;;  %v1102_v62 = vsel %vm406_vm1, %v1079_v16, 0.0  ;;  %v686_v16 = vpack.c.bf16 %v526_v13, %v526_v13 }
 0x210   : > { %v685_v19 = vpack.c.bf16 %v525_v14, %v525_v14 }
 0x212   : > { %v793_v26 = vunpack.c.l.b16 %v685_v19 }
 0x216   : > { %v738_v20 = vpop.permute.xlu1 %737  ;;  %v1229_v37 = vpop.permute.xlu2 %1228 }
 0x217   : > { %v743_v9 = vsel %vm406_vm1, %v738_v20, 0  ;;  %v1255_v10 = vsel %vm406_vm1, %v1229_v37, 0.0 }
 0x218   : > { %752 = vmatpush.bf16.xpose.msrb.mxu2 %v743_v9 }
 0x21d   : > { %v770_v46 = vpop.permute.xlu0 %769 }
 0x21e   : > { %v2686_v45 = vpop.permute.xlu1 %827  ;;  %v775_v47 = vsel %vm406_vm1, %v770_v46, 0  ;;  %v1083_v49 = vpop.permute.xlu2 %1082 }
 0x21f   : > { %2134 = vmatmul.msk.bf16.vlgmr.msrb.gmra.mxu2 %vm406_vm1, %v731_v43  ;;  %784 = vmatpush.bf16.xpose.msrb.mxu3 %v775_v47  ;;  %v1108_v51 = vsel %vm406_vm1, %v1083_v49, 0.0  ;;  %v842_v49 = vld [vmem:[%s3347_s7 + $0x20] sm:$0xff] }
 0x220   : > { %1109 = vadd.xlane.f32.xlu2 %v1108_v51 }
 0x225   : > { %v1225_v55 = vpop.permute.xlu0 %1224 }
 0x226   : > { %v1223_v53 = vpop.permute.xlu1 %1222  ;;  %2135 = vmatmul.msk.bf16.vlgmr.msrb.gmra.mxu3 %vm406_vm1, %v763_v54  ;;  %v1249_v58 = vsel %vm406_vm1, %v1225_v55, 0.0  ;;  %v1235_v37 = vpop.permute.xlu2 %1234 }
 0x227   : > { %v1246_v57 = vsel %vm406_vm1, %v1223_v53, 0.0  ;;  %1250 = vadd.xlane.f32.xlu0 %v1249_v58  ;;  %v1264_v43 = vsel %vm406_vm1, %v1235_v37, 0.0 }
 0x228   : > { %1247 = vadd.xlane.f32.xlu1 %v1246_v57 }
 0x22d   : > { %v1227_v4 = vpop.permute.xlu0 %1226 }
 0x22e   : > { %v1081_v60 = vpop.permute.xlu1 %1080  ;;  %v1252_v8 = vsel %vm406_vm1, %v1227_v4, 0.0  ;;  %v1091_v55 = vpop.permute.xlu2 %1090 }
 0x22f   : > { %v1105_v1 = vsel %vm406_vm1, %v1081_v60, 0.0  ;;  %v1120_v24 = vsel %vm406_vm1, %v1091_v55, 0.0  ;;  %v843_v55 = vld [vmem:[%s3347_s7 + $0x28] sm:$0xff] }
 0x230   : > { %1103 = vadd.xlane.f32.xlu1 %v1102_v62 }
 0x235   : > { %v1233_v27 = vpop.permute.xlu0 %1232 }
 0x236   : > { %v1231_v0 = vpop.permute.xlu1 %1230  ;;  %v1261_v28 = vsel %vm406_vm1, %v1233_v27, 0.0 }
 0x237   : > { %v1258_v25 = vsel %vm406_vm1, %v1231_v0, 0.0  ;;  %v838_v0 = vld [vmem:[%s3347_s7] sm:$0xff] }
 0x238   : > { %1106 = vadd.xlane.f32.xlu1 %v1105_v1  ;;  %v840_v1 = vld [vmem:[%s3347_s7 + $0x10] sm:$0xff] }
 0x23b   : > { %1236 = vrot.lane.b32.xlu0 %v2538_v42, %s2381_s28 }
 0x23e   : > { %v1085_v23 = vpop.permute.xlu1 %1084 }
 0x23f   : > { %v1111_v36 = vsel %vm406_vm1, %v1085_v23, 0.0 }
 0x240   : > { %1253 = vadd.xlane.f32.xlu1 %v1252_v8 }
 0x243   : > { %1092 = vrot.lane.b32.xlu0 %v2538_v42, %s2382_s29  ;;  %v794_v42 = vunpack.c.l.b16 %v686_v16 }
 0x245   : > { %v795_v9 = vpack.c.b16 %v794_v42, %v793_v26 }
 0x246   : > { %v1087_v32 = vpop.permute.xlu1 %1086 }
 0x247   : > { %v1114_v44 = vsel %vm406_vm1, %v1087_v32, 0.0 }
 0x248   : > { %1256 = vadd.xlane.f32.xlu1 %v1255_v10 }
 0x24e   : > { %v802_v40 = vpop.permute.xlu1 %801 }
 0x24f   : > { %v807_v20 = vsel %vm406_vm1, %v802_v40, 0  ;;  %v841_v40 = vld [vmem:[%s3347_s7 + $0x18] sm:$0xff] }
 0x250   : > { %816 = vmatpush.bf16.xpose.msra.mxu1 %v807_v20  ;;  %1259 = vadd.xlane.f32.xlu1 %v1258_v25  ;;  %v839_v20 = vld [vmem:[%s3347_s7 + $0x8] sm:$0xff] }
 0x256   : > { %v1089_v41 = vpop.permute.xlu1 %1088 }
 0x257   : > { %2136 = vmatmul.msk.bf16.vlgmr.msra.gmra.mxu1 %vm406_vm1, %v795_v9  ;;  %v1117_v18 = vsel %vm406_vm1, %v1089_v41, 0.0 }
 0x258   : > { %1262 = vadd.xlane.f32.xlu1 %v1261_v28  ;;  %1118 = vadd.xlane.f32.xlu2 %v1117_v18 }
 0x260   : > { %1112 = vadd.xlane.f32.xlu1 %v1111_v36 }
 0x268   : > { %1265 = vadd.xlane.f32.xlu1 %v1264_v43 }
 0x26d   : > { %1115 = vadd.xlane.f32.xlu0 %v1114_v44 }
 0x28c   : > { %v722_v57 = vpop.f32.mrf.mxu1 }
 0x28d   : > { %v830_v62 = vmul.f32 %v2686_v45, %v722_v57 }
 0x28f   : > { %v2740_v23 = vadd.f32 %v838_v0, %v830_v62 }
 0x291   : > { %v854_v14 = vsel %vm406_vm1, %v2740_v23, -inf }
 0x293   : > { %v1110_v2 = vpop.xlane.xlu2 %1109 }
 0x294   : > { %v2744_v33 = vadd.f32 1e-06, %v1110_v2  ;;  %v724_v11 = vpop.f32.mrf.mxu1 }
 0x295   : > { %v831_v10 = vmul.f32 %v2686_v45, %v724_v11 }
 0x297   : > { %v2767_v28 = vadd.f32 %v839_v20, %v831_v10 }
 0x29a   : > { %v1251_v47 = vpop.xlane.xlu0 %1250 }
 0x29b   : > { %v1248_v17 = vpop.xlane.xlu1 %1247  ;;  %v2738_v3 = vadd.f32 1e-06, %v1251_v47 }
 0x29c   : > { %v2730_v34 = vadd.f32 1e-06, %v1248_v17 }
 0x29d   : > { %vm1294_vm7 = vweird.f32 %v2738_v3 }
 0x29e   : > { %vm1284_vm5 = vweird.f32 %v2730_v34 }
 0x2a2   : > { %v754_v58 = vpop.f32.mrf.mxu2 }
 0x2a3   : > { %v2713_v46 = vpop.xlane.xlu1 %1103  ;;  %v832_v56 = vmul.f32 %v2686_v45, %v754_v58 }
 0x2a5   : > { %v2742_v8 = vadd.f32 %v840_v1, %v832_v56 }
 0x2a7   : > { %v860_v16 = vsel %vm406_vm1, %v2742_v8, -inf }
 0x2a9   : > { %v786_v48 = vpop.f32.mrf.mxu3 }
 0x2aa   : > { %v834_v50 = vmul.f32 %v2686_v45, %v786_v48  ;;  %v756_v12 = vpop.f32.mrf.mxu2 }
 0x2ab   : > { %v2715_v15 = vpop.xlane.xlu1 %1106  ;;  %v833_v13 = vmul.f32 %v2686_v45, %v756_v12 }
 0x2ac   : > { %v2721_v51 = vadd.f32 %v842_v49, %v834_v50 }
 0x2ad   : > { %v1237_v52 = vpop.permute.xlu0 %1236  ;;  %v2765_v41 = vadd.f32 %v841_v40, %v833_v13 }
 0x2ae   : > { %v1267_v53 = vsel %vm406_vm1, %v1237_v52, 0.0  ;;  %v866_v54 = vsel %vm406_vm1, %v2721_v51, -inf }
 0x2af   : > { %1268 = vadd.xlane.f32.xlu0 %v1267_v53  ;;  %867 = vmax.xlane.f32.xlu1 %v866_v54  ;;  %v863_v52 = vsel %vm406_vm1, %v2765_v41, -inf  ;;  %v857_v53 = vsel %vm406_vm1, %v2767_v28, -inf }
 0x2b1   : > { %v788_v36 = vpop.f32.mrf.mxu3 }
 0x2b2   : > { %v835_v49 = vmul.f32 %v2686_v45, %v788_v36 }
 0x2b3   : > { %v1254_v59 = vpop.xlane.xlu1 %1253 }
 0x2b4   : > { %v1272_v60 = vadd.f32 1e-06, %v1254_v59 }
 0x2b5   : > { %v1093_v61 = vpop.permute.xlu0 %1092 }
 0x2b6   : > { %2249 = vrsqrt.f32 %v1272_v60  ;;  %v1123_v63 = vsel %vm406_vm1, %v1093_v61, 0.0  ;;  %vm1304_vm9 = vweird.f32 %v1272_v60 }
 0x2b7   : > { %1124 = vadd.xlane.f32.xlu2 %v1123_v63  ;;  %1121 = vadd.xlane.f32.xlu0 %v1120_v24  ;;  %2251 = vrsqrt.f32 %v2730_v34  ;;  %v2800_v24 = vadd.f32 %v843_v55, %v835_v49 }
 0x2bb   : > { %v1257_v4 = vpop.xlane.xlu1 %1256 }
 0x2bc   : > { %v2250_v5 = vpop.eup %2249  ;;  %v1273_v7 = vadd.f32 1e-06, %v1257_v4 }
 0x2bd   : > { %v1299_v6 = vmul.f32 %v2250_v5, %v1272_v60  ;;  %v2761_v25 = vpop.eup %2251  ;;  %vm1305_vm8 = vweird.f32 %v2250_v5 }
 0x2be   : > { %2253 = vrsqrt.f32 %v1273_v7  ;;  %v1279_v17 = vmul.f32 %v2761_v25, %v2730_v34  ;;  %vm2779_vm10 = vmor %vm1304_vm9, %vm1305_vm8  ;;  %vm1314_vm12 = vweird.f32 %v1273_v7  ;;  %vm1285_vm15 = vweird.f32 %v2761_v25 }
 0x2bf   : > { %2255 = vrsqrt.f32 %v2738_v3  ;;  %v1300_v32 = vmul.f32 %v2250_v5, %v1299_v6  ;;  %855 = vmax.xlane.f32.xlu2 %v854_v14  ;;  %861 = vmax.xlane.f32.xlu0 %v860_v16  ;;  %vm2848_vm8 = vmor %vm1284_vm5, %vm1285_vm15 }
 0x2c0   : > { %2257 = vrsqrt.f32 %v2744_v33  ;;  %v1280_v59 = vmul.f32 %v2761_v25, %v1279_v17 }
 0x2c1   : > { %v1301_v19 = vmul.f32 0.5, %v1300_v32  ;;  %v869_v32 = vsel %vm406_vm1, %v2800_v24, -inf }
 0x2c3   : > { %v1302_v42 = vsub.f32 1.5, %v1301_v19  ;;  %v1260_v26 = vpop.xlane.xlu1 %1259 }
 0x2c4   : > { %v2254_v27 = vpop.eup %2253  ;;  %v2763_v9 = vadd.f32 1e-06, %v1260_v26 }
 0x2c5   : > { %v2769_v18 = vpop.eup %2255  ;;  %v1303_v37 = vmul.f32 %v2250_v5, %v1302_v42  ;;  %v1309_v43 = vmul.f32 %v2254_v27, %v1273_v7  ;;  %vm1315_vm11 = vweird.f32 %v2254_v27 }
 0x2c6   : > { %2259 = vrsqrt.f32 %v2763_v9  ;;  %v2772_v44 = vpop.eup %2257  ;;  %v1289_v48 = vmul.f32 %v2769_v18, %v2738_v3  ;;  %vm1316_vm13 = vmor %vm1314_vm12, %vm1315_vm11  ;;  %vm1324_vm2 = vweird.f32 %v2763_v9  ;;  %vm1295_vm3 = vweird.f32 %v2769_v18  ;;  %v845_v3 = vld [vmem:[%s3347_s7 + $0x38] sm:$0xff] }
 0x2c7   : > { %v1310_v47 = vmul.f32 %v2254_v27, %v1309_v43  ;;  %864 = vmax.xlane.f32.xlu2 %v863_v52  ;;  %858 = vmax.xlane.f32.xlu0 %v857_v53  ;;  %v1307_v57 = vsel %vm2779_vm10, %v2250_v5, %v1303_v37  ;;  %v1155_v58 = vmul.f32 %v2772_v44, %v2744_v33  ;;  %v1281_v5 = vmul.f32 0.5, %v1280_v59  ;;  %vm2853_vm9 = vmor %vm1294_vm7, %vm1295_vm3 }
 0x2c8   : > { %v1290_v56 = vmul.f32 %v2769_v18, %v1289_v48  ;;  %v1360_v0 = vmul.f32 %v1307_v57, %v2484_v22  ;;  %vm1161_vm6 = vweird.f32 %v2772_v44  ;;  %vm1160_vm11 = vweird.f32 %v2744_v33 }
 0x2c9   : > { %v1311_v54 = vmul.f32 0.5, %v1310_v47  ;;  %v1156_v4 = vmul.f32 %v2772_v44, %v1155_v58  ;;  %v1282_v19 = vsub.f32 1.5, %v1281_v5  ;;  %vm2870_vm12 = vmor %vm1160_vm11, %vm1161_vm6 }
 0x2ca   : > { %v1291_v6 = vmul.f32 0.5, %v1290_v56  ;;  %v1376_v13 = vpack.c.bf16 %v1360_v0, %v1360_v0 }
 0x2cb   : > { %v1312_v60 = vsub.f32 1.5, %v1311_v54  ;;  %v1263_v61 = vpop.xlane.xlu1 %1262  ;;  %v1157_v14 = vmul.f32 0.5, %v1156_v4  ;;  %v1283_v57 = vmul.f32 %v2761_v25, %v1282_v19 }
 0x2cc   : > { %v2795_v62 = vpop.eup %2259  ;;  %v2798_v63 = vadd.f32 1e-06, %v1263_v61  ;;  %v1292_v26 = vsub.f32 1.5, %v1291_v6  ;;  %v2816_v43 = vunpack.c.l.b16 %v1376_v13  ;;  %v2903_v61 = vpop.xlane.xlu2 %1118 }
 0x2cd   : > { %v1313_v1 = vmul.f32 %v2254_v27, %v1312_v60  ;;  %v1319_v2 = vmul.f32 %v2795_v62, %v2763_v9  ;;  %vm1325_vm14 = vweird.f32 %v2795_v62  ;;  %v1158_v50 = vsub.f32 1.5, %v1157_v14 }
 0x2ce   : > { %2261 = vrsqrt.f32 %v2798_v63  ;;  %v1293_v55 = vmul.f32 %v2769_v18, %v1292_v26  ;;  %vm2834_vm4 = vmor %vm1324_vm2, %vm1325_vm14 }
 0x2cf   : > { %v1320_v11 = vmul.f32 %v2795_v62, %v1319_v2  ;;  %v1317_v12 = vsel %vm1316_vm13, %v2254_v27, %v1313_v1  ;;  %870 = vmax.xlane.f32.xlu2 %v869_v32  ;;  %v844_v27 = vld [vmem:[%s3347_s7 + $0x30] sm:$0xff]  ;;  %v1159_v34 = vmul.f32 %v2772_v44, %v1158_v50  ;;  %v1287_v2 = vsel %vm2848_vm8, %v2761_v25, %v1283_v57 }
 0x2d0   : > { %v1361_v10 = vmul.f32 %v1317_v12, %v2500_v30  ;;  %v1297_v4 = vsel %vm2853_vm9, %v2769_v18, %v1293_v55  ;;  %vm1334_vm13 = vweird.f32 %v2798_v63  ;;  %v1358_v13 = vmul.f32 %v1287_v2, %v2482_v21 }
 0x2d1   : > { %v1321_v7 = vmul.f32 0.5, %v1320_v11  ;;  %v2911_v2 = vadd.f32 1e-06, %v2713_v46 }
 0x2d2   : > { %v1377_v16 = vpack.c.bf16 %v1361_v10, %v1361_v10  ;;  %v1163_v10 = vsel %vm2870_vm12, %v2772_v44, %v1159_v34 }
 0x2d3   : > { %v1322_v40 = vsub.f32 1.5, %v1321_v7  ;;  %v1113_v20 = vpop.xlane.xlu1 %1112  ;;  %v1359_v7 = vmul.f32 %v1297_v4, %v2502_v31 }
 0x2d4   : > { %v2262_v42 = vpop.eup %2261  ;;  %v2811_v36 = vadd.f32 1e-06, %v1113_v20  ;;  %v818_v37 = vpop.f32.mrf.mxu1  ;;  %v2818_v17 = vunpack.c.l.b16 %v1377_v16  ;;  %v1216_v20 = vmul.f32 %v1163_v10, %v2484_v22 }
 0x2d5   : > { %v1323_v47 = vmul.f32 %v2795_v62, %v1322_v40  ;;  %v1329_v48 = vmul.f32 %v2262_v42, %v2798_v63  ;;  %v836_v49 = vmul.f32 %v2686_v45, %v818_v37  ;;  %vm1335_vm10 = vweird.f32 %v2262_v42 }
 0x2d6   : > { %2263 = vrsqrt.f32 %v2811_v36  ;;  %v1427_v54 = vpack.c.b16 %v2818_v17, %v2816_v43  ;;  %vm1336_vm14 = vmor %vm1334_vm13, %vm1335_vm10  ;;  %v1375_v26 = vpack.c.bf16 %v1359_v7, %v1359_v7  ;;  %vm1170_vm2 = vweird.f32 %v2811_v36 }
 0x2d7   : > { %v1330_v52 = vmul.f32 %v2262_v42, %v1329_v48  ;;  %v2827_v53 = vadd.f32 %v844_v27, %v836_v49  ;;  %v1327_v60 = vsel %vm2834_vm4, %v2795_v62, %v1323_v47  ;;  %v1368_v55 = vpack.c.bf16 %v1216_v20, %v1216_v20 }
 0x2d8   : > { %v1362_v5 = vmul.f32 %v1327_v60, %v2498_v29  ;;  %v1392_v50 = vunpack.c.l.b16 %v1375_v26 }
 0x2d9   : > { %v1331_v59 = vmul.f32 0.5, %v1330_v52  ;;  %v872_v9 = vsel %vm406_vm1, %v2827_v53, -inf }
 0x2da   : > { %873 = vmax.xlane.f32.xlu0 %v872_v9  ;;  %v1378_v63 = vpack.c.bf16 %v1362_v5, %v1362_v5 }
 0x2db   : > { %v1332_v0 = vsub.f32 1.5, %v1331_v59  ;;  %v2896_v59 = vunpack.c.l.b16 %v1368_v55 }
 0x2dc   : > { %v2264_v62 = vpop.eup %2263  ;;  %v820_v1 = vpop.f32.mrf.mxu1  ;;  %v2888_v44 = vunpack.c.l.b16 %v1378_v63 }
 0x2dd   : > { %v1333_v33 = vmul.f32 %v2262_v42, %v1332_v0  ;;  %v1165_v12 = vmul.f32 %v2264_v62, %v2811_v36  ;;  %v837_v6 = vmul.f32 %v2686_v45, %v820_v1  ;;  %vm1171_vm15 = vweird.f32 %v2264_v62 }
 0x2de   : > { %vm1172_vm3 = vmor %vm1170_vm2, %vm1171_vm15 }
 0x2df   : > { %v1166_v25 = vmul.f32 %v2264_v62, %v1165_v12  ;;  %v2877_v32 = vadd.f32 %v845_v3, %v837_v6  ;;  %v1337_v18 = vsel %vm1336_vm14, %v2262_v42, %v1333_v33  ;;  %v1374_v42 = vpack.c.bf16 %v1358_v13, %v1358_v13 }
 0x2e0   : > { %v1363_v14 = vmul.f32 %v1337_v18, %v2524_v38  ;;  %v1116_v60 = vpop.xlane.xlu0 %1115  ;;  %v2908_v3 = vadd.f32 1e-06, %v2715_v15  ;;  %vm1140_vm14 = vweird.f32 %v2911_v2 }
 0x2e1   : > { %v1167_v16 = vmul.f32 0.5, %v1166_v25  ;;  %v875_v45 = vsel %vm406_vm1, %v2877_v32, -inf  ;;  %v1391_v49 = vunpack.c.l.b16 %v1374_v42 }
 0x2e2   : > { %876 = vmax.xlane.f32.xlu1 %v875_v45  ;;  %v1379_v19 = vpack.c.bf16 %v1363_v14, %v1363_v14  ;;  %vm1150_vm12 = vweird.f32 %v2908_v3 }
 0x2e3   : > { %v1168_v40 = vsub.f32 1.5, %v1167_v16  ;;  %v1393_v58 = vpack.c.b16 %v1392_v50, %v1391_v49 }
 0x2e4   : > { %v2890_v37 = vunpack.c.l.b16 %v1379_v19 }
 0x2e5   : > { %v1169_v27 = vmul.f32 %v2264_v62, %v1168_v40 }
 0x2e6   : > { %v1461_v47 = vpack.c.b16 %v2890_v37, %v2888_v44  ;;  %v957_v44 = vpack.c.bf16 %v2526_v39, %v2526_v39 }
 0x2e7   : > { %v1173_v48 = vsel %vm1172_vm3, %v2264_v62, %v1169_v27 }
 0x2e8   : > { %v1217_v52 = vmul.f32 %v1173_v48, %v2500_v30 }
 0x2ea   : > { %v1369_v57 = vpack.c.bf16 %v1217_v52, %v1217_v52 }
 0x2ec   : > { %v2898_v9 = vunpack.c.l.b16 %v1369_v57 }
 0x2ee   : > { %1394 = vrot.lane.b32.xlu0 %v1393_v58, %s2381_s28  ;;  %v1420_v36 = vpack.c.b16 %v2898_v9, %v2896_v59 }
 0x322   : > { %v2905_v34 = vpop.xlane.xlu0 %1268 }
 0x32a   : > { %v1122_v56 = vpop.xlane.xlu0 %1121  ;;  %v1125_v0 = vpop.xlane.xlu2 %1124 }
 0x32b   : > { %v1132_v62 = vadd.f32 1e-06, %v1122_v56  ;;  %v1133_v1 = vadd.f32 1e-06, %v1125_v0 }
 0x32d   : > { %2265 = vrsqrt.f32 %v1132_v62  ;;  %vm1200_vm6 = vweird.f32 %v1132_v62  ;;  %vm1210_vm8 = vweird.f32 %v1133_v1 }
 0x32e   : > { %2267 = vrsqrt.f32 %v1133_v1 }
 0x32f   : > { %2269 = vrsqrt.f32 %v2908_v3 }
 0x330   : > { %2271 = vrsqrt.f32 %v2911_v2 }
 0x332   : > { %v862_v4 = vpop.xlane.xlu0 %861  ;;  %v856_v5 = vpop.xlane.xlu2 %855 }
 0x333   : > { %v2266_v11 = vpop.eup %2265  ;;  %v880_v33 = vsub.f32 %v2742_v8, %v862_v4  ;;  %v878_v12 = vsub.f32 %v2740_v23, %v856_v5  ;;  %v2940_v4 = vadd.f32 1e-06, %v1116_v60 }
 0x334   : > { %v2268_v6 = vpop.eup %2267  ;;  %v1195_v25 = vmul.f32 %v2266_v11, %v1132_v62  ;;  %vm1201_vm4 = vweird.f32 %v2266_v11 }
 0x335   : > { %v1205_v18 = vmul.f32 %v2268_v6, %v1133_v1  ;;  %v890_v10 = vmul.f32 1.442695, %v880_v33  ;;  %v886_v15 = vmul.f32 1.442695, %v878_v12  ;;  %v2917_v14 = vpop.eup %2269  ;;  %vm1211_vm5 = vweird.f32 %v2268_v6  ;;  %vm1202_vm7 = vmor %vm1200_vm6, %vm1201_vm4  ;;  %v2942_v33 = vpop.xlane.xlu1 %1265 }
 0x336   : > { %v1196_v13 = vmul.f32 %v2266_v11, %v1195_v25  ;;  %v2921_v23 = vpop.eup %2271  ;;  %v1145_v20 = vmul.f32 %v2917_v14, %v2908_v3  ;;  %vm1212_vm9 = vmor %vm1210_vm8, %vm1211_vm5  ;;  %vm1151_vm10 = vweird.f32 %v2917_v14  ;;  %vm1180_vm4 = vweird.f32 %v2940_v4 }
 0x337   : > { %v1206_v7 = vmul.f32 %v2268_v6, %v1205_v18  ;;  %2273 = vpow2.f32 %v890_v10  ;;  %v1135_v50 = vmul.f32 %v2921_v23, %v2911_v2  ;;  %v2948_v18 = vadd.f32 1e-06, %v2903_v61  ;;  %vm2977_vm13 = vmor %vm1150_vm12, %vm1151_vm10 }
 0x338   : > { %v1197_v46 = vmul.f32 0.5, %v1196_v13  ;;  %2275 = vpow2.f32 %v886_v15  ;;  %v1146_v56 = vmul.f32 %v2917_v14, %v1145_v20  ;;  %v953_v20 = vpack.c.bf16 %v2500_v30, %v2500_v30 }
 0x339   : > { %v1207_v63 = vmul.f32 0.5, %v1206_v7  ;;  %v1136_v1 = vmul.f32 %v2921_v23, %v1135_v50  ;;  %vm1141_vm11 = vweird.f32 %v2921_v23  ;;  %v950_v30 = vpack.c.bf16 %v2482_v21, %v2482_v21 }
 0x33a   : > { %v1198_v16 = vsub.f32 1.5, %v1197_v46  ;;  %v859_v8 = vpop.xlane.xlu0 %858  ;;  %v2919_v45 = vpop.xlane.xlu2 %864  ;;  %vm1142_vm15 = vmor %vm1140_vm14, %vm1141_vm11  ;;  %vm1190_vm6 = vweird.f32 %v2948_v18 }
 0x33b   : > { %v1208_v19 = vsub.f32 1.5, %v1207_v63  ;;  %v879_v40 = vsub.f32 %v2767_v28, %v859_v8  ;;  %v1137_v7 = vmul.f32 0.5, %v1136_v1 }
 0x33c   : > { %v1199_v42 = vmul.f32 %v2266_v11, %v1198_v16 }
 0x33d   : > { %v2926_v26 = vpop.eup %2273  ;;  %v1209_v27 = vmul.f32 %v2268_v6, %v1208_v19  ;;  %v888_v48 = vmul.f32 1.442695, %v879_v40  ;;  %v1138_v61 = vsub.f32 1.5, %v1137_v7  ;;  %v2960_v63 = vpop.xlane.xlu1 %867  ;;  %v952_v40 = vpack.c.bf16 %v2484_v22, %v2484_v22 }
 0x33e   : > { %v2928_v49 = vpop.eup %2275  ;;  %v908_v28 = vsel %vm406_vm1, %v2926_v26, 0.0  ;;  %v1203_v52 = vsel %vm1202_vm7, %v2266_v11, %v1199_v42 }
 0x33f   : > { %2277 = vpow2.f32 %v888_v48  ;;  %909 = vadd.xlane.f32.xlu2 %v908_v28  ;;  %v902_v55 = vsel %vm406_vm1, %v2928_v49, 0.0  ;;  %v1213_v57 = vsel %vm1212_vm9, %v2268_v6, %v1209_v27  ;;  %v1220_v58 = vmul.f32 %v1203_v52, %v2520_v35 }
 0x340   : > { %903 = vadd.xlane.f32.xlu1 %v902_v55  ;;  %v1221_v0 = vmul.f32 %v1213_v57, %v2526_v39  ;;  %v1147_v6 = vmul.f32 0.5, %v1146_v56  ;;  %2279 = vrsqrt.f32 %v2940_v4  ;;  %v1139_v27 = vmul.f32 %v2921_v23, %v1138_v61 }
 0x341   : > { %v1372_v62 = vpack.c.bf16 %v1220_v58, %v1220_v58  ;;  %v951_v28 = vpack.c.bf16 %v2502_v31, %v2502_v31  ;;  %v996_v55 = vunpack.c.l.b16 %v953_v20  ;;  %v995_v57 = vunpack.c.l.b16 %v952_v40 }
 0x342   : > { %v871_v5 = vpop.xlane.xlu2 %870  ;;  %v1373_v11 = vpack.c.bf16 %v1221_v0, %v1221_v0  ;;  %v1148_v46 = vsub.f32 1.5, %v1147_v6  ;;  %v1143_v58 = vsel %vm1142_vm15, %v2921_v23, %v1139_v27  ;;  %v954_v40 = vpack.c.bf16 %v2498_v29, %v2498_v29 }
 0x343   : > { %v883_v12 = vsub.f32 %v2800_v24, %v871_v5  ;;  %v2945_v25 = vunpack.c.l.b16 %v1372_v62  ;;  %v965_v62 = vunpack.c.l.b16 %v950_v30  ;;  %v966_v1 = vunpack.c.l.b16 %v951_v28 }
 0x344   : > { %v2950_v10 = vunpack.c.l.b16 %v1373_v11  ;;  %v1149_v8 = vmul.f32 %v2917_v14, %v1148_v46  ;;  %v955_v20 = vpack.c.bf16 %v2524_v38, %v2524_v38  ;;  %v1025_v30 = vunpack.c.l.b16 %v954_v40 }
 0x345   : > { %v2952_v15 = vpop.eup %2277  ;;  %v896_v13 = vmul.f32 1.442695, %v883_v12  ;;  %v2996_v12 = vpack.c.b16 %v996_v55, %v995_v57  ;;  %v3001_v23 = vpack.c.b16 %v966_v1, %v965_v62 }
 0x346   : > { %v905_v60 = vsel %vm406_vm1, %v2952_v15, 0.0  ;;  %v1488_v24 = vpack.c.b16 %v2950_v10, %v2945_v25  ;;  %v2962_v16 = vpop.eup %2279  ;;  %v1153_v3 = vsel %vm2977_vm13, %v2917_v14, %v1149_v8  ;;  %v1214_v14 = vmul.f32 %v1143_v58, %v2482_v21 }
 0x347   : > { %2281 = vpow2.f32 %v896_v13  ;;  %906 = vadd.xlane.f32.xlu0 %v905_v60  ;;  %v1175_v22 = vmul.f32 %v2962_v16, %v2940_v4  ;;  %v1215_v5 = vmul.f32 %v1153_v3, %v2502_v31  ;;  %vm1181_vm2 = vweird.f32 %v2962_v16 }
 0x348   : > { %2283 = vrsqrt.f32 %v2948_v18  ;;  %v1366_v31 = vpack.c.bf16 %v1214_v14, %v1214_v14  ;;  %vm1182_vm5 = vmor %vm1180_vm4, %vm1181_vm2  ;;  %v1026_v28 = vunpack.c.l.b16 %v955_v20 }
 0x349   : > { %v1176_v56 = vmul.f32 %v2962_v16, %v1175_v22  ;;  %v1367_v7 = vpack.c.bf16 %v1215_v5, %v1215_v5 }
 0x34a   : > { %v1384_v8 = vunpack.c.l.b16 %v1366_v31  ;;  %v3020_v57 = vpack.c.b16 %v1026_v28, %v1025_v30 }
 0x34b   : > { %v1177_v13 = vmul.f32 0.5, %v1176_v56  ;;  %v1385_v46 = vunpack.c.l.b16 %v1367_v7 }
 0x34d   : > { %v2966_v19 = vpop.eup %2281  ;;  %v874_v56 = vpop.xlane.xlu0 %873 }
 0x34e   : > { %v2284_v42 = vpop.eup %2283  ;;  %v917_v48 = vsel %vm406_vm1, %v2966_v19, 0.0 }
 0x34f   : > { %918 = vadd.xlane.f32.xlu0 %v917_v48  ;;  %v1185_v52 = vmul.f32 %v2284_v42, %v2948_v18  ;;  %v1386_v48 = vpack.c.b16 %v1385_v46, %v1384_v8  ;;  %vm1191_vm3 = vweird.f32 %v2284_v42  ;;  %v884_v18 = vsub.f32 %v2827_v53, %v874_v56 }
 0x350   : > { %vm1192_vm7 = vmor %vm1190_vm6, %vm1191_vm3  ;;  %v881_v53 = vsub.f32 %v2765_v41, %v2919_v45  ;;  %v1276_v45 = vadd.f32 1e-06, %v2942_v33  ;;  %v1056_v46 = vunpack.c.l.b16 %v957_v44 }
 0x351   : > { %v1186_v11 = vmul.f32 %v2284_v42, %v1185_v52  ;;  %v898_v5 = vmul.f32 1.442695, %v884_v18 }
 0x352   : > { %vm1344_vm12 = vweird.f32 %v1276_v45 }
 0x353   : > { %v1187_v60 = vmul.f32 0.5, %v1186_v11  ;;  %v892_v11 = vmul.f32 1.442695, %v881_v53 }
 0x355   : > { %v877_v0 = vpop.xlane.xlu1 %876  ;;  %v1188_v61 = vsub.f32 1.5, %v1187_v60 }
 0x356   : > { %v885_v2 = vsub.f32 %v2877_v32, %v877_v0  ;;  %v1178_v32 = vsub.f32 1.5, %v1177_v13 }
 0x357   : > { %998 = vrot.lane.b32.xlu2 %v2996_v12, %s2383_s12  ;;  %v1189_v22 = vmul.f32 %v2284_v42, %v1188_v61 }
 0x358   : > { %v900_v6 = vmul.f32 1.442695, %v885_v2  ;;  %v1179_v27 = vmul.f32 %v2962_v16, %v1178_v32  ;;  %v956_v32 = vpack.c.bf16 %v2520_v35, %v2520_v35 }
 0x359   : > { %968 = vrot.lane.b32.xlu1 %v3001_v23, %s2383_s12  ;;  %v1193_v52 = vsel %vm1192_vm7, %v2284_v42, %v1189_v22  ;;  %v882_v42 = vsub.f32 %v2721_v51, %v2960_v63  ;;  %v1277_v51 = vadd.f32 1e-06, %v2905_v34 }
 0x35a   : > { %2285 = vpow2.f32 %v900_v6  ;;  %v1183_v3 = vsel %vm1182_vm5, %v2962_v16, %v1179_v27  ;;  %v1219_v58 = vmul.f32 %v1193_v52, %v2524_v38  ;;  %v1055_v34 = vunpack.c.l.b16 %v956_v32 }
 0x35b   : > { %v1218_v55 = vmul.f32 %v1183_v3, %v2498_v29  ;;  %2287 = vpow2.f32 %v898_v5  ;;  %v894_v2 = vmul.f32 1.442695, %v882_v42  ;;  %vm1354_vm10 = vweird.f32 %v1277_v51 }
 0x35c   : > { %v1371_v0 = vpack.c.bf16 %v1219_v58, %v1219_v58  ;;  %v3053_v20 = vpack.c.b16 %v1056_v46, %v1055_v34 }
 0x35d   : > { %v1370_v4 = vpack.c.bf16 %v1218_v55, %v1218_v55  ;;  %2289 = vpow2.f32 %v894_v2 }
 0x35e   : > { %v1453_v1 = vunpack.c.l.b16 %v1371_v0  ;;  %2291 = vpow2.f32 %v892_v11 }
 0x35f   : > { %v1452_v62 = vunpack.c.l.b16 %v1370_v4  ;;  %2293 = vrsqrt.f32 %v1277_v51 }
 0x360   : > { %v3005_v21 = vpop.eup %2285  ;;  %2295 = vrsqrt.f32 %v1276_v45  ;;  %v1395_v40 = vpop.permute.xlu0 %1394 }
 0x361   : > { %v923_v50 = vsel %vm406_vm1, %v3005_v21, 0.0  ;;  %1387 = vrot.lane.b32.xlu1 %v1386_v48, %s2382_s29  ;;  %v1454_v16 = vpack.c.b16 %v1453_v1, %v1452_v62  ;;  %v3027_v29 = vpop.eup %2287  ;;  %v1400_v52 = vsel %vm406_vm1, %v1395_v40, 0 }
 0x362   : > { %924 = vadd.xlane.f32.xlu0 %v923_v50  ;;  %v920_v38 = vsel %vm406_vm1, %v3027_v29, 0.0 }
 0x363   : > { %v3035_v14 = vpop.eup %2289 }
 0x364   : > { %v914_v6 = vsel %vm406_vm1, %v3035_v14, 0.0  ;;  %v3039_v13 = vpop.eup %2291 }
 0x365   : > { %v911_v41 = vsel %vm406_vm1, %v3039_v13, 0.0  ;;  %v2294_v63 = vpop.eup %2293 }
 0x366   : > { %v2296_v7 = vpop.eup %2295  ;;  %v1349_v60 = vmul.f32 %v2294_v63, %v1277_v51  ;;  %vm1355_vm8 = vweird.f32 %v2294_v63 }
 0x367   : > { %v1339_v31 = vmul.f32 %v2296_v7, %v1276_v45  ;;  %vm1345_vm9 = vweird.f32 %v2296_v7  ;;  %vm1356_vm11 = vmor %vm1354_vm10, %vm1355_vm8 }
 0x368   : > { %v1350_v37 = vmul.f32 %v2294_v63, %v1349_v60  ;;  %vm1346_vm13 = vmor %vm1344_vm12, %vm1345_vm9 }
 0x369   : > { %1028 = vrot.lane.b32.xlu1 %v3020_v57, %s2383_s12 }
 0x36a   : > { %v1351_v61 = vmul.f32 0.5, %v1350_v37 }
 0x36c   : > { %v1352_v27 = vsub.f32 1.5, %v1351_v61 }
 0x36e   : > { %v1353_v50 = vmul.f32 %v2294_v63, %v1352_v27 }
 0x370   : > { %v1357_v55 = vsel %vm1356_vm11, %v2294_v63, %v1353_v50 }
 0x371   : > { %v1365_v4 = vmul.f32 %v1357_v55, %v2526_v39 }
 0x373   : > { %v1381_v1 = vpack.c.bf16 %v1365_v4, %v1365_v4 }
 0x376   : > { %1455 = vrot.lane.b32.xlu0 %v1454_v16, %s2382_s29 }
 0x380   : > { %921 = vadd.xlane.f32.xlu2 %v920_v38 }
 0x393   : > { %915 = vadd.xlane.f32.xlu1 %v914_v6 }
 0x398   : > { %1462 = vrot.lane.b32.xlu2 %v1461_v47, %s2381_s28  ;;  %v1340_v47 = vmul.f32 %v2296_v7, %v1339_v31 }
 0x39a   : > { %v1341_v8 = vmul.f32 0.5, %v1340_v47 }
 0x39b   : > { %912 = vadd.xlane.f32.xlu1 %v911_v41 }
 0x39c   : > { %v1342_v48 = vsub.f32 1.5, %v1341_v8 }
 0x39e   : > { %v1343_v30 = vmul.f32 %v2296_v7, %v1342_v48 }
 0x3a0   : > { %v1347_v58 = vsel %vm1346_vm13, %v2296_v7, %v1343_v30 }
 0x3a1   : > { %v1364_v0 = vmul.f32 %v1347_v58, %v2520_v35 }
 0x3a3   : > { %v1380_v43 = vpack.c.bf16 %v1364_v0, %v1364_v0 }
 0x3a5   : > { %v1493_v38 = vunpack.c.l.b16 %v1380_v43 }
 0x3b2   : > { %v910_v33 = vpop.xlane.xlu2 %909 }
 0x3b3   : > { %v904_v22 = vpop.xlane.xlu1 %903 }
 0x3b4   : > { %1058 = vrot.lane.b32.xlu1 %v3053_v20, %s2383_s12  ;;  %2297 = vrcp.f32 %v904_v22 }
 0x3ba   : > { %v907_v28 = vpop.xlane.xlu0 %906  ;;  %v999_v3 = vpop.permute.xlu2 %998 }
 0x3bb   : > { %2299 = vrcp.f32 %v907_v28  ;;  %1011 = vmatpush.bf16.msra.mxu3 %v999_v3  ;;  %v2298_v56 = vpop.eup %2297 }
 0x3bc   : > { %1428 = vrot.lane.b32.xlu1 %v1427_v54, %s2381_s28  ;;  %v934_v5 = vmul.f32 %v2298_v56, %v2928_v49  ;;  %v1494_v54 = vunpack.c.l.b16 %v1381_v1 }
 0x3be   : > { %v942_v16 = vpack.c.bf16 %v934_v5, %v934_v5  ;;  %v1495_v42 = vpack.c.b16 %v1494_v54, %v1493_v38  ;;  %v2146_v38 = vld [vmem:[%s3347_s7 + $0x40] sm:$0xff] }
 0x3bf   : > { %1409 = vmatpush.bf16.xpose.msrb.mxu3 %v1400_v52 }
 0x3c0   : > { %v960_v2 = vunpack.c.l.b16 %v942_v16 }
 0x3c1   : > { %v2300_v18 = vpop.eup %2299 }
 0x3c2   : > { %v935_v62 = vmul.f32 %v2300_v18, %v2952_v15  ;;  %v919_v9 = vpop.xlane.xlu0 %918 }
 0x3c3   : > { %2301 = vrcp.f32 %v919_v9 }
 0x3c4   : > { %1421 = vrot.lane.b32.xlu1 %v1420_v36, %s2382_s29  ;;  %v943_v17 = vpack.c.bf16 %v935_v62, %v935_v62 }
 0x3c6   : > { %v961_v39 = vunpack.c.l.b16 %v943_v17 }
 0x3c8   : > { %v962_v15 = vpack.c.b16 %v961_v39, %v960_v2 }
 0x3c9   : > { %v2302_v53 = vpop.eup %2301 }
 0x3ca   : > { %v939_v11 = vmul.f32 %v2302_v53, %v2966_v19 }
 0x3cb   : > { %v969_v35 = vpop.permute.xlu1 %968 }
 0x3cc   : > { %981 = vmatpush.bf16.msra.mxu2 %v969_v35  ;;  %1496 = vrot.lane.b32.xlu1 %v1495_v42, %s2381_s28  ;;  %v947_v51 = vpack.c.bf16 %v939_v11, %v939_v11  ;;  %v2148_v35 = vld [vmem:[%s3347_s7 + $0x50] sm:$0xff]  ;;  %v2147_v11 = vld [vmem:[%s3347_s7 + $0x48] sm:$0xff] }
 0x3cf   : > { %2137 = vmatmul.msk.bf16.vlgmr.msra.gmra.mxu2 %vm406_vm1, %v962_v15 }
 0x3d3   : > { %v1388_v49 = vpop.permute.xlu1 %1387 }
 0x3d4   : > { %1489 = vrot.lane.b32.xlu1 %v1488_v24, %s2382_s29  ;;  %v1021_v24 = vunpack.c.l.b16 %v947_v51 }
 0x3d5   : > { %v925_v60 = vpop.xlane.xlu0 %924 }
 0x3db   : > { %v1029_v59 = vpop.permute.xlu1 %1028 }
 0x3dc   : > { %1041 = vmatpush.bf16.msrb.mxu1 %v1029_v59 }
 0x3e8   : > { %v1456_v55 = vpop.permute.xlu0 %1455 }
 0x3f3   : > { %v922_v7 = vpop.xlane.xlu2 %921 }
 0x3fb   : > { %v1463_v50 = vpop.permute.xlu2 %1462 }
 0x3fc   : > { %v1468_v30 = vsel %vm406_vm1, %v1463_v50, 0 }
 0x406   : > { %v916_v36 = vpop.xlane.xlu1 %915 }
 0x407   : > { %2303 = vrcp.f32 %v916_v36 }
 0x408   : > { %2305 = vrcp.f32 %v910_v33 }
 0x40d   : > { %v2304_v6 = vpop.eup %2303 }
 0x40e   : > { %v938_v41 = vmul.f32 %v2304_v6, %v3035_v14  ;;  %v913_v45 = vpop.xlane.xlu1 %912  ;;  %v2306_v63 = vpop.eup %2305 }
 0x40f   : > { %2307 = vrcp.f32 %v913_v45  ;;  %v936_v10 = vmul.f32 %v2306_v63, %v2926_v26  ;;  %v2149_v45 = vld [vmem:[%s3347_s7 + $0x58] sm:$0xff] }
 0x410   : > { %v946_v25 = vpack.c.bf16 %v938_v41, %v938_v41  ;;  %2309 = vrcp.f32 %v922_v7 }
 0x411   : > { %2311 = vrcp.f32 %v925_v60  ;;  %v944_v37 = vpack.c.bf16 %v936_v10, %v936_v10 }
 0x412   : > { %v1020_v31 = vunpack.c.l.b16 %v946_v25 }
 0x413   : > { %v990_v34 = vunpack.c.l.b16 %v944_v37 }
 0x414   : > { %v1022_v32 = vpack.c.b16 %v1021_v24, %v1020_v31  ;;  %v2151_v31 = vld [vmem:[%s3347_s7 + $0x68] sm:$0xff] }
 0x415   : > { %v2308_v44 = vpop.eup %2307 }
 0x416   : > { %v937_v19 = vmul.f32 %v2308_v44, %v3039_v13  ;;  %2139 = vmatmul.msk.bf16.vlgmr.msrb.gmra.mxu1 %vm406_vm1, %v1022_v32  ;;  %v2310_v47 = vpop.eup %2309 }
 0x417   : > { %v2312_v61 = vpop.eup %2311  ;;  %v940_v8 = vmul.f32 %v2310_v47, %v3027_v29  ;;  %v2213_v29 = vld [vmem:[%s3348_s8 + $0x1] ss:$0 sm:$0xff] }
 0x418   : > { %v945_v14 = vpack.c.bf16 %v937_v19, %v937_v19  ;;  %v941_v40 = vmul.f32 %v2312_v61, %v3005_v21  ;;  %1523 = vperm.xlu2 %2189, %v2213_v29  }
 0x419   : > { %v948_v33 = vpack.c.bf16 %v940_v8, %v940_v8  ;;  %v2150_v8 = vld [vmem:[%s3347_s7 + $0x60] sm:$0xff] }
 0x41a   : > { %v991_v46 = vunpack.c.l.b16 %v945_v14  ;;  %v949_v27 = vpack.c.bf16 %v941_v40, %v941_v40  ;;  %v2152_v14 = vld [vmem:[%s3347_s7 + $0x70] sm:$0xff] }
 0x41b   : > { %v1050_v48 = vunpack.c.l.b16 %v948_v33 }
 0x41c   : > { %v992_v26 = vpack.c.b16 %v991_v46, %v990_v34  ;;  %v1051_v22 = vunpack.c.l.b16 %v949_v27 }
 0x41e   : > { %2138 = vmatmul.msk.bf16.vlgmr.msra.gmra.mxu3 %vm406_vm1, %v992_v26  ;;  %v1052_v28 = vpack.c.b16 %v1051_v22, %v1050_v48  ;;  %v2153_v48 = vld [vmem:[%s3347_s7 + $0x78] sm:$0xff] }
 0x426   : > { %v1059_v13 = vpop.permute.xlu1 %1058 }
 0x427   : > { %1071 = vmatpush.bf16.msrb.mxu2 %v1059_v13 }
 0x42a   : > { %2140 = vmatmul.msk.bf16.vlgmr.msrb.gmra.mxu2 %vm406_vm1, %v1052_v28 }
 0x42b   : > { %1477 = vmatpush.bf16.xpose.msra.mxu2 %v1468_v30 }
 0x42e   : > { %v1429_v3 = vpop.permute.xlu1 %1428  ;;  %2141 = vmatmul.msk.bf16.vlgmr.msrb.gmra.mxu3 %vm406_vm1, %v1388_v49 }
 0x42f   : > { %v1434_v21 = vsel %vm406_vm1, %v1429_v3, 0 }
 0x430   : > { %1443 = vmatpush.bf16.xpose.msra.mxu1 %v1434_v21 }
 0x436   : > { %v1422_v52 = vpop.permute.xlu1 %1421 }
 0x437   : > { %2142 = vmatmul.msk.bf16.vlgmr.msra.gmra.mxu1 %vm406_vm1, %v1422_v52 }
 0x43a   : > { %2143 = vmatmul.msk.bf16.vlgmr.msra.gmra.mxu2 %vm406_vm1, %v1456_v55 }
 0x43e   : > { %v1497_v58 = vpop.permute.xlu1 %1496 }
 0x43f   : > { %v1502_v4 = vsel %vm406_vm1, %v1497_v58, 0 }
 0x440   : > { %1511 = vmatpush.bf16.xpose.msra.mxu3 %v1502_v4 }
 0x446   : > { %v1490_v56 = vpop.permute.xlu1 %1489 }
 0x447   : > { %2144 = vmatmul.msk.bf16.vlgmr.msra.gmra.mxu3 %vm406_vm1, %v1490_v56 }
 0x452   : > { %v3095_v0 = vpop.f32.mrf.mxu2 }
 0x45a   : > { %v3101_v1 = vpop.f32.mrf.mxu2 }
 0x472   : > { %v1524_v54 = vpop.permute.xlu2 %1523 }
 0x493   : > { %v3099_v62 = vpop.f32.mrf.mxu1 }
 0x49b   : > { %v3105_v43 = vpop.f32.mrf.mxu1 }
 0x4a1   : > { %v3097_v18 = vpop.f32.mrf.mxu3 }
 0x4a9   : > { %v3103_v5 = vpop.f32.mrf.mxu3 }
 0x4ad   : > { %v3107_v17 = vpop.f32.mrf.mxu2 }
 0x4b1   : > { %v1411_v16 = vpop.f32.mrf.mxu3 }
 0x4b2   : > { %v1526_v39 = vmul.f32 %v1524_v54, %v1411_v16 }
 0x4b4   : > { %v1445_v42 = vpop.f32.mrf.mxu1  ;;  %v1543_v2 = vadd.f32 %v2146_v38, %v1526_v39 }
 0x4b5   : > { %v1528_v15 = vmul.f32 %v1524_v54, %v1445_v42  ;;  %v3115_v49 = vpop.f32.mrf.mxu2 }
 0x4b6   : > { %v1551_v59 = vsel %vm406_vm1, %v1543_v2, -inf }
 0x4b7   : > { %1552 = vmax.xlane.f32.xlu1 %v1551_v59  ;;  %v1545_v9 = vadd.f32 %v2148_v35, %v1528_v15 }
 0x4b9   : > { %v1413_v36 = vpop.f32.mrf.mxu3  ;;  %v1557_v53 = vsel %vm406_vm1, %v1545_v9, -inf }
 0x4ba   : > { %v1527_v6 = vmul.f32 %v1524_v54, %v1413_v36  ;;  %1558 = vmax.xlane.f32.xlu2 %v1557_v53 }
 0x4bc   : > { %v1447_v51 = vpop.f32.mrf.mxu1  ;;  %v1544_v41 = vadd.f32 %v2147_v11, %v1527_v6 }
 0x4bd   : > { %v1529_v63 = vmul.f32 %v1524_v54, %v1447_v51  ;;  %v1479_v7 = vpop.f32.mrf.mxu2 }
 0x4be   : > { %v1554_v25 = vsel %vm406_vm1, %v1544_v41, -inf  ;;  %v1530_v61 = vmul.f32 %v1524_v54, %v1479_v7 }
 0x4bf   : > { %1555 = vmax.xlane.f32.xlu0 %v1554_v25  ;;  %v1546_v10 = vadd.f32 %v2149_v45, %v1529_v63 }
 0x4c0   : > { %v1547_v26 = vadd.f32 %v2150_v8, %v1530_v61 }
 0x4c1   : > { %v1560_v24 = vsel %vm406_vm1, %v1546_v10, -inf }
 0x4c2   : > { %1561 = vmax.xlane.f32.xlu1 %v1560_v24  ;;  %v1563_v27 = vsel %vm406_vm1, %v1547_v26, -inf }
 0x4c5   : > { %v1481_v60 = vpop.f32.mrf.mxu2 }
 0x4c6   : > { %v1531_v32 = vmul.f32 %v1524_v54, %v1481_v60 }
 0x4c8   : > { %v1548_v44 = vadd.f32 %v2151_v31, %v1531_v32 }
 0x4ca   : > { %v1513_v37 = vpop.f32.mrf.mxu3  ;;  %v1566_v19 = vsel %vm406_vm1, %v1548_v44, -inf }
 0x4cb   : > { %v1532_v47 = vmul.f32 %v1524_v54, %v1513_v37  ;;  %1567 = vmax.xlane.f32.xlu2 %v1566_v19 }
 0x4cd   : > { %v1549_v34 = vadd.f32 %v2152_v14, %v1532_v47 }
 0x4cf   : > { %v1569_v46 = vsel %vm406_vm1, %v1549_v34, -inf }
 0x4d0   : > { %1570 = vmax.xlane.f32.xlu1 %v1569_v46 }
 0x4d2   : > { %v1515_v40 = vpop.f32.mrf.mxu3 }
 0x4d3   : > { %1652 = vrot.lane.b32.xlu0 %v3001_v23, %s2384_s27  ;;  %v1533_v33 = vmul.f32 %v1524_v54, %v1515_v40 }
 0x4d5   : > { %v1550_v50 = vadd.f32 %v2153_v48, %v1533_v33 }
 0x4d7   : > { %v1572_v22 = vsel %vm406_vm1, %v1550_v50, -inf }
 0x4fd   : > { %1564 = vmax.xlane.f32.xlu0 %v1563_v27 }
 0x505   : > { %1573 = vmax.xlane.f32.xlu0 %v1572_v22 }
 0x519   : > { %1702 = vrot.lane.b32.xlu0 %v3020_v57, %s2384_s27 }
 0x52a   : > { %v1553_v23 = vpop.xlane.xlu1 %1552 }
 0x52b   : > { %v1575_v13 = vsub.f32 %v1543_v2, %v1553_v23 }
 0x52d   : > { %v1583_v30 = vmul.f32 1.442695, %v1575_v13  ;;  %v1559_v28 = vpop.xlane.xlu2 %1558 }
 0x52e   : > { %v1577_v3 = vsub.f32 %v1545_v9, %v1559_v28 }
 0x52f   : > { %2313 = vpow2.f32 %v1583_v30 }
 0x530   : > { %v1587_v21 = vmul.f32 1.442695, %v1577_v3 }
 0x532   : > { %v1556_v29 = vpop.xlane.xlu0 %1555  ;;  %2315 = vpow2.f32 %v1587_v21 }
 0x533   : > { %v1576_v52 = vsub.f32 %v1544_v41, %v1556_v29 }
 0x535   : > { %v2314_v55 = vpop.eup %2313  ;;  %v1585_v58 = vmul.f32 1.442695, %v1576_v52  ;;  %v1562_v4 = vpop.xlane.xlu1 %1561 }
 0x536   : > { %v1578_v56 = vsub.f32 %v1546_v10, %v1562_v4  ;;  %v1599_v54 = vsel %vm406_vm1, %v2314_v55, 0.0 }
 0x537   : > { %2317 = vpow2.f32 %v1585_v58  ;;  %1600 = vadd.xlane.f32.xlu2 %v1599_v54 }
 0x538   : > { %v1589_v16 = vmul.f32 1.442695, %v1578_v56  ;;  %v3148_v57 = vpop.eup %2315 }
 0x539   : > { %v1605_v42 = vsel %vm406_vm1, %v3148_v57, 0.0 }
 0x53a   : > { %2319 = vpow2.f32 %v1589_v16 }
 0x53d   : > { %v2318_v38 = vpop.eup %2317 }
 0x53e   : > { %v1602_v39 = vsel %vm406_vm1, %v2318_v38, 0.0  ;;  %v1568_v35 = vpop.xlane.xlu2 %1567 }
 0x53f   : > { %1603 = vadd.xlane.f32.xlu1 %v1602_v39  ;;  %1606 = vadd.xlane.f32.xlu2 %v1605_v42  ;;  %v1580_v36 = vsub.f32 %v1548_v44, %v1568_v35 }
 0x540   : > { %v2320_v2 = vpop.eup %2319 }
 0x541   : > { %v1608_v11 = vsel %vm406_vm1, %v2320_v2, 0.0  ;;  %v1593_v6 = vmul.f32 1.442695, %v1580_v36 }
 0x543   : > { %v1571_v15 = vpop.xlane.xlu1 %1570 }
 0x544   : > { %v1581_v59 = vsub.f32 %v1549_v34, %v1571_v15 }
 0x545   : > { %v1653_v9 = vpop.permute.xlu0 %1652 }
 0x546   : > { %v1595_v53 = vmul.f32 1.442695, %v1581_v59  ;;  %1665 = vmatpush.bf16.msrb.mxu0 %v1653_v9 }
 0x547   : > { %1609 = vadd.xlane.f32.xlu1 %v1608_v11 }
 0x548   : > { %2321 = vpow2.f32 %v1595_v53 }
 0x549   : > { %2323 = vpow2.f32 %v1593_v6 }
 0x54e   : > { %v3154_v51 = vpop.eup %2321 }
 0x54f   : > { %v1617_v41 = vsel %vm406_vm1, %v3154_v51, 0.0  ;;  %v2324_v45 = vpop.eup %2323 }
 0x550   : > { %1618 = vadd.xlane.f32.xlu1 %v1617_v41  ;;  %v1614_v63 = vsel %vm406_vm1, %v2324_v45, 0.0 }
 0x558   : > { %1615 = vadd.xlane.f32.xlu1 %v1614_v63 }
 0x570   : > { %v1565_v7 = vpop.xlane.xlu0 %1564 }
 0x571   : > { %v1579_v25 = vsub.f32 %v1547_v26, %v1565_v7  ;;  %1727 = vrot.lane.b32.xlu1 %v3053_v20, %s2384_s27 }
 0x573   : > { %v1591_v10 = vmul.f32 1.442695, %v1579_v25 }
 0x575   : > { %2325 = vpow2.f32 %v1591_v10 }
 0x578   : > { %v1574_v24 = vpop.xlane.xlu0 %1573 }
 0x579   : > { %v1582_v60 = vsub.f32 %v1550_v50, %v1574_v24 }
 0x57b   : > { %v2326_v31 = vpop.eup %2325  ;;  %v1597_v32 = vmul.f32 1.442695, %v1582_v60 }
 0x57c   : > { %v1611_v44 = vsel %vm406_vm1, %v2326_v31, 0.0 }
 0x57d   : > { %2327 = vpow2.f32 %v1597_v32  ;;  %1612 = vadd.xlane.f32.xlu2 %v1611_v44 }
 0x583   : > { %v2328_v37 = vpop.eup %2327 }
 0x584   : > { %v1620_v19 = vsel %vm406_vm1, %v2328_v37, 0.0 }
 0x585   : > { %1621 = vadd.xlane.f32.xlu0 %v1620_v19 }
 0x58b   : > { %v1703_v14 = vpop.permute.xlu0 %1702 }
 0x58c   : > { %1715 = vmatpush.bf16.msrb.mxu2 %v1703_v14 }
 0x595   : > { %1677 = vrot.lane.b32.xlu2 %v2996_v12, %s2384_s27 }
 0x5aa   : > { %v1601_v20 = vpop.xlane.xlu2 %1600 }
 0x5ab   : > { %2329 = vrcp.f32 %v1601_v20  ;;  %v1787_v20 = vld [vmem:[%s3343_s3] sm:$0xff] }
 0x5b1   : > { %v2330_v34 = vpop.eup %2329 }
 0x5b2   : > { %v1604_v47 = vpop.xlane.xlu1 %1603  ;;  %v1631_v46 = vmul.f32 %v2330_v34, %v2314_v55  ;;  %v1607_v12 = vpop.xlane.xlu2 %1606 }
 0x5b3   : > { %2331 = vrcp.f32 %v1604_v47  ;;  %v1788_v47 = vld [vmem:[%s3343_s3 + $0x8] sm:$0xff] }
 0x5b4   : > { %v1639_v8 = vpack.c.bf16 %v1631_v46, %v1631_v46  ;;  %v1795_v34 = vpack.c.bf16 %v1788_v47, %v1787_v20 }
 0x5b6   : > { %v1649_v33 = vunpack.c.l.b16 %v1639_v8 }
 0x5b9   : > { %v2332_v61 = vpop.eup %2331 }
 0x5ba   : > { %v1632_v26 = vmul.f32 %v2332_v61, %v2318_v38  ;;  %v1610_v50 = vpop.xlane.xlu1 %1609 }
 0x5bb   : > { %2333 = vrcp.f32 %v1610_v50 }
 0x5bc   : > { %v1640_v40 = vpack.c.bf16 %v1632_v26, %v1632_v26  ;;  %2335 = vrcp.f32 %v1607_v12 }
 0x5be   : > { %v1650_v27 = vunpack.c.l.b16 %v1640_v40 }
 0x5c0   : > { %v1651_v48 = vpack.c.b16 %v1650_v27, %v1649_v33 }
 0x5c1   : > { %v2334_v30 = vpop.eup %2333 }
 0x5c2   : > { %2154 = vmatmul.msk.bf16.vlgmr.msrb.gmra.mxu0 %vm406_vm1, %v1651_v48  ;;  %v2336_v28 = vpop.eup %2335  ;;  %v1634_v3 = vmul.f32 %v2334_v30, %v2320_v2 }
 0x5c3   : > { %v1619_v22 = vpop.xlane.xlu1 %1618  ;;  %v1633_v21 = vmul.f32 %v2336_v28, %v3148_v57 }
 0x5c4   : > { %v1642_v55 = vpack.c.bf16 %v1634_v3, %v1634_v3 }
 0x5c5   : > { %v1641_v58 = vpack.c.bf16 %v1633_v21, %v1633_v21 }
 0x5c6   : > { %v1675_v56 = vunpack.c.l.b16 %v1642_v55 }
 0x5c7   : > { %v1674_v16 = vunpack.c.l.b16 %v1641_v58 }
 0x5c9   : > { %v1676_v2 = vpack.c.b16 %v1675_v56, %v1674_v16 }
 0x5cb   : > { %v1616_v23 = vpop.xlane.xlu1 %1615 }
 0x5cc   : > { %2337 = vrcp.f32 %v1616_v23 }
 0x5d2   : > { %v2338_v52 = vpop.eup %2337 }
 0x5d3   : > { %v1636_v4 = vmul.f32 %v2338_v52, %v2324_v45 }
 0x5d5   : > { %v1644_v38 = vpack.c.bf16 %v1636_v4, %v1636_v4 }
 0x5d7   : > { %v1700_v9 = vunpack.c.l.b16 %v1644_v38 }
 0x5e3   : > { %v1728_v13 = vpop.permute.xlu1 %1727 }
 0x5e4   : > { %1740 = vmatpush.bf16.msrb.mxu3 %v1728_v13 }
 0x5f0   : > { %v1613_v29 = vpop.xlane.xlu2 %1612 }
 0x5f1   : > { %2339 = vrcp.f32 %v1613_v29 }
 0x5f2   : > { %2341 = vrcp.f32 %v1619_v22 }
 0x5f7   : > { %v2340_v54 = vpop.eup %2339 }
 0x5f8   : > { %v1635_v39 = vmul.f32 %v2340_v54, %v2326_v31  ;;  %v1622_v42 = vpop.xlane.xlu0 %1621  ;;  %v1678_v35 = vpop.permute.xlu2 %1677  ;;  %v1790_v31 = vld [vmem:[%s3343_s3 + $0x18] sm:$0xff] }
 0x5f9   : > { %v2342_v15 = vpop.eup %2341  ;;  %2343 = vrcp.f32 %v1622_v42  ;;  %1690 = vmatpush.bf16.msrb.mxu1 %v1678_v35 }
 0x5fa   : > { %v1643_v59 = vpack.c.bf16 %v1635_v39, %v1635_v39  ;;  %v1637_v57 = vmul.f32 %v2342_v15, %v3154_v51  ;;  %v1789_v51 = vld [vmem:[%s3343_s3 + $0x10] sm:$0xff] }
 0x5fb   : > { %v1796_v32 = vpack.c.bf16 %v1790_v31, %v1789_v51 }
 0x5fc   : > { %v1699_v36 = vunpack.c.l.b16 %v1643_v59  ;;  %2155 = vmatmul.msk.bf16.vlgmr.msrb.gmra.mxu1 %vm406_vm1, %v1676_v2  ;;  %v1645_v6 = vpack.c.bf16 %v1637_v57, %v1637_v57 }
 0x5fd   : > { %1819 = vmatpush.bf16.msra.mxu0 %v1796_v32 }
 0x5fe   : > { %v1701_v53 = vpack.c.b16 %v1700_v9, %v1699_v36  ;;  %v1724_v63 = vunpack.c.l.b16 %v1645_v6 }
 0x5ff   : > { %v2344_v11 = vpop.eup %2343 }
 0x600   : > { %v1638_v41 = vmul.f32 %v2344_v11, %v2328_v37  ;;  %2156 = vmatmul.msk.bf16.vlgmr.msrb.gmra.mxu2 %vm406_vm1, %v1701_v53  ;;  %v2386_v11 = vmov 32.0  }
 0x601   : > { %1820 = vmatpush.bf16.msra.mxu0 %v1795_v34  ;;  %2345 = vrcp.f32 %v2386_v11 }
 0x602   : > { %v1646_v45 = vpack.c.bf16 %v1638_v41, %v1638_v41 }
 0x604   : > { %v1725_v7 = vunpack.c.l.b16 %v1646_v45 }
 0x606   : > { %v1726_v25 = vpack.c.b16 %v1725_v7, %v1724_v63 }
 0x607   : > { %v2346_v41 = vpop.eup %2345 }
 0x608   : > { %2157 = vmatmul.msk.bf16.vlgmr.msrb.gmra.mxu3 %vm406_vm1, %v1726_v25  ;;  %v1869_v7 = vmul.f32 32.0, %v2346_v41 }
 0x63f   : > { %v1667_v10 = vpop.f32.mrf.mxu0 }
 0x647   : > { %v1669_v24 = vpop.f32.mrf.mxu0 }
 0x648   : > { %v2190_v60 = vpack.i.bf16 %v1669_v24, %v1667_v10  ;;  %v1870_v10 = vsub.f32 1.0, %v1869_v7 }
 0x64a   : > { %2191 = vrot.lane.b32.xlu2 %v2190_v60, %s2385_s13  ;;  %v1871_v51 = vmul.f32 %v2346_v41, %v1870_v10  ;;  %v3269_v10 = vld [vmem:[%s3345_s5] ss:$0 sm:$0xff] }
 0x64c   : > { %v1872_v32 = vadd.f32 %v2346_v41, %v1871_v51  ;;  %v3274_v51 = vld [vmem:[%s3346_s6] ss:$0 sm:$0xff] }
 0x679   : > { %v1692_v44 = vpop.f32.mrf.mxu1 }
 0x681   : > { %v1694_v37 = vpop.f32.mrf.mxu1 }
 0x682   : > { %v2195_v19 = vpack.i.bf16 %v1694_v37, %v1692_v44 }
 0x683   : > { %v1717_v14 = vpop.f32.mrf.mxu2 }
 0x684   : > { %2196 = vrot.lane.b32.xlu2 %v2195_v19, %s2385_s13 }
 0x68b   : > { %v1719_v46 = vpop.f32.mrf.mxu2  ;;  %v1742_v61 = vpop.f32.mrf.mxu3 }
 0x68c   : > { %v2200_v8 = vpack.i.bf16 %v1719_v46, %v1717_v14 }
 0x68e   : > { %2201 = vrot.lane.b32.xlu1 %v2200_v8, %s2385_s13 }
 0x693   : > { %v1744_v26 = vpop.f32.mrf.mxu3 }
 0x694   : > { %v2205_v40 = vpack.i.bf16 %v1744_v26, %v1742_v61 }
 0x696   : > { %2206 = vrot.lane.b32.xlu2 %v2205_v40, %s2385_s13  ;;  %s3284_s13 = scalar_lea.vmem %s3349_s9, %s2164_s19 }
 0x6a4   : > { %v2192_v33 = vpop.permute.xlu2 %2191 }
 0x6a5   : > { %v2194_v27 = vunpack.i.h.bf16 %v2192_v33  ;;  %v2193_v48 = vunpack.i.l.bf16 %v2192_v33 }
 0x6a7   : > { %v1780_v50 = vsel %vm406_vm1, %v3101_v1, %v2194_v27  ;;  %v1779_v22 = vsel %vm406_vm1, %v3095_v0, %v2193_v48 }
 0x6a8   : > { %v1791_v23 = vpack.c.bf16 %v1780_v50, %v1779_v22 }
 0x6aa   : > { %2158 = vmatmul.msk.bf16.vlgmr.msra.gmra.mxu0 %vm356_vm0, %v1791_v23 }
 0x6de   : > { %v2197_v13 = vpop.permute.xlu2 %2196 }
 0x6df   : > { %v2199_v12 = vunpack.i.h.bf16 %v2197_v13  ;;  %v2198_v30 = vunpack.i.l.bf16 %v2197_v13 }
 0x6e1   : > { %v1781_v28 = vsel %vm406_vm1, %v3097_v18, %v2198_v30  ;;  %v1782_v3 = vsel %vm406_vm1, %v3103_v5, %v2199_v12 }
 0x6e2   : > { %v1792_v21 = vpack.c.bf16 %v1782_v3, %v1781_v28 }
 0x6e4   : > { %2159 = vmatmul.msk.bf16.gmra.mxu0 %vm356_vm0, %v1792_v21 }
 0x6f0   : > { %v2207_v4 = vpop.permute.xlu2 %2206 }
 0x6f1   : > { %v2209_v18 = vunpack.i.h.bf16 %v2207_v4  ;;  %v2208_v56 = vunpack.i.l.bf16 %v2207_v4 }
 0x6f3   : > { %v1785_v5 = vsel %vm406_vm1, %v3107_v17, %v2208_v56  ;;  %v1786_v54 = vsel %vm406_vm1, %v3115_v49, %v2209_v18 }
 0x6f4   : > { %v1794_v16 = vpack.c.bf16 %v1786_v54, %v1785_v5 }
 0x700   : > { %v2202_v29 = vpop.permute.xlu1 %2201 }
 0x701   : > { %v2204_v1 = vunpack.i.h.bf16 %v2202_v29  ;;  %v2203_v52 = vunpack.i.l.bf16 %v2202_v29 }
 0x703   : > { %v1783_v0 = vsel %vm406_vm1, %v3099_v62, %v2203_v52  ;;  %v1784_v55 = vsel %vm406_vm1, %v3105_v43, %v2204_v1  ;;  %v2214_v62 = vld [vmem:[%s3344_s4] ss:$0 sm:$0xff]  ;;  %vm1873_vm1 = vweird.f32 %v2346_v41 }
 0x704   : > { %v1793_v58 = vpack.c.bf16 %v1784_v55, %v1783_v0  ;;  %v3213_v19 = vsel %vm1873_vm1, %v2346_v41, %v1872_v32 }
 0x706   : > { %2160 = vmatmul.msk.bf16.gmra.mxu0 %vm356_vm0, %v1793_v58 }
 0x716   : > { %2161 = vmatmul.msk.bf16.gmra.mxu0 %vm356_vm0, %v1794_v16 }
 0x727   : > { %v1822_v43 = vpop.f32.mrf.mxu0 }
 0x728   : > { %v1823_v38 = vadd.f32 %v2214_v62, %v1822_v43 }
 0x72a   : > { %v1844_v39 = vsel %vm356_vm0, %v1823_v38, 0.0 }
 0x72b   : > { %1845 = vadd.xlane.f32.xlu1 %v1844_v39 }
 0x72f   : > { %v1824_v42 = vpop.f32.mrf.mxu0 }
 0x730   : > { %v1825_v35 = vadd.f32 %v2214_v62, %v1824_v42 }
 0x732   : > { %v1847_v15 = vsel %vm356_vm0, %v1825_v35, 0.0 }
 0x733   : > { %1848 = vadd.xlane.f32.xlu2 %v1847_v15 }
 0x761   : > { %v1827_v17 = vpop.f32.mrf.mxu0 }
 0x762   : > { %v1828_v2 = vadd.f32 %v2214_v62, %v1827_v17 }
 0x764   : > { %v1850_v49 = vsel %vm356_vm0, %v1828_v2, 0.0 }
 0x765   : > { %1851 = vadd.xlane.f32.xlu0 %v1850_v49 }
 0x769   : > { %v1829_v59 = vpop.f32.mrf.mxu0 }
 0x76a   : > { %v1830_v57 = vadd.f32 %v2214_v62, %v1829_v59 }
 0x76c   : > { %v1853_v9 = vsel %vm356_vm0, %v1830_v57, 0.0 }
 0x76d   : > { %1854 = vadd.xlane.f32.xlu0 %v1853_v9 }
 0x783   : > { %v1832_v36 = vpop.f32.mrf.mxu0 }
 0x784   : > { %v1833_v53 = vadd.f32 %v2214_v62, %v1832_v36 }
 0x786   : > { %v1856_v6 = vsel %vm356_vm0, %v1833_v53, 0.0 }
 0x787   : > { %1857 = vadd.xlane.f32.xlu0 %v1856_v6 }
 0x78b   : > { %v1834_v45 = vpop.f32.mrf.mxu0 }
 0x78c   : > { %v1835_v63 = vadd.f32 %v2214_v62, %v1834_v45 }
 0x78e   : > { %v1859_v25 = vsel %vm356_vm0, %v1835_v63, 0.0 }
 0x78f   : > { %1860 = vadd.xlane.f32.xlu0 %v1859_v25 }
 0x793   : > { %v1837_v24 = vpop.f32.mrf.mxu0 }
 0x794   : > { %v1838_v60 = vadd.f32 %v2214_v62, %v1837_v24 }
 0x796   : > { %v1862_v31 = vsel %vm356_vm0, %v1838_v60, 0.0 }
 0x797   : > { %1863 = vadd.xlane.f32.xlu0 %v1862_v31 }
 0x79b   : > { %v1839_v44 = vpop.f32.mrf.mxu0 }
 0x79c   : > { %v1840_v37 = vadd.f32 %v2214_v62, %v1839_v44 }
 0x79e   : > { %v1865_v14 = vsel %vm356_vm0, %v1840_v37, 0.0  ;;  %v1846_v20 = vpop.xlane.xlu1 %1845 }
 0x79f   : > { %1866 = vadd.xlane.f32.xlu1 %v1865_v14  ;;  %v1875_v47 = vmul.f32 %v3213_v19, %v1846_v20 }
 0x7a1   : > { %v3217_v34 = vsub.f32 %v1823_v38, %v1875_v47  ;;  %v2363_v47 = vld [vmem:[%s2465_s22] sm:$0xff] }
 0x7a3   : > { %v1891_v46 = vmul.f32 %v3217_v34, %v3217_v34 }
 0x7a5   : > { %v1899_v61 = vsel %vm356_vm0, %v1891_v46, 0.0 }
 0x7a6   : > { %v1849_v8 = vpop.xlane.xlu2 %1848  ;;  %1900 = vadd.xlane.f32.xlu2 %v1899_v61 }
 0x7a7   : > { %v1876_v26 = vmul.f32 %v3213_v19, %v1849_v8 }
 0x7a9   : > { %v3223_v40 = vsub.f32 %v1825_v35, %v1876_v26 }
 0x7ab   : > { %v1892_v33 = vmul.f32 %v3223_v40, %v3223_v40 }
 0x7ad   : > { %v1902_v27 = vsel %vm356_vm0, %v1892_v33, 0.0  ;;  %v2364_v33 = vld [vmem:[%s2465_s22 + $0x8] sm:$0xff] }
 0x7ae   : > { %1903 = vadd.xlane.f32.xlu0 %v1902_v27 }
 0x7d8   : > { %v1852_v48 = vpop.xlane.xlu0 %1851 }
 0x7d9   : > { %v1877_v50 = vmul.f32 %v3213_v19, %v1852_v48 }
 0x7db   : > { %v3229_v22 = vsub.f32 %v1828_v2, %v1877_v50 }
 0x7dd   : > { %v1893_v23 = vmul.f32 %v3229_v22, %v3229_v22 }
 0x7df   : > { %v1905_v13 = vsel %vm356_vm0, %v1893_v23, 0.0 }
 0x7e0   : > { %v1855_v12 = vpop.xlane.xlu0 %1854  ;;  %1906 = vadd.xlane.f32.xlu1 %v1905_v13 }
 0x7e1   : > { %v1878_v30 = vmul.f32 %v3213_v19, %v1855_v12 }
 0x7e3   : > { %v3235_v28 = vsub.f32 %v1830_v57, %v1878_v30 }
 0x7e5   : > { %v1894_v3 = vmul.f32 %v3235_v28, %v3235_v28 }
 0x7e7   : > { %v1908_v21 = vsel %vm356_vm0, %v1894_v3, 0.0 }
 0x7e8   : > { %1909 = vadd.xlane.f32.xlu2 %v1908_v21 }
 0x7fa   : > { %v1858_v29 = vpop.xlane.xlu0 %1857 }
 0x7fb   : > { %v1879_v1 = vmul.f32 %v3213_v19, %v1858_v29 }
 0x7fd   : > { %v3241_v52 = vsub.f32 %v1833_v53, %v1879_v1 }
 0x7ff   : > { %v1895_v0 = vmul.f32 %v3241_v52, %v3241_v52 }
 0x801   : > { %v1911_v55 = vsel %vm356_vm0, %v1895_v0, 0.0 }
 0x802   : > { %1912 = vadd.xlane.f32.xlu0 %v1911_v55  ;;  %v1861_v58 = vpop.xlane.xlu0 %1860 }
 0x803   : > { %v1880_v4 = vmul.f32 %v3213_v19, %v1861_v58 }
 0x805   : > { %v3247_v18 = vsub.f32 %v1835_v63, %v1880_v4 }
 0x807   : > { %v1896_v56 = vmul.f32 %v3247_v18, %v3247_v18 }
 0x809   : > { %v1914_v5 = vsel %vm356_vm0, %v1896_v56, 0.0 }
 0x80a   : > { %1915 = vadd.xlane.f32.xlu1 %v1914_v5  ;;  %v1864_v54 = vpop.xlane.xlu0 %1863 }
 0x80b   : > { %v1881_v16 = vmul.f32 %v3213_v19, %v1864_v54 }
 0x80d   : > { %v3253_v62 = vsub.f32 %v1838_v60, %v1881_v16 }
 0x80f   : > { %v1897_v43 = vmul.f32 %v3253_v62, %v3253_v62 }
 0x811   : > { %v1917_v38 = vsel %vm356_vm0, %v1897_v43, 0.0 }
 0x812   : > { %v1867_v39 = vpop.xlane.xlu1 %1866  ;;  %1918 = vadd.xlane.f32.xlu2 %v1917_v38 }
 0x813   : > { %v1882_v42 = vmul.f32 %v3213_v19, %v1867_v39 }
 0x815   : > { %v3259_v35 = vsub.f32 %v1840_v37, %v1882_v42  ;;  %v2365_v42 = vld [vmem:[%s2465_s22 + $0x10] sm:$0xff] }
 0x817   : > { %v1898_v15 = vmul.f32 %v3259_v35, %v3259_v35 }
 0x819   : > { %v1920_v17 = vsel %vm356_vm0, %v1898_v15, 0.0  ;;  %v1901_v2 = vpop.xlane.xlu2 %1900 }
 0x81a   : > { %1921 = vadd.xlane.f32.xlu0 %v1920_v17  ;;  %v1923_v49 = vmul.f32 %v1901_v2, %v3213_v19 }
 0x81c   : > { %v1931_v59 = vadd.f32 1e-05, %v1923_v49 }
 0x81e   : > { %2347 = vrsqrt.f32 %v1931_v59  ;;  %vm1945_vm15 = vweird.f32 %v1931_v59 }
 0x821   : > { %v1904_v57 = vpop.xlane.xlu0 %1903 }
 0x822   : > { %v1924_v9 = vmul.f32 %v1904_v57, %v3213_v19 }
 0x824   : > { %v2348_v36 = vpop.eup %2347  ;;  %v1932_v53 = vadd.f32 1e-05, %v1924_v9  ;;  %v2366_v9 = vld [vmem:[%s2465_s22 + $0x18] sm:$0xff] }
 0x825   : > { %v1940_v11 = vmul.f32 %v2348_v36, %v1931_v59  ;;  %vm1946_vm14 = vweird.f32 %v2348_v36 }
 0x826   : > { %2349 = vrsqrt.f32 %v1932_v53  ;;  %vm1947_vm2 = vmor %vm1945_vm15, %vm1946_vm14  ;;  %vm1955_vm4 = vweird.f32 %v1932_v53 }
 0x827   : > { %v1941_v6 = vmul.f32 %v2348_v36, %v1940_v11 }
 0x829   : > { %v1942_v41 = vmul.f32 0.5, %v1941_v6 }
 0x82b   : > { %v1943_v45 = vsub.f32 1.5, %v1942_v41 }
 0x82c   : > { %v2350_v63 = vpop.eup %2349 }
 0x82d   : > { %v1944_v7 = vmul.f32 %v2348_v36, %v1943_v45  ;;  %v1950_v25 = vmul.f32 %v2350_v63, %v1932_v53  ;;  %vm1956_vm3 = vweird.f32 %v2350_v63 }
 0x82e   : > { %vm1957_vm5 = vmor %vm1955_vm4, %vm1956_vm3 }
 0x82f   : > { %v1948_v24 = vsel %vm1947_vm2, %v2348_v36, %v1944_v7  ;;  %v1951_v60 = vmul.f32 %v2350_v63, %v1950_v25 }
 0x830   : > { %v2019_v31 = vmul.f32 %v1948_v24, %v3217_v34 }
 0x831   : > { %v1952_v32 = vmul.f32 0.5, %v1951_v60 }
 0x832   : > { %v2030_v44 = vmul.f32 %v3269_v10, %v2019_v31 }
 0x833   : > { %v1953_v37 = vsub.f32 1.5, %v1952_v32 }
 0x834   : > { %v2041_v14 = vadd.f32 %v3274_v51, %v2030_v44 }
 0x835   : > { %v1954_v20 = vmul.f32 %v2350_v63, %v1953_v37 }
 0x836   : > { %v2049_v34 = vadd.f32 %v2363_v47, %v2041_v14 }
 0x837   : > { %v1958_v46 = vsel %vm1957_vm5, %v2350_v63, %v1954_v20 }
 0x838   : > { %2057 = vst.msk [vmem:[%s3284_s13] sm:$0xff] %vm356_vm0, %v2049_v34  ;;  %v2020_v61 = vmul.f32 %v1958_v46, %v3223_v40 }
 0x83a   : > { %v2031_v8 = vmul.f32 %v3269_v10, %v2020_v61 }
 0x83c   : > { %v2042_v26 = vadd.f32 %v3274_v51, %v2031_v8 }
 0x83e   : > { %v2050_v27 = vadd.f32 %v2364_v33, %v2042_v26 }
 0x840   : > { %2058 = vst.msk [vmem:[%s3284_s13 + $0x8] sm:$0xff] %vm356_vm0, %v2050_v27 }
 0x853   : > { %v1907_v48 = vpop.xlane.xlu1 %1906 }
 0x854   : > { %v1925_v50 = vmul.f32 %v1907_v48, %v3213_v19 }
 0x856   : > { %v1933_v23 = vadd.f32 1e-05, %v1925_v50 }
 0x858   : > { %2351 = vrsqrt.f32 %v1933_v23  ;;  %vm1965_vm7 = vweird.f32 %v1933_v23 }
 0x85b   : > { %v1910_v13 = vpop.xlane.xlu2 %1909 }
 0x85c   : > { %v1926_v12 = vmul.f32 %v1910_v13, %v3213_v19  ;;  %v2367_v13 = vld [vmem:[%s2465_s22 + $0x20] sm:$0xff] }
 0x85e   : > { %v2352_v30 = vpop.eup %2351  ;;  %v1934_v3 = vadd.f32 1e-05, %v1926_v12 }
 0x85f   : > { %v1960_v21 = vmul.f32 %v2352_v30, %v1933_v23  ;;  %vm1966_vm6 = vweird.f32 %v2352_v30 }
 0x860   : > { %2353 = vrsqrt.f32 %v1934_v3  ;;  %vm1967_vm8 = vmor %vm1965_vm7, %vm1966_vm6  ;;  %vm1975_vm10 = vweird.f32 %v1934_v3 }
 0x861   : > { %v1961_v40 = vmul.f32 %v2352_v30, %v1960_v21 }
 0x863   : > { %v1962_v29 = vmul.f32 0.5, %v1961_v40 }
 0x865   : > { %v1963_v1 = vsub.f32 1.5, %v1962_v29 }
 0x866   : > { %v2354_v0 = vpop.eup %2353 }
 0x867   : > { %v1964_v55 = vmul.f32 %v2352_v30, %v1963_v1  ;;  %v1970_v58 = vmul.f32 %v2354_v0, %v1934_v3  ;;  %vm1976_vm9 = vweird.f32 %v2354_v0 }
 0x868   : > { %vm1977_vm11 = vmor %vm1975_vm10, %vm1976_vm9 }
 0x869   : > { %v1968_v4 = vsel %vm1967_vm8, %v2352_v30, %v1964_v55  ;;  %v1971_v56 = vmul.f32 %v2354_v0, %v1970_v58  ;;  %v2368_v58 = vld [vmem:[%s2465_s22 + $0x28] sm:$0xff] }
 0x86a   : > { %v2021_v5 = vmul.f32 %v1968_v4, %v3229_v22 }
 0x86b   : > { %v1972_v54 = vmul.f32 0.5, %v1971_v56 }
 0x86c   : > { %v2032_v16 = vmul.f32 %v3269_v10, %v2021_v5 }
 0x86d   : > { %v1973_v43 = vsub.f32 1.5, %v1972_v54 }
 0x86e   : > { %v2043_v38 = vadd.f32 %v3274_v51, %v2032_v16 }
 0x86f   : > { %v1974_v39 = vmul.f32 %v2354_v0, %v1973_v43 }
 0x870   : > { %v2051_v15 = vadd.f32 %v2365_v42, %v2043_v38  ;;  %v2369_v42 = vld [vmem:[%s2465_s22 + $0x30] sm:$0xff] }
 0x871   : > { %v1978_v17 = vsel %vm1977_vm11, %v2354_v0, %v1974_v39 }
 0x872   : > { %2059 = vst.msk [vmem:[%s3284_s13 + $0x10] sm:$0xff] %vm356_vm0, %v2051_v15  ;;  %v2022_v2 = vmul.f32 %v1978_v17, %v3235_v28 }
 0x874   : > { %v2033_v22 = vmul.f32 %v3269_v10, %v2022_v2 }
 0x875   : > { %v1913_v49 = vpop.xlane.xlu0 %1912 }
 0x876   : > { %v2044_v59 = vadd.f32 %v3274_v51, %v2033_v22  ;;  %v1927_v57 = vmul.f32 %v1913_v49, %v3213_v19  ;;  %v2370_v49 = vld [vmem:[%s2465_s22 + $0x38] sm:$0xff] }
 0x878   : > { %v2052_v36 = vadd.f32 %v2366_v9, %v2044_v59  ;;  %v1935_v53 = vadd.f32 1e-05, %v1927_v57 }
 0x87a   : > { %2060 = vst.msk [vmem:[%s3284_s13 + $0x18] sm:$0xff] %vm356_vm0, %v2052_v36  ;;  %2355 = vrsqrt.f32 %v1935_v53  ;;  %vm1985_vm13 = vweird.f32 %v1935_v53 }
 0x87d   : > { %v1916_v11 = vpop.xlane.xlu1 %1915 }
 0x87e   : > { %v1928_v6 = vmul.f32 %v1916_v11, %v3213_v19 }
 0x880   : > { %v2356_v41 = vpop.eup %2355  ;;  %v1936_v45 = vadd.f32 1e-05, %v1928_v6 }
 0x881   : > { %v1980_v63 = vmul.f32 %v2356_v41, %v1935_v53  ;;  %vm1986_vm12 = vweird.f32 %v2356_v41 }
 0x882   : > { %2357 = vrsqrt.f32 %v1936_v45  ;;  %vm1987_vm1 = vmor %vm1985_vm13, %vm1986_vm12  ;;  %vm1995_vm15 = vweird.f32 %v1936_v45 }
 0x883   : > { %v1981_v28 = vmul.f32 %v2356_v41, %v1980_v63 }
 0x885   : > { %v1982_v7 = vmul.f32 0.5, %v1981_v28  ;;  %v1919_v25 = vpop.xlane.xlu2 %1918 }
 0x886   : > { %v1929_v24 = vmul.f32 %v1919_v25, %v3213_v19 }
 0x887   : > { %v1983_v60 = vsub.f32 1.5, %v1982_v7 }
 0x888   : > { %v2358_v31 = vpop.eup %2357  ;;  %v1937_v32 = vadd.f32 1e-05, %v1929_v24 }
 0x889   : > { %v1984_v44 = vmul.f32 %v2356_v41, %v1983_v60  ;;  %v1990_v37 = vmul.f32 %v2358_v31, %v1936_v45  ;;  %vm1996_vm14 = vweird.f32 %v2358_v31 }
 0x88a   : > { %2359 = vrsqrt.f32 %v1937_v32  ;;  %vm1997_vm2 = vmor %vm1995_vm15, %vm1996_vm14  ;;  %vm2005_vm4 = vweird.f32 %v1937_v32 }
 0x88b   : > { %v1988_v14 = vsel %vm1987_vm1, %v2356_v41, %v1984_v44  ;;  %v1991_v20 = vmul.f32 %v2358_v31, %v1990_v37 }
 0x88c   : > { %v2023_v47 = vmul.f32 %v1988_v14, %v3241_v52 }
 0x88d   : > { %v1992_v34 = vmul.f32 0.5, %v1991_v20  ;;  %v1922_v46 = vpop.xlane.xlu0 %1921 }
 0x88e   : > { %v2034_v61 = vmul.f32 %v3269_v10, %v2023_v47  ;;  %v1930_v8 = vmul.f32 %v1922_v46, %v3213_v19 }
 0x88f   : > { %v1993_v26 = vsub.f32 1.5, %v1992_v34 }
 0x890   : > { %v2360_v33 = vpop.eup %2359  ;;  %v2045_v27 = vadd.f32 %v3274_v51, %v2034_v61  ;;  %v1938_v48 = vadd.f32 1e-05, %v1930_v8 }
 0x891   : > { %v1994_v50 = vmul.f32 %v2358_v31, %v1993_v26  ;;  %v2000_v23 = vmul.f32 %v2360_v33, %v1937_v32  ;;  %vm2006_vm3 = vweird.f32 %v2360_v33 }
 0x892   : > { %v2053_v12 = vadd.f32 %v2367_v13, %v2045_v27  ;;  %2361 = vrsqrt.f32 %v1938_v48  ;;  %vm2007_vm5 = vmor %vm2005_vm4, %vm2006_vm3  ;;  %vm2015_vm7 = vweird.f32 %v1938_v48 }
 0x893   : > { %v1998_v52 = vsel %vm1997_vm2, %v2358_v31, %v1994_v50  ;;  %v2001_v30 = vmul.f32 %v2360_v33, %v2000_v23 }
 0x894   : > { %2061 = vst.msk [vmem:[%s3284_s13 + $0x20] sm:$0xff] %vm356_vm0, %v2053_v12  ;;  %v2024_v19 = vmul.f32 %v1998_v52, %v3247_v18 }
 0x895   : > { %v2002_v3 = vmul.f32 0.5, %v2001_v30 }
 0x896   : > { %v2035_v21 = vmul.f32 %v3269_v10, %v2024_v19 }
 0x897   : > { %v2003_v40 = vsub.f32 1.5, %v2002_v3 }
 0x898   : > { %v2362_v29 = vpop.eup %2361  ;;  %v2046_v1 = vadd.f32 %v3274_v51, %v2035_v21 }
 0x899   : > { %v2004_v0 = vmul.f32 %v2360_v33, %v2003_v40  ;;  %v2010_v55 = vmul.f32 %v2362_v29, %v1938_v48  ;;  %vm2016_vm6 = vweird.f32 %v2362_v29 }
 0x89a   : > { %v2054_v4 = vadd.f32 %v2368_v58, %v2046_v1  ;;  %vm2017_vm8 = vmor %vm2015_vm7, %vm2016_vm6 }
 0x89b   : > { %v2008_v56 = vsel %vm2007_vm5, %v2360_v33, %v2004_v0  ;;  %v2011_v5 = vmul.f32 %v2362_v29, %v2010_v55 }
 0x89c   : > { %2062 = vst.msk [vmem:[%s3284_s13 + $0x28] sm:$0xff] %vm356_vm0, %v2054_v4  ;;  %v2025_v18 = vmul.f32 %v2008_v56, %v3253_v62 }
 0x89d   : > { %v2012_v54 = vmul.f32 0.5, %v2011_v5 }
 0x89e   : > { %v2036_v16 = vmul.f32 %v3269_v10, %v2025_v18 }
 0x89f   : > { %v2013_v43 = vsub.f32 1.5, %v2012_v54 }
 0x8a0   : > { %v2047_v38 = vadd.f32 %v3274_v51, %v2036_v16 }
 0x8a1   : > { %v2014_v39 = vmul.f32 %v2362_v29, %v2013_v43 }
 0x8a2   : > { %v2055_v15 = vadd.f32 %v2369_v42, %v2047_v38 }
 0x8a3   : > { %v2018_v17 = vsel %vm2017_vm8, %v2362_v29, %v2014_v39 }
 0x8a4   : > { %2063 = vst.msk [vmem:[%s3284_s13 + $0x30] sm:$0xff] %vm356_vm0, %v2055_v15  ;;  %v2026_v2 = vmul.f32 %v2018_v17, %v3259_v35 }
 0x8a6   : > { %v2037_v62 = vmul.f32 %v3269_v10, %v2026_v2 }
 0x8a8   : > { %v2048_v22 = vadd.f32 %v3274_v51, %v2037_v62 }
 0x8aa   : > { %v2056_v59 = vadd.f32 %v2370_v49, %v2048_v22 }
 0x8ac   : > { %2064 = vst.msk [vmem:[%s3284_s13 + $0x38] sm:$0xff] %vm356_vm0, %v2056_v59 }
 0x8ad PF: > { %s19_s30 = sadd.s32 1, %s2377_s30  }
 0x8ae   : > { %p16_p4 = scmp.ge.s32.totalorder %s19_s30, 4  }
 0x8b0   :  { %18 = sbr.rel (!%p16_p4) target bundleno = 1 (0x1), region = 88 }

// kernel: forward.16
= control target key start
LH: loop header
LB: loop body
LE: loop exit
PB: predicated region body
PF: predicated region fallthrough
CT: control target
= control target key end

     0   :  { %s463_s18 = smov 0   ;;  %s550_s0 = inlined_call_operand.vmem [shape: f32[32,128], index: 0, kind: input, shape index: {}]   ;;  %s551_s1 = inlined_call_operand.vmem [shape: f32[128,64], index: 1, kind: input, shape index: {}]   ;;  %s552_s2 = inlined_call_operand.vmem [shape: f32[1,64], index: 2, kind: input, shape index: {}]   ;;  %s553_s3 = inlined_call_operand.vmem [shape: f32[1,64], index: 3, kind: input, shape index: {}]   ;;  %s554_s4 = inlined_call_operand.vmem [shape: f32[1,64], index: 4, kind: input, shape index: {}]   ;;  %s555_s5 = inlined_call_operand.vmem [shape: f32[32,64], index: 5, kind: output, shape index: {}]  }
   0x1 LB: > { %s395_s19 = sadd.s32 4294967295, %s430_s18   ;;  %p399_p0 = scmp.ge.s32.totalorder %s430_s18, 1  ;;  %s430_s18 = sphi %s463_s18, %s15_s18  }
   0x2   : > { %p188_p1 = scmp.lt.s32.totalorder %s430_s18, 3 }
   0x4   : > { %p189_p2 = pnand %p399_p0, %p188_p1 }
   0x5   : > { %s400_s11 = sshll.u32 (!%p189_p2), %s395_s19, 1 }
   0x6   : > { %192 = sbr.rel (%p189_p2) target bundleno = 450 (0x1c2), region = 40  ;;  %p217_p3 = scmp.lt.s32.totalorder (!%p189_p2), %s400_s11, 3 }
   0xb   : > { %v244_v0 = vld [vmem:[%s551_s1 + $0x70] sm:$0xff]  ;;  %v245_v1 = vld [vmem:[%s551_s1 + $0x78] sm:$0xff]  ;;  %v242_v2 = vld [vmem:[%s551_s1 + $0x60] sm:$0xff]  ;;  %s557_s11 = smov (!%p217_p3, %s400_s11), 3  ;;  %vm275_vm0 = vcmask 523264   ;;  %v432_v34 = vmov 64.0  }
   0xc   : > { %v254_v3 = vpack.c.bf16 %v245_v1, %v244_v0  ;;  %v243_v4 = vld [vmem:[%s551_s1 + $0x68] sm:$0xff]  ;;  %v240_v6 = vld [vmem:[%s551_s1 + $0x50] sm:$0xff]  ;;  %v241_v7 = vld [vmem:[%s551_s1 + $0x58] sm:$0xff]  ;;  %s401_s25 = sshll.u32 %s557_s11, 3  ;;  %418 = vrcp.f32 %v432_v34 }
   0xd   : > { %v253_v5 = vpack.c.bf16 %v243_v4, %v242_v2  ;;  %v252_v8 = vpack.c.bf16 %v241_v7, %v240_v6  ;;  %v238_v9 = vld [vmem:[%s551_s1 + $0x40] sm:$0xff]  ;;  %v239_v10 = vld [vmem:[%s551_s1 + $0x48] sm:$0xff]  ;;  %v236_v12 = vld [vmem:[%s551_s1 + $0x30] sm:$0xff]  ;;  %s220_s7 = scalar_lea.vmem %s550_s0, %s401_s25  ;;  %s226_s17 = scalar_lea.vmem %s555_s5, %s401_s25 }
   0xe   : > { %259 = vmatpush.bf16.msra.mxu0 %v254_v3  ;;  %v251_v11 = vpack.c.bf16 %v239_v10, %v238_v9  ;;  %v237_v13 = vld [vmem:[%s551_s1 + $0x38] sm:$0xff]  ;;  %v234_v15 = vld [vmem:[%s551_s1 + $0x20] sm:$0xff]  ;;  %v235_v16 = vld [vmem:[%s551_s1 + $0x28] sm:$0xff] }
   0xf   : > { %v250_v14 = vpack.c.bf16 %v237_v13, %v236_v12  ;;  %v249_v17 = vpack.c.bf16 %v235_v16, %v234_v15  ;;  %v232_v18 = vld [vmem:[%s551_s1 + $0x10] sm:$0xff]  ;;  %v233_v19 = vld [vmem:[%s551_s1 + $0x18] sm:$0xff]  ;;  %v230_v21 = vld [vmem:[%s551_s1] sm:$0xff] }
  0x10   : > { %v248_v20 = vpack.c.bf16 %v233_v19, %v232_v18  ;;  %v231_v22 = vld [vmem:[%s551_s1 + $0x8] sm:$0xff]  ;;  %v228_v24 = vld [vmem:[%s220_s7] sm:$0xff] }
  0x11   : > { %v247_v23 = vpack.c.bf16 %v231_v22, %v230_v21  ;;  %v229_v25 = vld [vmem:[%s220_s7 + $0x8] sm:$0xff]  ;;  %v415_v27 = vld [vmem:[%s552_s2] ss:$0 sm:$0xff] }
  0x12   : > { %260 = vmatpush.bf16.msra.mxu0 %v253_v5  ;;  %v246_v26 = vpack.c.bf16 %v229_v25, %v228_v24  ;;  %v419_v35 = vpop.eup %418  ;;  %v416_v1 = vld [vmem:[%s553_s3] ss:$0 sm:$0xff] }
  0x13   : > { %v283_v36 = vmul.f32 64.0, %v419_v35  ;;  %vm287_vm1 = vweird.f32 %v419_v35  ;;  %v417_v4 = vld [vmem:[%s554_s4] ss:$0 sm:$0xff] }
  0x15   : > { %v284_v37 = vsub.f32 1.0, %v283_v36 }
  0x16   : > { %261 = vmatpush.bf16.msra.mxu0 %v252_v8 }
  0x17   : > { %v285_v38 = vmul.f32 %v419_v35, %v284_v37 }
  0x19   : > { %v286_v39 = vadd.f32 %v419_v35, %v285_v38 }
  0x1a   : > { %262 = vmatpush.bf16.msra.mxu0 %v251_v11 }
  0x1b   : > { %v288_v40 = vsel %vm287_vm1, %v419_v35, %v286_v39 }
  0x1e   : > { %263 = vmatpush.bf16.msra.mxu0 %v250_v14 }
  0x22   : > { %264 = vmatpush.bf16.msra.mxu0 %v249_v17 }
  0x26   : > { %265 = vmatpush.bf16.msra.mxu0 %v248_v20 }
  0x2a   : > { %266 = vmatpush.bf16.msra.mxu0 %v247_v23 }
  0x2d   : > { %267 = vmatmul.bf16.vlgmr.msra.gmra.mxu0 %v246_v26 }
  0xaa   : > { %v268_v28 = vpop.f32.mrf.mxu0 }
  0xab   : > { %v269_v29 = vadd.f32 %v415_v27, %v268_v28 }
  0xad   : > { %v276_v30 = vsel %vm275_vm0, %v269_v29, 0.0 }
  0xae   : > { %277 = vadd.xlane.f32.xlu0 %v276_v30 }
  0xb2   : > { %v270_v31 = vpop.f32.mrf.mxu0 }
  0xb3   : > { %v271_v32 = vadd.f32 %v415_v27, %v270_v31 }
  0xb5   : > { %v279_v33 = vsel %vm275_vm0, %v271_v32, 0.0 }
  0xb6   : > { %280 = vadd.xlane.f32.xlu0 %v279_v33 }
 0x121   : > { %v278_v41 = vpop.xlane.xlu0 %277 }
 0x122   : > { %v289_v42 = vmul.f32 %v288_v40, %v278_v41 }
 0x124   : > { %v291_v43 = vsub.f32 %v269_v29, %v289_v42 }
 0x126   : > { %v293_v44 = vmul.f32 %v291_v43, %v291_v43 }
 0x128   : > { %v295_v45 = vsel %vm275_vm0, %v293_v44, 0.0 }
 0x129   : > { %296 = vadd.xlane.f32.xlu1 %v295_v45  ;;  %v281_v46 = vpop.xlane.xlu0 %280 }
 0x12a   : > { %v290_v47 = vmul.f32 %v288_v40, %v281_v46 }
 0x12c   : > { %v292_v48 = vsub.f32 %v271_v32, %v290_v47 }
 0x12e   : > { %v294_v49 = vmul.f32 %v292_v48, %v292_v48 }
 0x130   : > { %v298_v50 = vsel %vm275_vm0, %v294_v49, 0.0 }
 0x131   : > { %299 = vadd.xlane.f32.xlu1 %v298_v50 }
 0x19c   : > { %v297_v51 = vpop.xlane.xlu1 %296 }
 0x19d   : > { %v301_v52 = vmul.f32 %v297_v51, %v288_v40 }
 0x19f   : > { %v303_v53 = vadd.f32 1e-05, %v301_v52 }
 0x1a1   : > { %420 = vrsqrt.f32 %v303_v53  ;;  %vm311_vm3 = vweird.f32 %v303_v53 }
 0x1a4   : > { %v300_v54 = vpop.xlane.xlu1 %299 }
 0x1a5   : > { %v302_v55 = vmul.f32 %v300_v54, %v288_v40 }
 0x1a7   : > { %v421_v56 = vpop.eup %420  ;;  %v304_v57 = vadd.f32 1e-05, %v302_v55 }
 0x1a8   : > { %v306_v58 = vmul.f32 %v421_v56, %v303_v53  ;;  %vm312_vm2 = vweird.f32 %v421_v56 }
 0x1a9   : > { %422 = vrsqrt.f32 %v304_v57  ;;  %vm313_vm4 = vmor %vm311_vm3, %vm312_vm2  ;;  %vm321_vm6 = vweird.f32 %v304_v57 }
 0x1aa   : > { %v307_v59 = vmul.f32 %v421_v56, %v306_v58 }
 0x1ac   : > { %v308_v60 = vmul.f32 0.5, %v307_v59 }
 0x1ae   : > { %v309_v61 = vsub.f32 1.5, %v308_v60 }
 0x1af   : > { %v423_v62 = vpop.eup %422 }
 0x1b0   : > { %v310_v63 = vmul.f32 %v421_v56, %v309_v61  ;;  %v316_v0 = vmul.f32 %v423_v62, %v304_v57  ;;  %vm322_vm5 = vweird.f32 %v423_v62 }
 0x1b1   : > { %vm323_vm7 = vmor %vm321_vm6, %vm322_vm5 }
 0x1b2   : > { %v314_v2 = vsel %vm313_vm4, %v421_v56, %v310_v63  ;;  %v317_v3 = vmul.f32 %v423_v62, %v316_v0 }
 0x1b3   : > { %v325_v5 = vmul.f32 %v314_v2, %v291_v43 }
 0x1b4   : > { %v318_v6 = vmul.f32 0.5, %v317_v3 }
 0x1b5   : > { %v330_v7 = vmul.f32 %v416_v1, %v325_v5 }
 0x1b6   : > { %v319_v8 = vsub.f32 1.5, %v318_v6 }
 0x1b7   : > { %v335_v9 = vadd.f32 %v417_v4, %v330_v7 }
 0x1b8   : > { %v320_v10 = vmul.f32 %v423_v62, %v319_v8 }
 0x1b9   : > { %337 = vst.msk [vmem:[%s226_s17] sm:$0xff] %vm275_vm0, %v335_v9 }
 0x1ba   : > { %v324_v11 = vsel %vm323_vm7, %v423_v62, %v320_v10 }
 0x1bb   : > { %v326_v12 = vmul.f32 %v324_v11, %v292_v48 }
 0x1bd   : > { %v331_v13 = vmul.f32 %v416_v1, %v326_v12 }
 0x1bf   : > { %v336_v14 = vadd.f32 %v417_v4, %v331_v13 }
 0x1c1   : > { %338 = vst.msk [vmem:[%s226_s17 + $0x8] sm:$0xff] %vm275_vm0, %v336_v14 }
 0x1c2 PF: > { %s15_s18 = sadd.s32 1, %s430_s18  }
 0x1c3   : > { %p12_p4 = scmp.ge.s32.totalorder %s15_s18, 4  }
 0x1c5   :  { %14 = sbr.rel (!%p12_p4) target bundleno = 1 (0x1), region = 70 }

// kernel: forward.18
= control target key start
LH: loop header
LB: loop body
LE: loop exit
PB: predicated region body
PF: predicated region fallthrough
CT: control target
= control target key end

     0   :  { %s677_s24 = smov 0   ;;  %s873_s0 = inlined_call_operand.vmem [shape: f32[32,64], index: 0, kind: input, shape index: {}]   ;;  %s874_s1 = inlined_call_operand.vmem [shape: f32[64,256], index: 1, kind: input, shape index: {}]   ;;  %s875_s2 = inlined_call_operand.vmem [shape: f32[1,256], index: 2, kind: input, shape index: {}]   ;;  %s876_s3 = inlined_call_operand.vmem [shape: f32[256,64], index: 3, kind: input, shape index: {}]   ;;  %s877_s4 = inlined_call_operand.vmem [shape: f32[1,64], index: 4, kind: input, shape index: {}]   ;;  %s878_s5 = inlined_call_operand.vmem [shape: f32[1,64], index: 5, kind: input, shape index: {}]   ;;  %s879_s6 = inlined_call_operand.vmem [shape: f32[1,64], index: 6, kind: input, shape index: {}]   ;;  %s880_s7 = inlined_call_operand.vmem [shape: f32[32,64], index: 7, kind: output, shape index: {}]  }
   0x1 LB: > { %s589_s25 = sadd.s32 4294967295, %s634_s24   ;;  %p593_p0 = scmp.ge.s32.totalorder %s634_s24, 1  ;;  %s634_s24 = sphi %s677_s24, %s17_s24  }
   0x2   : > { %p238_p1 = scmp.lt.s32.totalorder %s634_s24, 3 }
   0x4   : > { %p239_p2 = pnand %p593_p0, %p238_p1 }
   0x5   : > { %s594_s9 = sshll.u32 (!%p239_p2), %s589_s25, 1 }
   0x6   : > { %242 = sbr.rel (%p239_p2) target bundleno = 605 (0x25d), region = 48  ;;  %p271_p3 = scmp.lt.s32.totalorder (!%p239_p2), %s594_s9, 3 }
   0xb   : > { %v297_v0 = vld [vmem:[%s874_s1 + $0x60] sm:$0xff]  ;;  %v299_v1 = vld [vmem:[%s874_s1 + $0x70] sm:$0xff]  ;;  %v298_v2 = vld [vmem:[%s874_s1 + $0x68] sm:$0xff]  ;;  %s882_s9 = smov (!%p271_p3, %s594_s9), 3  ;;  %vm316_vm0 = vcmask 523264  }
   0xc   : > { %v308_v3 = vpack.c.bf16 %v299_v1, %v297_v0  ;;  %v300_v4 = vld [vmem:[%s874_s1 + $0x78] sm:$0xff]  ;;  %v293_v5 = vld [vmem:[%s874_s1 + $0x40] sm:$0xff]  ;;  %v295_v6 = vld [vmem:[%s874_s1 + $0x50] sm:$0xff]  ;;  %s595_s29 = sshll.u32 %s882_s9, 3 }
   0xd   : > { %v309_v7 = vpack.c.bf16 %v300_v4, %v298_v2  ;;  %v294_v8 = vld [vmem:[%s874_s1 + $0x48] sm:$0xff]  ;;  %v296_v9 = vld [vmem:[%s874_s1 + $0x58] sm:$0xff]  ;;  %v306_v10 = vpack.c.bf16 %v295_v6, %v293_v5  ;;  %v289_v12 = vld [vmem:[%s874_s1 + $0x20] sm:$0xff]  ;;  %s274_s14 = scalar_lea.vmem %s873_s0, %s595_s29  ;;  %s280_s13 = scalar_lea.vmem %s880_s7, %s595_s29 }
   0xe   : > { %324 = vmatpush.bf16.msra.mxu0 %v308_v3  ;;  %v307_v11 = vpack.c.bf16 %v296_v9, %v294_v8  ;;  %v291_v13 = vld [vmem:[%s874_s1 + $0x30] sm:$0xff]  ;;  %v290_v14 = vld [vmem:[%s874_s1 + $0x28] sm:$0xff]  ;;  %v292_v15 = vld [vmem:[%s874_s1 + $0x38] sm:$0xff] }
   0xf   : > { %338 = vmatpush.bf16.msra.mxu1 %v309_v7  ;;  %v304_v16 = vpack.c.bf16 %v291_v13, %v289_v12  ;;  %v305_v17 = vpack.c.bf16 %v292_v15, %v290_v14  ;;  %v285_v18 = vld [vmem:[%s874_s1] sm:$0xff]  ;;  %v287_v19 = vld [vmem:[%s874_s1 + $0x10] sm:$0xff]  ;;  %v286_v20 = vld [vmem:[%s874_s1 + $0x8] sm:$0xff] }
  0x10   : > { %v288_v21 = vld [vmem:[%s874_s1 + $0x18] sm:$0xff]  ;;  %v302_v22 = vpack.c.bf16 %v287_v19, %v285_v18  ;;  %v741_v23 = vld [vmem:[%s274_s14] sm:$0xff]  ;;  %v743_v24 = vld [vmem:[%s274_s14 + $0x8] sm:$0xff] }
  0x11   : > { %v303_v25 = vpack.c.bf16 %v288_v21, %v286_v20  ;;  %v301_v26 = vpack.c.bf16 %v743_v24, %v741_v23  ;;  %v398_v27 = vld [vmem:[%s876_s3 + $0x70] sm:$0xff]  ;;  %v399_v28 = vld [vmem:[%s876_s3 + $0x78] sm:$0xff]  ;;  %v396_v33 = vld [vmem:[%s876_s3 + $0x60] sm:$0xff] }
  0x12   : > { %325 = vmatpush.bf16.msra.mxu0 %v306_v10  ;;  %v414_v29 = vld [vmem:[%s876_s3 + $0xf0] sm:$0xff]  ;;  %v425_v30 = vpack.c.bf16 %v399_v28, %v398_v27  ;;  %v415_v31 = vld [vmem:[%s876_s3 + $0xf8] sm:$0xff]  ;;  %v397_v34 = vld [vmem:[%s876_s3 + $0x68] sm:$0xff] }
  0x13   : > { %339 = vmatpush.bf16.msra.mxu1 %v307_v11  ;;  %v433_v32 = vpack.c.bf16 %v415_v31, %v414_v29  ;;  %v412_v35 = vld [vmem:[%s876_s3 + $0xe0] sm:$0xff]  ;;  %v424_v36 = vpack.c.bf16 %v397_v34, %v396_v33  ;;  %v413_v37 = vld [vmem:[%s876_s3 + $0xe8] sm:$0xff]  ;;  %v394_v39 = vld [vmem:[%s876_s3 + $0x50] sm:$0xff] }
  0x14   : > { %438 = vmatpush.bf16.msra.mxu2 %v425_v30  ;;  %v432_v38 = vpack.c.bf16 %v413_v37, %v412_v35  ;;  %v395_v40 = vld [vmem:[%s876_s3 + $0x58] sm:$0xff]  ;;  %v410_v41 = vld [vmem:[%s876_s3 + $0xd0] sm:$0xff]  ;;  %v392_v45 = vld [vmem:[%s876_s3 + $0x40] sm:$0xff] }
  0x15   : > { %452 = vmatpush.bf16.msra.mxu3 %v433_v32  ;;  %v423_v42 = vpack.c.bf16 %v395_v40, %v394_v39  ;;  %v411_v43 = vld [vmem:[%s876_s3 + $0xd8] sm:$0xff]  ;;  %v393_v46 = vld [vmem:[%s876_s3 + $0x48] sm:$0xff]  ;;  %v408_v47 = vld [vmem:[%s876_s3 + $0xc0] sm:$0xff] }
  0x16   : > { %326 = vmatpush.bf16.msra.mxu0 %v304_v16  ;;  %v431_v44 = vpack.c.bf16 %v411_v43, %v410_v41  ;;  %v422_v48 = vpack.c.bf16 %v393_v46, %v392_v45  ;;  %v409_v49 = vld [vmem:[%s876_s3 + $0xc8] sm:$0xff]  ;;  %v390_v51 = vld [vmem:[%s876_s3 + $0x30] sm:$0xff]  ;;  %v391_v52 = vld [vmem:[%s876_s3 + $0x38] sm:$0xff] }
  0x17   : > { %340 = vmatpush.bf16.msra.mxu1 %v305_v17  ;;  %v430_v50 = vpack.c.bf16 %v409_v49, %v408_v47  ;;  %v406_v53 = vld [vmem:[%s876_s3 + $0xb0] sm:$0xff]  ;;  %v421_v54 = vpack.c.bf16 %v391_v52, %v390_v51  ;;  %v407_v55 = vld [vmem:[%s876_s3 + $0xb8] sm:$0xff]  ;;  %v388_v56 = vld [vmem:[%s876_s3 + $0x20] sm:$0xff] }
  0x18   : > { %439 = vmatpush.bf16.msra.mxu2 %v424_v36  ;;  %v389_v57 = vld [vmem:[%s876_s3 + $0x28] sm:$0xff]  ;;  %v429_v58 = vpack.c.bf16 %v407_v55, %v406_v53  ;;  %v404_v59 = vld [vmem:[%s876_s3 + $0xa0] sm:$0xff]  ;;  %v386_v63 = vld [vmem:[%s876_s3 + $0x10] sm:$0xff] }
  0x19   : > { %453 = vmatpush.bf16.msra.mxu3 %v432_v38  ;;  %v405_v60 = vld [vmem:[%s876_s3 + $0xa8] sm:$0xff]  ;;  %v420_v61 = vpack.c.bf16 %v389_v57, %v388_v56  ;;  %v387_v0 = vld [vmem:[%s876_s3 + $0x18] sm:$0xff]  ;;  %v402_v1 = vld [vmem:[%s876_s3 + $0x90] sm:$0xff] }
  0x1a   : > { %327 = vmatpush.bf16.msra.mxu0 %v302_v22  ;;  %v428_v62 = vpack.c.bf16 %v405_v60, %v404_v59  ;;  %v403_v2 = vld [vmem:[%s876_s3 + $0x98] sm:$0xff]  ;;  %v310_v3 = vld [vmem:[%s875_s2] sm:$0x3]  ;;  %v419_v4 = vpack.c.bf16 %v387_v0, %v386_v63  ;;  %v385_v7 = vld [vmem:[%s876_s3 + $0x8] sm:$0xff] }
  0x1b   : > { %341 = vmatpush.bf16.msra.mxu1 %v303_v25  ;;  %v427_v5 = vpack.c.bf16 %v403_v2, %v402_v1  ;;  %v384_v6 = vld [vmem:[%s876_s3] sm:$0xff]  ;;  %v401_v9 = vld [vmem:[%s876_s3 + $0x88] sm:$0xff]  ;;  %v312_v10 = vperm.slane %v310_v3, 0  ;;  %v313_v11 = vperm.slane %v310_v3, 1 }
  0x1c   : > { %440 = vmatpush.bf16.msra.mxu2 %v423_v42  ;;  %v400_v8 = vld [vmem:[%s876_s3 + $0x80] sm:$0xff]  ;;  %v418_v12 = vpack.c.bf16 %v385_v7, %v384_v6 }
  0x1d   : > { %598 = vmatmul.msk.bf16.vlgmr.msra.gmra.mxu0 %vm316_vm0, %v301_v26  ;;  %454 = vmatpush.bf16.msra.mxu3 %v431_v44  ;;  %v426_v13 = vpack.c.bf16 %v401_v9, %v400_v8  ;;  %v636_v9 = vmov 64.0  }
  0x1e   : > { %599 = vmatmul.msk.bf16.vlgmr.msra.gmra.mxu1 %vm316_vm0, %v301_v26 }
  0x20   : > { %441 = vmatpush.bf16.msra.mxu2 %v422_v48 }
  0x21   : > { %455 = vmatpush.bf16.msra.mxu3 %v430_v50 }
  0x24   : > { %442 = vmatpush.bf16.msra.mxu2 %v421_v54 }
  0x25   : > { %456 = vmatpush.bf16.msra.mxu3 %v429_v58 }
  0x28   : > { %443 = vmatpush.bf16.msra.mxu2 %v420_v61 }
  0x29   : > { %457 = vmatpush.bf16.msra.mxu3 %v428_v62  ;;  %v611_v62 = vld [vmem:[%s877_s4] ss:$0 sm:$0xff] }
  0x2c   : > { %444 = vmatpush.bf16.msra.mxu2 %v419_v4 }
  0x2d   : > { %458 = vmatpush.bf16.msra.mxu3 %v427_v5 }
  0x30   : > { %445 = vmatpush.bf16.msra.mxu2 %v418_v12 }
  0x31   : > { %459 = vmatpush.bf16.msra.mxu3 %v426_v13 }
  0x9a   : > { %v329_v14 = vpop.f32.mrf.mxu0 }
  0x9b   : > { %v330_v15 = vadd.f32 %v329_v14, %v312_v10  ;;  %v343_v16 = vpop.f32.mrf.mxu1 }
  0x9c   : > { %v344_v17 = vadd.f32 %v343_v16, %v313_v11 }
  0x9d   : > { %v348_v18 = vmul.f32 %v330_v15, %v330_v15 }
  0x9e   : > { %v349_v19 = vmul.f32 %v344_v17, %v344_v17 }
  0x9f   : > { %v352_v20 = vmul.f32 %v348_v18, %v330_v15 }
  0xa0   : > { %v353_v21 = vmul.f32 %v349_v19, %v344_v17 }
  0xa1   : > { %v356_v22 = vmul.f32 0.044715, %v352_v20 }
  0xa2   : > { %v357_v25 = vmul.f32 0.044715, %v353_v21  ;;  %v331_v26 = vpop.f32.mrf.mxu0 }
  0xa3   : > { %v360_v27 = vadd.f32 %v356_v22, %v330_v15  ;;  %v332_v28 = vadd.f32 %v331_v26, %v312_v10  ;;  %v345_v29 = vpop.f32.mrf.mxu1 }
  0xa4   : > { %v361_v30 = vadd.f32 %v357_v25, %v344_v17  ;;  %v346_v31 = vadd.f32 %v345_v29, %v313_v11 }
  0xa5   : > { %v350_v32 = vmul.f32 %v332_v28, %v332_v28  ;;  %v364_v33 = vmul.f32 0.7978846, %v360_v27 }
  0xa6   : > { %v351_v34 = vmul.f32 %v346_v31, %v346_v31  ;;  %v365_v35 = vmul.f32 0.7978846, %v361_v30 }
  0xa7   : > { %v354_v36 = vmul.f32 %v350_v32, %v332_v28  ;;  %614 = vtanh.f32 %v364_v33 }
  0xa8   : > { %v355_v37 = vmul.f32 %v351_v34, %v346_v31  ;;  %616 = vtanh.f32 %v365_v35 }
  0xa9   : > { %v358_v38 = vmul.f32 0.044715, %v354_v36 }
  0xaa   : > { %v359_v39 = vmul.f32 0.044715, %v355_v37 }
  0xab   : > { %v362_v40 = vadd.f32 %v358_v38, %v332_v28 }
  0xac   : > { %v363_v41 = vadd.f32 %v359_v39, %v346_v31 }
  0xad   : > { %v366_v42 = vmul.f32 0.7978846, %v362_v40  ;;  %v615_v44 = vpop.eup %614 }
  0xae   : > { %v367_v43 = vmul.f32 0.7978846, %v363_v41  ;;  %v617_v45 = vpop.eup %616  ;;  %v372_v46 = vadd.f32 1.0, %v615_v44 }
  0xaf   : > { %618 = vtanh.f32 %v366_v42  ;;  %v373_v47 = vadd.f32 1.0, %v617_v45  ;;  %v612_v42 = vld [vmem:[%s878_s5] ss:$0 sm:$0xff] }
  0xb0   : > { %620 = vtanh.f32 %v367_v43  ;;  %v376_v51 = vmul.f32 0.5, %v372_v46  ;;  %v613_v45 = vld [vmem:[%s879_s6] ss:$0 sm:$0xff] }
  0xb1   : > { %v377_v53 = vmul.f32 0.5, %v373_v47  ;;  %622 = vrcp.f32 %v636_v9 }
  0xb2   : > { %v380_v56 = vmul.f32 %v376_v51, %v330_v15 }
  0xb3   : > { %v381_v58 = vmul.f32 %v377_v53, %v344_v17 }
  0xb5   : > { %v619_v48 = vpop.eup %618 }
  0xb6   : > { %v621_v49 = vpop.eup %620  ;;  %v374_v50 = vadd.f32 1.0, %v619_v48 }
  0xb7   : > { %v375_v52 = vadd.f32 1.0, %v621_v49  ;;  %v623_v10 = vpop.eup %622 }
  0xb8   : > { %v378_v54 = vmul.f32 0.5, %v374_v50  ;;  %v475_v11 = vmul.f32 64.0, %v623_v10  ;;  %vm479_vm1 = vweird.f32 %v623_v10 }
  0xb9   : > { %v379_v55 = vmul.f32 0.5, %v375_v52 }
  0xba   : > { %v382_v57 = vmul.f32 %v378_v54, %v332_v28  ;;  %v476_v12 = vsub.f32 1.0, %v475_v11 }
  0xbb   : > { %v383_v59 = vmul.f32 %v379_v55, %v346_v31 }
  0xbc   : > { %v416_v60 = vpack.c.bf16 %v382_v57, %v380_v56  ;;  %v477_v13 = vmul.f32 %v623_v10, %v476_v12 }
  0xbd   : > { %v417_v61 = vpack.c.bf16 %v383_v59, %v381_v58 }
  0xbe   : > { %446 = vmatmul.bf16.vlgmr.msra.gmra.mxu2 %v416_v60  ;;  %v478_v14 = vadd.f32 %v623_v10, %v477_v13 }
  0xbf   : > { %460 = vmatmul.bf16.vlgmr.msra.gmra.mxu3 %v417_v61 }
  0xc0   : > { %v480_v15 = vsel %vm479_vm1, %v623_v10, %v478_v14 }
 0x141   : > { %v447_v63 = vpop.f32.mrf.mxu2 }
 0x142   : > { %v448_v0 = vadd.f32 %v611_v62, %v447_v63  ;;  %v461_v1 = vpop.f32.mrf.mxu3 }
 0x144   : > { %v462_v2 = vadd.f32 %v461_v1, %v448_v0 }
 0x146   : > { %v468_v3 = vsel %vm316_vm0, %v462_v2, 0.0 }
 0x147   : > { %469 = vadd.xlane.f32.xlu0 %v468_v3 }
 0x149   : > { %v449_v4 = vpop.f32.mrf.mxu2 }
 0x14a   : > { %v450_v5 = vadd.f32 %v611_v62, %v449_v4  ;;  %v463_v6 = vpop.f32.mrf.mxu3 }
 0x14c   : > { %v464_v7 = vadd.f32 %v463_v6, %v450_v5 }
 0x14e   : > { %v471_v8 = vsel %vm316_vm0, %v464_v7, 0.0 }
 0x14f   : > { %472 = vadd.xlane.f32.xlu0 %v471_v8 }
 0x1ba   : > { %v470_v16 = vpop.xlane.xlu0 %469 }
 0x1bb   : > { %v481_v17 = vmul.f32 %v480_v15, %v470_v16 }
 0x1bd   : > { %v483_v18 = vsub.f32 %v462_v2, %v481_v17 }
 0x1bf   : > { %v485_v19 = vmul.f32 %v483_v18, %v483_v18 }
 0x1c1   : > { %v487_v20 = vsel %vm316_vm0, %v485_v19, 0.0 }
 0x1c2   : > { %488 = vadd.xlane.f32.xlu1 %v487_v20  ;;  %v473_v21 = vpop.xlane.xlu0 %472 }
 0x1c3   : > { %v482_v22 = vmul.f32 %v480_v15, %v473_v21 }
 0x1c5   : > { %v484_v25 = vsub.f32 %v464_v7, %v482_v22 }
 0x1c7   : > { %v486_v26 = vmul.f32 %v484_v25, %v484_v25 }
 0x1c9   : > { %v490_v27 = vsel %vm316_vm0, %v486_v26, 0.0 }
 0x1ca   : > { %491 = vadd.xlane.f32.xlu1 %v490_v27 }
 0x235   : > { %v489_v28 = vpop.xlane.xlu1 %488 }
 0x236   : > { %v493_v29 = vmul.f32 %v489_v28, %v480_v15 }
 0x238   : > { %v495_v30 = vadd.f32 1e-05, %v493_v29 }
 0x23a   : > { %624 = vrsqrt.f32 %v495_v30  ;;  %vm503_vm3 = vweird.f32 %v495_v30 }
 0x23d   : > { %v492_v31 = vpop.xlane.xlu1 %491 }
 0x23e   : > { %v494_v32 = vmul.f32 %v492_v31, %v480_v15 }
 0x240   : > { %v625_v33 = vpop.eup %624  ;;  %v496_v34 = vadd.f32 1e-05, %v494_v32 }
 0x241   : > { %v498_v35 = vmul.f32 %v625_v33, %v495_v30  ;;  %vm504_vm2 = vweird.f32 %v625_v33 }
 0x242   : > { %626 = vrsqrt.f32 %v496_v34  ;;  %vm505_vm4 = vmor %vm503_vm3, %vm504_vm2  ;;  %vm513_vm6 = vweird.f32 %v496_v34 }
 0x243   : > { %v499_v36 = vmul.f32 %v625_v33, %v498_v35 }
 0x245   : > { %v500_v37 = vmul.f32 0.5, %v499_v36 }
 0x247   : > { %v501_v38 = vsub.f32 1.5, %v500_v37 }
 0x248   : > { %v627_v39 = vpop.eup %626 }
 0x249   : > { %v502_v40 = vmul.f32 %v625_v33, %v501_v38  ;;  %v508_v41 = vmul.f32 %v627_v39, %v496_v34  ;;  %vm514_vm5 = vweird.f32 %v627_v39 }
 0x24a   : > { %vm515_vm7 = vmor %vm513_vm6, %vm514_vm5 }
 0x24b   : > { %v506_v43 = vsel %vm505_vm4, %v625_v33, %v502_v40  ;;  %v509_v44 = vmul.f32 %v627_v39, %v508_v41 }
 0x24c   : > { %v517_v46 = vmul.f32 %v506_v43, %v483_v18 }
 0x24d   : > { %v510_v47 = vmul.f32 0.5, %v509_v44 }
 0x24e   : > { %v522_v48 = vmul.f32 %v612_v42, %v517_v46 }
 0x24f   : > { %v511_v49 = vsub.f32 1.5, %v510_v47 }
 0x250   : > { %v527_v50 = vadd.f32 %v613_v45, %v522_v48 }
 0x251   : > { %v512_v51 = vmul.f32 %v627_v39, %v511_v49 }
 0x252   : > { %v529_v52 = vadd.f32 %v527_v50, %v741_v23 }
 0x253   : > { %v516_v53 = vsel %vm515_vm7, %v627_v39, %v512_v51 }
 0x254   : > { %531 = vst.msk [vmem:[%s280_s13] sm:$0xff] %vm316_vm0, %v529_v52  ;;  %v518_v54 = vmul.f32 %v516_v53, %v484_v25 }
 0x256   : > { %v523_v55 = vmul.f32 %v612_v42, %v518_v54 }
 0x258   : > { %v528_v56 = vadd.f32 %v613_v45, %v523_v55 }
 0x25a   : > { %v530_v57 = vadd.f32 %v528_v56, %v743_v24 }
 0x25c   : > { %532 = vst.msk [vmem:[%s280_s13 + $0x8] sm:$0xff] %vm316_vm0, %v530_v57 }
 0x25d PF: > { %s17_s24 = sadd.s32 1, %s634_s24  }
 0x25e   : > { %p14_p4 = scmp.ge.s32.totalorder %s17_s24, 4  }
 0x260   :  { %16 = sbr.rel (!%p14_p4) target bundleno = 1 (0x1), region = 78 }

// kernel: forward.17
= control target key start
LH: loop header
LB: loop body
LE: loop exit
PB: predicated region body
PF: predicated region fallthrough
CT: control target
= control target key end

     0   :  { %s1497_s30 = smov 0   ;;  %s1890_s0 = inlined_call_operand.vmem [shape: f32[2,1,16,64], index: 0, kind: input, shape index: {}]   ;;  %s1891_s1 = inlined_call_operand.vmem [shape: f32[64,192], index: 1, kind: input, shape index: {}]   ;;  %s1892_s2 = inlined_call_operand.vmem [shape: f32[1,192], index: 2, kind: input, shape index: {}]   ;;  %s1893_s3 = inlined_call_operand.vmem [shape: f32[64,64], index: 3, kind: input, shape index: {}]   ;;  %s1894_s4 = inlined_call_operand.vmem [shape: f32[1,64], index: 4, kind: input, shape index: {}]   ;;  %s1895_s5 = inlined_call_operand.vmem [shape: f32[1,64], index: 5, kind: input, shape index: {}]   ;;  %s1896_s6 = inlined_call_operand.vmem [shape: f32[1,64], index: 6, kind: input, shape index: {}]   ;;  %s1897_s7 = inlined_call_operand.vmem [shape: f32[4,1,16,16], index: 7, kind: input, shape index: {}]   ;;  %s1898_s8 = inlined_call_operand.vmem [shape: f32[4,1,1], index: 8, kind: input, shape index: {}]   ;;  %s1899_s9 = inlined_call_operand.vmem [shape: f32[2,1,16,64], index: 9, kind: output, shape index: {}]  }
   0x1 LB: > { %s1283_s10 = sadd.s32 4294967295, %s1436_s30   ;;  %p1287_p0 = scmp.ge.s32.totalorder %s1436_s30, 1  ;;  %s1436_s30 = sphi %s1497_s30, %s19_s30  }
   0x2   : > { %p287_p1 = scmp.lt.s32.totalorder %s1436_s30, 3 }
   0x4   : > { %p288_p2 = pnand %p1287_p0, %p287_p1 }
   0x5   : > { %p323_p3 = scmp.lt.s32.totalorder (!%p288_p2), %s1283_s10, 1  ;;  %s1438_s14 = smov (!%p288_p2), 64  }
   0x6   : > { %291 = sbr.rel (%p288_p2) target bundleno = 2076 (0x81c), region = 56  ;;  %s1439_s15 = smov (!%p288_p2), 48  }
   0x7   : > { %s1440_s16 = smov (!%p288_p2), 16   ;;  %s1441_s17 = smov (!%p288_p2), 80  }
   0x8   : > { %s1443_s20 = smov (!%p288_p2), 32   ;;  %s1444_s21 = smov (!%p288_p2), 112  }
   0x9   : > { %s1445_s22 = smov (!%p288_p2), 96  }
   0xb   : > { %v348_v0 = vld [vmem:[%s1891_s1 + $0x60] sm:$0xff]  ;;  %v350_v1 = vld [vmem:[%s1891_s1 + $0x70] sm:$0xff]  ;;  %s1905_s10 = smov (!%p323_p3, %s1283_s10), 1  ;;  %vm367_vm0 = vcmask 523264   ;;  %vm401_vm1 = vcmask 130048   ;;  %v1442_v25 = vmov 0  }
   0xc   : > { %v344_v2 = vld [vmem:[%s1891_s1 + $0x40] sm:$0xff]  ;;  %v359_v3 = vpack.c.bf16 %v350_v1, %v348_v0  ;;  %v346_v4 = vld [vmem:[%s1891_s1 + $0x50] sm:$0xff]  ;;  %s1314_s23 = sshll.u32 %s1905_s10, 4  ;;  %1333 = vset.pattern.permute.xlu1 %v1442_v25  ;;  %1335 = vset.pattern.permute.xlu0 %v1442_v25 }
   0xd   : > { %v357_v5 = vpack.c.bf16 %v346_v4, %v344_v2  ;;  %v340_v6 = vld [vmem:[%s1891_s1 + $0x20] sm:$0xff]  ;;  %v342_v7 = vld [vmem:[%s1891_s1 + $0x30] sm:$0xff]  ;;  %s1537_s11 = scalar_lea.vmem %s1890_s0, %s1314_s23  ;;  %1334 = vset.pattern.permute.xlu2 %v1442_v25 }
   0xe   : > { %375 = vmatpush.bf16.msra.mxu0 %v359_v3  ;;  %v355_v8 = vpack.c.bf16 %v342_v7, %v340_v6  ;;  %v336_v9 = vld [vmem:[%s1891_s1] sm:$0xff]  ;;  %v338_v10 = vld [vmem:[%s1891_s1 + $0x10] sm:$0xff]  ;;  %v335_v13 = vld [vmem:[%s1537_s11 + $0x8] sm:$0xff] }
   0xf   : > { %v353_v11 = vpack.c.bf16 %v338_v10, %v336_v9  ;;  %v334_v12 = vld [vmem:[%s1537_s11] sm:$0xff] }
  0x10   : > { %v1541_v14 = vpack.c.bf16 %v335_v13, %v334_v12  ;;  %v1548_v15 = vld [vmem:[%s1892_s2] sm:$0x3] }
  0x11   : > { %v363_v16 = vperm.slane %v1548_v15, 0  ;;  %v1351_v30 = vld [vmem:[%s1898_s8] ss:$0 sm:$0xff] }
  0x12   : > { %376 = vmatpush.bf16.msra.mxu0 %v357_v5 }
  0x16   : > { %377 = vmatpush.bf16.msra.mxu0 %v355_v8 }
  0x1a   : > { %378 = vmatpush.bf16.msra.mxu0 %v353_v11 }
  0x1d   : > { %1292 = vmatmul.msk.bf16.vlgmr.msra.gmra.mxu0 %vm367_vm0, %v1541_v14 }
  0x9a   : > { %v380_v17 = vpop.f32.mrf.mxu0 }
  0x9b   : > { %v1551_v18 = vadd.f32 %v380_v17, %v363_v16 }
  0x9d   : > { %v1555_v19 = vmul.f32 %v1551_v18, %v1551_v18 }
  0x9f   : > { %434 = vrot.lane.b32.xlu0 %v1555_v19, %s1438_s14  ;;  %v402_v20 = vsel %vm401_vm1, %v1555_v19, 0.0 }
  0xa0   : > { %403 = vadd.xlane.f32.xlu2 %v402_v20 }
  0xa2   : > { %v382_v21 = vpop.f32.mrf.mxu0 }
  0xa3   : > { %v1561_v22 = vadd.f32 %v382_v21, %v363_v16 }
  0xa5   : > { %v1565_v23 = vmul.f32 %v1561_v22, %v1561_v22 }
  0xa7   : > { %436 = vrot.lane.b32.xlu0 %v1565_v23, %s1438_s14  ;;  %v405_v24 = vsel %vm401_vm1, %v1565_v23, 0.0 }
  0xa8   : > { %406 = vadd.xlane.f32.xlu2 %v405_v24 }
  0xc0   : > { %609 = vrot.lane.b32.xlu2 %v1555_v19, %s1439_s15 }
  0xc8   : > { %957 = vrot.lane.b32.xlu2 %v1555_v19, %s1440_s16 }
  0xd0   : > { %923 = vrot.lane.b32.xlu2 %v1565_v23, %s1441_s17 }
 0x111   : > { %v435_v26 = vpop.permute.xlu0 %434 }
 0x112   : > { %v440_v27 = vsel %vm401_vm1, %v435_v26, 0.0 }
 0x113   : > { %441 = vadd.xlane.f32.xlu1 %v440_v27  ;;  %v404_v56 = vpop.xlane.xlu2 %403 }
 0x114   : > { %v408_v59 = vadd.f32 1e-06, %v404_v56 }
 0x116   : > { %vm416_vm12 = vweird.f32 %v408_v59 }
 0x119   : > { %v437_v28 = vpop.permute.xlu0 %436 }
 0x11a   : > { %v443_v29 = vsel %vm401_vm1, %v437_v28, 0.0 }
 0x11b   : > { %444 = vadd.xlane.f32.xlu1 %v443_v29  ;;  %v407_v57 = vpop.xlane.xlu2 %406 }
 0x11c   : > { %v409_v58 = vadd.f32 1e-06, %v407_v57  ;;  %v341_v57 = vld [vmem:[%s1891_s1 + $0x28] sm:$0xff] }
 0x11e   : > { %vm426_vm10 = vweird.f32 %v409_v58 }
 0x123   : > { %v610_v5 = vpop.permute.xlu2 %609 }
 0x124   : > { %v615_v7 = vsel %vm401_vm1, %v610_v5, 0.0 }
 0x12b   : > { %v958_v56 = vpop.permute.xlu2 %957 }
 0x134   : > { %510 = vperm.xlu1 %1333, %v1351_v30  }
 0x13c   : > { %959 = vrot.lane.b32.xlu1 %v1565_v23, %s1440_s16 }
 0x144   : > { %783 = vrot.lane.b32.xlu1 %v1555_v19, %s1443_s20 }
 0x186   : > { %v442_v31 = vpop.xlane.xlu1 %441 }
 0x187   : > { %v446_v32 = vadd.f32 1e-06, %v442_v31 }
 0x189   : > { %1358 = vrsqrt.f32 %v446_v32  ;;  %vm454_vm3 = vweird.f32 %v446_v32 }
 0x18e   : > { %v445_v33 = vpop.xlane.xlu1 %444 }
 0x18f   : > { %v1359_v34 = vpop.eup %1358  ;;  %v447_v35 = vadd.f32 1e-06, %v445_v33 }
 0x190   : > { %v449_v36 = vmul.f32 %v1359_v34, %v446_v32  ;;  %vm455_vm2 = vweird.f32 %v1359_v34 }
 0x191   : > { %1360 = vrsqrt.f32 %v447_v35  ;;  %vm456_vm4 = vmor %vm454_vm3, %vm455_vm2  ;;  %vm464_vm6 = vweird.f32 %v447_v35 }
 0x192   : > { %v450_v37 = vmul.f32 %v1359_v34, %v449_v36  ;;  %1362 = vrsqrt.f32 %v409_v58 }
 0x193   : > { %1364 = vrsqrt.f32 %v408_v59 }
 0x194   : > { %v451_v38 = vmul.f32 0.5, %v450_v37 }
 0x196   : > { %v452_v39 = vsub.f32 1.5, %v451_v38  ;;  %v515_v38 = vld [vmem:[%s1897_s7] sm:$0xff] }
 0x197   : > { %v1361_v40 = vpop.eup %1360 }
 0x198   : > { %v453_v41 = vmul.f32 %v1359_v34, %v452_v39  ;;  %v459_v42 = vmul.f32 %v1361_v40, %v447_v35  ;;  %vm465_vm5 = vweird.f32 %v1361_v40  ;;  %v1363_v61 = vpop.eup %1362 }
 0x199   : > { %vm466_vm7 = vmor %vm464_vm6, %vm465_vm5  ;;  %v1365_v62 = vpop.eup %1364  ;;  %v421_v63 = vmul.f32 %v1363_v61, %v409_v58  ;;  %vm427_vm8 = vweird.f32 %v1363_v61  ;;  %v343_v58 = vld [vmem:[%s1891_s1 + $0x38] sm:$0xff] }
 0x19a   : > { %v460_v43 = vmul.f32 %v1361_v40, %v459_v42  ;;  %v457_v45 = vsel %vm456_vm4, %v1359_v34, %v453_v41  ;;  %v411_v0 = vmul.f32 %v1365_v62, %v408_v59  ;;  %vm417_vm9 = vweird.f32 %v1365_v62  ;;  %vm428_vm11 = vmor %vm426_vm10, %vm427_vm8 }
 0x19b   : > { %v468_v47 = vmul.f32 %v457_v45, %v1551_v18  ;;  %v422_v1 = vmul.f32 %v1363_v61, %v421_v63  ;;  %vm418_vm13 = vmor %vm416_vm12, %vm417_vm9  ;;  %v356_v59 = vpack.c.bf16 %v343_v58, %v341_v57  ;;  %v963_v63 = vsel %vm401_vm1, %v958_v56, 0.0 }
 0x19c   : > { %v461_v44 = vmul.f32 0.5, %v460_v43  ;;  %v412_v2 = vmul.f32 %v1365_v62, %v411_v0  ;;  %v516_v43 = vld [vmem:[%s1897_s7 + $0x8] sm:$0xff] }
 0x19d   : > { %v472_v51 = vpack.c.bf16 %v468_v47, %v468_v47  ;;  %v423_v4 = vmul.f32 0.5, %v422_v1  ;;  %v924_v1 = vpop.permute.xlu2 %923 }
 0x19e   : > { %v462_v46 = vsub.f32 1.5, %v461_v44  ;;  %v413_v6 = vmul.f32 0.5, %v412_v2 }
 0x19f   : > { %v481_v53 = vunpack.c.l.b16 %v472_v51  ;;  %v424_v8 = vsub.f32 1.5, %v423_v4  ;;  %v345_v51 = vld [vmem:[%s1891_s1 + $0x48] sm:$0xff]  ;;  %v930_v4 = vsel %vm401_vm1, %v924_v1, 0.0 }
 0x1a0   : > { %v463_v48 = vmul.f32 %v1361_v40, %v462_v46  ;;  %v414_v9 = vsub.f32 1.5, %v413_v6 }
 0x1a1   : > { %v425_v10 = vmul.f32 %v1363_v61, %v424_v8 }
 0x1a2   : > { %v467_v49 = vsel %vm466_vm7, %v1361_v40, %v463_v48  ;;  %v415_v12 = vmul.f32 %v1365_v62, %v414_v9  ;;  %v349_v48 = vld [vmem:[%s1891_s1 + $0x68] sm:$0xff] }
 0x1a3   : > { %v469_v50 = vmul.f32 %v467_v49, %v1561_v22  ;;  %v429_v16 = vsel %vm428_vm11, %v1363_v61, %v425_v10  ;;  %v351_v49 = vld [vmem:[%s1891_s1 + $0x78] sm:$0xff] }
 0x1a4   : > { %v419_v17 = vsel %vm418_vm13, %v1365_v62, %v415_v12  ;;  %v339_v61 = vld [vmem:[%s1891_s1 + $0x18] sm:$0xff] }
 0x1a5   : > { %v473_v52 = vpack.c.bf16 %v469_v50, %v469_v50  ;;  %v430_v20 = vmul.f32 %v419_v17, %v1551_v18  ;;  %v360_v50 = vpack.c.bf16 %v351_v49, %v349_v48 }
 0x1a6   : > { %v511_v60 = vpop.permute.xlu1 %510 }
 0x1a7   : > { %v482_v54 = vunpack.c.l.b16 %v473_v52  ;;  %v470_v25 = vpack.c.bf16 %v430_v20, %v430_v20  ;;  %v347_v52 = vld [vmem:[%s1891_s1 + $0x58] sm:$0xff]  ;;  %389 = vmatpush.bf16.msra.mxu1 %v360_v50 }
 0x1a9   : > { %v483_v55 = vpack.c.b16 %v482_v54, %v481_v53  ;;  %v476_v27 = vunpack.c.l.b16 %v470_v25 }
 0x1ab   : > { %484 = vrot.lane.b32.xlu0 %v483_v55, %s1438_s14  ;;  %v358_v55 = vpack.c.bf16 %v347_v52, %v345_v51 }
 0x1ad   : > { %390 = vmatpush.bf16.msra.mxu1 %v358_v55 }
 0x1ae   : > { %v1603_v3 = vpop.permute.xlu1 %959 }
 0x1af   : > { %v966_v62 = vsel %vm401_vm1, %v1603_v3, 0.0 }
 0x1b1   : > { %391 = vmatpush.bf16.msra.mxu1 %v356_v59 }
 0x1b3   : > { %611 = vrot.lane.b32.xlu0 %v1565_v23, %s1439_s15 }
 0x1b6   : > { %v784_v11 = vpop.permute.xlu1 %783 }
 0x1b7   : > { %v789_v13 = vsel %vm401_vm1, %v784_v11, 0.0 }
 0x1bb   : > { %573 = vrot.lane.b32.xlu0 %v1555_v19, %s1444_s21 }
 0x1c3   : > { %575 = vrot.lane.b32.xlu0 %v1565_v23, %s1444_s21 }
 0x1cb   : > { %921 = vrot.lane.b32.xlu0 %v1555_v19, %s1441_s17 }
 0x1d3   : > { %785 = vrot.lane.b32.xlu0 %v1565_v23, %s1443_s20 }
 0x1db   : > { %747 = vrot.lane.b32.xlu0 %v1555_v19, %s1445_s22  ;;  %v431_v19 = vmul.f32 %v429_v16, %v1561_v22 }
 0x1dd   : > { %v471_v21 = vpack.c.bf16 %v431_v19, %v431_v19 }
 0x1df   : > { %v477_v26 = vunpack.c.l.b16 %v471_v21 }
 0x1e1   : > { %v478_v28 = vpack.c.b16 %v477_v26, %v476_v27 }
 0x1e3   : > { %749 = vrot.lane.b32.xlu0 %v1565_v23, %s1445_s22 }
 0x20d   : > { %616 = vadd.xlane.f32.xlu0 %v615_v7 }
 0x215   : > { %790 = vadd.xlane.f32.xlu0 %v789_v13 }
 0x21d   : > { %v485_v23 = vpop.permute.xlu0 %484 }
 0x21e   : > { %v490_v24 = vsel %vm401_vm1, %v485_v23, 0 }
 0x21f   : > { %499 = vmatpush.bf16.xpose.msra.mxu2 %v490_v24 }
 0x225   : > { %v612_v29 = vpop.permute.xlu0 %611 }
 0x226   : > { %1294 = vmatmul.msk.bf16.vlgmr.msra.gmra.mxu2 %vm401_vm1, %v478_v28  ;;  %v618_v46 = vsel %vm401_vm1, %v612_v29, 0.0 }
 0x22d   : > { %v574_v30 = vpop.permute.xlu0 %573 }
 0x22e   : > { %v579_v54 = vsel %vm401_vm1, %v574_v30, 0.0 }
 0x235   : > { %v576_v31 = vpop.permute.xlu0 %575 }
 0x236   : > { %v582_v53 = vsel %vm401_vm1, %v576_v31, 0.0 }
 0x23d   : > { %v922_v32 = vpop.permute.xlu0 %921 }
 0x23e   : > { %v927_v2 = vsel %vm401_vm1, %v922_v32, 0.0 }
 0x245   : > { %v786_v33 = vpop.permute.xlu0 %785 }
 0x246   : > { %v792_v5 = vsel %vm401_vm1, %v786_v33, 0.0 }
 0x24d   : > { %v748_v34 = vpop.permute.xlu0 %747 }
 0x24e   : > { %v753_v3 = vsel %vm401_vm1, %v748_v34, 0.0 }
 0x255   : > { %v750_v35 = vpop.permute.xlu0 %749 }
 0x256   : > { %v756_v36 = vsel %vm401_vm1, %v750_v35, 0.0 }
 0x257   : > { %757 = vadd.xlane.f32.xlu0 %v756_v36 }
 0x280   : > { %v617_v6 = vpop.xlane.xlu0 %616 }
 0x281   : > { %v621_v7 = vadd.f32 1e-06, %v617_v6 }
 0x283   : > { %1366 = vrsqrt.f32 %v621_v7  ;;  %vm629_vm15 = vweird.f32 %v621_v7 }
 0x288   : > { %v791_v16 = vpop.xlane.xlu0 %790 }
 0x289   : > { %v1367_v8 = vpop.eup %1366  ;;  %v1656_v23 = vadd.f32 1e-06, %v791_v16 }
 0x28a   : > { %v624_v10 = vmul.f32 %v1367_v8, %v621_v7  ;;  %vm630_vm14 = vweird.f32 %v1367_v8 }
 0x28b   : > { %vm631_vm2 = vmor %vm629_vm15, %vm630_vm14 }
 0x28c   : > { %v625_v13 = vmul.f32 %v1367_v8, %v624_v10 }
 0x2a9   : > { %v501_v37 = vpop.f32.mrf.mxu2 }
 0x2aa   : > { %v513_v39 = vmul.f32 %v511_v60, %v501_v37 }
 0x2ac   : > { %v517_v40 = vadd.f32 %v515_v38, %v513_v39 }
 0x2ae   : > { %v519_v41 = vsel %vm401_vm1, %v517_v40, -inf }
 0x2af   : > { %520 = vmax.xlane.f32.xlu2 %v519_v41 }
 0x2b1   : > { %v503_v42 = vpop.f32.mrf.mxu2 }
 0x2b2   : > { %v514_v44 = vmul.f32 %v511_v60, %v503_v42  ;;  %v337_v60 = vld [vmem:[%s1891_s1 + $0x8] sm:$0xff] }
 0x2b3   : > { %v354_v0 = vpack.c.bf16 %v339_v61, %v337_v60 }
 0x2b4   : > { %v518_v45 = vadd.f32 %v516_v43, %v514_v44 }
 0x2b5   : > { %392 = vmatpush.bf16.msra.mxu1 %v354_v0 }
 0x2b6   : > { %v522_v47 = vsel %vm401_vm1, %v518_v45, -inf }
 0x2b7   : > { %619 = vadd.xlane.f32.xlu2 %v618_v46  ;;  %523 = vmax.xlane.f32.xlu1 %v522_v47 }
 0x2b8   : > { %1293 = vmatmul.msk.bf16.vlgmr.msra.gmra.mxu1 %vm367_vm0, %v1541_v14  ;;  %v626_v14 = vmul.f32 0.5, %v625_v13 }
 0x2ba   : > { %v627_v27 = vsub.f32 1.5, %v626_v14 }
 0x2bc   : > { %v628_v32 = vmul.f32 %v1367_v8, %v627_v27 }
 0x2be   : > { %v632_v41 = vsel %vm631_vm2, %v1367_v8, %v628_v32 }
 0x2bf   : > { %583 = vadd.xlane.f32.xlu2 %v582_v53  ;;  %580 = vadd.xlane.f32.xlu1 %v579_v54  ;;  %v643_v47 = vmul.f32 %v632_v41, %v1551_v18 }
 0x2c1   : > { %v647_v59 = vpack.c.bf16 %v643_v47, %v643_v47 }
 0x2c3   : > { %v658_v6 = vunpack.c.l.b16 %v647_v59 }
 0x2c7   : > { %967 = vadd.xlane.f32.xlu2 %v966_v62  ;;  %964 = vadd.xlane.f32.xlu1 %v963_v63 }
 0x2ca   : > { %v758_v28 = vpop.xlane.xlu0 %757 }
 0x2cb   : > { %v1663_v33 = vadd.f32 1e-06, %v758_v28 }
 0x2cf   : > { %928 = vadd.xlane.f32.xlu1 %v927_v2  ;;  %931 = vadd.xlane.f32.xlu2 %v930_v4 }
 0x2d7   : > { %793 = vadd.xlane.f32.xlu1 %v792_v5  ;;  %754 = vadd.xlane.f32.xlu2 %v753_v3 }
 0x322   : > { %v521_v9 = vpop.xlane.xlu2 %520 }
 0x323   : > { %v525_v11 = vsub.f32 %v517_v40, %v521_v9 }
 0x325   : > { %v527_v12 = vmul.f32 1.442695, %v525_v11 }
 0x327   : > { %1368 = vpow2.f32 %v527_v12 }
 0x32a   : > { %v524_v17 = vpop.xlane.xlu1 %523  ;;  %v620_v19 = vpop.xlane.xlu2 %619 }
 0x32b   : > { %v526_v20 = vsub.f32 %v518_v45, %v524_v17  ;;  %v622_v21 = vadd.f32 1e-06, %v620_v19 }
 0x32d   : > { %v1658_v24 = vpop.eup %1368  ;;  %v529_v25 = vmul.f32 1.442695, %v526_v20  ;;  %1370 = vrsqrt.f32 %v622_v21  ;;  %vm639_vm4 = vweird.f32 %v622_v21 }
 0x32e   : > { %v531_v26 = vsel %vm401_vm1, %v1658_v24, 0.0 }
 0x32f   : > { %1372 = vpow2.f32 %v529_v25  ;;  %532 = vadd.xlane.f32.xlu1 %v531_v26 }
 0x330   : > { %1374 = vrsqrt.f32 %v1656_v23 }
 0x332   : > { %v581_v29 = vpop.xlane.xlu1 %580  ;;  %v584_v30 = vpop.xlane.xlu2 %583 }
 0x333   : > { %v1371_v31 = vpop.eup %1370  ;;  %v585_v34 = vadd.f32 1e-06, %v581_v29  ;;  %v1665_v35 = vadd.f32 1e-06, %v584_v30 }
 0x334   : > { %v634_v36 = vmul.f32 %v1371_v31, %v622_v21  ;;  %vm640_vm3 = vweird.f32 %v1371_v31 }
 0x335   : > { %v1667_v37 = vpop.eup %1372  ;;  %1376 = vrsqrt.f32 %v585_v34  ;;  %vm641_vm5 = vmor %vm639_vm4, %vm640_vm3  ;;  %vm593_vm8 = vweird.f32 %v585_v34  ;;  %vm603_vm10 = vweird.f32 %v1665_v35 }
 0x336   : > { %v1669_v38 = vpop.eup %1374  ;;  %v635_v39 = vmul.f32 %v1371_v31, %v634_v36  ;;  %1378 = vrsqrt.f32 %v1665_v35  ;;  %v534_v40 = vsel %vm401_vm1, %v1667_v37, 0.0 }
 0x337   : > { %1380 = vrsqrt.f32 %v1663_v33  ;;  %535 = vadd.xlane.f32.xlu2 %v534_v40  ;;  %v798_v43 = vmul.f32 %v1669_v38, %v1656_v23  ;;  %vm804_vm4 = vweird.f32 %v1669_v38 }
 0x338   : > { %v636_v42 = vmul.f32 0.5, %v635_v39 }
 0x339   : > { %v799_v55 = vmul.f32 %v1669_v38, %v798_v43 }
 0x33a   : > { %v637_v44 = vsub.f32 1.5, %v636_v42  ;;  %v965_v45 = vpop.xlane.xlu1 %964  ;;  %v968_v46 = vpop.xlane.xlu2 %967 }
 0x33b   : > { %v1377_v48 = vpop.eup %1376  ;;  %v1678_v49 = vadd.f32 1e-06, %v965_v45  ;;  %v1680_v50 = vadd.f32 1e-06, %v968_v46  ;;  %v1691_v0 = vmul.f32 0.5, %v799_v55 }
 0x33c   : > { %v1379_v51 = vpop.eup %1378  ;;  %v638_v52 = vmul.f32 %v1371_v31, %v637_v44  ;;  %v588_v53 = vmul.f32 %v1377_v48, %v585_v34  ;;  %vm594_vm6 = vweird.f32 %v1377_v48 }
 0x33d   : > { %v1682_v54 = vpop.eup %1380  ;;  %v598_v56 = vmul.f32 %v1379_v51, %v1665_v35  ;;  %1382 = vrsqrt.f32 %v1678_v49  ;;  %vm604_vm7 = vweird.f32 %v1379_v51  ;;  %vm595_vm9 = vmor %vm593_vm8, %vm594_vm6  ;;  %vm977_vm14 = vweird.f32 %v1678_v49 }
 0x33e   : > { %v589_v57 = vmul.f32 %v1377_v48, %v588_v53  ;;  %1384 = vrsqrt.f32 %v1680_v50  ;;  %v642_v58 = vsel %vm641_vm5, %v1371_v31, %v638_v52  ;;  %v772_v62 = vmul.f32 %v1682_v54, %v1663_v33  ;;  %vm605_vm11 = vmor %vm603_vm10, %vm604_vm7 }
 0x33f   : > { %v599_v60 = vmul.f32 %v1379_v51, %v598_v56  ;;  %v644_v61 = vmul.f32 %v642_v58, %v1561_v22  ;;  %v801_v31 = vsub.f32 1.5, %v1691_v0  ;;  %vm987_vm15 = vweird.f32 %v1680_v50 }
 0x340   : > { %v590_v63 = vmul.f32 0.5, %v589_v57  ;;  %v773_v13 = vmul.f32 %v1682_v54, %v772_v62  ;;  %vm778_vm6 = vweird.f32 %v1682_v54 }
 0x341   : > { %v600_v1 = vmul.f32 0.5, %v599_v60  ;;  %v648_v2 = vpack.c.bf16 %v644_v61, %v644_v61  ;;  %v802_v62 = vmul.f32 %v1669_v38, %v801_v31 }
 0x342   : > { %v591_v4 = vsub.f32 1.5, %v590_v63  ;;  %v929_v5 = vpop.xlane.xlu1 %928  ;;  %v932_v3 = vpop.xlane.xlu2 %931  ;;  %v774_v32 = vmul.f32 0.5, %v773_v13 }
 0x343   : > { %v1383_v7 = vpop.eup %1382  ;;  %v601_v8 = vsub.f32 1.5, %v600_v1  ;;  %v1693_v9 = vadd.f32 1e-06, %v929_v5  ;;  %v1695_v10 = vadd.f32 1e-06, %v932_v3  ;;  %v659_v11 = vunpack.c.l.b16 %v648_v2 }
 0x344   : > { %v1385_v12 = vpop.eup %1384  ;;  %v592_v16 = vmul.f32 %v1377_v48, %v591_v4  ;;  %v972_v17 = vmul.f32 %v1383_v7, %v1678_v49  ;;  %vm978_vm12 = vweird.f32 %v1383_v7  ;;  %v775_v55 = vsub.f32 1.5, %v774_v32 }
 0x345   : > { %v602_v19 = vmul.f32 %v1379_v51, %v601_v8  ;;  %v982_v14 = vmul.f32 %v1385_v12, %v1680_v50  ;;  %1386 = vrsqrt.f32 %v1693_v9  ;;  %v660_v25 = vpack.c.b16 %v659_v11, %v658_v6  ;;  %vm979_vm2 = vmor %vm977_vm14, %vm978_vm12 }
 0x346   : > { %v973_v20 = vmul.f32 %v1383_v7, %v972_v17  ;;  %1388 = vrsqrt.f32 %v1695_v10  ;;  %v596_v26 = vsel %vm595_vm9, %v1377_v48, %v592_v16  ;;  %vm988_vm13 = vweird.f32 %v1385_v12 }
 0x347   : > { %v983_v21 = vmul.f32 %v1385_v12, %v982_v14  ;;  %v606_v27 = vsel %vm605_vm11, %v1379_v51, %v602_v19  ;;  %v607_v29 = vmul.f32 %v596_v26, %v1551_v18  ;;  %661 = vrot.lane.b32.xlu0 %v660_v25, %s1439_s15  ;;  %vm989_vm3 = vmor %vm987_vm15, %vm988_vm13  ;;  %v776_v3 = vmul.f32 %v1682_v54, %v775_v55 }
 0x348   : > { %v974_v28 = vmul.f32 0.5, %v973_v20  ;;  %v608_v30 = vmul.f32 %v606_v27, %v1561_v22  ;;  %vm941_vm8 = vweird.f32 %v1693_v9  ;;  %vm951_vm10 = vweird.f32 %v1695_v10 }
 0x349   : > { %v984_v34 = vmul.f32 0.5, %v983_v21  ;;  %v645_v40 = vpack.c.bf16 %v607_v29, %v607_v29  ;;  %vm803_vm11 = vweird.f32 %v1656_v23  ;;  %vm777_vm12 = vweird.f32 %v1663_v33 }
 0x34a   : > { %v975_v35 = vsub.f32 1.5, %v974_v28  ;;  %v794_v36 = vpop.xlane.xlu1 %793  ;;  %v755_v39 = vpop.xlane.xlu2 %754  ;;  %v646_v45 = vpack.c.bf16 %v608_v30, %v608_v30  ;;  %vm1736_vm14 = vmor %vm803_vm11, %vm804_vm4 }
 0x34b   : > { %v1387_v41 = vpop.eup %1386  ;;  %v985_v42 = vsub.f32 1.5, %v984_v34  ;;  %v1709_v43 = vadd.f32 1e-06, %v794_v36  ;;  %v1711_v44 = vadd.f32 1e-06, %v755_v39  ;;  %v651_v53 = vunpack.c.l.b16 %v645_v40  ;;  %vm1743_vm15 = vmor %vm777_vm12, %vm778_vm6 }
 0x34c   : > { %v1389_v46 = vpop.eup %1388  ;;  %v976_v47 = vmul.f32 %v1383_v7, %v975_v35  ;;  %v936_v48 = vmul.f32 %v1387_v41, %v1693_v9  ;;  %v652_v49 = vunpack.c.l.b16 %v646_v45  ;;  %vm942_vm5 = vweird.f32 %v1387_v41 }
 0x34d   : > { %v986_v51 = vmul.f32 %v1385_v12, %v985_v42  ;;  %v946_v52 = vmul.f32 %v1389_v46, %v1695_v10  ;;  %1390 = vrsqrt.f32 %v1709_v43  ;;  %vm952_vm7 = vweird.f32 %v1389_v46  ;;  %vm943_vm9 = vmor %vm941_vm8, %vm942_vm5 }
 0x34e   : > { %v937_v56 = vmul.f32 %v1387_v41, %v936_v48  ;;  %1392 = vrsqrt.f32 %v1711_v44  ;;  %v980_v58 = vsel %vm979_vm2, %v1383_v7, %v976_v47  ;;  %v653_v0 = vpack.c.b16 %v652_v49, %v651_v53  ;;  %vm953_vm13 = vmor %vm951_vm10, %vm952_vm7 }
 0x34f   : > { %v947_v57 = vmul.f32 %v1389_v46, %v946_v52  ;;  %v990_v50 = vsel %vm989_vm3, %v1385_v12, %v986_v51  ;;  %v991_v60 = vmul.f32 %v980_v58, %v1551_v18  ;;  %v806_v27 = vsel %vm1736_vm14, %v1669_v38, %v802_v62  ;;  %v394_v58 = vpop.f32.mrf.mxu1 }
 0x350   : > { %v938_v59 = vmul.f32 0.5, %v937_v56  ;;  %v992_v61 = vmul.f32 %v990_v50, %v1561_v22  ;;  %654 = vrot.lane.b32.xlu1 %v653_v0, %s1444_s21  ;;  %v780_v30 = vsel %vm1743_vm15, %v1682_v54, %v776_v3  ;;  %v817_v36 = vmul.f32 %v806_v27, %v1551_v18 }
 0x351   : > { %v948_v63 = vmul.f32 0.5, %v947_v57  ;;  %v995_v2 = vpack.c.bf16 %v991_v60, %v991_v60  ;;  %vm813_vm4 = vweird.f32 %v1709_v43  ;;  %v782_v40 = vmul.f32 %v780_v30, %v1561_v22 }
 0x352   : > { %v939_v1 = vsub.f32 1.5, %v938_v59  ;;  %v996_v4 = vpack.c.bf16 %v992_v61, %v992_v61  ;;  %vm767_vm6 = vweird.f32 %v1711_v44  ;;  %vm1121_vm8 = vcmask 261120  }
 0x353   : > { %v1391_v5 = vpop.eup %1390  ;;  %v949_v6 = vsub.f32 1.5, %v948_v63  ;;  %v1006_v12 = vunpack.c.l.b16 %v995_v2  ;;  %v820_v51 = vpack.c.bf16 %v782_v40, %v782_v40 }
 0x354   : > { %v1393_v7 = vpop.eup %1392  ;;  %v940_v8 = vmul.f32 %v1387_v41, %v939_v1  ;;  %v808_v11 = vmul.f32 %v1391_v5, %v1709_v43  ;;  %v1007_v17 = vunpack.c.l.b16 %v996_v4  ;;  %vm814_vm2 = vweird.f32 %v1391_v5 }
 0x355   : > { %v950_v13 = vmul.f32 %v1389_v46, %v949_v6  ;;  %v762_v16 = vmul.f32 %v1393_v7, %v1711_v44  ;;  %vm768_vm3 = vweird.f32 %v1393_v7  ;;  %vm815_vm5 = vmor %vm813_vm4, %vm814_vm2  ;;  %v826_v57 = vunpack.c.l.b16 %v820_v51 }
 0x356   : > { %v809_v19 = vmul.f32 %v1391_v5, %v808_v11  ;;  %v944_v14 = vsel %vm943_vm9, %v1387_v41, %v940_v8  ;;  %v1008_v21 = vpack.c.b16 %v1007_v17, %v1006_v12  ;;  %vm769_vm7 = vmor %vm767_vm6, %vm768_vm3  ;;  %vm1124_vm9 = vcmask 392192  }
 0x357   : > { %v763_v20 = vmul.f32 %v1393_v7, %v762_v16  ;;  %v954_v25 = vsel %vm953_vm13, %v1389_v46, %v950_v13  ;;  %v955_v10 = vmul.f32 %v944_v14, %v1551_v18  ;;  %v821_v46 = vpack.c.bf16 %v817_v36, %v817_v36  ;;  %v396_v60 = vpop.f32.mrf.mxu1 }
 0x358   : > { %v810_v33 = vmul.f32 0.5, %v809_v19  ;;  %v956_v26 = vmul.f32 %v954_v25, %v1561_v22  ;;  %1009 = vrot.lane.b32.xlu2 %v1008_v21, %s1440_s16 }
 0x359   : > { %v764_v28 = vmul.f32 0.5, %v763_v20  ;;  %v993_v29 = vpack.c.bf16 %v955_v10, %v955_v10  ;;  %v832_v53 = vunpack.c.l.b16 %v821_v46  ;;  %v1303_v46 = vld [vmem:[%s1897_s7 + $0x20] sm:$0xff] }
 0x35a   : > { %v811_v31 = vsub.f32 1.5, %v810_v33  ;;  %v994_v32 = vpack.c.bf16 %v956_v26, %v956_v26 }
 0x35b   : > { %v765_v34 = vsub.f32 1.5, %v764_v28  ;;  %v999_v35 = vunpack.c.l.b16 %v993_v29  ;;  %v1298_v28 = vld [vmem:[%s1897_s7 + $0x10] sm:$0xff] }
 0x35c   : > { %v812_v39 = vmul.f32 %v1391_v5, %v811_v31  ;;  %v1000_v38 = vunpack.c.l.b16 %v994_v32 }
 0x35d   : > { %v766_v41 = vmul.f32 %v1393_v7, %v765_v34  ;;  %v1299_v34 = vld [vmem:[%s1897_s7 + $0x18] sm:$0xff] }
 0x35e   : > { %v1001_v54 = vpack.c.b16 %v1000_v38, %v999_v35  ;;  %v816_v42 = vsel %vm815_vm5, %v1391_v5, %v812_v39 }
 0x35f   : > { %v818_v45 = vmul.f32 %v816_v42, %v1561_v22  ;;  %v770_v47 = vsel %vm769_vm7, %v1393_v7, %v766_v41  ;;  %v1352_v22 = vld [vmem:[%s1898_s8 + $0x3] ss:$0 sm:$0xff] }
 0x360   : > { %1002 = vrot.lane.b32.xlu0 %v1001_v54, %s1441_s17  ;;  %v781_v48 = vmul.f32 %v770_v47, %v1551_v18  ;;  %v364_v18 = vperm.slane %v1548_v15, 1  ;;  %v1308_v54 = vld [vmem:[%s1897_s7 + $0x30] sm:$0xff] }
 0x361   : > { %v822_v43 = vpack.c.bf16 %v818_v45, %v818_v45 }
 0x362   : > { %v819_v52 = vpack.c.bf16 %v781_v48, %v781_v48  ;;  %v395_v50 = vadd.f32 %v394_v58, %v364_v18  ;;  %v397_v61 = vadd.f32 %v396_v60, %v364_v18  ;;  %v1304_v58 = vld [vmem:[%s1897_s7 + $0x28] sm:$0xff] }
 0x363   : > { %v833_v55 = vunpack.c.l.b16 %v822_v43 }
 0x364   : > { %v825_v56 = vunpack.c.l.b16 %v819_v52  ;;  %v543_v59 = vpack.c.bf16 %v395_v50, %v395_v50  ;;  %v544_v63 = vpack.c.bf16 %v397_v61, %v397_v61 }
 0x365   : > { %v834_v49 = vpack.c.b16 %v833_v55, %v832_v53  ;;  %v1309_v55 = vld [vmem:[%s1897_s7 + $0x38] sm:$0xff] }
 0x366   : > { %v827_v44 = vpack.c.b16 %v826_v57, %v825_v56  ;;  %v552_v62 = vunpack.c.l.b16 %v543_v59  ;;  %v553_v0 = vunpack.c.l.b16 %v544_v63 }
 0x367   : > { %835 = vrot.lane.b32.xlu1 %v834_v49, %s1443_s20 }
 0x368   : > { %828 = vrot.lane.b32.xlu0 %v827_v44, %s1445_s22  ;;  %v1768_v1 = vpack.c.b16 %v553_v0, %v552_v62 }
 0x36a   : > { %566 = vmatpush.bf16.msra.mxu3 %v1768_v1 }
 0x36f   : > { %1036 = vperm.xlu1 %1333, %v1352_v22  }
 0x3a2   : > { %v533_v2 = vpop.xlane.xlu1 %532 }
 0x3a3   : > { %1394 = vrcp.f32 %v533_v2 }
 0x3a9   : > { %v1395_v5 = vpop.eup %1394 }
 0x3aa   : > { %v536_v4 = vpop.xlane.xlu2 %535  ;;  %v539_v3 = vmul.f32 %v1395_v5, %v1658_v24  ;;  %v1353_v24 = vld [vmem:[%s1898_s8 + $0x2] ss:$0 sm:$0xff] }
 0x3ab   : > { %1396 = vrcp.f32 %v536_v4  ;;  %862 = vperm.xlu0 %1335, %v1353_v24  }
 0x3ac   : > { %v541_v7 = vpack.c.bf16 %v539_v3, %v539_v3 }
 0x3ae   : > { %v547_v11 = vunpack.c.l.b16 %v541_v7 }
 0x3b1   : > { %v1397_v6 = vpop.eup %1396 }
 0x3b2   : > { %v540_v15 = vmul.f32 %v1397_v6, %v1667_v37  ;;  %v1010_v16 = vpop.permute.xlu2 %1009  ;;  %v1354_v37 = vld [vmem:[%s1898_s8 + $0x1] ss:$0 sm:$0xff] }
 0x3b3   : > { %v1015_v14 = vsel %vm401_vm1, %v1010_v16, 0  ;;  %688 = vperm.xlu2 %1334, %v1354_v37  }
 0x3b4   : > { %v542_v8 = vpack.c.bf16 %v540_v15, %v540_v15 }
 0x3b6   : > { %v548_v12 = vunpack.c.l.b16 %v542_v8 }
 0x3b8   : > { %v549_v13 = vpack.c.b16 %v548_v12, %v547_v11 }
 0x3b9   : > { %v662_v17 = vpop.permute.xlu0 %661 }
 0x3ba   : > { %1295 = vmatmul.msk.bf16.vlgmr.msra.gmra.mxu3 %vm401_vm1, %v549_v13  ;;  %v667_v19 = vsel %vm401_vm1, %v662_v17, 0 }
 0x3bb   : > { %676 = vmatpush.bf16.xpose.msrb.mxu3 %v667_v19 }
 0x3c2   : > { %v655_v9 = vpop.permute.xlu1 %654 }
 0x3c3   : > { %1024 = vmatpush.bf16.xpose.msra.mxu3 %v1015_v14 }
 0x3ca   : > { %1296 = vmatmul.msk.bf16.vlgmr.msrb.gmra.mxu3 %vm401_vm1, %v655_v9 }
 0x3d2   : > { %v1003_v20 = vpop.permute.xlu0 %1002 }
 0x3d9   : > { %v836_v21 = vpop.permute.xlu1 %835 }
 0x3da   : > { %1306 = vmatmul.msk.bf16.vlgmr.msra.gmra.mxu3 %vm401_vm1, %v1003_v20  ;;  %v841_v25 = vsel %vm401_vm1, %v836_v21, 0  ;;  %v829_v10 = vpop.permute.xlu0 %828 }
 0x3db   : > { %850 = vmatpush.bf16.xpose.msrb.mxu0 %v841_v25 }
 0x3e1   : > { %v1037_v38 = vpop.permute.xlu1 %1036 }
 0x3e2   : > { %1301 = vmatmul.msk.bf16.vlgmr.msrb.gmra.mxu0 %vm401_vm1, %v829_v10 }
 0x40d   : > { %v689_v26 = vpop.permute.xlu2 %688 }
 0x41d   : > { %v863_v41 = vpop.permute.xlu0 %862 }
 0x43d   : > { %v1786_v23 = vpop.f32.mrf.mxu3 }
 0x445   : > { %v1788_v33 = vpop.f32.mrf.mxu3 }
 0x44d   : > { %v678_v27 = vpop.f32.mrf.mxu3 }
 0x44e   : > { %v691_v29 = vmul.f32 %v689_v26, %v678_v27 }
 0x450   : > { %v696_v30 = vadd.f32 %v1298_v28, %v691_v29 }
 0x452   : > { %v698_v31 = vsel %vm401_vm1, %v696_v30, -inf }
 0x453   : > { %699 = vmax.xlane.f32.xlu2 %v698_v31 }
 0x455   : > { %v680_v32 = vpop.f32.mrf.mxu3 }
 0x456   : > { %v692_v35 = vmul.f32 %v689_v26, %v680_v32 }
 0x458   : > { %v697_v36 = vadd.f32 %v1299_v34, %v692_v35 }
 0x45a   : > { %v701_v39 = vsel %vm401_vm1, %v697_v36, -inf }
 0x45b   : > { %702 = vmax.xlane.f32.xlu1 %v701_v39 }
 0x45d   : > { %v1026_v40 = vpop.f32.mrf.mxu3 }
 0x45e   : > { %v1039_v42 = vmul.f32 %v1037_v38, %v1026_v40 }
 0x45f   : > { %v852_v45 = vpop.f32.mrf.mxu0 }
 0x460   : > { %v865_v47 = vmul.f32 %v863_v41, %v852_v45  ;;  %v1044_v48 = vadd.f32 %v1308_v54, %v1039_v42 }
 0x462   : > { %v1046_v51 = vsel %vm401_vm1, %v1044_v48, -inf  ;;  %v870_v43 = vadd.f32 %v1303_v46, %v865_v47 }
 0x463   : > { %1047 = vmax.xlane.f32.xlu0 %v1046_v51 }
 0x464   : > { %v872_v52 = vsel %vm401_vm1, %v870_v43, -inf }
 0x465   : > { %v1028_v53 = vpop.f32.mrf.mxu3  ;;  %873 = vmax.xlane.f32.xlu1 %v872_v52 }
 0x466   : > { %v1040_v56 = vmul.f32 %v1037_v38, %v1028_v53 }
 0x467   : > { %v854_v57 = vpop.f32.mrf.mxu0 }
 0x468   : > { %v1045_v49 = vadd.f32 %v1309_v55, %v1040_v56  ;;  %v866_v44 = vmul.f32 %v863_v41, %v854_v57 }
 0x46a   : > { %v1049_v22 = vsel %vm401_vm1, %v1045_v49, -inf  ;;  %v871_v18 = vadd.f32 %v1304_v58, %v866_v44 }
 0x46b   : > { %1050 = vmax.xlane.f32.xlu2 %v1049_v22 }
 0x46c   : > { %v875_v50 = vsel %vm401_vm1, %v871_v18, -inf }
 0x473   : > { %876 = vmax.xlane.f32.xlu2 %v875_v50 }
 0x48b   : > { %727 = vrot.lane.b32.xlu2 %v1768_v1, %s1444_s21 }
 0x4c6   : > { %v700_v60 = vpop.xlane.xlu2 %699 }
 0x4c7   : > { %v704_v63 = vsub.f32 %v696_v30, %v700_v60 }
 0x4c9   : > { %v706_v4 = vmul.f32 1.442695, %v704_v63 }
 0x4ce   : > { %v703_v59 = vpop.xlane.xlu1 %702 }
 0x4cf   : > { %v705_v13 = vsub.f32 %v697_v36, %v703_v59 }
 0x4d1   : > { %v708_v19 = vmul.f32 1.442695, %v705_v13  ;;  %v1131_v13 = vld [vmem:[%s1893_s3 + $0x20] sm:$0xff] }
 0x4d6   : > { %v1048_v5 = vpop.xlane.xlu0 %1047 }
 0x4d7   : > { %v1052_v3 = vsub.f32 %v1044_v48, %v1048_v5 }
 0x4d8   : > { %v874_v61 = vpop.xlane.xlu1 %873 }
 0x4d9   : > { %v878_v62 = vsub.f32 %v870_v43, %v874_v61  ;;  %v1054_v7 = vmul.f32 1.442695, %v1052_v3 }
 0x4db   : > { %v880_v0 = vmul.f32 1.442695, %v878_v62 }
 0x4dd   : > { %1398 = vpow2.f32 %v880_v0 }
 0x4de   : > { %v1051_v2 = vpop.xlane.xlu2 %1050  ;;  %1400 = vpow2.f32 %v706_v4 }
 0x4df   : > { %1402 = vpow2.f32 %v1054_v7  ;;  %v1053_v9 = vsub.f32 %v1045_v49, %v1051_v2 }
 0x4e1   : > { %v1056_v25 = vmul.f32 1.442695, %v1053_v9  ;;  %v1128_v9 = vld [vmem:[%s1893_s3 + $0x8] sm:$0xff] }
 0x4e3   : > { %v1816_v6 = vpop.eup %1398 }
 0x4e4   : > { %v884_v15 = vsel %vm401_vm1, %v1816_v6, 0.0  ;;  %v1401_v12 = vpop.eup %1400 }
 0x4e5   : > { %885 = vadd.xlane.f32.xlu1 %v884_v15  ;;  %v710_v17 = vsel %vm401_vm1, %v1401_v12, 0.0  ;;  %v1403_v24 = vpop.eup %1402 }
 0x4e6   : > { %v877_v8 = vpop.xlane.xlu2 %876  ;;  %v1058_v21 = vsel %vm401_vm1, %v1403_v24, 0.0 }
 0x4e7   : > { %v879_v11 = vsub.f32 %v871_v18, %v877_v8  ;;  %v1133_v8 = vld [vmem:[%s1893_s3 + $0x30] sm:$0xff] }
 0x4e9   : > { %v882_v16 = vmul.f32 1.442695, %v879_v11  ;;  %v1134_v11 = vld [vmem:[%s1893_s3 + $0x38] sm:$0xff] }
 0x4eb   : > { %1404 = vpow2.f32 %v882_v16  ;;  %v1132_v16 = vld [vmem:[%s1893_s3 + $0x28] sm:$0xff] }
 0x4ec   : > { %1406 = vpow2.f32 %v708_v19  ;;  %v1138_v19 = vpack.c.bf16 %v1132_v16, %v1131_v13 }
 0x4ed   : > { %711 = vadd.xlane.f32.xlu1 %v710_v17  ;;  %1408 = vpow2.f32 %v1056_v25  ;;  %v1129_v17 = vld [vmem:[%s1893_s3 + $0x10] sm:$0xff] }
 0x4ee   : > { %v728_v14 = vpop.permute.xlu2 %727 }
 0x4ef   : > { %740 = vmatpush.bf16.msrb.mxu2 %v728_v14  ;;  %v1130_v14 = vld [vmem:[%s1893_s3 + $0x18] sm:$0xff] }
 0x4f1   : > { %v1405_v37 = vpop.eup %1404 }
 0x4f2   : > { %v887_v20 = vsel %vm401_vm1, %v1405_v37, 0.0  ;;  %v1407_v10 = vpop.eup %1406 }
 0x4f3   : > { %888 = vadd.xlane.f32.xlu0 %v887_v20  ;;  %v713_v26 = vsel %vm401_vm1, %v1407_v10, 0.0  ;;  %v1409_v27 = vpop.eup %1408 }
 0x4f4   : > { %v1061_v28 = vsel %vm401_vm1, %v1409_v27, 0.0 }
 0x4f5   : > { %1059 = vadd.xlane.f32.xlu1 %v1058_v21 }
 0x4fb   : > { %714 = vadd.xlane.f32.xlu0 %v713_v26 }
 0x503   : > { %1062 = vadd.xlane.f32.xlu0 %v1061_v28 }
 0x50e   : > { %1075 = vrot.lane.b32.xlu1 %v1768_v1, %s1441_s17 }
 0x517   : > { %901 = vrot.lane.b32.xlu0 %v1768_v1, %s1445_s22 }
 0x558   : > { %v886_v29 = vpop.xlane.xlu1 %885 }
 0x560   : > { %v712_v30 = vpop.xlane.xlu1 %711 }
 0x561   : > { %1410 = vrcp.f32 %v712_v30 }
 0x566   : > { %v889_v31 = vpop.xlane.xlu0 %888 }
 0x567   : > { %v1411_v34 = vpop.eup %1410 }
 0x568   : > { %v718_v35 = vmul.f32 %v1411_v34, %v1401_v12  ;;  %v1060_v38 = vpop.xlane.xlu1 %1059  ;;  %v1139_v12 = vpack.c.bf16 %v1134_v11, %v1133_v8 }
 0x56a   : > { %v720_v39 = vpack.c.bf16 %v718_v35, %v718_v35  ;;  %1151 = vmatpush.bf16.msra.mxu0 %v1139_v12  ;;  %v1356_v12 = vld [vmem:[%s1895_s5] ss:$0 sm:$0xff] }
 0x56c   : > { %v724_v42 = vunpack.c.l.b16 %v720_v39 }
 0x56e   : > { %v715_v32 = vpop.xlane.xlu0 %714  ;;  %1152 = vmatpush.bf16.msra.mxu0 %v1138_v19 }
 0x56f   : > { %1412 = vrcp.f32 %v715_v32 }
 0x570   : > { %1414 = vrcp.f32 %v889_v31 }
 0x575   : > { %v1413_v36 = vpop.eup %1412 }
 0x576   : > { %v719_v40 = vmul.f32 %v1413_v36, %v1407_v10  ;;  %v1063_v41 = vpop.xlane.xlu0 %1062  ;;  %v1415_v45 = vpop.eup %1414 }
 0x577   : > { %1416 = vrcp.f32 %v1063_v41  ;;  %v893_v43 = vmul.f32 %v1415_v45, %v1405_v37  ;;  %v1127_v37 = vld [vmem:[%s1893_s3] sm:$0xff] }
 0x578   : > { %1418 = vrcp.f32 %v886_v29  ;;  %v721_v54 = vpack.c.bf16 %v719_v40, %v719_v40  ;;  %v1136_v20 = vpack.c.bf16 %v1128_v9, %v1127_v37 }
 0x579   : > { %1420 = vrcp.f32 %v1060_v38  ;;  %v895_v57 = vpack.c.bf16 %v893_v43, %v893_v43 }
 0x57a   : > { %v725_v1 = vunpack.c.l.b16 %v721_v54 }
 0x57b   : > { %v899_v58 = vunpack.c.l.b16 %v895_v57 }
 0x57c   : > { %v726_v46 = vpack.c.b16 %v725_v1, %v724_v42 }
 0x57d   : > { %v1417_v47 = vpop.eup %1416 }
 0x57e   : > { %v1419_v48 = vpop.eup %1418  ;;  %1300 = vmatmul.msk.bf16.vlgmr.msrb.gmra.mxu2 %vm401_vm1, %v726_v46  ;;  %v1067_v52 = vmul.f32 %v1417_v47, %v1409_v27  ;;  %v1446_v46 = vmov 64.0  }
 0x57f   : > { %v1421_v51 = vpop.eup %1420  ;;  %v892_v55 = vmul.f32 %v1419_v48, %v1816_v6  ;;  %1422 = vrcp.f32 %v1446_v46 }
 0x580   : > { %v1076_v53 = vpop.permute.xlu1 %1075  ;;  %v1066_v56 = vmul.f32 %v1421_v51, %v1403_v24  ;;  %v1069_v49 = vpack.c.bf16 %v1067_v52, %v1067_v52  ;;  %v1137_v24 = vpack.c.bf16 %v1130_v14, %v1129_v17  ;;  %v1357_v17 = vld [vmem:[%s1896_s6] ss:$0 sm:$0xff] }
 0x581   : > { %1088 = vmatpush.bf16.msra.mxu2 %v1076_v53  ;;  %v894_v44 = vpack.c.bf16 %v892_v55, %v892_v55 }
 0x582   : > { %v1068_v22 = vpack.c.bf16 %v1066_v56, %v1066_v56  ;;  %v1073_v18 = vunpack.c.l.b16 %v1069_v49  ;;  %1153 = vmatpush.bf16.msra.mxu0 %v1137_v24 }
 0x583   : > { %v898_v50 = vunpack.c.l.b16 %v894_v44 }
 0x584   : > { %v1072_v60 = vunpack.c.l.b16 %v1068_v22 }
 0x585   : > { %v900_v61 = vpack.c.b16 %v899_v58, %v898_v50  ;;  %v1423_v47 = vpop.eup %1422 }
 0x586   : > { %v1074_v62 = vpack.c.b16 %v1073_v18, %v1072_v60  ;;  %1154 = vmatpush.bf16.msra.mxu0 %v1136_v20  ;;  %v1170_v48 = vmul.f32 64.0, %v1423_v47 }
 0x588   : > { %v1171_v51 = vsub.f32 1.0, %v1170_v48 }
 0x589   : > { %v902_v59 = vpop.permute.xlu0 %901 }
 0x58a   : > { %914 = vmatpush.bf16.msrb.mxu1 %v902_v59  ;;  %v1172_v43 = vmul.f32 %v1423_v47, %v1171_v51 }
 0x58c   : > { %v1173_v52 = vadd.f32 %v1423_v47, %v1172_v43 }
 0x58d   : > { %1305 = vmatmul.msk.bf16.vlgmr.msrb.gmra.mxu1 %vm401_vm1, %v900_v61 }
 0x58e   : > { %1310 = vmatmul.msk.bf16.vlgmr.msra.gmra.mxu2 %vm401_vm1, %v1074_v62 }
 0x601   : > { %v742_v63 = vpop.f32.mrf.mxu2 }
 0x609   : > { %v744_v2 = vpop.f32.mrf.mxu2 }
 0x60a   : > { %v916_v0 = vpop.f32.mrf.mxu1  ;;  %v1341_v6 = vpack.i.bf16 %v744_v2, %v742_v63 }
 0x611   : > { %v1090_v3 = vpop.f32.mrf.mxu2 }
 0x612   : > { %v918_v4 = vpop.f32.mrf.mxu1 }
 0x613   : > { %v1336_v5 = vpack.i.bf16 %v918_v4, %v916_v0 }
 0x615   : > { %1337 = vrot.lane.b32.xlu2 %v1336_v5, %s1443_s20 }
 0x619   : > { %v1092_v15 = vpop.f32.mrf.mxu2 }
 0x61a   : > { %v1346_v7 = vpack.i.bf16 %v1092_v15, %v1090_v3 }
 0x61d   : > { %1342 = vrot.lane.b32.xlu2 %v1341_v6, %s1440_s16  ;;  %s332_s16 = scalar_lea.vmem %s1899_s9, %s1314_s23 }
 0x625   : > { %1347 = vrot.lane.b32.xlu2 %v1346_v7, %s1439_s15 }
 0x66f   : > { %v1338_v21 = vpop.permute.xlu2 %1337 }
 0x670   : > { %v1340_v29 = vunpack.i.h.bf16 %v1338_v21  ;;  %v1339_v30 = vunpack.i.l.bf16 %v1338_v21  ;;  %v1428_v21 = vld [vmem:[%s1537_s11] sm:$0xff] }
 0x677   : > { %v1343_v25 = vpop.permute.xlu2 %1342 }
 0x678   : > { %v1345_v10 = vunpack.i.h.bf16 %v1343_v25  ;;  %v1344_v26 = vunpack.i.l.bf16 %v1343_v25 }
 0x67a   : > { %v1120_v27 = vsel %vm401_vm1, %v1788_v33, %v1345_v10  ;;  %v1119_v28 = vsel %vm401_vm1, %v1786_v23, %v1344_v26  ;;  %v1355_v33 = vld [vmem:[%s1894_s4] ss:$0 sm:$0xff]  ;;  %vm1174_vm1 = vweird.f32 %v1423_v47 }
 0x67b   : > { %v1122_v35 = vsel %vm1121_vm8, %v1119_v28, %v1339_v30  ;;  %v1123_v36 = vsel %vm1121_vm8, %v1120_v27, %v1340_v29  ;;  %v1175_v53 = vsel %vm1174_vm1, %v1423_v47, %v1173_v52  ;;  %v1429_v29 = vld [vmem:[%s1537_s11 + $0x8] sm:$0xff] }
 0x67f   : > { %v1348_v31 = vpop.permute.xlu2 %1347 }
 0x680   : > { %v1350_v32 = vunpack.i.h.bf16 %v1348_v31  ;;  %v1349_v34 = vunpack.i.l.bf16 %v1348_v31 }
 0x682   : > { %v1125_v39 = vsel %vm1124_vm9, %v1122_v35, %v1349_v34  ;;  %v1126_v38 = vsel %vm1124_vm9, %v1123_v36, %v1350_v32 }
 0x683   : > { %v1135_v40 = vpack.c.bf16 %v1126_v38, %v1125_v39 }
 0x685   : > { %1311 = vmatmul.msk.bf16.vlgmr.msra.gmra.mxu0 %vm367_vm0, %v1135_v40 }
 0x702   : > { %v1156_v41 = vpop.f32.mrf.mxu0 }
 0x703   : > { %v1157_v23 = vadd.f32 %v1355_v33, %v1156_v41 }
 0x705   : > { %v1163_v54 = vsel %vm367_vm0, %v1157_v23, 0.0 }
 0x706   : > { %1164 = vadd.xlane.f32.xlu0 %v1163_v54 }
 0x70a   : > { %v1158_v42 = vpop.f32.mrf.mxu0 }
 0x70b   : > { %v1159_v1 = vadd.f32 %v1355_v33, %v1158_v42 }
 0x70d   : > { %v1166_v45 = vsel %vm367_vm0, %v1159_v1, 0.0 }
 0x70e   : > { %1167 = vadd.xlane.f32.xlu1 %v1166_v45 }
 0x779   : > { %v1165_v55 = vpop.xlane.xlu0 %1164 }
 0x77a   : > { %v1176_v56 = vmul.f32 %v1175_v53, %v1165_v55 }
 0x77c   : > { %v1178_v57 = vsub.f32 %v1157_v23, %v1176_v56 }
 0x77e   : > { %v1180_v49 = vmul.f32 %v1178_v57, %v1178_v57 }
 0x780   : > { %v1182_v44 = vsel %vm367_vm0, %v1180_v49, 0.0 }
 0x781   : > { %v1168_v22 = vpop.xlane.xlu1 %1167  ;;  %1183 = vadd.xlane.f32.xlu2 %v1182_v44 }
 0x782   : > { %v1177_v58 = vmul.f32 %v1175_v53, %v1168_v22 }
 0x784   : > { %v1179_v18 = vsub.f32 %v1159_v1, %v1177_v58 }
 0x786   : > { %v1181_v50 = vmul.f32 %v1179_v18, %v1179_v18 }
 0x788   : > { %v1185_v59 = vsel %vm367_vm0, %v1181_v50, 0.0 }
 0x789   : > { %1186 = vadd.xlane.f32.xlu0 %v1185_v59 }
 0x7f4   : > { %v1184_v60 = vpop.xlane.xlu2 %1183 }
 0x7f5   : > { %v1188_v61 = vmul.f32 %v1184_v60, %v1175_v53 }
 0x7f7   : > { %v1190_v62 = vadd.f32 1e-05, %v1188_v61 }
 0x7f9   : > { %1424 = vrsqrt.f32 %v1190_v62  ;;  %vm1198_vm11 = vweird.f32 %v1190_v62 }
 0x7fc   : > { %v1187_v63 = vpop.xlane.xlu0 %1186 }
 0x7fd   : > { %v1189_v0 = vmul.f32 %v1187_v63, %v1175_v53 }
 0x7ff   : > { %v1425_v2 = vpop.eup %1424  ;;  %v1191_v4 = vadd.f32 1e-05, %v1189_v0 }
 0x800   : > { %v1193_v5 = vmul.f32 %v1425_v2, %v1190_v62  ;;  %vm1199_vm10 = vweird.f32 %v1425_v2 }
 0x801   : > { %1426 = vrsqrt.f32 %v1191_v4  ;;  %vm1200_vm12 = vmor %vm1198_vm11, %vm1199_vm10  ;;  %vm1208_vm14 = vweird.f32 %v1191_v4 }
 0x802   : > { %v1194_v3 = vmul.f32 %v1425_v2, %v1193_v5 }
 0x804   : > { %v1195_v6 = vmul.f32 0.5, %v1194_v3 }
 0x806   : > { %v1196_v15 = vsub.f32 1.5, %v1195_v6 }
 0x807   : > { %v1427_v7 = vpop.eup %1426 }
 0x808   : > { %v1197_v8 = vmul.f32 %v1425_v2, %v1196_v15  ;;  %v1203_v11 = vmul.f32 %v1427_v7, %v1191_v4  ;;  %vm1209_vm13 = vweird.f32 %v1427_v7 }
 0x809   : > { %vm1210_vm15 = vmor %vm1208_vm14, %vm1209_vm13 }
 0x80a   : > { %v1201_v13 = vsel %vm1200_vm12, %v1425_v2, %v1197_v8  ;;  %v1204_v16 = vmul.f32 %v1427_v7, %v1203_v11 }
 0x80b   : > { %v1212_v19 = vmul.f32 %v1201_v13, %v1178_v57 }
 0x80c   : > { %v1205_v14 = vmul.f32 0.5, %v1204_v16 }
 0x80d   : > { %v1217_v24 = vmul.f32 %v1356_v12, %v1212_v19 }
 0x80e   : > { %v1206_v37 = vsub.f32 1.5, %v1205_v14 }
 0x80f   : > { %v1222_v9 = vadd.f32 %v1357_v17, %v1217_v24 }
 0x810   : > { %v1207_v20 = vmul.f32 %v1427_v7, %v1206_v37 }
 0x811   : > { %v1224_v25 = vadd.f32 %v1428_v21, %v1222_v9 }
 0x812   : > { %v1211_v10 = vsel %vm1210_vm15, %v1427_v7, %v1207_v20 }
 0x813   : > { %1226 = vst.msk [vmem:[%s332_s16] sm:$0xff] %vm367_vm0, %v1224_v25  ;;  %v1213_v26 = vmul.f32 %v1211_v10, %v1179_v18 }
 0x815   : > { %v1218_v27 = vmul.f32 %v1356_v12, %v1213_v26 }
 0x817   : > { %v1223_v28 = vadd.f32 %v1357_v17, %v1218_v27 }
 0x819   : > { %v1225_v30 = vadd.f32 %v1429_v29, %v1223_v28 }
 0x81b   : > { %1227 = vst.msk [vmem:[%s332_s16 + $0x8] sm:$0xff] %vm367_vm0, %v1225_v30 }
 0x81c PF: > { %s19_s30 = sadd.s32 1, %s1436_s30  }
 0x81d   : > { %p16_p4 = scmp.ge.s32.totalorder %s19_s30, 4  }
 0x81f   :  { %18 = sbr.rel (!%p16_p4) target bundleno = 1 (0x1), region = 92 }

// kernel: forward.21
= control target key start
LH: loop header
LB: loop body
LE: loop exit
PB: predicated region body
PF: predicated region fallthrough
CT: control target
= control target key end

     0   :  { %vm28_vm0 = vcmask 523264   ;;  %s395_s0 = inlined_call_operand.vmem [shape: f32[2,16,64], index: 0, kind: input, shape index: {}]   ;;  %s396_s1 = inlined_call_operand.vmem [shape: f32[1,64], index: 1, kind: input, shape index: {}]   ;;  %s397_s2 = inlined_call_operand.vmem [shape: f32[1,64], index: 2, kind: input, shape index: {}]   ;;  %s398_s3 = inlined_call_operand.vmem [shape: f32[64,5], index: 3, kind: input, shape index: {}]   ;;  %s399_s4 = inlined_call_operand.vmem [shape: f32[1,5], index: 4, kind: input, shape index: {}]   ;;  %s400_s5 = inlined_call_operand.hbm [shape: f32[2,5], index: 5, kind: output, shape index: {}]  }
   0x1   :  { %v24_v0 = vld [vmem:[%s395_s0 + $0x10] sm:$0xff]  ;;  %v22_v1 = vld [vmem:[%s395_s0] sm:$0xff] }
   0x2   :  { %v35_v2 = vsel %vm28_vm0, %v24_v0, 0.0  ;;  %v29_v3 = vsel %vm28_vm0, %v22_v1, 0.0 }
   0x3   :  { %36 = vadd.xlane.f32.xlu1 %v35_v2  ;;  %30 = vadd.xlane.f32.xlu0 %v29_v3 }
   0x4   :  { %10 = vsyncpa [#allocation3], 0  ;;  %v25_v4 = vld [vmem:[%s395_s0 + $0x18] sm:$0xff]  ;;  %v23_v5 = vld [vmem:[%s395_s0 + $0x8] sm:$0xff]  ;;  %v275_v8 = vmov 64.0   ;;  %vm189_vm15 = vcmask 1041409  }
   0x5   :  { %v38_v6 = vsel %vm28_vm0, %v25_v4, 0.0  ;;  %v32_v7 = vsel %vm28_vm0, %v23_v5, 0.0  ;;  %233 = vrcp.f32 %v275_v8  ;;  %v173_v45 = vld [vmem:[%s398_s3 + $0x30] sm:$0xff]  ;;  %v174_v46 = vld [vmem:[%s398_s3 + $0x38] sm:$0xff]  ;;  %v171_v47 = vld [vmem:[%s398_s3 + $0x20] sm:$0xff]  ;;  %s277_s19 = smov [#allocation2]  }
   0x6   :  { %v180_v48 = vpack.c.bf16 %v174_v46, %v173_v45  ;;  %v172_v49 = vld [vmem:[%s398_s3 + $0x28] sm:$0xff]  ;;  %v169_v57 = vld [vmem:[%s398_s3 + $0x10] sm:$0xff]  ;;  %v170_v58 = vld [vmem:[%s398_s3 + $0x18] sm:$0xff]  ;;  %s215_s20 = sshll.u32 %s277_s19, 4  ;;  %s217_s23 = sshll.u32 %s400_s5, 4  ;;  %s216_s20 = int_to_ptr.vmem [resolvable:$true] %s215_s20  ;;  %s218_s23 = int_to_ptr.hbm [resolvable:$true] %s217_s23 }
   0x7   :  { %v179_v55 = vpack.c.bf16 %v172_v49, %v171_v47  ;;  %v178_v62 = vpack.c.bf16 %v170_v58, %v169_v57 }
   0x8   :  { %199 = vmatpush.bf16.msra.mxu0 %v180_v48 }
   0xb   :  { %39 = vadd.xlane.f32.xlu1 %v38_v6  ;;  %33 = vadd.xlane.f32.xlu0 %v32_v7  ;;  %v234_v9 = vpop.eup %233 }
   0xc   :  { %v42_v10 = vmul.f32 64.0, %v234_v9  ;;  %vm46_vm1 = vweird.f32 %v234_v9  ;;  %200 = vmatpush.bf16.msra.mxu0 %v179_v55 }
   0xe   :  { %v43_v11 = vsub.f32 1.0, %v42_v10 }
  0x10   :  { %v44_v12 = vmul.f32 %v234_v9, %v43_v11  ;;  %201 = vmatpush.bf16.msra.mxu0 %v178_v62 }
  0x12   :  { %v45_v13 = vadd.f32 %v234_v9, %v44_v12 }
  0x14   :  { %v47_v14 = vsel %vm46_vm1, %v234_v9, %v45_v13  ;;  %v232_v9 = vld [vmem:[%s399_s4] ss:$0 sm:$0xff]  ;;  %vm208_vm1 = vcmask 33792  }
  0x76   :  { %v37_v15 = vpop.xlane.xlu1 %36  ;;  %v31_v16 = vpop.xlane.xlu0 %30 }
  0x77   :  { %v50_v17 = vmul.f32 %v47_v14, %v37_v15  ;;  %v48_v18 = vmul.f32 %v47_v14, %v31_v16 }
  0x79   :  { %v324_v19 = vsub.f32 %v24_v0, %v50_v17  ;;  %v326_v20 = vsub.f32 %v22_v1, %v48_v18  ;;  %v167_v0 = vld [vmem:[%s398_s3] sm:$0xff]  ;;  %v168_v1 = vld [vmem:[%s398_s3 + $0x8] sm:$0xff]  ;;  %v276_v17 = vmov 16.0  }
  0x7a   :  { %v177_v8 = vpack.c.bf16 %v168_v1, %v167_v0  ;;  %v230_v18 = vld [vmem:[%s396_s1] ss:$0 sm:$0xff] }
  0x7b   :  { %v58_v21 = vmul.f32 %v324_v19, %v324_v19  ;;  %v56_v22 = vmul.f32 %v326_v20, %v326_v20 }
  0x7c   :  { %202 = vmatpush.bf16.msra.mxu0 %v177_v8 }
  0x7d   :  { %v66_v23 = vsel %vm28_vm0, %v58_v21, 0.0  ;;  %v60_v24 = vsel %vm28_vm0, %v56_v22, 0.0 }
  0x7e   :  { %v40_v25 = vpop.xlane.xlu1 %39  ;;  %67 = vadd.xlane.f32.xlu0 %v66_v23  ;;  %61 = vadd.xlane.f32.xlu2 %v60_v24  ;;  %v34_v26 = vpop.xlane.xlu0 %33 }
  0x7f   :  { %v51_v27 = vmul.f32 %v47_v14, %v40_v25  ;;  %v49_v28 = vmul.f32 %v47_v14, %v34_v26 }
  0x81   :  { %v334_v29 = vsub.f32 %v25_v4, %v51_v27  ;;  %v336_v30 = vsub.f32 %v23_v5, %v49_v28  ;;  %v231_v27 = vld [vmem:[%s397_s2] ss:$0 sm:$0xff] }
  0x83   :  { %v59_v31 = vmul.f32 %v334_v29, %v334_v29  ;;  %v57_v32 = vmul.f32 %v336_v30, %v336_v30 }
  0x85   :  { %v69_v33 = vsel %vm28_vm0, %v59_v31, 0.0  ;;  %v63_v34 = vsel %vm28_vm0, %v57_v32, 0.0 }
  0x86   :  { %70 = vadd.xlane.f32.xlu1 %v69_v33  ;;  %64 = vadd.xlane.f32.xlu2 %v63_v34 }
  0xf1   :  { %v62_v35 = vpop.xlane.xlu2 %61  ;;  %v68_v36 = vpop.xlane.xlu0 %67 }
  0xf2   :  { %v72_v37 = vmul.f32 %v62_v35, %v47_v14  ;;  %v74_v38 = vmul.f32 %v68_v36, %v47_v14 }
  0xf4   :  { %v76_v39 = vadd.f32 1e-05, %v72_v37  ;;  %v78_v40 = vadd.f32 1e-05, %v74_v38 }
  0xf6   :  { %235 = vrsqrt.f32 %v76_v39  ;;  %vm86_vm4 = vweird.f32 %v76_v39  ;;  %vm106_vm6 = vweird.f32 %v78_v40 }
  0xf7   :  { %237 = vrsqrt.f32 %v78_v40 }
  0xf9   :  { %v71_v41 = vpop.xlane.xlu1 %70  ;;  %v65_v42 = vpop.xlane.xlu2 %64 }
  0xfa   :  { %v75_v43 = vmul.f32 %v71_v41, %v47_v14  ;;  %v73_v44 = vmul.f32 %v65_v42, %v47_v14 }
  0xfc   :  { %v236_v50 = vpop.eup %235  ;;  %v79_v51 = vadd.f32 1e-05, %v75_v43  ;;  %v77_v52 = vadd.f32 1e-05, %v73_v44 }
  0xfd   :  { %v238_v53 = vpop.eup %237  ;;  %v81_v54 = vmul.f32 %v236_v50, %v76_v39  ;;  %vm87_vm2 = vweird.f32 %v236_v50 }
  0xfe   :  { %v101_v56 = vmul.f32 %v238_v53, %v78_v40  ;;  %239 = vrsqrt.f32 %v79_v51  ;;  %vm107_vm3 = vweird.f32 %v238_v53  ;;  %vm368_vm5 = vmor %vm86_vm4, %vm87_vm2  ;;  %vm116_vm10 = vweird.f32 %v79_v51 }
  0xff   :  { %v82_v59 = vmul.f32 %v236_v50, %v81_v54  ;;  %241 = vrsqrt.f32 %v77_v52  ;;  %vm108_vm7 = vmor %vm106_vm6, %vm107_vm3  ;;  %vm96_vm12 = vweird.f32 %v77_v52 }
 0x100   :  { %v102_v60 = vmul.f32 %v238_v53, %v101_v56  ;;  %243 = vrcp.f32 %v276_v17 }
 0x101   :  { %v83_v61 = vmul.f32 0.5, %v82_v59 }
 0x102   :  { %v103_v63 = vmul.f32 0.5, %v102_v60 }
 0x103   :  { %v84_v2 = vsub.f32 1.5, %v83_v61 }
 0x104   :  { %v240_v3 = vpop.eup %239  ;;  %v104_v4 = vsub.f32 1.5, %v103_v63 }
 0x105   :  { %v242_v5 = vpop.eup %241  ;;  %v85_v6 = vmul.f32 %v236_v50, %v84_v2  ;;  %v111_v7 = vmul.f32 %v240_v3, %v79_v51  ;;  %vm117_vm8 = vweird.f32 %v240_v3 }
 0x106   :  { %v105_v10 = vmul.f32 %v238_v53, %v104_v4  ;;  %v91_v11 = vmul.f32 %v242_v5, %v77_v52  ;;  %vm97_vm9 = vweird.f32 %v242_v5  ;;  %vm118_vm11 = vmor %vm116_vm10, %vm117_vm8  ;;  %v244_v32 = vpop.eup %243 }
 0x107   :  { %v112_v12 = vmul.f32 %v240_v3, %v111_v7  ;;  %v89_v13 = vsel %vm368_vm5, %v236_v50, %v85_v6  ;;  %vm98_vm13 = vmor %vm96_vm12, %vm97_vm9  ;;  %v157_v38 = vmul.f32 16.0, %v244_v32  ;;  %vm161_vm14 = vweird.f32 %v244_v32 }
 0x108   :  { %v109_v14 = vsel %vm108_vm7, %v238_v53, %v105_v10  ;;  %v92_v15 = vmul.f32 %v242_v5, %v91_v11  ;;  %v120_v23 = vmul.f32 %v89_v13, %v326_v20 }
 0x109   :  { %v113_v16 = vmul.f32 0.5, %v112_v12  ;;  %v122_v21 = vmul.f32 %v109_v14, %v324_v19  ;;  %v158_v45 = vsub.f32 1.0, %v157_v38 }
 0x10a   :  { %v93_v22 = vmul.f32 0.5, %v92_v15  ;;  %v127_v33 = vmul.f32 %v230_v18, %v120_v23 }
 0x10b   :  { %v114_v24 = vsub.f32 1.5, %v113_v16  ;;  %v129_v28 = vmul.f32 %v230_v18, %v122_v21  ;;  %v159_v50 = vmul.f32 %v244_v32, %v158_v45 }
 0x10c   :  { %v94_v25 = vsub.f32 1.5, %v93_v22  ;;  %v134_v39 = vadd.f32 %v231_v27, %v127_v33 }
 0x10d   :  { %v115_v26 = vmul.f32 %v240_v3, %v114_v24  ;;  %v136_v36 = vadd.f32 %v231_v27, %v129_v28  ;;  %v160_v55 = vadd.f32 %v244_v32, %v159_v50 }
 0x10e   :  { %v95_v31 = vmul.f32 %v242_v5, %v94_v25  ;;  %v138_v46 = vsel %vm28_vm0, %v134_v39, 0.0 }
 0x10f   :  { %v119_v19 = vsel %vm118_vm11, %v240_v3, %v115_v26  ;;  %v147_v43 = vsel %vm28_vm0, %v136_v36, 0.0  ;;  %v162_v60 = vsel %vm161_vm14, %v244_v32, %v160_v55 }
 0x110   :  { %v123_v20 = vmul.f32 %v119_v19, %v334_v29  ;;  %v99_v34 = vsel %vm98_vm13, %v242_v5, %v95_v31 }
 0x111   :  { %v121_v35 = vmul.f32 %v99_v34, %v336_v30 }
 0x112   :  { %v130_v37 = vmul.f32 %v230_v18, %v123_v20 }
 0x113   :  { %v128_v40 = vmul.f32 %v230_v18, %v121_v35 }
 0x114   :  { %v137_v41 = vadd.f32 %v231_v27, %v130_v37 }
 0x115   :  { %v135_v42 = vadd.f32 %v231_v27, %v128_v40 }
 0x116   :  { %v148_v44 = vsel %vm28_vm0, %v137_v41, 0.0 }
 0x117   :  { %v149_v47 = vadd.f32 %v148_v44, %v147_v43  ;;  %v139_v29 = vsel %vm28_vm0, %v135_v42, 0.0 }
 0x118   :  { %v140_v48 = vadd.f32 %v139_v29, %v138_v46 }
 0x119   :  { %v150_v49 = vrot.slane %v149_v47, 4 }
 0x11a   :  { %v141_v30 = vrot.slane %v140_v48, 4 }
 0x11b   :  { %v151_v51 = vadd.f32 %v150_v49, %v149_v47 }
 0x11c   :  { %v142_v52 = vadd.f32 %v141_v30, %v140_v48 }
 0x11d   :  { %v152_v53 = vrot.slane %v151_v51, 2 }
 0x11e   :  { %v143_v54 = vrot.slane %v142_v52, 2 }
 0x11f   :  { %v153_v56 = vadd.f32 %v152_v53, %v151_v51 }
 0x120   :  { %v144_v57 = vadd.f32 %v143_v54, %v142_v52 }
 0x121   :  { %v154_v58 = vrot.slane %v153_v56, 1 }
 0x122   :  { %v145_v59 = vrot.slane %v144_v57, 1 }
 0x123   :  { %v155_v61 = vadd.f32 %v154_v58, %v153_v56 }
 0x124   :  { %v146_v62 = vadd.f32 %v145_v59, %v144_v57 }
 0x125   :  { %v164_v63 = vmul.f32 %v162_v60, %v155_v61 }
 0x126   :  { %v163_v0 = vmul.f32 %v162_v60, %v146_v62 }
 0x127   :  { %245 = vtanh.f32 %v164_v63 }
 0x128   :  { %247 = vtanh.f32 %v163_v0 }
 0x12d   :  { %v246_v1 = vpop.eup %245 }
 0x12e   :  { %v248_v2 = vpop.eup %247  ;;  %v176_v3 = vpack.c.bf16 %v246_v1, %v246_v1 }
 0x12f   :  { %v175_v4 = vpack.c.bf16 %v248_v2, %v248_v2 }
 0x130   :  { %v188_v5 = vunpack.c.l.b16 %v176_v3 }
 0x131   :  { %v187_v6 = vunpack.c.l.b16 %v175_v4 }
 0x133   :  { %v190_v7 = vsel %vm189_vm15, %v188_v5, %v187_v6 }
 0x134   :  { %v191_v8 = vpack.c.b16 %v190_v7, %v190_v7 }
 0x136   :  { %226 = vmatmul.msk.bf16.vlgmr.msra.gmra.mxu0 %vm28_vm0, %v191_v8 }
 0x1b3   :  { %v204_v10 = vpop.f32.mrf.mxu0 }
 0x1b4   :  { %v205_v11 = vadd.f32 %v232_v9, %v204_v10 }
 0x1b6   :  { %209 = vst.msk [vmem:[#allocation2] sm:$0x3] %vm208_vm1, %v205_v11 }
 0x1b7   :  { %220 = dma.vmem_to_hbm [thread:$0]  %s216_s20, 32, %s218_s23, [#allocation3]  }
 0x1bb   :  { %v206_v12 = vpop.f32.mrf.mxu0 }
 0x1bc   :  { %273 = dma.done.wait [#allocation3], 32  }
 0x1bd   :  { %274 = vsyncadd [#allocation3], 4294967264 }
 0x1be   :  { %225 = vsyncpa [#allocation3], 1 }

</bundles_post_ra>
